<compile_context>
chip_gen: v6e
topology: v6e:2x2x1
jax: 0.10.0
libtpu: 0.0.40
codegen_flags: <defaults>
</compile_context>

<pallas_src>
import functools

import jax
import jax.numpy as jnp
from jax.experimental import pallas as pl
from jax.experimental.pallas import tpu as pltpu


# -----------------------------------------------------------------------------
# Model constants.
# -----------------------------------------------------------------------------
C_RES = 64                    # residual channels of the diffwave stand-in
LIP_FEAT = 512                # lipreading feature channels
ID_FEAT = 128                 # facial identity feature channels (fc_out=128)
COND_FEAT = ID_FEAT + LIP_FEAT  # 640, matches cond_feat_size in build_diffwave_model
MEL = 80
MEL_PAD = 128                 # mel channels padded to a lane-dense 128
STEP_EMB = 128
LIP_K = 88 * 88               # 7744
LIP_K_PAD = 7808              # 61 * 128 — padded ONCE at init


# -----------------------------------------------------------------------------
# Generic tiled matmul + bias + activation kernel.
# Grid = (N tiles [parallel], K tiles [arbitrary reduction]); bf16 MXU, f32 accumulate.
# -----------------------------------------------------------------------------
def _linear_kernel(x_ref, w_ref, b_ref, o_ref, acc_ref, *, act, num_k):
    @pl.when(pl.program_id(1) == 0)
    def _():
        acc_ref[...] = jnp.zeros_like(acc_ref)

    acc_ref[...] += jnp.dot(
        x_ref[...].astype(jnp.bfloat16),
        w_ref[...].astype(jnp.bfloat16),
        preferred_element_type=jnp.float32,
    )

    @pl.when(pl.program_id(1) == num_k - 1)
    def _():
        y = acc_ref[...] + b_ref[...]
        if act == "relu":
            y = jnp.maximum(y, 0.0)
        elif act == "swish":
            y = y * jax.nn.sigmoid(y)
        o_ref[...] = y.astype(o_ref.dtype)


def linear_pallas(x, w, b, act="none", tk=None, tn=None):
    """y = act(x @ w + b); N tiled on a parallel grid axis, K reduction trailing."""
    M, K = x.shape
    K2, N = w.shape
    assert K == K2
    if tk is None:
        tk = K
    if tn is None:
        tn = N
    assert K % tk == 0 and N % tn == 0
    num_k = K // tk
    num_n = N // tn
    b2 = b.reshape(1, N)

    kernel = functools.partial(_linear_kernel, act=act, num_k=num_k)
    return pl.pallas_call(
        kernel,
        out_shape=jax.ShapeDtypeStruct((M, N), jnp.float32),
        grid_spec=pltpu.PrefetchScalarGridSpec(
            num_scalar_prefetch=0,
            grid=(num_n, num_k),
            in_specs=[
                pl.BlockSpec((M, tk), lambda n, k: (0, k)),
                pl.BlockSpec((tk, tn), lambda n, k: (k, n)),
                pl.BlockSpec((1, tn), lambda n, k: (0, n)),
            ],
            out_specs=pl.BlockSpec((M, tn), lambda n, k: (0, n)),
            scratch_shapes=[pltpu.VMEM((M, tn), jnp.float32)],
        ),
        compiler_params=pltpu.CompilerParams(
            dimension_semantics=("parallel", "arbitrary")
        ),
    )(x, w, b2)


# -----------------------------------------------------------------------------
# Fused diffusion-step-embedding MLP (two FCs + swish) in one tiny kernel.
# -----------------------------------------------------------------------------
def _step_emb_kernel(e_ref, w1_ref, b1_ref, w2_ref, b2_ref, o_ref):
    e = e_ref[...].astype(jnp.bfloat16)
    h = jnp.dot(e, w1_ref[...], preferred_element_type=jnp.float32) + b1_ref[...]
    h = h * jax.nn.sigmoid(h)
    h = jnp.dot(h.astype(jnp.bfloat16), w2_ref[...],
                preferred_element_type=jnp.float32) + b2_ref[...]
    h = h * jax.nn.sigmoid(h)
    o_ref[...] = h.astype(o_ref.dtype)


def step_emb_pallas(emb, w1, b1, w2, b2):
    B, E = emb.shape
    C = w1.shape[-1]
    full = lambda i: (0, 0)
    return pl.pallas_call(
        _step_emb_kernel,
        out_shape=jax.ShapeDtypeStruct((B, C), jnp.float32),
        grid_spec=pltpu.PrefetchScalarGridSpec(
            num_scalar_prefetch=0,
            grid=(1,),
            in_specs=[
                pl.BlockSpec((B, E), full),
                pl.BlockSpec((E, C), full), pl.BlockSpec((1, C), full),
                pl.BlockSpec((C, C), full), pl.BlockSpec((1, C), full),
            ],
            out_specs=pl.BlockSpec((B, C), full),
        ),
        compiler_params=pltpu.CompilerParams(dimension_semantics=("arbitrary",)),
    )(emb, w1, b1.reshape(1, C), w2, b2.reshape(1, C))


# -----------------------------------------------------------------------------
# Fused DiffWave-style gated residual block.
#   input 1x1 conv (mel padded to 128) -> + step emb -> fused tanh|sigmoid gate with the
#   visual-conditioning matmul evaluated at T resolution and repeated 4x in-kernel
#   (repeat(x) @ W == repeat(x @ W)) -> skip proj -> output 1x1 conv back to 128 (padded mel).
# -----------------------------------------------------------------------------
def _diffwave_block_kernel(x_ref, cond_ref, demb_ref,
                           w_in_ref, b_in_ref,
                           w_gres_ref, w_gcond_ref, b_g_ref,
                           w_sk_ref, b_sk_ref,
                           w_out_ref, b_out_ref,
                           o_ref):
    x = x_ref[0]                         # (tl, 128)  padded mel, f32
    cond = cond_ref[0]                   # (tl//4, 640) visual cond at T resolution
    demb = demb_ref[0]                   # (1, C)

    c = w_in_ref.shape[-1]               # residual channels
    tl = x.shape[0]
    tq = cond.shape[0]
    rep = tl // tq                       # = 4 (mel frames per video frame)

    # input 1x1 conv + relu, then add diffusion-step embedding (broadcast over time)
    h = jnp.dot(x.astype(jnp.bfloat16), w_in_ref[...],
                preferred_element_type=jnp.float32) + b_in_ref[...]
    h = jnp.maximum(h, 0.0) + demb       # (tl, C)

    # fused gated unit: one N=128 matmul per operand (tanh|sigmoid branches concatenated)
    z = jnp.dot(h.astype(jnp.bfloat16), w_gres_ref[...],
                preferred_element_type=jnp.float32)                   # (tl, 2C)
    zc = jnp.dot(cond.astype(jnp.bfloat16), w_gcond_ref[...],
                 preferred_element_type=jnp.float32)                  # (tq, 2C)
    # nearest-neighbour time upsample of the cond branch, done on the small (tq, 2C) result
    zc = jnp.broadcast_to(zc[:, None, :], (tq, rep, 2 * c)).reshape(tl, 2 * c)
    z = z + zc + b_g_ref[...]

    gated = jnp.tanh(z[:, :c]) * jax.nn.sigmoid(z[:, c:])             # (tl, C)

    # skip projection + relu, output 1x1 conv back to (padded) mel bins
    s = jnp.maximum(
        jnp.dot(gated.astype(jnp.bfloat16), w_sk_ref[...],
                preferred_element_type=jnp.float32) + b_sk_ref[...],
        0.0,
    )
    y = jnp.dot(s.astype(jnp.bfloat16), w_out_ref[...],
                preferred_element_type=jnp.float32) + b_out_ref[...]  # (tl, 128)
    o_ref[0] = y.astype(o_ref.dtype)


def diffwave_block_pallas(x_ld, cond_t_ld, demb, p, tl=None):
    """x_ld: (B, L, 128), cond_t_ld: (B, T=L//4, 640), demb: (B, 1, C) -> (B, L, 128)."""
    B, L, nmp = x_ld.shape
    _, T, nc = cond_t_ld.shape
    C = demb.shape[-1]
    assert L == 4 * T
    if tl is None:
        tl = min(L, 512)                 # larger time tiles amortize per-step overhead
    assert L % tl == 0 and tl % 4 == 0
    tq = tl // 4
    full = lambda b, l: (0, 0)

    return pl.pallas_call(
        _diffwave_block_kernel,
        out_shape=jax.ShapeDtypeStruct((B, L, nmp), jnp.float32),
        grid_spec=pltpu.PrefetchScalarGridSpec(
            num_scalar_prefetch=0,
            grid=(B, L // tl),
            in_specs=[
                pl.BlockSpec((1, tl, nmp), lambda b, l: (b, l, 0)),
                pl.BlockSpec((1, tq, nc), lambda b, l: (b, l, 0)),
                pl.BlockSpec((1, 1, C), lambda b, l: (b, 0, 0)),
                pl.BlockSpec((nmp, C), full), pl.BlockSpec((1, C), full),
                pl.BlockSpec((C, 2 * C), full), pl.BlockSpec((nc, 2 * C), full),
                pl.BlockSpec((1, 2 * C), full),
                pl.BlockSpec((C, C), full), pl.BlockSpec((1, C), full),
                pl.BlockSpec((C, nmp), full), pl.BlockSpec((1, nmp), full),
            ],
            out_specs=pl.BlockSpec((1, tl, nmp), lambda b, l: (b, l, 0)),
        ),
        compiler_params=pltpu.CompilerParams(
            dimension_semantics=("parallel", "parallel")
        ),
    )(
        x_ld, cond_t_ld, demb,
        p["w_in"], p["b_in"].reshape(1, C),
        p["w_gate_res"], p["w_gate_cond"], p["b_gate"].reshape(1, 2 * C),
        p["w_skip"], p["b_skip"].reshape(1, C),
        p["w_out"], p["b_out"].reshape(1, nmp),
    )


# -----------------------------------------------------------------------------
# Parameter init (deterministic, synthetic).  Weights stored bf16, padded / fused at init.
# -----------------------------------------------------------------------------
def init_params(key):
    def w(k, shape, scale=0.02):
        return (scale * jax.random.normal(k, shape)).astype(jnp.float32)

    ks = jax.random.split(key, 16)
    bf16 = jnp.bfloat16

    # natural-shape synthetic weights
    w_lip = w(ks[0], (LIP_K, LIP_FEAT))
    w_face = w(ks[1], (3 * 14 * 14, ID_FEAT))
    w_t1 = w(ks[2], (STEP_EMB, C_RES))
    w_t2 = w(ks[3], (C_RES, C_RES))
    w_in = w(ks[4], (MEL, C_RES))
    w_res_t = w(ks[5], (C_RES, C_RES))
    w_cond_t = w(ks[6], (COND_FEAT, C_RES))
    w_res_s = w(ks[7], (C_RES, C_RES))
    w_cond_s = w(ks[8], (COND_FEAT, C_RES))
    w_skip = w(ks[9], (C_RES, C_RES))
    w_out = w(ks[10], (C_RES, MEL))

    p = {
        # lipreading stand-in: K padded once to 7808 = 61*128, bf16 weight
        "w_lip": jnp.pad(w_lip, ((0, LIP_K_PAD - LIP_K), (0, 0))).astype(bf16),
        "b_lip": jnp.zeros((LIP_FEAT,), jnp.float32),
        # facial stand-in: 16x16-pooled 3x14x14=588 -> 128
        "w_face": w_face.astype(bf16),
        "b_face": jnp.zeros((ID_FEAT,), jnp.float32),
        # diffusion step embedding FCs
        "w_t1": w_t1.astype(bf16), "b_t1": jnp.zeros((C_RES,), jnp.float32),
        "w_t2": w_t2.astype(bf16), "b_t2": jnp.zeros((C_RES,), jnp.float32),
        # diffwave gated residual block: mel padded 80->128, tanh|sigmoid branches fused
        "w_in": jnp.pad(w_in, ((0, MEL_PAD - MEL), (0, 0))).astype(bf16),        # (128, 64)
        "b_in": jnp.zeros((C_RES,), jnp.float32),
        "w_gate_res": jnp.concatenate([w_res_t, w_res_s], axis=1).astype(bf16),  # (64, 128)
        "w_gate_cond": jnp.concatenate([w_cond_t, w_cond_s], axis=1).astype(bf16),  # (640, 128)
        "b_gate": jnp.zeros((2 * C_RES,), jnp.float32),
        "w_skip": w_skip.astype(bf16),
        "b_skip": jnp.zeros((C_RES,), jnp.float32),
        "w_out": jnp.pad(w_out, ((0, 0), (0, MEL_PAD - MEL))).astype(bf16),      # (64, 128)
        "b_out": jnp.zeros((MEL_PAD,), jnp.float32),
        # null conditioning buffers (register_buffer in the torch module)
        "mouthroi_null": jax.random.normal(ks[11], (1, 1, 1, 88, 88), jnp.float32),
        "face_null": jax.random.normal(ks[12], (1, 3, 224, 224), jnp.float32),
    }
    return p


# -----------------------------------------------------------------------------
# Sub-network stand-ins built on the Pallas kernels.
# -----------------------------------------------------------------------------
def net_lipreading(params, mouthroi):
    """(B,1,T,88,88) -> (B, 512, 1, T)."""
    B, _, T, H, W = mouthroi.shape
    x = mouthroi.reshape(B * T, H * W)                               # per-frame flatten (glue)
    x = jnp.pad(x, ((0, 0), (0, LIP_K_PAD - H * W)))                 # small activation pad only
    # weight already padded/bf16 at init; N tiled into 128-wide parallel blocks
    feat = linear_pallas(x, params["w_lip"], params["b_lip"], act="relu", tn=128)
    feat = feat.reshape(B, T, LIP_FEAT)
    return jnp.transpose(feat, (0, 2, 1))[:, :, None, :]             # (B, 512, 1, T)


def net_facial(params, face):
    """(B,3,224,224) -> (B, 128)."""
    B = face.shape[0]
    # 16x16 average pooling (glue reduction), then FC in the Pallas kernel.
    pooled = face.reshape(B, 3, 14, 16, 14, 16).mean(axis=(3, 5))    # (B,3,14,14)
    flat = pooled.reshape(B, 3 * 14 * 14)
    return linear_pallas(flat, params["w_face"], params["b_face"], act="relu")


def diffusion_step_embedding(params, diffusion_steps):
    """(B,1) -> (B, 1, C_RES)."""
    half = STEP_EMB // 2
    j = jnp.arange(half, dtype=jnp.float32)
    freqs = 10.0 ** (j * 4.0 / (half - 1))
    args = diffusion_steps.astype(jnp.float32) * freqs[None, :]       # (B, 64)
    emb = jnp.concatenate([jnp.sin(args), jnp.cos(args)], axis=-1)    # (B, 128)
    emb = step_emb_pallas(emb, params["w_t1"], params["b_t1"],
                          params["w_t2"], params["b_t2"])             # fused two-FC kernel
    return emb[:, None, :]                                            # (B, 1, C)


def net_diffwave(params, melspec, diffusion_steps, cond):
    """melspec (B,80,L), diffusion_steps (B,1), cond (B,640,T) -> (B,80,L)."""
    B, nm, L = melspec.shape
    T = cond.shape[-1]
    assert L == 4 * T
    demb = diffusion_step_embedding(params, diffusion_steps)
    # TODO(synk): real DiffWave upsamples cond with ConvTranspose2d; nearest-neighbour repeat
    # is used here and is folded into the kernel (no (B,640,L) tensor is materialized).
    cond_t_ld = jnp.transpose(cond, (0, 2, 1))                        # (B, T, 640)
    x_ld = jnp.transpose(melspec, (0, 2, 1))                          # (B, L, 80)
    x_ld = jnp.pad(x_ld, ((0, 0), (0, 0), (0, MEL_PAD - nm)))         # lane-dense 128
    out_ld = diffwave_block_pallas(x_ld, cond_t_ld, demb, params)     # (B, L, 128)
    out_ld = out_ld[:, :, :nm]                                        # drop mel padding
    return jnp.transpose(out_ld, (0, 2, 1))                           # (B, 80, L)


# -----------------------------------------------------------------------------
# VTTS_Model.forward
# -----------------------------------------------------------------------------
def vtts_forward(params, melspec, mouthroi, face_image, diffusion_steps,
                 cond_drop_prob, rng_key):
    batch = melspec.shape[0]
    if cond_drop_prob > 0:
        # prob_mask_like((B,1,1,1,1), 1 - p): keep-mask, broadcast select vs null buffers.
        if cond_drop_prob >= 1.0:
            keep = jnp.zeros((batch, 1, 1, 1, 1), dtype=bool)
        else:
            keep = jax.random.uniform(rng_key, (batch, 1, 1, 1, 1)) < (1.0 - cond_drop_prob)
        _mouthroi = jnp.where(keep, mouthroi, params["mouthroi_null"])
        _face_image = jnp.where(jnp.squeeze(keep, axis=1), face_image, params["face_null"])
    else:
        _mouthroi = mouthroi
        _face_image = face_image

    lipreading_feature = net_lipreading(params, _mouthroi)           # (B,512,1,T)
    identity_feature = net_facial(params, _face_image)               # (B,128)
    identity_feature = identity_feature[:, :, None, None]            # (B,128,1,1)
    T = lipreading_feature.shape[-1]
    identity_feature = jnp.broadcast_to(                             # .repeat(1,1,1,T)
        identity_feature, (batch, ID_FEAT, 1, T))
    visual_feature = jnp.concatenate(
        (identity_feature, lipreading_feature), axis=1)              # (B,640,1,T)
    visual_feature = jnp.squeeze(visual_feature, axis=2)             # (B,640,T)
    output = net_diffwave(params, melspec, diffusion_steps, cond=visual_feature)
    return output


# -----------------------------------------------------------------------------
if __name__ == "__main__":
    key = jax.random.PRNGKey(0)
    k_param, k_mel, k_mouth, k_face, k_mask = jax.random.split(key, 5)

    params = init_params(k_param)

    B, T = 2, 8
    L = 4 * T                                      # mel frames = 4 * video frames
    melspec = jax.random.normal(k_mel, (B, MEL, L), jnp.float32)
    mouthroi = jax.random.normal(k_mouth, (B, 1, T, 88, 88), jnp.float32)
    face_image = jax.random.normal(k_face, (B, 3, 224, 224), jnp.float32)
    diffusion_steps = jnp.full((B, 1), 5.0, jnp.float32)

    fwd = jax.jit(vtts_forward, static_argnames=("cond_drop_prob",))
    out = fwd(params, melspec, mouthroi, face_image, diffusion_steps,
              cond_drop_prob=0.25, rng_key=k_mask)
    out = jax.block_until_ready(out)
    assert out.shape == (B, MEL, L), out.shape
    print("KERNEL_OK")
</pallas_src>

<mosaic_0001>
module attributes {stable_mosaic.version = 11 : i64} {
  func.func @_linear_kernel(%arg0: i32, %arg1: i32, %arg2: memref<2x588xf32, #tpu.memory_space<vmem>>, %arg3: memref<588x128xbf16, #tpu.memory_space<vmem>>, %arg4: memref<1x128xf32, #tpu.memory_space<vmem>>, %arg5: memref<2x128xf32, #tpu.memory_space<vmem>>, %arg6: memref<2x128xf32, #tpu.memory_space<vmem>>) attributes {dimension_semantics = [#tpu.dimension_semantics<parallel>, #tpu.dimension_semantics<arbitrary>], iteration_bounds = array<i64: 1, 1>, scalar_prefetch = 0 : i64, scratch_operands = 1 : i64, tpu.core_type = #tpu.core_type<tc>, window_params = [{transform_indices = @transform_0, window_bounds = array<i64: 2, 588>}, {transform_indices = @transform_1, window_bounds = array<i64: 588, 128>}, {transform_indices = @transform_2, window_bounds = array<i64: 1, 128>}, {transform_indices = @transform_3, window_bounds = array<i64: 2, 128>}]} {
    %c0_i32 = arith.constant 0 : i32
    %0 = arith.cmpi eq, %arg1, %c0_i32 : i32
    %1 = arith.extui %0 : i1 to i32
    %c0_i32_0 = arith.constant 0 : i32
    %2 = arith.cmpi ne, %1, %c0_i32_0 : i32
    scf.if %2 {
      %cst_10 = arith.constant 0.000000e+00 : f32
      %13 = vector.broadcast %cst_10 : f32 to vector<2x128xf32>
      %c0_11 = arith.constant 0 : index
      %c0_12 = arith.constant 0 : index
      %14 = vector.load %arg6[%c0_11, %c0_12] : memref<2x128xf32, #tpu.memory_space<vmem>>, vector<2x128xf32>
      tpu.vector_store %arg6[%c0_11, %c0_12], %13 {strides = array<i32>} : memref<2x128xf32, #tpu.memory_space<vmem>>, vector<2x128xf32>,
    } else {
    }
    %c0 = arith.constant 0 : index
    %c0_1 = arith.constant 0 : index
    %3 = vector.load %arg6[%c0, %c0_1] : memref<2x128xf32, #tpu.memory_space<vmem>>, vector<2x128xf32>
    %c0_2 = arith.constant 0 : index
    %c0_3 = arith.constant 0 : index
    %4 = vector.load %arg2[%c0_2, %c0_3] : memref<2x588xf32, #tpu.memory_space<vmem>>, vector<2x588xf32>
    %5 = arith.truncf %4 : vector<2x588xf32> to vector<2x588xbf16>
    %c0_4 = arith.constant 0 : index
    %c0_5 = arith.constant 0 : index
    %6 = vector.load %arg3[%c0_4, %c0_5] : memref<588x128xbf16, #tpu.memory_space<vmem>>, vector<588x128xbf16>
    %cst = arith.constant dense<0.000000e+00> : vector<2x128xf32>
    %7 = tpu.matmul %5, %6, %cst {dimension_numbers = #tpu.dot_dimension_numbers<[1], [0], [0], [1], [0, 0, 1, 1], [], []>} : vector<2x588xbf16>, vector<588x128xbf16>, vector<2x128xf32> -> vector<2x128xf32>
    %8 = arith.addf %3, %7 : vector<2x128xf32>
    %c0_6 = arith.constant 0 : index
    %c0_7 = arith.constant 0 : index
    %9 = vector.load %arg6[%c0_6, %c0_7] : memref<2x128xf32, #tpu.memory_space<vmem>>, vector<2x128xf32>
    tpu.vector_store %arg6[%c0_6, %c0_7], %8 {strides = array<i32>} : memref<2x128xf32, #tpu.memory_space<vmem>>, vector<2x128xf32>,
    %c0_i32_8 = arith.constant 0 : i32
    %10 = arith.cmpi eq, %arg1, %c0_i32_8 : i32
    %11 = arith.extui %10 : i1 to i32
    %c0_i32_9 = arith.constant 0 : i32
    %12 = arith.cmpi ne, %11, %c0_i32_9 : i32
    scf.if %12 {
      %c0_10 = arith.constant 0 : index
      %c0_11 = arith.constant 0 : index
      %13 = vector.load %arg6[%c0_10, %c0_11] : memref<2x128xf32, #tpu.memory_space<vmem>>, vector<2x128xf32>
      %c0_12 = arith.constant 0 : index
      %c0_13 = arith.constant 0 : index
      %14 = vector.load %arg4[%c0_12, %c0_13] : memref<1x128xf32, #tpu.memory_space<vmem>>, vector<1x128xf32>
      %15 = vector.broadcast %14 : vector<1x128xf32> to vector<2x128xf32>
      %16 = arith.addf %13, %15 : vector<2x128xf32>
      %cst_14 = arith.constant 0.000000e+00 : f32
      %17 = vector.broadcast %cst_14 : f32 to vector<2x128xf32>
      %18 = arith.maximumf %16, %17 : vector<2x128xf32>
      %c0_15 = arith.constant 0 : index
      %c0_16 = arith.constant 0 : index
      %19 = vector.load %arg5[%c0_15, %c0_16] : memref<2x128xf32, #tpu.memory_space<vmem>>, vector<2x128xf32>
      tpu.vector_store %arg5[%c0_15, %c0_16], %18 {strides = array<i32>} : memref<2x128xf32, #tpu.memory_space<vmem>>, vector<2x128xf32>,
    } else {
    }
    return
  }
  func.func @transform_0(%arg0: i32, %arg1: i32) -> (i32, i32) {
    %c0_i32 = arith.constant 0 : i32
    %c0_i32_0 = arith.constant 0 : i32
    return %c0_i32, %arg1 : i32, i32
  }
  func.func @transform_1(%arg0: i32, %arg1: i32) -> (i32, i32) {
    %c0_i32 = arith.constant 0 : i32
    return %arg1, %arg0 : i32, i32
  }
  func.func @transform_2(%arg0: i32, %arg1: i32) -> (i32, i32) {
    %c0_i32 = arith.constant 0 : i32
    %c0_i32_0 = arith.constant 0 : i32
    return %c0_i32, %arg0 : i32, i32
  }
  func.func @transform_3(%arg0: i32, %arg1: i32) -> (i32, i32) {
    %c0_i32 = arith.constant 0 : i32
    %c0_i32_0 = arith.constant 0 : i32
    return %c0_i32, %arg0 : i32, i32
  }
}

module attributes {stable_mosaic.version = 11 : i64} {
  func.func @_linear_kernel(%arg0: i32, %arg1: i32, %arg2: memref<16x7808xf32, #tpu.memory_space<vmem>>, %arg3: memref<7808x128xbf16, #tpu.memory_space<vmem>>, %arg4: memref<1x128xf32, #tpu.memory_space<vmem>>, %arg5: memref<16x128xf32, #tpu.memory_space<vmem>>, %arg6: memref<16x128xf32, #tpu.memory_space<vmem>>) attributes {dimension_semantics = [#tpu.dimension_semantics<parallel>, #tpu.dimension_semantics<arbitrary>], iteration_bounds = array<i64: 4, 1>, scalar_prefetch = 0 : i64, scratch_operands = 1 : i64, tpu.core_type = #tpu.core_type<tc>, window_params = [{transform_indices = @transform_0, window_bounds = array<i64: 16, 7808>}, {transform_indices = @transform_1, window_bounds = array<i64: 7808, 128>}, {transform_indices = @transform_2, window_bounds = array<i64: 1, 128>}, {transform_indices = @transform_3, window_bounds = array<i64: 16, 128>}]} {
    %c0_i32 = arith.constant 0 : i32
    %0 = arith.cmpi eq, %arg1, %c0_i32 : i32
    %1 = arith.extui %0 : i1 to i32
    %c0_i32_0 = arith.constant 0 : i32
    %2 = arith.cmpi ne, %1, %c0_i32_0 : i32
    scf.if %2 {
      %cst_10 = arith.constant 0.000000e+00 : f32
      %13 = vector.broadcast %cst_10 : f32 to vector<16x128xf32>
      %c0_11 = arith.constant 0 : index
      %c0_12 = arith.constant 0 : index
      %14 = vector.load %arg6[%c0_11, %c0_12] : memref<16x128xf32, #tpu.memory_space<vmem>>, vector<16x128xf32>
      tpu.vector_store %arg6[%c0_11, %c0_12], %13 {strides = array<i32>} : memref<16x128xf32, #tpu.memory_space<vmem>>, vector<16x128xf32>,
    } else {
    }
    %c0 = arith.constant 0 : index
    %c0_1 = arith.constant 0 : index
    %3 = vector.load %arg6[%c0, %c0_1] : memref<16x128xf32, #tpu.memory_space<vmem>>, vector<16x128xf32>
    %c0_2 = arith.constant 0 : index
    %c0_3 = arith.constant 0 : index
    %4 = vector.load %arg2[%c0_2, %c0_3] : memref<16x7808xf32, #tpu.memory_space<vmem>>, vector<16x7808xf32>
    %5 = arith.truncf %4 : vector<16x7808xf32> to vector<16x7808xbf16>
    %c0_4 = arith.constant 0 : index
    %c0_5 = arith.constant 0 : index
    %6 = vector.load %arg3[%c0_4, %c0_5] : memref<7808x128xbf16, #tpu.memory_space<vmem>>, vector<7808x128xbf16>
    %cst = arith.constant dense<0.000000e+00> : vector<16x128xf32>
    %7 = tpu.matmul %5, %6, %cst {dimension_numbers = #tpu.dot_dimension_numbers<[1], [0], [0], [1], [0, 0, 1, 1], [], []>} : vector<16x7808xbf16>, vector<7808x128xbf16>, vector<16x128xf32> -> vector<16x128xf32>
    %8 = arith.addf %3, %7 : vector<16x128xf32>
    %c0_6 = arith.constant 0 : index
    %c0_7 = arith.constant 0 : index
    %9 = vector.load %arg6[%c0_6, %c0_7] : memref<16x128xf32, #tpu.memory_space<vmem>>, vector<16x128xf32>
    tpu.vector_store %arg6[%c0_6, %c0_7], %8 {strides = array<i32>} : memref<16x128xf32, #tpu.memory_space<vmem>>, vector<16x128xf32>,
    %c0_i32_8 = arith.constant 0 : i32
    %10 = arith.cmpi eq, %arg1, %c0_i32_8 : i32
    %11 = arith.extui %10 : i1 to i32
    %c0_i32_9 = arith.constant 0 : i32
    %12 = arith.cmpi ne, %11, %c0_i32_9 : i32
    scf.if %12 {
      %c0_10 = arith.constant 0 : index
      %c0_11 = arith.constant 0 : index
      %13 = vector.load %arg6[%c0_10, %c0_11] : memref<16x128xf32, #tpu.memory_space<vmem>>, vector<16x128xf32>
      %c0_12 = arith.constant 0 : index
      %c0_13 = arith.constant 0 : index
      %14 = vector.load %arg4[%c0_12, %c0_13] : memref<1x128xf32, #tpu.memory_space<vmem>>, vector<1x128xf32>
      %15 = vector.broadcast %14 : vector<1x128xf32> to vector<16x128xf32>
      %16 = arith.addf %13, %15 : vector<16x128xf32>
      %cst_14 = arith.constant 0.000000e+00 : f32
      %17 = vector.broadcast %cst_14 : f32 to vector<16x128xf32>
      %18 = arith.maximumf %16, %17 : vector<16x128xf32>
      %c0_15 = arith.constant 0 : index
      %c0_16 = arith.constant 0 : index
      %19 = vector.load %arg5[%c0_15, %c0_16] : memref<16x128xf32, #tpu.memory_space<vmem>>, vector<16x128xf32>
      tpu.vector_store %arg5[%c0_15, %c0_16], %18 {strides = array<i32>} : memref<16x128xf32, #tpu.memory_space<vmem>>, vector<16x128xf32>,
    } else {
    }
    return
  }
  func.func @transform_0(%arg0: i32, %arg1: i32) -> (i32, i32) {
    %c0_i32 = arith.constant 0 : i32
    %c0_i32_0 = arith.constant 0 : i32
    return %c0_i32, %arg1 : i32, i32
  }
  func.func @transform_1(%arg0: i32, %arg1: i32) -> (i32, i32) {
    %c0_i32 = arith.constant 0 : i32
    return %arg1, %arg0 : i32, i32
  }
  func.func @transform_2(%arg0: i32, %arg1: i32) -> (i32, i32) {
    %c0_i32 = arith.constant 0 : i32
    %c0_i32_0 = arith.constant 0 : i32
    return %c0_i32, %arg0 : i32, i32
  }
  func.func @transform_3(%arg0: i32, %arg1: i32) -> (i32, i32) {
    %c0_i32 = arith.constant 0 : i32
    %c0_i32_0 = arith.constant 0 : i32
    return %c0_i32, %arg0 : i32, i32
  }
}

module attributes {stable_mosaic.version = 11 : i64} {
  func.func @_diffwave_block_kernel(%arg0: i32, %arg1: i32, %arg2: memref<1x32x128xf32, #tpu.memory_space<vmem>>, %arg3: memref<1x8x640xf32, #tpu.memory_space<vmem>>, %arg4: memref<1x1x64xf32, #tpu.memory_space<vmem>>, %arg5: memref<128x64xbf16, #tpu.memory_space<vmem>>, %arg6: memref<1x64xf32, #tpu.memory_space<vmem>>, %arg7: memref<64x128xbf16, #tpu.memory_space<vmem>>, %arg8: memref<640x128xbf16, #tpu.memory_space<vmem>>, %arg9: memref<1x128xf32, #tpu.memory_space<vmem>>, %arg10: memref<64x64xbf16, #tpu.memory_space<vmem>>, %arg11: memref<1x64xf32, #tpu.memory_space<vmem>>, %arg12: memref<64x128xbf16, #tpu.memory_space<vmem>>, %arg13: memref<1x128xf32, #tpu.memory_space<vmem>>, %arg14: memref<1x32x128xf32, #tpu.memory_space<vmem>>) attributes {dimension_semantics = [#tpu.dimension_semantics<parallel>, #tpu.dimension_semantics<parallel>], iteration_bounds = array<i64: 2, 1>, scalar_prefetch = 0 : i64, scratch_operands = 0 : i64, tpu.core_type = #tpu.core_type<tc>, window_params = [{transform_indices = @transform_0, window_bounds = array<i64: 1, 32, 128>}, {transform_indices = @transform_1, window_bounds = array<i64: 1, 8, 640>}, {transform_indices = @transform_2, window_bounds = array<i64: 1, 1, 64>}, {pipeline_mode = #tpu.pipeline_mode<synchronous>, transform_indices = @transform_3, window_bounds = array<i64: 128, 64>}, {pipeline_mode = #tpu.pipeline_mode<synchronous>, transform_indices = @transform_4, window_bounds = array<i64: 1, 64>}, {pipeline_mode = #tpu.pipeline_mode<synchronous>, transform_indices = @transform_5, window_bounds = array<i64: 64, 128>}, {pipeline_mode = #tpu.pipeline_mode<synchronous>, transform_indices = @transform_6, window_bounds = array<i64: 640, 128>}, {pipeline_mode = #tpu.pipeline_mode<synchronous>, transform_indices = @transform_7, window_bounds = array<i64: 1, 128>}, {pipeline_mode = #tpu.pipeline_mode<synchronous>, transform_indices = @transform_8, window_bounds = array<i64: 64, 64>}, {pipeline_mode = #tpu.pipeline_mode<synchronous>, transform_indices = @transform_9, window_bounds = array<i64: 1, 64>}, {pipeline_mode = #tpu.pipeline_mode<synchronous>, transform_indices = @transform_10, window_bounds = array<i64: 64, 128>}, {pipeline_mode = #tpu.pipeline_mode<synchronous>, transform_indices = @transform_11, window_bounds = array<i64: 1, 128>}, {transform_indices = @transform_12, window_bounds = array<i64: 1, 32, 128>}]} {
    %c0 = arith.constant 0 : index
    %c0_0 = arith.constant 0 : index
    %c0_1 = arith.constant 0 : index
    %0 = vector.load %arg2[%c0, %c0_0, %c0_1] : memref<1x32x128xf32, #tpu.memory_space<vmem>>, vector<1x32x128xf32>
    %1 = vector.shape_cast %0 : vector<1x32x128xf32> to vector<32x128xf32>
    %c0_2 = arith.constant 0 : index
    %c0_3 = arith.constant 0 : index
    %c0_4 = arith.constant 0 : index
    %2 = vector.load %arg3[%c0_2, %c0_3, %c0_4] : memref<1x8x640xf32, #tpu.memory_space<vmem>>, vector<1x8x640xf32>
    %3 = vector.shape_cast %2 : vector<1x8x640xf32> to vector<8x640xf32>
    %c0_5 = arith.constant 0 : index
    %c0_6 = arith.constant 0 : index
    %c0_7 = arith.constant 0 : index
    %4 = vector.load %arg4[%c0_5, %c0_6, %c0_7] : memref<1x1x64xf32, #tpu.memory_space<vmem>>, vector<1x1x64xf32>
    %5 = vector.shape_cast %4 : vector<1x1x64xf32> to vector<1x64xf32>
    %6 = arith.truncf %1 : vector<32x128xf32> to vector<32x128xbf16>
    %c0_8 = arith.constant 0 : index
    %c0_9 = arith.constant 0 : index
    %7 = vector.load %arg5[%c0_8, %c0_9] : memref<128x64xbf16, #tpu.memory_space<vmem>>, vector<128x64xbf16>
    %cst = arith.constant dense<0.000000e+00> : vector<32x64xf32>
    %8 = tpu.matmul %6, %7, %cst {dimension_numbers = #tpu.dot_dimension_numbers<[1], [0], [0], [1], [0, 0, 1, 1], [], []>} : vector<32x128xbf16>, vector<128x64xbf16>, vector<32x64xf32> -> vector<32x64xf32>
    %c0_10 = arith.constant 0 : index
    %c0_11 = arith.constant 0 : index
    %9 = vector.load %arg6[%c0_10, %c0_11] : memref<1x64xf32, #tpu.memory_space<vmem>>, vector<1x64xf32>
    %10 = vector.broadcast %9 : vector<1x64xf32> to vector<32x64xf32>
    %11 = arith.addf %8, %10 : vector<32x64xf32>
    %cst_12 = arith.constant 0.000000e+00 : f32
    %12 = vector.broadcast %cst_12 : f32 to vector<32x64xf32>
    %13 = arith.maximumf %11, %12 : vector<32x64xf32>
    %14 = vector.broadcast %5 : vector<1x64xf32> to vector<32x64xf32>
    %15 = arith.addf %13, %14 : vector<32x64xf32>
    %16 = arith.truncf %15 : vector<32x64xf32> to vector<32x64xbf16>
    %c0_13 = arith.constant 0 : index
    %c0_14 = arith.constant 0 : index
    %17 = vector.load %arg7[%c0_13, %c0_14] : memref<64x128xbf16, #tpu.memory_space<vmem>>, vector<64x128xbf16>
    %cst_15 = arith.constant dense<0.000000e+00> : vector<32x128xf32>
    %18 = tpu.matmul %16, %17, %cst_15 {dimension_numbers = #tpu.dot_dimension_numbers<[1], [0], [0], [1], [0, 0, 1, 1], [], []>} : vector<32x64xbf16>, vector<64x128xbf16>, vector<32x128xf32> -> vector<32x128xf32>
    %19 = arith.truncf %3 : vector<8x640xf32> to vector<8x640xbf16>
    %c0_16 = arith.constant 0 : index
    %c0_17 = arith.constant 0 : index
    %20 = vector.load %arg8[%c0_16, %c0_17] : memref<640x128xbf16, #tpu.memory_space<vmem>>, vector<640x128xbf16>
    %cst_18 = arith.constant dense<0.000000e+00> : vector<8x128xf32>
    %21 = tpu.matmul %19, %20, %cst_18 {dimension_numbers = #tpu.dot_dimension_numbers<[1], [0], [0], [1], [0, 0, 1, 1], [], []>} : vector<8x640xbf16>, vector<640x128xbf16>, vector<8x128xf32> -> vector<8x128xf32>
    %22 = vector.shape_cast %21 : vector<8x128xf32> to vector<8x1x128xf32>
    %23 = vector.shape_cast %22 : vector<8x1x128xf32> to vector<8x1x128xf32>
    %24 = vector.broadcast %23 : vector<8x1x128xf32> to vector<8x4x128xf32>
    %25 = vector.shape_cast %24 : vector<8x4x128xf32> to vector<32x128xf32>
    %26 = arith.addf %18, %25 : vector<32x128xf32>
    %c0_19 = arith.constant 0 : index
    %c0_20 = arith.constant 0 : index
    %27 = vector.load %arg9[%c0_19, %c0_20] : memref<1x128xf32, #tpu.memory_space<vmem>>, vector<1x128xf32>
    %28 = vector.broadcast %27 : vector<1x128xf32> to vector<32x128xf32>
    %29 = arith.addf %26, %28 : vector<32x128xf32>
    %30 = vector.extract_strided_slice %29 {offsets = [0, 0], sizes = [32, 64], strides = [1, 1]} : vector<32x128xf32> to vector<32x64xf32>
    %31 = math.tanh %30 : vector<32x64xf32>
    %32 = vector.extract_strided_slice %29 {offsets = [0, 64], sizes = [32, 64], strides = [1, 1]} : vector<32x128xf32> to vector<32x64xf32>
    %33 = arith.negf %32 : vector<32x64xf32>
    %34 = math.exp %33 : vector<32x64xf32>
    %cst_21 = arith.constant 1.000000e+00 : f32
    %35 = vector.broadcast %cst_21 : f32 to vector<32x64xf32>
    %36 = arith.addf %35, %34 : vector<32x64xf32>
    %37 = arith.divf %35, %36 : vector<32x64xf32>
    %38 = arith.mulf %31, %37 : vector<32x64xf32>
    %39 = arith.truncf %38 : vector<32x64xf32> to vector<32x64xbf16>
    %c0_22 = arith.constant 0 : index
    %c0_23 = arith.constant 0 : index
    %40 = vector.load %arg10[%c0_22, %c0_23] : memref<64x64xbf16, #tpu.memory_space<vmem>>, vector<64x64xbf16>
    %cst_24 = arith.constant dense<0.000000e+00> : vector<32x64xf32>
    %41 = tpu.matmul %39, %40, %cst_24 {dimension_numbers = #tpu.dot_dimension_numbers<[1], [0], [0], [1], [0, 0, 1, 1], [], []>} : vector<32x64xbf16>, vector<64x64xbf16>, vector<32x64xf32> -> vector<32x64xf32>
    %c0_25 = arith.constant 0 : index
    %c0_26 = arith.constant 0 : index
    %42 = vector.load %arg11[%c0_25, %c0_26] : memref<1x64xf32, #tpu.memory_space<vmem>>, vector<1x64xf32>
    %43 = vector.broadcast %42 : vector<1x64xf32> to vector<32x64xf32>
    %44 = arith.addf %41, %43 : vector<32x64xf32>
    %cst_27 = arith.constant 0.000000e+00 : f32
    %45 = vector.broadcast %cst_27 : f32 to vector<32x64xf32>
    %46 = arith.maximumf %44, %45 : vector<32x64xf32>
    %47 = arith.truncf %46 : vector<32x64xf32> to vector<32x64xbf16>
    %c0_28 = arith.constant 0 : index
    %c0_29 = arith.constant 0 : index
    %48 = vector.load %arg12[%c0_28, %c0_29] : memref<64x128xbf16, #tpu.memory_space<vmem>>, vector<64x128xbf16>
    %cst_30 = arith.constant dense<0.000000e+00> : vector<32x128xf32>
    %49 = tpu.matmul %47, %48, %cst_30 {dimension_numbers = #tpu.dot_dimension_numbers<[1], [0], [0], [1], [0, 0, 1, 1], [], []>} : vector<32x64xbf16>, vector<64x128xbf16>, vector<32x128xf32> -> vector<32x128xf32>
    %c0_31 = arith.constant 0 : index
    %c0_32 = arith.constant 0 : index
    %50 = vector.load %arg13[%c0_31, %c0_32] : memref<1x128xf32, #tpu.memory_space<vmem>>, vector<1x128xf32>
    %51 = vector.broadcast %50 : vector<1x128xf32> to vector<32x128xf32>
    %52 = arith.addf %49, %51 : vector<32x128xf32>
    %c0_33 = arith.constant 0 : index
    %c0_34 = arith.constant 0 : index
    %c0_35 = arith.constant 0 : index
    %53 = vector.load %arg14[%c0_33, %c0_34, %c0_35] : memref<1x32x128xf32, #tpu.memory_space<vmem>>, vector<1x32x128xf32>
    %54 = vector.shape_cast %53 : vector<1x32x128xf32> to vector<32x128xf32>
    %55 = vector.shape_cast %52 : vector<32x128xf32> to vector<1x32x128xf32>
    tpu.vector_store %arg14[%c0_33, %c0_34, %c0_35], %55 {strides = array<i32>} : memref<1x32x128xf32, #tpu.memory_space<vmem>>, vector<1x32x128xf32>,
    return
  }
  func.func @transform_0(%arg0: i32, %arg1: i32) -> (i32, i32, i32) {
    %c0_i32 = arith.constant 0 : i32
    %c0_i32_0 = arith.constant 0 : i32
    return %arg0, %arg1, %c0_i32 : i32, i32, i32
  }
  func.func @transform_1(%arg0: i32, %arg1: i32) -> (i32, i32, i32) {
    %c0_i32 = arith.constant 0 : i32
    %c0_i32_0 = arith.constant 0 : i32
    return %arg0, %arg1, %c0_i32 : i32, i32, i32
  }
  func.func @transform_2(%arg0: i32, %arg1: i32) -> (i32, i32, i32) {
    %c0_i32 = arith.constant 0 : i32
    %c0_i32_0 = arith.constant 0 : i32
    %c0_i32_1 = arith.constant 0 : i32
    return %arg0, %c0_i32, %c0_i32_0 : i32, i32, i32
  }
  func.func @transform_3(%arg0: i32, %arg1: i32) -> (i32, i32) {
    %c0_i32 = arith.constant 0 : i32
    %c0_i32_0 = arith.constant 0 : i32
    %c0_i32_1 = arith.constant 0 : i32
    return %c0_i32, %c0_i32_0 : i32, i32
  }
  func.func @transform_4(%arg0: i32, %arg1: i32) -> (i32, i32) {
    %c0_i32 = arith.constant 0 : i32
    %c0_i32_0 = arith.constant 0 : i32
    %c0_i32_1 = arith.constant 0 : i32
    return %c0_i32, %c0_i32_0 : i32, i32
  }
  func.func @transform_5(%arg0: i32, %arg1: i32) -> (i32, i32) {
    %c0_i32 = arith.constant 0 : i32
    %c0_i32_0 = arith.constant 0 : i32
    %c0_i32_1 = arith.constant 0 : i32
    return %c0_i32, %c0_i32_0 : i32, i32
  }
  func.func @transform_6(%arg0: i32, %arg1: i32) -> (i32, i32) {
    %c0_i32 = arith.constant 0 : i32
    %c0_i32_0 = arith.constant 0 : i32
    %c0_i32_1 = arith.constant 0 : i32
    return %c0_i32, %c0_i32_0 : i32, i32
  }
  func.func @transform_7(%arg0: i32, %arg1: i32) -> (i32, i32) {
    %c0_i32 = arith.constant 0 : i32
    %c0_i32_0 = arith.constant 0 : i32
    %c0_i32_1 = arith.constant 0 : i32
    return %c0_i32, %c0_i32_0 : i32, i32
  }
  func.func @transform_8(%arg0: i32, %arg1: i32) -> (i32, i32) {
    %c0_i32 = arith.constant 0 : i32
    %c0_i32_0 = arith.constant 0 : i32
    %c0_i32_1 = arith.constant 0 : i32
    return %c0_i32, %c0_i32_0 : i32, i32
  }
  func.func @transform_9(%arg0: i32, %arg1: i32) -> (i32, i32) {
    %c0_i32 = arith.constant 0 : i32
    %c0_i32_0 = arith.constant 0 : i32
    %c0_i32_1 = arith.constant 0 : i32
    return %c0_i32, %c0_i32_0 : i32, i32
  }
  func.func @transform_10(%arg0: i32, %arg1: i32) -> (i32, i32) {
    %c0_i32 = arith.constant 0 : i32
    %c0_i32_0 = arith.constant 0 : i32
    %c0_i32_1 = arith.constant 0 : i32
    return %c0_i32, %c0_i32_0 : i32, i32
  }
  func.func @transform_11(%arg0: i32, %arg1: i32) -> (i32, i32) {
    %c0_i32 = arith.constant 0 : i32
    %c0_i32_0 = arith.constant 0 : i32
    %c0_i32_1 = arith.constant 0 : i32
    return %c0_i32, %c0_i32_0 : i32, i32
  }
  func.func @transform_12(%arg0: i32, %arg1: i32) -> (i32, i32, i32) {
    %c0_i32 = arith.constant 0 : i32
    %c0_i32_0 = arith.constant 0 : i32
    return %arg0, %arg1, %c0_i32 : i32, i32, i32
  }
}

module attributes {stable_mosaic.version = 11 : i64} {
  func.func @_step_emb_kernel(%arg0: i32, %arg1: memref<2x128xf32, #tpu.memory_space<vmem>>, %arg2: memref<128x64xbf16, #tpu.memory_space<vmem>>, %arg3: memref<1x64xf32, #tpu.memory_space<vmem>>, %arg4: memref<64x64xbf16, #tpu.memory_space<vmem>>, %arg5: memref<1x64xf32, #tpu.memory_space<vmem>>, %arg6: memref<2x64xf32, #tpu.memory_space<vmem>>) attributes {dimension_semantics = [#tpu.dimension_semantics<arbitrary>], iteration_bounds = array<i64: 1>, scalar_prefetch = 0 : i64, scratch_operands = 0 : i64, tpu.core_type = #tpu.core_type<tc>, window_params = [{pipeline_mode = #tpu.pipeline_mode<synchronous>, transform_indices = @transform_0, window_bounds = array<i64: 2, 128>}, {pipeline_mode = #tpu.pipeline_mode<synchronous>, transform_indices = @transform_1, window_bounds = array<i64: 128, 64>}, {pipeline_mode = #tpu.pipeline_mode<synchronous>, transform_indices = @transform_2, window_bounds = array<i64: 1, 64>}, {pipeline_mode = #tpu.pipeline_mode<synchronous>, transform_indices = @transform_3, window_bounds = array<i64: 64, 64>}, {pipeline_mode = #tpu.pipeline_mode<synchronous>, transform_indices = @transform_4, window_bounds = array<i64: 1, 64>}, {pipeline_mode = #tpu.pipeline_mode<synchronous>, transform_indices = @transform_5, window_bounds = array<i64: 2, 64>}]} {
    %c0 = arith.constant 0 : index
    %c0_0 = arith.constant 0 : index
    %0 = vector.load %arg1[%c0, %c0_0] : memref<2x128xf32, #tpu.memory_space<vmem>>, vector<2x128xf32>
    %1 = arith.truncf %0 : vector<2x128xf32> to vector<2x128xbf16>
    %c0_1 = arith.constant 0 : index
    %c0_2 = arith.constant 0 : index
    %2 = vector.load %arg2[%c0_1, %c0_2] : memref<128x64xbf16, #tpu.memory_space<vmem>>, vector<128x64xbf16>
    %cst = arith.constant dense<0.000000e+00> : vector<2x64xf32>
    %3 = tpu.matmul %1, %2, %cst {dimension_numbers = #tpu.dot_dimension_numbers<[1], [0], [0], [1], [0, 0, 1, 1], [], []>} : vector<2x128xbf16>, vector<128x64xbf16>, vector<2x64xf32> -> vector<2x64xf32>
    %c0_3 = arith.constant 0 : index
    %c0_4 = arith.constant 0 : index
    %4 = vector.load %arg3[%c0_3, %c0_4] : memref<1x64xf32, #tpu.memory_space<vmem>>, vector<1x64xf32>
    %5 = vector.broadcast %4 : vector<1x64xf32> to vector<2x64xf32>
    %6 = arith.addf %3, %5 : vector<2x64xf32>
    %7 = arith.negf %6 : vector<2x64xf32>
    %8 = math.exp %7 : vector<2x64xf32>
    %cst_5 = arith.constant 1.000000e+00 : f32
    %9 = vector.broadcast %cst_5 : f32 to vector<2x64xf32>
    %10 = arith.addf %9, %8 : vector<2x64xf32>
    %11 = arith.divf %9, %10 : vector<2x64xf32>
    %12 = arith.mulf %6, %11 : vector<2x64xf32>
    %13 = arith.truncf %12 : vector<2x64xf32> to vector<2x64xbf16>
    %c0_6 = arith.constant 0 : index
    %c0_7 = arith.constant 0 : index
    %14 = vector.load %arg4[%c0_6, %c0_7] : memref<64x64xbf16, #tpu.memory_space<vmem>>, vector<64x64xbf16>
    %cst_8 = arith.constant dense<0.000000e+00> : vector<2x64xf32>
    %15 = tpu.matmul %13, %14, %cst_8 {dimension_numbers = #tpu.dot_dimension_numbers<[1], [0], [0], [1], [0, 0, 1, 1], [], []>} : vector<2x64xbf16>, vector<64x64xbf16>, vector<2x64xf32> -> vector<2x64xf32>
    %c0_9 = arith.constant 0 : index
    %c0_10 = arith.constant 0 : index
    %16 = vector.load %arg5[%c0_9, %c0_10] : memref<1x64xf32, #tpu.memory_space<vmem>>, vector<1x64xf32>
    %17 = vector.broadcast %16 : vector<1x64xf32> to vector<2x64xf32>
    %18 = arith.addf %15, %17 : vector<2x64xf32>
    %19 = arith.negf %18 : vector<2x64xf32>
    %20 = math.exp %19 : vector<2x64xf32>
    %cst_11 = arith.constant 1.000000e+00 : f32
    %21 = vector.broadcast %cst_11 : f32 to vector<2x64xf32>
    %22 = arith.addf %21, %20 : vector<2x64xf32>
    %23 = arith.divf %21, %22 : vector<2x64xf32>
    %24 = arith.mulf %18, %23 : vector<2x64xf32>
    %c0_12 = arith.constant 0 : index
    %c0_13 = arith.constant 0 : index
    %25 = vector.load %arg6[%c0_12, %c0_13] : memref<2x64xf32, #tpu.memory_space<vmem>>, vector<2x64xf32>
    tpu.vector_store %arg6[%c0_12, %c0_13], %24 {strides = array<i32>} : memref<2x64xf32, #tpu.memory_space<vmem>>, vector<2x64xf32>,
    return
  }
  func.func @transform_0(%arg0: i32) -> (i32, i32) {
    %c0_i32 = arith.constant 0 : i32
    %c0_i32_0 = arith.constant 0 : i32
    %c0_i32_1 = arith.constant 0 : i32
    return %c0_i32, %c0_i32_0 : i32, i32
  }
  func.func @transform_1(%arg0: i32) -> (i32, i32) {
    %c0_i32 = arith.constant 0 : i32
    %c0_i32_0 = arith.constant 0 : i32
    %c0_i32_1 = arith.constant 0 : i32
    return %c0_i32, %c0_i32_0 : i32, i32
  }
  func.func @transform_2(%arg0: i32) -> (i32, i32) {
    %c0_i32 = arith.constant 0 : i32
    %c0_i32_0 = arith.constant 0 : i32
    %c0_i32_1 = arith.constant 0 : i32
    return %c0_i32, %c0_i32_0 : i32, i32
  }
  func.func @transform_3(%arg0: i32) -> (i32, i32) {
    %c0_i32 = arith.constant 0 : i32
    %c0_i32_0 = arith.constant 0 : i32
    %c0_i32_1 = arith.constant 0 : i32
    return %c0_i32, %c0_i32_0 : i32, i32
  }
  func.func @transform_4(%arg0: i32) -> (i32, i32) {
    %c0_i32 = arith.constant 0 : i32
    %c0_i32_0 = arith.constant 0 : i32
    %c0_i32_1 = arith.constant 0 : i32
    return %c0_i32, %c0_i32_0 : i32, i32
  }
  func.func @transform_5(%arg0: i32) -> (i32, i32) {
    %c0_i32 = arith.constant 0 : i32
    %c0_i32_0 = arith.constant 0 : i32
    %c0_i32_1 = arith.constant 0 : i32
    return %c0_i32, %c0_i32_0 : i32, i32
  }
}

</mosaic_0001>

<bundles_post_ra>
// kernel: vtts_forward.4
= control target key start
LH: loop header
LB: loop body
LE: loop exit
PB: predicated region body
PF: predicated region fallthrough
CT: control target
= control target key end

     0   :  { %v647_v1 = vmov 0.0   ;;  %v648_v23 = vmov 1983009808   ;;  %v29_v25 = vlaneseq  ;;  %vm358_vm0 = vcmask 1045504   ;;  %s800_s1 = inlined_call_operand.vmem [shape: bf16[588,128], index: 1, kind: input, shape index: {}]   ;;  %s801_s0 = inlined_call_operand.vmem [shape: f32[2,588], index: 0, kind: input, shape index: {}]   ;;  %s802_s2 = inlined_call_operand.vmem [shape: f32[1,128], index: 2, kind: input, shape index: {}]   ;;  %s803_s3 = inlined_call_operand.vmem [shape: f32[2,128], index: 3, kind: output, shape index: {}]  }
   0x1   :  { %v609_v0 = vld [vmem:[%s800_s1 + $0x78] sm:$0xff]   ;;  %19 = vst [vmem:[#allocation2] sm:$0x3] %v647_v1  ;;  %v613_v5 = vld [vmem:[%s800_s1 + $0x70] sm:$0xff]   ;;  %v617_v9 = vld [vmem:[%s800_s1 + $0x68] sm:$0xff]   ;;  %v27_v24 = vunpack.c.l.s4 %v648_v23  ;;  %vm649_vm1 = vmmov 0  }
   0x2   :  { %v610_v2 = vld [vmem:[%s800_s1 + $0xf8] sm:$0xff]   ;;  %542 = vmatprep.subr.bf16.mxu0 %v609_v0  ;;  %v614_v6 = vld [vmem:[%s800_s1 + $0xf0] sm:$0xff]   ;;  %v618_v10 = vld [vmem:[%s800_s1 + $0xe8] sm:$0xff]   ;;  %v30_v31 = vshrl.u32 %v29_v25, 7  ;;  %vm354_vm2 = vcmask 621568  }
   0x3   :  { %v611_v3 = vld [vmem:[%s800_s1 + $0x38] sm:$0xff]   ;;  %564 = vmatprep.subr.bf16.mxu1 %v610_v2  ;;  %v615_v7 = vld [vmem:[%s800_s1 + $0x30] sm:$0xff]   ;;  %v619_v11 = vld [vmem:[%s800_s1 + $0x28] sm:$0xff]   ;;  %v28_v30 = vunpack.c.0.s8 %v27_v24 }
   0x4   :  { %v612_v4 = vld [vmem:[%s800_s1 + $0xb8] sm:$0xff]   ;;  %543 = vmatpush3.bf16.msra.mxu0 %v611_v3  ;;  %v616_v8 = vld [vmem:[%s800_s1 + $0xb0] sm:$0xff]   ;;  %v620_v12 = vld [vmem:[%s800_s1 + $0xa8] sm:$0xff]  }
   0x5   :  { %565 = vmatpush3.bf16.msra.mxu1 %v612_v4  ;;  %544 = vmatprep.subr.bf16.mxu0 %v613_v5  ;;  %v621_v13 = vld [vmem:[%s800_s1 + $0x60] sm:$0xff]   ;;  %v625_v17 = vld [vmem:[%s800_s1 + $0x58] sm:$0xff]   ;;  %v629_v21 = vld [vmem:[%s800_s1 + $0x50] sm:$0xff]   ;;  %v31_v36 = vsub.s32 %v28_v30, %v30_v31 }
   0x6   :  { %566 = vmatprep.subr.bf16.mxu1 %v614_v6  ;;  %v622_v14 = vld [vmem:[%s800_s1 + $0xe0] sm:$0xff]   ;;  %v626_v18 = vld [vmem:[%s800_s1 + $0xd8] sm:$0xff]   ;;  %v630_v22 = vld [vmem:[%s800_s1 + $0xd0] sm:$0xff]  }
   0x7   :  { %v623_v15 = vld [vmem:[%s800_s1 + $0x20] sm:$0xff]   ;;  %v627_v19 = vld [vmem:[%s800_s1 + $0x18] sm:$0xff]   ;;  %v631_v26 = vld [vmem:[%s800_s1 + $0x10] sm:$0xff]  }
   0x8   :  { %545 = vmatpush3.bf16.msra.mxu0 %v615_v7  ;;  %v624_v16 = vld [vmem:[%s800_s1 + $0xa0] sm:$0xff]   ;;  %v628_v20 = vld [vmem:[%s800_s1 + $0x98] sm:$0xff]   ;;  %v632_v27 = vld [vmem:[%s800_s1 + $0x90] sm:$0xff]  }
   0x9   :  { %567 = vmatpush3.bf16.msra.mxu1 %v616_v8  ;;  %546 = vmatprep.subr.bf16.mxu0 %v617_v9  ;;  %v633_v28 = vld [vmem:[%s800_s1 + $0x48] sm:$0xff]   ;;  %v637_v34 = vld [vmem:[%s800_s1 + $0x40] sm:$0xff]   ;;  %v643_v51 = vld [vmem:[%s800_s1 + $0x118] sm:$0xff]  }
   0xa   :  { %568 = vmatprep.subr.bf16.mxu1 %v618_v10  ;;  %v634_v29 = vld [vmem:[%s800_s1 + $0xc8] sm:$0xff]   ;;  %v638_v35 = vld [vmem:[%s800_s1 + $0xc0] sm:$0xff]   ;;  %v644_v52 = vld [vmem:[%s800_s1 + $0x110] sm:$0xff]  }
   0xb   :  { %v635_v32 = vld [vmem:[%s800_s1 + $0x8] sm:$0xff]   ;;  %v639_v37 = vld [vmem:[%s800_s1] sm:$0xff]  }
   0xc   :  { %547 = vmatpush3.bf16.msra.mxu0 %v619_v11  ;;  %v636_v33 = vld [vmem:[%s800_s1 + $0x88] sm:$0xff]   ;;  %v640_v38 = vld [vmem:[%s800_s1 + $0x80] sm:$0xff]  }
   0xd   :  { %569 = vmatpush3.bf16.msra.mxu1 %v620_v12  ;;  %548 = vmatprep.subr.bf16.mxu0 %v621_v13  ;;  %v21_v39 = vld [vmem:[%s801_s0] sm:$0xff]  ;;  %v645_v53 = vld [vmem:[%s800_s1 + $0x108] sm:$0xff]  }
   0xe   :  { %570 = vmatprep.subr.bf16.mxu1 %v622_v14  ;;  %v32_v40 = vrot.slane %v21_v39, %v31_v36  ;;  %v25_v41 = vcombine.high %v21_v39, %v21_v39  ;;  %v642_v42 = vld [vmem:[%s800_s1 + $0x120] sm:$0x3f]   ;;  %v502_v54 = vld.sshfl [vmem:[%s801_s0 + $0x8] sm:$0x3 pattern:$0x76325410] }
   0xf   :  { %v360_v49 = vsel %vm358_vm0, %v642_v42, 0  ;;  %v646_v55 = vld [vmem:[%s800_s1 + $0x100] sm:$0xff]   ;;  %v58_v56 = vpack.c.bf16 %v502_v54, %v502_v54 }
  0x10   :  { %549 = vmatpush3.bf16.msra.mxu0 %v623_v15  ;;  %v40_v43 = vcombine.high %v32_v40, %v32_v40  ;;  %v39_v44 = vrot.slane %v25_v41, %v31_v36  ;;  %v54_v45 = vpack.c.bf16 %v32_v40, %v32_v40  ;;  %v20_v5 = vld [vmem:[#allocation2] sm:$0x3] }
  0x11   :  { %571 = vmatpush3.bf16.msra.mxu1 %v624_v16  ;;  %550 = vmatprep.subr.bf16.mxu0 %v625_v17  ;;  %v541_v11 = vld [vmem:[%s802_s2] ss:$0 sm:$0xff] }
  0x12   :  { %572 = vmatprep.subr.bf16.mxu1 %v626_v18  ;;  %v55_v46 = vpack.c.bf16 %v40_v43, %v40_v43  ;;  %v41_v47 = vcombine.high %v39_v44, %v39_v44  ;;  %v56_v48 = vpack.c.bf16 %v39_v44, %v39_v44 }
  0x14   :  { %551 = vmatpush3.bf16.msra.mxu0 %v627_v19  ;;  %394 = vmatprep.mubr.bf16.mxu0 %v55_v46  ;;  %v57_v50 = vpack.c.bf16 %v41_v47, %v41_v47 }
  0x15   :  { %573 = vmatpush3.bf16.msra.mxu1 %v628_v20  ;;  %552 = vmatprep.subr.bf16.mxu0 %v629_v21 }
  0x16   :  { %574 = vmatprep.subr.bf16.mxu1 %v630_v22  ;;  %434 = vmatprep.mubr.bf16.mxu1 %v57_v50 }
  0x18   :  { %553 = vmatpush3.bf16.msra.mxu0 %v631_v26 }
  0x19   :  { %575 = vmatpush3.bf16.msra.mxu1 %v632_v27  ;;  %554 = vmatprep.subr.bf16.mxu0 %v633_v28 }
  0x1a   :  { %576 = vmatprep.subr.bf16.mxu1 %v634_v29 }
  0x1c   :  { %555 = vmatpush3.bf16.msra.mxu0 %v635_v32 }
  0x1d   :  { %577 = vmatpush3.bf16.msra.mxu1 %v636_v33  ;;  %556 = vmatprep.subr.bf16.mxu0 %v637_v34 }
  0x1e   :  { %578 = vmatprep.subr.bf16.mxu1 %v638_v35 }
  0x20   :  { %557 = vmatpush3.bf16.msra.mxu0 %v639_v37 }
  0x21   :  { %579 = vmatpush3.bf16.msra.mxu1 %v640_v38  ;;  %592 = vmatprep.subr.bf16.mxu0 %v647_v1 }
  0x23   :  { %395 = vmatmul.mubr.bf16.vlgmr.msra.gmra.mxu0 %v54_v45 }
  0x24   :  { %593 = vmatpush3.bf16.msra.mxu0 %v360_v49  ;;  %435 = vmatmul.mubr.bf16.vlgmr.msra.gmra.mxu1 %v56_v48 }
  0x25   :  { %594 = vmatprep.subr.bf16.mxu0 %v647_v1  ;;  %602 = vmatprep.mubr.msk.bf16.mxu0 %vm649_vm1, %v647_v1 }
  0x28   :  { %595 = vmatpush3.bf16.msra.mxu0 %v643_v51 }
  0x29   :  { %596 = vmatprep.subr.bf16.mxu0 %v647_v1 }
  0x2c   :  { %597 = vmatpush3.bf16.msra.mxu0 %v644_v52 }
  0x2d   :  { %598 = vmatprep.subr.bf16.mxu0 %v647_v1 }
  0x30   :  { %599 = vmatpush3.bf16.msra.mxu0 %v645_v53 }
  0x31   :  { %600 = vmatprep.subr.bf16.mxu0 %v647_v1 }
  0x34   :  { %601 = vmatpush3.bf16.msra.mxu0 %v646_v55 }
  0x37   :  { %603 = vmatmul.mubr.msk.bf16.vlgmr.msra.gmra.mxu0 %vm354_vm2, %v58_v56 }
  0xe3   :  { %v558_v57 = vpop.f32.mrf.mxu0 }
  0xe4   :  { %v580_v58 = vpop.f32.mrf.mxu1 }
  0xe5   :  { %v559_v59 = vpop.f32.mrf.mxu0 }
  0xe6   :  { %v581_v60 = vpop.f32.mrf.mxu1  ;;  %v560_v2 = vadd.f32 %v559_v59, %v558_v57 }
  0xe7   :  { %v561_v61 = vpop.f32.mrf.mxu0  ;;  %v582_v3 = vadd.f32 %v581_v60, %v580_v58 }
  0xe8   :  { %v583_v63 = vpop.f32.mrf.mxu1 }
  0xe9   :  { %v562_v62 = vpop.f32.mrf.mxu0  ;;  %v437_v4 = vadd.f32 %v582_v3, %v560_v2 }
  0xea   :  { %v584_v0 = vpop.f32.mrf.mxu1 }
  0xf7   :  { %v476_v6 = vpop.f32.mrf.mxu0 }
  0xf8   :  { %v477_v7 = vadd.f32 %v476_v6, %v437_v4 }
  0xf9   :  { %v604_v8 = vpop.f32.mrf.mxu0 }
  0xfa   :  { %v482_v1 = vadd.f32 %v477_v7, %v20_v5 }
  0xfb   :  { %v479_v9 = vpop.f32.mrf.mxu0 }
  0xfc   :  { %483 = vst [vmem:[#allocation2] sm:$0x3] %v482_v1 }
  0xfd   :  { %v605_v10 = vpop.f32.mrf.mxu0 }
 0x103   :  { %v487_v12 = vld [vmem:[#allocation2] sm:$0x3] }
 0x104   :  { %v495_v13 = vadd.f32 %v541_v11, %v487_v12 }
 0x106   :  { %v496_v14 = vmax.f32 %v495_v13, 0.0 }
 0x108   :  { %497 = vst [vmem:[%s803_s3] sm:$0x3] %v496_v14 }

// kernel: vtts_forward.6
= control target key start
LH: loop header
LB: loop body
LE: loop exit
PB: predicated region body
PF: predicated region fallthrough
CT: control target
= control target key end

     0   :  { %v323_v0 = vmov 0.0   ;;  %vm324_vm0 = vmmov 0   ;;  %vm181_vm1 = vcmask 523264   ;;  %vm232_vm2 = vcmask 517120   ;;  %s403_s1 = inlined_call_operand.vmem [shape: bf16[128,64], index: 1, kind: input, shape index: {}]   ;;  %s404_s0 = inlined_call_operand.vmem [shape: f32[2,128], index: 0, kind: input, shape index: {}]   ;;  %s405_s3 = inlined_call_operand.vmem [shape: bf16[64,64], index: 3, kind: input, shape index: {}]   ;;  %s406_s2 = inlined_call_operand.vmem [shape: f32[1,64], index: 2, kind: input, shape index: {}]   ;;  %s407_s4 = inlined_call_operand.vmem [shape: f32[1,64], index: 4, kind: input, shape index: {}]   ;;  %s408_s5 = inlined_call_operand.vmem [shape: f32[2,64], index: 5, kind: output, shape index: {}]  }
   0x1   :  { %269 = vmatprep.subr.bf16.mxu0 %v323_v0  ;;  %v303_v1 = vld [vmem:[%s403_s1 + $0x38] sm:$0xff]   ;;  %285 = vmatprep.mubr.msk.bf16.mxu0 %vm324_vm0, %v323_v0  ;;  %v304_v2 = vld [vmem:[%s403_s1 + $0x30] sm:$0xff]   ;;  %v305_v3 = vld [vmem:[%s403_s1 + $0x28] sm:$0xff]  }
   0x2   :  { %289 = vmatprep.subr.bf16.mxu1 %v323_v0  ;;  %297 = vmatprep.mubr.msk.bf16.mxu1 %vm324_vm0, %v323_v0  ;;  %v306_v4 = vld [vmem:[%s403_s1 + $0x20] sm:$0xff]   ;;  %v307_v5 = vld [vmem:[%s403_s1 + $0x18] sm:$0xff]   ;;  %v308_v6 = vld [vmem:[%s403_s1 + $0x10] sm:$0xff]  }
   0x3   :  { %270 = vmatpush3.bf16.msra.mxu0 %v303_v1  ;;  %v309_v7 = vld [vmem:[%s403_s1 + $0x8] sm:$0xff]   ;;  %v310_v8 = vld [vmem:[%s403_s1] sm:$0xff]   ;;  %v311_v11 = vld [vmem:[%s405_s3 + $0x18] sm:$0xff]  }
   0x4   :  { %271 = vmatprep.subr.bf16.mxu0 %v323_v0  ;;  %v21_v9 = vld [vmem:[%s404_s0] sm:$0x3]  ;;  %290 = vmatpush3.bf16.msra.mxu1 %v311_v11  ;;  %v312_v12 = vld [vmem:[%s405_s3 + $0x10] sm:$0xff]   ;;  %v313_v13 = vld [vmem:[%s405_s3 + $0x8] sm:$0xff]  }
   0x5   :  { %v22_v10 = vpack.c.bf16 %v21_v9, %v21_v9  ;;  %291 = vmatprep.subr.bf16.mxu1 %v323_v0  ;;  %v314_v14 = vld [vmem:[%s405_s3] sm:$0xff]  }
   0x6   :  { %v238_v15 = vld [vmem:[%s406_s2] ss:$0 sm:$0xff] }
   0x7   :  { %272 = vmatpush3.bf16.msra.mxu0 %v304_v2  ;;  %v248_v27 = vld [vmem:[%s407_s4] ss:$0 sm:$0xff] }
   0x8   :  { %273 = vmatprep.subr.bf16.mxu0 %v323_v0  ;;  %292 = vmatpush3.bf16.msra.mxu1 %v312_v12 }
   0x9   :  { %293 = vmatprep.subr.bf16.mxu1 %v323_v0 }
   0xb   :  { %274 = vmatpush3.bf16.msra.mxu0 %v305_v3 }
   0xc   :  { %275 = vmatprep.subr.bf16.mxu0 %v323_v0  ;;  %294 = vmatpush3.bf16.msra.mxu1 %v313_v13 }
   0xd   :  { %295 = vmatprep.subr.bf16.mxu1 %v323_v0 }
   0xf   :  { %276 = vmatpush3.bf16.msra.mxu0 %v306_v4 }
  0x10   :  { %277 = vmatprep.subr.bf16.mxu0 %v323_v0  ;;  %296 = vmatpush3.bf16.msra.mxu1 %v314_v14 }
  0x13   :  { %278 = vmatpush3.bf16.msra.mxu0 %v307_v5 }
  0x14   :  { %279 = vmatprep.subr.bf16.mxu0 %v323_v0 }
  0x17   :  { %280 = vmatpush3.bf16.msra.mxu0 %v308_v6 }
  0x18   :  { %281 = vmatprep.subr.bf16.mxu0 %v323_v0 }
  0x1b   :  { %282 = vmatpush3.bf16.msra.mxu0 %v309_v7 }
  0x1c   :  { %283 = vmatprep.subr.bf16.mxu0 %v323_v0 }
  0x1f   :  { %284 = vmatpush3.bf16.msra.mxu0 %v310_v8 }
  0x22   :  { %286 = vmatmul.mubr.bf16.vlgmr.msra.gmra.mxu0 %v22_v10 }
  0xe2   :  { %v128_v16 = vpop.f32.mrf.mxu0 }
  0xe3   :  { %v129_v17 = vadd.f32 %v238_v15, %v128_v16 }
  0xe4   :  { %v287_v18 = vpop.f32.mrf.mxu0 }
  0xe5   :  { %v247_v19 = vmul.f32 -1.442695, %v129_v17 }
  0xe6   :  { %v131_v20 = vpop.f32.mrf.mxu0 }
  0xe7   :  { %315 = vpow2.f32 %v247_v19 }
  0xe8   :  { %v288_v21 = vpop.f32.mrf.mxu0 }
  0xf4   :  { %v316_v22 = vpop.eup %315 }
  0xf5   :  { %v137_v23 = vadd.f32 1.0, %v316_v22 }
  0xf7   :  { %317 = vrcp.f32 %v137_v23 }
 0x104   :  { %v318_v24 = vpop.eup %317 }
 0x105   :  { %v140_v25 = vmul.f32 %v318_v24, %v129_v17 }
 0x107   :  { %v141_v26 = vpack.c.bf16 %v140_v25, %v140_v25 }
 0x109   :  { %298 = vmatmul.mubr.msk.bf16.vlgmr.msra.gmra.mxu1 %vm181_vm1, %v141_v26 }
 0x1c9   :  { %v219_v28 = vpop.f32.mrf.mxu1 }
 0x1ca   :  { %v220_v29 = vadd.f32 %v248_v27, %v219_v28 }
 0x1cb   :  { %v299_v30 = vpop.f32.mrf.mxu1 }
 0x1cc   :  { %v254_v31 = vmul.f32 -1.442695, %v220_v29 }
 0x1cd   :  { %v222_v32 = vpop.f32.mrf.mxu1 }
 0x1ce   :  { %319 = vpow2.f32 %v254_v31 }
 0x1cf   :  { %v300_v33 = vpop.f32.mrf.mxu1 }
 0x1db   :  { %v320_v34 = vpop.eup %319 }
 0x1dc   :  { %v228_v35 = vadd.f32 1.0, %v320_v34 }
 0x1de   :  { %321 = vrcp.f32 %v228_v35 }
 0x1eb   :  { %v322_v36 = vpop.eup %321 }
 0x1ec   :  { %v231_v37 = vmul.f32 %v322_v36, %v220_v29 }
 0x1ee   :  { %233 = vst.msk [vmem:[%s408_s5] sm:$0x3] %vm232_vm2, %v231_v37 }

// kernel: vtts_forward.7
= control target key start
LH: loop header
LB: loop body
LE: loop exit
PB: predicated region body
PF: predicated region fallthrough
CT: control target
= control target key end

     0   :  { %s2101_s21 = smov 0   ;;  %s2103_s22 = smov 0   ;;  %s2360_s0 = inlined_call_operand.vmem [shape: f32[2,32,128], index: 0, kind: input, shape index: {}]   ;;  %s2361_s1 = inlined_call_operand.vmem [shape: f32[2,8,640], index: 1, kind: input, shape index: {}]   ;;  %s2362_s2 = inlined_call_operand.vmem [shape: f32[2,1,64], index: 2, kind: input, shape index: {}]   ;;  %s2363_s3 = inlined_call_operand.vmem [shape: bf16[128,64], index: 3, kind: input, shape index: {}]   ;;  %s2364_s4 = inlined_call_operand.vmem [shape: f32[1,64], index: 4, kind: input, shape index: {}]   ;;  %s2365_s5 = inlined_call_operand.vmem [shape: bf16[64,128], index: 5, kind: input, shape index: {}]   ;;  %s2366_s6 = inlined_call_operand.vmem [shape: bf16[640,128], index: 6, kind: input, shape index: {}]   ;;  %s2367_s7 = inlined_call_operand.vmem [shape: f32[1,128], index: 7, kind: input, shape index: {}]   ;;  %s2368_s8 = inlined_call_operand.vmem [shape: bf16[64,64], index: 8, kind: input, shape index: {}]   ;;  %s2369_s9 = inlined_call_operand.vmem [shape: f32[1,64], index: 9, kind: input, shape index: {}]   ;;  %s2370_s10 = inlined_call_operand.vmem [shape: bf16[64,128], index: 10, kind: input, shape index: {}]   ;;  %s2371_s11 = inlined_call_operand.vmem [shape: f32[1,128], index: 11, kind: input, shape index: {}]   ;;  %s2372_s12 = inlined_call_operand.vmem [shape: f32[2,32,128], index: 12, kind: output, shape index: {}]  }
   0x1   :  { %s2105_s23 = smov 0  }
   0x2 LB: > { %s34_s24 = sadd.s32 1, %s2026_s22  ;;  %p1653_p0 = scmp.ge.s32.totalorder %s2030_s23, 1  ;;  %s2030_s23 = sphi %s2105_s23, %s22_s23   ;;  %s2026_s22 = sphi %s2103_s22, %s2374_s22   ;;  %s2022_s21 = sphi %s2101_s21, %s2373_s21  }
   0x3   : > { %p36_p1 = scmp.ge.s32.totalorder %s34_s24, 2  ;;  %p407_p2 = scmp.lt.s32.totalorder %s2030_s23, 3 }
   0x5   : > { %s2376_s24 = smov (%p36_p1, %s34_s24), 0  ;;  %p408_p3 = pnand %p1653_p0, %p407_p2 }
   0x6   : > { %p470_p4 = scmp.lt.s32.totalorder (!%p408_p3), %s2022_s21, 1 }
   0x7   : > { %411 = sbr.rel (%p408_p3) target bundleno = 1016 (0x3f8), region = 68 }
   0xc   : > { %v1924_v0 = vld [vmem:[%s2363_s3 + $0x38] sm:$0xff]   ;;  %v1925_v1 = vld [vmem:[%s2363_s3 + $0x30] sm:$0xff]   ;;  %s2378_s21 = smov (!%p470_p4, %s2022_s21), 1  ;;  %v1926_v2 = vld [vmem:[%s2363_s3 + $0x28] sm:$0xff]   ;;  %v2032_v42 = vmov 0.0   ;;  %vm2033_vm0 = vmmov 0  }
   0xd   : > { %1819 = vmatprep.subr.bf16.mxu0 %v1924_v0  ;;  %s1736_s13 = sshll.u32 %s2378_s21, 5  ;;  %v1927_v3 = vld [vmem:[%s2363_s3 + $0x20] sm:$0xff]   ;;  %v1928_v7 = vld [vmem:[%s2363_s3 + $0x18] sm:$0xff]   ;;  %v1934_v10 = vld [vmem:[%s2366_s6 + $0x70] sm:$0xff]   ;;  %s1895_s19 = smul.u32 40, %s2378_s21  ;;  %vm1217_vm1 = vcmask 523264  }
   0xe   : > { %1820 = vmatpush3.bf16.msra.mxu0 %v1924_v0  ;;  %s2136_s16 = scalar_lea.vmem %s2360_s0, %s1736_s13  ;;  %v1932_v8 = vld [vmem:[%s2366_s6 + $0x78] sm:$0xff]   ;;  %v1935_v11 = vld [vmem:[%s2366_s6 + $0x30] sm:$0xff]   ;;  %v1936_v12 = vld [vmem:[%s2366_s6 + $0x68] sm:$0xff]   ;;  %s490_s29 = scalar_lea.vmem %s2362_s2, %s2378_s21 }
   0xf   : > { %1821 = vmatprep.subr.bf16.mxu0 %v1925_v1  ;;  %v502_v4 = vld [vmem:[%s2136_s16] sm:$0xff]  ;;  %v503_v5 = vld [vmem:[%s2136_s16 + $0x8] sm:$0xff]  ;;  %v1933_v9 = vld [vmem:[%s2366_s6 + $0x38] sm:$0xff]   ;;  %1748 = vmatprep.subr.bf16.mxu1 %v1932_v8  ;;  %s2193_s15 = scalar_lea.vmem %s2361_s1, %s1895_s19 }
  0x10   : > { %v512_v6 = vpack.c.bf16 %v503_v5, %v502_v4  ;;  %1749 = vmatpush3.bf16.msra.mxu1 %v1933_v9  ;;  %v1929_v13 = vld [vmem:[%s2363_s3 + $0x10] sm:$0xff]   ;;  %v1937_v14 = vld [vmem:[%s2366_s6 + $0x28] sm:$0xff]   ;;  %v1938_v15 = vld [vmem:[%s2366_s6 + $0x60] sm:$0xff]  }
  0x11   : > { %1750 = vmatprep.subr.bf16.mxu1 %v1934_v10  ;;  %v1930_v16 = vld [vmem:[%s2363_s3 + $0x8] sm:$0xff]   ;;  %v1939_v17 = vld [vmem:[%s2366_s6 + $0x20] sm:$0xff]   ;;  %v1940_v18 = vld [vmem:[%s2366_s6 + $0x58] sm:$0xff]  }
  0x12   : > { %1822 = vmatpush3.bf16.msra.mxu0 %v1925_v1  ;;  %1835 = vmatprep.mubr.bf16.mxu0 %v512_v6  ;;  %v1931_v19 = vld [vmem:[%s2363_s3] sm:$0xff]   ;;  %v504_v20 = vld [vmem:[%s2136_s16 + $0x10] sm:$0xff]  ;;  %v1941_v21 = vld [vmem:[%s2366_s6 + $0x18] sm:$0xff]  }
  0x13   : > { %1823 = vmatprep.subr.bf16.mxu0 %v1926_v2  ;;  %v1942_v22 = vld [vmem:[%s2366_s6 + $0x50] sm:$0xff]   ;;  %v505_v23 = vld [vmem:[%s2136_s16 + $0x18] sm:$0xff]  ;;  %v507_v26 = vld [vmem:[%s2193_s15 + $0x8] sm:$0xff] }
  0x14   : > { %1751 = vmatpush3.bf16.msra.mxu1 %v1935_v11  ;;  %v1946_v24 = vld [vmem:[%s2366_s6 + $0xf8] sm:$0xff]   ;;  %v1943_v25 = vld [vmem:[%s2366_s6 + $0x10] sm:$0xff]   ;;  %v513_v27 = vpack.c.bf16 %v505_v23, %v504_v20  ;;  %v1944_v28 = vld [vmem:[%s2366_s6 + $0x48] sm:$0xff]   ;;  %v659_v29 = vpack.c.bf16 %v507_v26, %v507_v26 }
  0x15   : > { %1752 = vmatprep.subr.bf16.mxu1 %v1936_v12  ;;  %v1947_v30 = vld [vmem:[%s2366_s6 + $0xb8] sm:$0xff]   ;;  %v1950_v31 = vld [vmem:[%s2366_s6 + $0xf0] sm:$0xff]   ;;  %v1945_v32 = vld [vmem:[%s2366_s6 + $0x8] sm:$0xff]  }
  0x16   : > { %1824 = vmatpush3.bf16.msra.mxu0 %v1926_v2  ;;  %1015 = vmatprep.mubr.bf16.mxu1 %v659_v29  ;;  %v1948_v33 = vld [vmem:[%s2366_s6 + $0x40] sm:$0xff]   ;;  %v1951_v35 = vld [vmem:[%s2366_s6 + $0xb0] sm:$0xff]   ;;  %v1953_v36 = vld [vmem:[%s2366_s6 + $0xe8] sm:$0xff]  }
  0x17   : > { %1825 = vmatprep.subr.bf16.mxu0 %v1927_v3  ;;  %v1949_v34 = vld [vmem:[%s2366_s6] sm:$0xff]   ;;  %v1954_v38 = vld [vmem:[%s2366_s6 + $0xa8] sm:$0xff]   ;;  %v1952_v41 = vld [vmem:[%s2366_s6 + $0x138] sm:$0xff]  }
  0x18   : > { %1753 = vmatpush3.bf16.msra.mxu1 %v1937_v14  ;;  %v506_v37 = vld [vmem:[%s2193_s15] sm:$0xff]  ;;  %v1959_v44 = vld [vmem:[%s2366_s6 + $0xd8] sm:$0xff]   ;;  %v1955_v45 = vld [vmem:[%s2366_s6 + $0x130] sm:$0xff]  }
  0x19   : > { %1754 = vmatprep.subr.bf16.mxu1 %v1938_v15  ;;  %v658_v39 = vpack.c.bf16 %v506_v37, %v506_v37  ;;  %v1956_v40 = vld [vmem:[%s2366_s6 + $0xe0] sm:$0xff]   ;;  %v1960_v46 = vld [vmem:[%s2366_s6 + $0x98] sm:$0xff]   ;;  %v1962_v47 = vld [vmem:[%s2366_s6 + $0xd0] sm:$0xff]  }
  0x1a   : > { %1826 = vmatpush3.bf16.msra.mxu0 %v1927_v3  ;;  %v1957_v43 = vld [vmem:[%s2366_s6 + $0xa0] sm:$0xff]   ;;  %v509_v48 = vld [vmem:[%s2193_s15 + $0x18] sm:$0xff]  ;;  %v1958_v49 = vld [vmem:[%s2366_s6 + $0x128] sm:$0xff]  }
  0x1b   : > { %1827 = vmatprep.subr.bf16.mxu0 %v1928_v7  ;;  %v661_v50 = vpack.c.bf16 %v509_v48, %v509_v48  ;;  %v1963_v51 = vld [vmem:[%s2366_s6 + $0x90] sm:$0xff]   ;;  %v1961_v52 = vld [vmem:[%s2366_s6 + $0x120] sm:$0xff]   ;;  %v1965_v53 = vld [vmem:[%s2366_s6 + $0xc8] sm:$0xff]  }
  0x1c   : > { %1755 = vmatpush3.bf16.msra.mxu1 %v1939_v17  ;;  %v1966_v54 = vld [vmem:[%s2366_s6 + $0x88] sm:$0xff]   ;;  %v1968_v55 = vld [vmem:[%s2366_s6 + $0xc0] sm:$0xff]   ;;  %v1964_v56 = vld [vmem:[%s2366_s6 + $0x118] sm:$0xff]  }
  0x1d   : > { %1756 = vmatprep.subr.bf16.mxu1 %v1940_v18  ;;  %v1969_v57 = vld [vmem:[%s2366_s6 + $0x80] sm:$0xff]   ;;  %v508_v58 = vld [vmem:[%s2193_s15 + $0x10] sm:$0xff]  ;;  %v1970_v61 = vld [vmem:[%s2366_s6 + $0x108] sm:$0xff]  }
  0x1e   : > { %1828 = vmatpush3.bf16.msra.mxu0 %v1928_v7  ;;  %v1967_v59 = vld [vmem:[%s2366_s6 + $0x110] sm:$0xff]   ;;  %v660_v60 = vpack.c.bf16 %v508_v58, %v508_v58  ;;  %v1971_v62 = vld [vmem:[%s2366_s6 + $0x100] sm:$0xff]   ;;  %v1972_v1 = vld [vmem:[%s2365_s5 + $0x18] sm:$0xff]  }
  0x1f   : > { %1829 = vmatprep.subr.bf16.mxu0 %v1929_v13  ;;  %v510_v63 = vld [vmem:[%s2193_s15 + $0x20] sm:$0xff]  ;;  %v1973_v2 = vld [vmem:[%s2365_s5 + $0x10] sm:$0xff]   ;;  %v1974_v3 = vld [vmem:[%s2365_s5 + $0x8] sm:$0xff]  }
  0x20   : > { %1757 = vmatpush3.bf16.msra.mxu1 %v1941_v21  ;;  %v662_v0 = vpack.c.bf16 %v510_v63, %v510_v63  ;;  %v1975_v4 = vld [vmem:[%s2365_s5] sm:$0xff]  }
  0x21   : > { %1758 = vmatprep.subr.bf16.mxu1 %v1942_v22  ;;  %v1659_v6 = vld [vmem:[%s2364_s4] ss:$0 sm:$0xff] }
  0x22   : > { %1830 = vmatpush3.bf16.msra.mxu0 %v1929_v13  ;;  %v1668_v17 = vld [vmem:[%s490_s29] ss:$0 sm:$0xff]  ;;  %s2035_s29 = smov 64  }
  0x23   : > { %1831 = vmatprep.subr.bf16.mxu0 %v1930_v16 }
  0x24   : > { %1759 = vmatpush3.bf16.msra.mxu1 %v1943_v25 }
  0x25   : > { %1760 = vmatprep.subr.bf16.mxu1 %v1944_v28 }
  0x26   : > { %1832 = vmatpush3.bf16.msra.mxu0 %v1930_v16 }
  0x27   : > { %1833 = vmatprep.subr.bf16.mxu0 %v1931_v19 }
  0x28   : > { %1761 = vmatpush3.bf16.msra.mxu1 %v1945_v32 }
  0x29   : > { %1762 = vmatprep.subr.bf16.mxu1 %v1948_v33 }
  0x2a   : > { %1834 = vmatpush3.bf16.msra.mxu0 %v1931_v19 }
  0x2b   : > { %1770 = vmatprep.subr.bf16.mxu0 %v1946_v24 }
  0x2c   : > { %1763 = vmatpush3.bf16.msra.mxu1 %v1949_v34 }
  0x2d   : > { %1836 = vmatmul.mubr.bf16.vlgmr.msra.gmra.mxu0 %v513_v27  ;;  %1839 = vmatprep.subr.bf16.mxu1 %v2032_v42 }
  0x2e   : > { %1771 = vmatpush3.bf16.msra.mxu0 %v1947_v30  ;;  %1055 = vmatprep.mubr.bf16.mxu0 %v661_v50 }
  0x2f   : > { %1772 = vmatprep.subr.bf16.mxu0 %v1950_v31  ;;  %1016 = vmatmul.mubr.bf16.vlgmr.msra.gmra.mxu1 %v658_v39 }
  0x30   : > { %1840 = vmatpush3.bf16.msra.mxu1 %v1952_v41  ;;  %1855 = vmatprep.mubr.msk.bf16.mxu1 %vm2033_vm0, %v2032_v42  ;;  %v1976_v41 = vld [vmem:[%s2368_s8 + $0x18] sm:$0xff]  }
  0x31   : > { %1841 = vmatprep.subr.bf16.mxu1 %v2032_v42 }
  0x32   : > { %1773 = vmatpush3.bf16.msra.mxu0 %v1951_v35 }
  0x33   : > { %1774 = vmatprep.subr.bf16.mxu0 %v1953_v36 }
  0x34   : > { %1842 = vmatpush3.bf16.msra.mxu1 %v1955_v45  ;;  %v1108_v45 = vlaneseq }
  0x35   : > { %1843 = vmatprep.subr.bf16.mxu1 %v2032_v42 }
  0x36   : > { %1775 = vmatpush3.bf16.msra.mxu0 %v1954_v38 }
  0x37   : > { %1776 = vmatprep.subr.bf16.mxu0 %v1956_v40 }
  0x38   : > { %1844 = vmatpush3.bf16.msra.mxu1 %v1958_v49 }
  0x39   : > { %1845 = vmatprep.subr.bf16.mxu1 %v2032_v42 }
  0x3a   : > { %1777 = vmatpush3.bf16.msra.mxu0 %v1957_v43  ;;  %v2034_v43 = vmov 1966171168  }
  0x3b   : > { %1778 = vmatprep.subr.bf16.mxu0 %v1959_v44  ;;  %v1106_v44 = vunpack.c.l.s4 %v2034_v43 }
  0x3c   : > { %1846 = vmatpush3.bf16.msra.mxu1 %v1961_v52 }
  0x3d   : > { %1847 = vmatprep.subr.bf16.mxu1 %v2032_v42 }
  0x3e   : > { %1779 = vmatpush3.bf16.msra.mxu0 %v1960_v46  ;;  %v1107_v46 = vunpack.c.0.s8 %v1106_v44 }
  0x3f   : > { %1780 = vmatprep.subr.bf16.mxu0 %v1962_v47  ;;  %v1109_v47 = vshrl.u32 %v1108_v45, 7 }
  0x40   : > { %1848 = vmatpush3.bf16.msra.mxu1 %v1964_v56 }
  0x41   : > { %1849 = vmatprep.subr.bf16.mxu1 %v2032_v42  ;;  %v1110_v49 = vsub.s32 %v1107_v46, %v1109_v47 }
  0x42   : > { %1781 = vmatpush3.bf16.msra.mxu0 %v1963_v51 }
  0x43   : > { %1782 = vmatprep.subr.bf16.mxu0 %v1965_v53 }
  0x44   : > { %1850 = vmatpush3.bf16.msra.mxu1 %v1967_v59 }
  0x45   : > { %1851 = vmatprep.subr.bf16.mxu1 %v2032_v42 }
  0x46   : > { %1783 = vmatpush3.bf16.msra.mxu0 %v1966_v54 }
  0x47   : > { %1784 = vmatprep.subr.bf16.mxu0 %v1968_v55 }
  0x48   : > { %1852 = vmatpush3.bf16.msra.mxu1 %v1970_v61 }
  0x49   : > { %1853 = vmatprep.subr.bf16.mxu1 %v2032_v42  ;;  %v1977_v42 = vld [vmem:[%s2368_s8 + $0x10] sm:$0xff]  }
  0x4a   : > { %1785 = vmatpush3.bf16.msra.mxu0 %v1969_v57  ;;  %v1155_v57 = vsub.s32 0, %v1109_v47 }
  0x4b   : > { %1859 = vmatprep.subr.bf16.mxu0 %v1972_v1 }
  0x4c   : > { %1854 = vmatpush3.bf16.msra.mxu1 %v1971_v62 }
  0x4d   : > { %1056 = vmatmul.mubr.bf16.vlgmr.msra.gmra.mxu0 %v660_v60  ;;  %1871 = vmatprep.subr.bf16.mxu1 %v1976_v41 }
  0x4e   : > { %1860 = vmatpush3.bf16.msra.mxu0 %v1972_v1 }
  0x4f   : > { %1856 = vmatmul.mubr.bf16.vlgmr.msra.gmra.mxu1 %v662_v0  ;;  %1861 = vmatprep.subr.bf16.mxu0 %v1973_v2 }
  0x50   : > { %1872 = vmatpush3.bf16.msra.mxu1 %v1976_v41 }
  0x51   : > { %1873 = vmatprep.subr.bf16.mxu1 %v1977_v42 }
  0x52   : > { %1862 = vmatpush3.bf16.msra.mxu0 %v1973_v2 }
  0x53   : > { %1863 = vmatprep.subr.bf16.mxu0 %v1974_v3 }
  0x54   : > { %1874 = vmatpush3.bf16.msra.mxu1 %v1977_v42 }
  0x56   : > { %1864 = vmatpush3.bf16.msra.mxu0 %v1974_v3 }
  0x57   : > { %1865 = vmatprep.subr.bf16.mxu0 %v1975_v4 }
  0x5a   : > { %1866 = vmatpush3.bf16.msra.mxu0 %v1975_v4 }
  0xed   : > { %v1837_v5 = vpop.f32.mrf.mxu0 }
  0xee   : > { %v628_v9 = vadd.f32 %v1837_v5, %v1659_v6 }
  0xef   : > { %v619_v7 = vpop.f32.mrf.mxu0  ;;  %v1764_v20 = vpop.f32.mrf.mxu1 }
  0xf0   : > { %v620_v8 = vadd.f32 %v1659_v6, %v619_v7  ;;  %v636_v16 = vmax.f32 %v628_v9, 0.0  ;;  %v1715_v7 = vld [vmem:[%s2367_s7] ss:$0 sm:$0xff] }
  0xf1   : > { %v1838_v10 = vpop.f32.mrf.mxu0  ;;  %v1765_v24 = vpop.f32.mrf.mxu1 }
  0xf2   : > { %v631_v11 = vadd.f32 %v1838_v10, %v1659_v6  ;;  %v634_v13 = vmax.f32 %v620_v8, 0.0  ;;  %v646_v23 = vadd.f32 %v1668_v17, %v636_v16  ;;  %v1766_v26 = vadd.f32 %v1765_v24, %v1764_v20 }
  0xf3   : > { %v622_v12 = vpop.f32.mrf.mxu0  ;;  %v1767_v28 = vpop.f32.mrf.mxu1 }
  0xf4   : > { %v637_v14 = vmax.f32 %v631_v11, 0.0  ;;  %v623_v15 = vadd.f32 %v1659_v6, %v622_v12  ;;  %v644_v21 = vadd.f32 %v1668_v17, %v634_v13 }
  0xf5   : > { %v1768_v29 = vpop.f32.mrf.mxu1 }
  0xf6   : > { %v635_v18 = vmax.f32 %v623_v15, 0.0  ;;  %v647_v19 = vadd.f32 %v1668_v17, %v637_v14 }
  0xf8   : > { %v645_v22 = vadd.f32 %v1668_v17, %v635_v18  ;;  %v649_v27 = vpack.c.bf16 %v647_v19, %v646_v23 }
  0xfa   : > { %v648_v25 = vpack.c.bf16 %v645_v22, %v644_v21 }
  0xfc   : > { %1867 = vmatprep.mubr.msk.bf16.mxu0 %vm1217_vm1, %v648_v25 }
  0xfd   : > { %1868 = vmatmul.mubr.msk.bf16.vlgmr.msra.gmra.mxu0 %vm1217_vm1, %v649_v27 }
 0x10d   : > { %v1786_v30 = vpop.f32.mrf.mxu0 }
 0x10f   : > { %v1787_v31 = vpop.f32.mrf.mxu0  ;;  %v1097_v36 = vpop.f32.mrf.mxu1 }
 0x110   : > { %v1788_v32 = vadd.f32 %v1787_v31, %v1786_v30 }
 0x111   : > { %v1789_v33 = vpop.f32.mrf.mxu0  ;;  %v1857_v38 = vpop.f32.mrf.mxu1 }
 0x112   : > { %v1058_v34 = vadd.f32 %v1788_v32, %v1766_v26  ;;  %v1980_v38 = vld [vmem:[%s2370_s10 + $0x18] sm:$0xff]  }
 0x113   : > { %v1790_v35 = vpop.f32.mrf.mxu0  ;;  %v1100_v39 = vpop.f32.mrf.mxu1  ;;  %1883 = vmatprep.subr.bf16.mxu0 %v1980_v38 }
 0x114   : > { %v1098_v37 = vadd.f32 %v1097_v36, %v1058_v34  ;;  %v1978_v35 = vld [vmem:[%s2368_s8 + $0x8] sm:$0xff]   ;;  %1884 = vmatpush3.bf16.msra.mxu0 %v1980_v38 }
 0x115   : > { %v1858_v40 = vpop.f32.mrf.mxu1  ;;  %1875 = vmatprep.subr.bf16.mxu1 %v1978_v35 }
 0x116   : > { %v1104_v48 = vcombine.high %v1098_v37, %v1098_v37  ;;  %v1111_v51 = vrot.slane %v1098_v37, %v1110_v49  ;;  %1876 = vmatpush3.bf16.msra.mxu1 %v1978_v35  ;;  %v1979_v37 = vld [vmem:[%s2368_s8] sm:$0xff]  }
 0x117   : > { %1877 = vmatprep.subr.bf16.mxu1 %v1979_v37 }
 0x118   : > { %v1118_v50 = vrot.slane %v1104_v48, %v1110_v49  ;;  %v1119_v53 = vcombine.high %v1111_v51, %v1111_v51  ;;  %v1127_v56 = vrot.slane %v1111_v51, %v1110_v49 }
 0x11a   : > { %v1120_v52 = vcombine.high %v1118_v50, %v1118_v50  ;;  %v1134_v54 = vrot.slane %v1118_v50, %v1110_v49  ;;  %v1141_v58 = vrot.slane %v1119_v53, %v1110_v49  ;;  %v1156_v63 = vrot.slane %v1127_v56, %v1155_v57  ;;  %1878 = vmatpush3.bf16.msra.mxu1 %v1979_v37 }
 0x11b   : > { %v1149_v1 = vcombine.high %v1127_v56, %v1127_v56 }
 0x11c   : > { %v1148_v55 = vrot.slane %v1120_v52, %v1110_v49  ;;  %v1172_v59 = vrot.slane %v1134_v54, %v1155_v57  ;;  %v1150_v61 = vcombine.high %v1134_v54, %v1134_v54  ;;  %v1160_v0 = vrot.slane %v1141_v58, %v1155_v57 }
 0x11d   : > { %v1151_v2 = vcombine.high %v1141_v58, %v1141_v58  ;;  %v1164_v10 = vrot.slane %v1149_v1, %v1155_v57  ;;  %v1982_v58 = vld [vmem:[%s2370_s10 + $0x8] sm:$0xff]  }
 0x11e   : > { %v1176_v60 = vrot.slane %v1148_v55, %v1155_v57  ;;  %v1152_v62 = vcombine.high %v1148_v55, %v1148_v55  ;;  %v1180_v4 = vrot.slane %v1150_v61, %v1155_v57  ;;  %v1209_v9 = vcombine.low %v1156_v63, %v1160_v0 }
 0x11f   : > { %v1168_v11 = vrot.slane %v1151_v2, %v1155_v57 }
 0x120   : > { %v1211_v3 = vcombine.low %v1172_v59, %v1176_v60  ;;  %v1184_v5 = vrot.slane %v1152_v62, %v1155_v57  ;;  %v1981_v57 = vld [vmem:[%s2370_s10 + $0x10] sm:$0xff]   ;;  %v1983_v59 = vld [vmem:[%s2370_s10] sm:$0xff]  }
 0x121   : > { %v1210_v20 = vcombine.low %v1164_v10, %v1168_v11  ;;  %1885 = vmatprep.subr.bf16.mxu0 %v1981_v57  ;;  %v1720_v62 = vld [vmem:[%s2369_s9] ss:$0 sm:$0xff] }
 0x122   : > { %v1212_v15 = vcombine.low %v1180_v4, %v1184_v5  ;;  %1886 = vmatpush3.bf16.msra.mxu0 %v1981_v57  ;;  %v1727_v11 = vld [vmem:[%s2371_s11] ss:$0 sm:$0xff] }
 0x123   : > { %1887 = vmatprep.subr.bf16.mxu0 %v1982_v58 }
 0x126   : > { %1888 = vmatpush3.bf16.msra.mxu0 %v1982_v58 }
 0x127   : > { %1889 = vmatprep.subr.bf16.mxu0 %v1983_v59 }
 0x12a   : > { %1890 = vmatpush3.bf16.msra.mxu0 %v1983_v59 }
 0x1bd   : > { %v1869_v6 = vpop.f32.mrf.mxu0 }
 0x1be   : > { %v1267_v8 = vadd.f32 %v1869_v6, %v1211_v3 }
 0x1bf   : > { %v1258_v12 = vpop.f32.mrf.mxu0 }
 0x1c0   : > { %v1282_v13 = vadd.f32 %v1715_v7, %v1267_v8  ;;  %v1259_v14 = vadd.f32 %v1258_v12, %v1209_v9 }
 0x1c1   : > { %v1870_v16 = vpop.f32.mrf.mxu0 }
 0x1c2   : > { %v1718_v17 = vmul.f32 -1.442695, %v1282_v13  ;;  %v1280_v18 = vadd.f32 %v1715_v7, %v1259_v14  ;;  %v1270_v19 = vadd.f32 %v1870_v16, %v1212_v15 }
 0x1c3   : > { %v1261_v21 = vpop.f32.mrf.mxu0 }
 0x1c4   : > { %1984 = vpow2.f32 %v1718_v17  ;;  %v1716_v22 = vmul.f32 -1.442695, %v1280_v18  ;;  %v1283_v23 = vadd.f32 %v1715_v7, %v1270_v19  ;;  %v1262_v24 = vadd.f32 %v1261_v21, %v1210_v20 }
 0x1c6   : > { %1986 = vpow2.f32 %v1716_v22  ;;  %v1719_v25 = vmul.f32 -1.442695, %v1283_v23  ;;  %v1281_v26 = vadd.f32 %v1715_v7, %v1262_v24 }
 0x1c8   : > { %1988 = vpow2.f32 %v1719_v25  ;;  %v1717_v27 = vmul.f32 -1.442695, %v1281_v26 }
 0x1ca   : > { %1990 = vpow2.f32 %v1717_v27 }
 0x1d1   : > { %v1985_v28 = vpop.eup %1984 }
 0x1d2   : > { %v1302_v29 = vadd.f32 1.0, %v1985_v28 }
 0x1d3   : > { %v1987_v30 = vpop.eup %1986 }
 0x1d4   : > { %1992 = vrcp.f32 %v1302_v29  ;;  %v1300_v31 = vadd.f32 1.0, %v1987_v30 }
 0x1d5   : > { %v1989_v32 = vpop.eup %1988 }
 0x1d6   : > { %1994 = vrcp.f32 %v1300_v31  ;;  %v1303_v33 = vadd.f32 1.0, %v1989_v32 }
 0x1d7   : > { %v1991_v34 = vpop.eup %1990 }
 0x1d8   : > { %1996 = vrcp.f32 %v1303_v33  ;;  %v1301_v36 = vadd.f32 1.0, %v1991_v34 }
 0x1da   : > { %1998 = vrcp.f32 %v1301_v36 }
 0x1db   : > { %2000 = vtanh.f32 %v1282_v13 }
 0x1dc   : > { %2002 = vtanh.f32 %v1283_v23 }
 0x1dd   : > { %2004 = vtanh.f32 %v1280_v18 }
 0x1de   : > { %2006 = vtanh.f32 %v1281_v26 }
 0x1e1   : > { %v1993_v39 = vpop.eup %1992 }
 0x1e2   : > { %1320 = vrot.lane.b32.xlu1 %v1993_v39, %s2035_s29 }
 0x1e3   : > { %v1995_v40 = vpop.eup %1994 }
 0x1e4   : > { %1316 = vrot.lane.b32.xlu0 %v1995_v40, %s2035_s29 }
 0x1e5   : > { %v1997_v41 = vpop.eup %1996 }
 0x1e6   : > { %1322 = vrot.lane.b32.xlu1 %v1997_v41, %s2035_s29 }
 0x1e7   : > { %v1999_v42 = vpop.eup %1998 }
 0x1e8   : > { %1318 = vrot.lane.b32.xlu0 %v1999_v42, %s2035_s29  ;;  %v2001_v45 = vpop.eup %2000  ;;  %s499_s29 = scalar_lea.vmem %s2372_s12, %s1736_s13 }
 0x1e9   : > { %v2003_v46 = vpop.eup %2002 }
 0x1ea   : > { %v2005_v48 = vpop.eup %2004 }
 0x1eb   : > { %v2007_v51 = vpop.eup %2006 }
 0x254   : > { %v1321_v43 = vpop.permute.xlu1 %1320 }
 0x255   : > { %v1330_v49 = vmul.f32 %v2001_v45, %v1321_v43 }
 0x256   : > { %v1317_v44 = vpop.permute.xlu0 %1316 }
 0x257   : > { %v1328_v53 = vmul.f32 %v2005_v48, %v1317_v44 }
 0x258   : > { %v1323_v47 = vpop.permute.xlu1 %1322 }
 0x259   : > { %v1331_v50 = vmul.f32 %v2003_v46, %v1323_v47 }
 0x25a   : > { %v1319_v52 = vpop.permute.xlu0 %1318 }
 0x25b   : > { %v1333_v54 = vpack.c.bf16 %v1331_v50, %v1330_v49  ;;  %v1329_v55 = vmul.f32 %v2007_v51, %v1319_v52 }
 0x25d   : > { %v1332_v56 = vpack.c.bf16 %v1329_v55, %v1328_v53 }
 0x25f   : > { %1879 = vmatprep.mubr.msk.bf16.mxu1 %vm1217_vm1, %v1332_v56 }
 0x260   : > { %1880 = vmatmul.mubr.msk.bf16.vlgmr.msra.gmra.mxu1 %vm1217_vm1, %v1333_v54 }
 0x320   : > { %v1881_v60 = vpop.f32.mrf.mxu1 }
 0x321   : > { %v1422_v2 = vadd.f32 %v1881_v60, %v1720_v62 }
 0x322   : > { %v1413_v61 = vpop.f32.mrf.mxu1 }
 0x323   : > { %v1414_v0 = vadd.f32 %v1720_v62, %v1413_v61  ;;  %v1430_v8 = vmax.f32 %v1422_v2, 0.0 }
 0x324   : > { %v1882_v63 = vpop.f32.mrf.mxu1 }
 0x325   : > { %v1425_v1 = vadd.f32 %v1882_v63, %v1720_v62  ;;  %v1428_v6 = vmax.f32 %v1414_v0, 0.0 }
 0x326   : > { %v1416_v3 = vpop.f32.mrf.mxu1 }
 0x327   : > { %v1417_v4 = vadd.f32 %v1720_v62, %v1416_v3  ;;  %v1431_v5 = vmax.f32 %v1425_v1, 0.0 }
 0x329   : > { %v1429_v7 = vmax.f32 %v1417_v4, 0.0  ;;  %v1433_v10 = vpack.c.bf16 %v1431_v5, %v1430_v8 }
 0x32b   : > { %v1432_v9 = vpack.c.bf16 %v1429_v7, %v1428_v6 }
 0x32d   : > { %1891 = vmatprep.mubr.msk.bf16.mxu0 %vm1217_vm1, %v1432_v9 }
 0x32e   : > { %1892 = vmatmul.mubr.msk.bf16.vlgmr.msra.gmra.mxu0 %vm1217_vm1, %v1433_v10 }
 0x3ee   : > { %v1893_v12 = vpop.f32.mrf.mxu0 }
 0x3ef   : > { %v1522_v13 = vadd.f32 %v1893_v12, %v1727_v11 }
 0x3f0   : > { %v1513_v14 = vpop.f32.mrf.mxu0 }
 0x3f1   : > { %1530 = vst [vmem:[%s499_s29 + $0x10] sm:$0xff] %v1522_v13  ;;  %v1514_v15 = vadd.f32 %v1727_v11, %v1513_v14 }
 0x3f2   : > { %v1894_v16 = vpop.f32.mrf.mxu0 }
 0x3f3   : > { %1528 = vst [vmem:[%s499_s29] sm:$0xff] %v1514_v15  ;;  %v1525_v17 = vadd.f32 %v1894_v16, %v1727_v11 }
 0x3f4   : > { %v1516_v18 = vpop.f32.mrf.mxu0 }
 0x3f5   : > { %1531 = vst [vmem:[%s499_s29 + $0x18] sm:$0xff] %v1525_v17  ;;  %v1517_v19 = vadd.f32 %v1727_v11, %v1516_v18 }
 0x3f7   : > { %1529 = vst [vmem:[%s499_s29 + $0x8] sm:$0xff] %v1517_v19 }
 0x3f8 PF: > { %s22_s23 = sadd.s32 1, %s2030_s23   ;;  %s2373_s21 = smov %s2026_s22 }
 0x3f9   : > { %p19_p5 = scmp.ge.s32.totalorder %s22_s23, 4   ;;  %s2374_s22 = smov %s2376_s24 }
 0x3fb   :  { %21 = sbr.rel (!%p19_p5) target bundleno = 2 (0x2), region = 104 }

// kernel: vtts_forward.5
= control target key start
LH: loop header
LB: loop body
LE: loop exit
PB: predicated region body
PF: predicated region fallthrough
CT: control target
= control target key end

     0   :  { %s15414_s12 = smov 0   ;;  %s15416_s13 = smov 0   ;;  %s18577_s0 = inlined_call_operand.vmem [shape: f32[16,7808], index: 0, kind: input, shape index: {}]   ;;  %s18578_s1 = inlined_call_operand.vmem [shape: bf16[7808,512], index: 1, kind: input, shape index: {}]   ;;  %s18579_s2 = inlined_call_operand.vmem [shape: f32[1,512], index: 2, kind: input, shape index: {}]   ;;  %s18580_s3 = inlined_call_operand.vmem [shape: f32[16,512], index: 3, kind: output, shape index: {}]  }
   0x1   :  { %s15418_s14 = smov 0   ;;  %s15420_s15 = smov 0  }
   0x2   :  { %s15422_s16 = smov 0  }
   0x3 LB: > { %s25_s17 = sadd.s32 1, %s15386_s15  ;;  %s13630_s18 = sadd.s32 4294967295, %s15390_s16   ;;  %s15390_s16 = sphi %s15422_s16, %s13_s16   ;;  %s15386_s15 = sphi %s15420_s15, %s18619_s15   ;;  %s15382_s14 = sphi %s15418_s14, %s18618_s14   ;;  %s15378_s13 = sphi %s15416_s13, %s18617_s13   ;;  %s15374_s12 = sphi %s15414_s12, %s18616_s12  }
   0x4   : > { %p27_p0 = scmp.ge.s32.totalorder %s25_s17, 4  ;;  %p67_p1 = scmp.ne.s32.totalorder %s15378_s13, %s15374_s12 }
   0x5   : > { %p68_p2 = scmp.eq.s32.totalorder %s15390_s16, 0  ;;  %p123_p4 = scmp.eq.s32.totalorder %s13630_s18, 3 }
   0x6   : > { %s18621_s17 = smov (%p27_p0, %s25_s17), 0  ;;  %s60_s20 = sadd.s32 1, %s15378_s13 }
   0x7   : > { %p69_p3 = por %p68_p2, %p67_p1  ;;  %s56_s19 = ssub.s32 %s15386_s15, %s18621_s17 }
   0x8   : > { %p58_p5 = scmp.eq.s32.totalorder %s56_s19, 0  ;;  %p15449_p6 = por %p123_p4, %p67_p1 }
   0x9   : > { %p13634_p7 = scmp.ge.s32.totalorder %s15390_s16, 4 }
   0xa   : > { %s15454_s22 = scalar_select %p58_p5, %s15378_s13, %s60_s20  }
   0xb   : > { %154 = sbr.rel (%p13634_p7) target bundleno = 671 (0x29f), region = 20 }
  0x10   : > { %157 = sbr.rel (!%p69_p3) target bundleno = 671 (0x29f), region = 24  ;;  %s159_s23 = sand.u32 (%p69_p3), 1, %s15378_s13  }
  0x11   : > { %s13635_s24 = sshll.u32 (%p69_p3), %s15386_s15, 2  ;;  %s14820_s25 = smul.u32 (%p69_p3), 3904, %s159_s23 }
  0x12   : > { %s15462_s28 = scalar_lea.vmem (%p69_p3), %s18578_s1, %s13635_s24 }
  0x13   : > { %v183_v0 = vld [vmem:[%s15462_s28] sm:$0xf] (%p69_p3)  ;;  %v185_v1 = vld [vmem:[%s15462_s28 + $0x10] sm:$0xf] (%p69_p3)  ;;  %s15469_s29 = scalar_lea.vmem (%p69_p3), [#allocation3], %s14820_s25 }
  0x14   : > { %v187_v2 = vld [vmem:[%s15462_s28 + $0x20] sm:$0xf] (%p69_p3)  ;;  %v189_v3 = vld [vmem:[%s15462_s28 + $0x30] sm:$0xf] (%p69_p3)  ;;  %184 = vst [vmem:[%s15469_s29] sm:$0xf] (%p69_p3), %v183_v0 }
  0x15   : > { %v191_v4 = vld [vmem:[%s15462_s28 + $0x40] sm:$0xf]  ;;  %186 = vst [vmem:[%s15469_s29 + $0x4] sm:$0xf] %v185_v1  ;;  %188 = vst [vmem:[%s15469_s29 + $0x8] sm:$0xf] %v187_v2 }
  0x16   : > { %190 = vst [vmem:[%s15469_s29 + $0xc] sm:$0xf] %v189_v3  ;;  %192 = vst [vmem:[%s15469_s29 + $0x10] sm:$0xf] %v191_v4  ;;  %v193_v5 = vld [vmem:[%s15462_s28 + $0x50] sm:$0xf] }
  0x17   : > { %v195_v6 = vld [vmem:[%s15462_s28 + $0x60] sm:$0xf]  ;;  %v197_v7 = vld [vmem:[%s15462_s28 + $0x70] sm:$0xf]  ;;  %194 = vst [vmem:[%s15469_s29 + $0x14] sm:$0xf] %v193_v5 }
  0x18   : > { %196 = vst [vmem:[%s15469_s29 + $0x18] sm:$0xf] %v195_v6  ;;  %198 = vst [vmem:[%s15469_s29 + $0x1c] sm:$0xf] %v197_v7  ;;  %v199_v8 = vld [vmem:[%s15462_s28 + $0x80] sm:$0xf] }
  0x19   : > { %v201_v9 = vld [vmem:[%s15462_s28 + $0x90] sm:$0xf]  ;;  %v203_v10 = vld [vmem:[%s15462_s28 + $0xa0] sm:$0xf]  ;;  %200 = vst [vmem:[%s15469_s29 + $0x20] sm:$0xf] %v199_v8 }
  0x1a   : > { %202 = vst [vmem:[%s15469_s29 + $0x24] sm:$0xf] %v201_v9  ;;  %204 = vst [vmem:[%s15469_s29 + $0x28] sm:$0xf] %v203_v10  ;;  %v205_v11 = vld [vmem:[%s15462_s28 + $0xb0] sm:$0xf] }
  0x1b   : > { %v207_v12 = vld [vmem:[%s15462_s28 + $0xc0] sm:$0xf]  ;;  %v209_v13 = vld [vmem:[%s15462_s28 + $0xd0] sm:$0xf]  ;;  %206 = vst [vmem:[%s15469_s29 + $0x2c] sm:$0xf] %v205_v11 }
  0x1c   : > { %208 = vst [vmem:[%s15469_s29 + $0x30] sm:$0xf] %v207_v12  ;;  %210 = vst [vmem:[%s15469_s29 + $0x34] sm:$0xf] %v209_v13  ;;  %v211_v14 = vld [vmem:[%s15462_s28 + $0xe0] sm:$0xf] }
  0x1d   : > { %v213_v15 = vld [vmem:[%s15462_s28 + $0xf0] sm:$0xf]  ;;  %v215_v16 = vld [vmem:[%s15462_s28 + $0x100] sm:$0xf]  ;;  %212 = vst [vmem:[%s15469_s29 + $0x38] sm:$0xf] %v211_v14 }
  0x1e   : > { %214 = vst [vmem:[%s15469_s29 + $0x3c] sm:$0xf] %v213_v15  ;;  %216 = vst [vmem:[%s15469_s29 + $0x40] sm:$0xf] %v215_v16  ;;  %v217_v17 = vld [vmem:[%s15462_s28 + $0x110] sm:$0xf] }
  0x1f   : > { %v219_v18 = vld [vmem:[%s15462_s28 + $0x120] sm:$0xf]  ;;  %v221_v19 = vld [vmem:[%s15462_s28 + $0x130] sm:$0xf]  ;;  %218 = vst [vmem:[%s15469_s29 + $0x44] sm:$0xf] %v217_v17 }
  0x20   : > { %220 = vst [vmem:[%s15469_s29 + $0x48] sm:$0xf] %v219_v18  ;;  %222 = vst [vmem:[%s15469_s29 + $0x4c] sm:$0xf] %v221_v19  ;;  %v223_v20 = vld [vmem:[%s15462_s28 + $0x140] sm:$0xf] }
  0x21   : > { %v225_v21 = vld [vmem:[%s15462_s28 + $0x150] sm:$0xf]  ;;  %v227_v22 = vld [vmem:[%s15462_s28 + $0x160] sm:$0xf]  ;;  %224 = vst [vmem:[%s15469_s29 + $0x50] sm:$0xf] %v223_v20 }
  0x22   : > { %226 = vst [vmem:[%s15469_s29 + $0x54] sm:$0xf] %v225_v21  ;;  %228 = vst [vmem:[%s15469_s29 + $0x58] sm:$0xf] %v227_v22  ;;  %v229_v23 = vld [vmem:[%s15462_s28 + $0x170] sm:$0xf] }
  0x23   : > { %v231_v24 = vld [vmem:[%s15462_s28 + $0x180] sm:$0xf]  ;;  %v233_v25 = vld [vmem:[%s15462_s28 + $0x190] sm:$0xf]  ;;  %230 = vst [vmem:[%s15469_s29 + $0x5c] sm:$0xf] %v229_v23 }
  0x24   : > { %232 = vst [vmem:[%s15469_s29 + $0x60] sm:$0xf] %v231_v24  ;;  %234 = vst [vmem:[%s15469_s29 + $0x64] sm:$0xf] %v233_v25  ;;  %v235_v26 = vld [vmem:[%s15462_s28 + $0x1a0] sm:$0xf] }
  0x25   : > { %v237_v27 = vld [vmem:[%s15462_s28 + $0x1b0] sm:$0xf]  ;;  %v239_v28 = vld [vmem:[%s15462_s28 + $0x1c0] sm:$0xf]  ;;  %236 = vst [vmem:[%s15469_s29 + $0x68] sm:$0xf] %v235_v26 }
  0x26   : > { %238 = vst [vmem:[%s15469_s29 + $0x6c] sm:$0xf] %v237_v27  ;;  %240 = vst [vmem:[%s15469_s29 + $0x70] sm:$0xf] %v239_v28  ;;  %v241_v29 = vld [vmem:[%s15462_s28 + $0x1d0] sm:$0xf] }
  0x27   : > { %v243_v30 = vld [vmem:[%s15462_s28 + $0x1e0] sm:$0xf]  ;;  %v245_v31 = vld [vmem:[%s15462_s28 + $0x1f0] sm:$0xf]  ;;  %242 = vst [vmem:[%s15469_s29 + $0x74] sm:$0xf] %v241_v29 }
  0x28   : > { %244 = vst [vmem:[%s15469_s29 + $0x78] sm:$0xf] %v243_v30  ;;  %246 = vst [vmem:[%s15469_s29 + $0x7c] sm:$0xf] %v245_v31  ;;  %v247_v32 = vld [vmem:[%s15462_s28 + $0x200] sm:$0xf] }
  0x29   : > { %v249_v33 = vld [vmem:[%s15462_s28 + $0x210] sm:$0xf]  ;;  %v251_v34 = vld [vmem:[%s15462_s28 + $0x220] sm:$0xf]  ;;  %248 = vst [vmem:[%s15469_s29 + $0x80] sm:$0xf] %v247_v32 }
  0x2a   : > { %250 = vst [vmem:[%s15469_s29 + $0x84] sm:$0xf] %v249_v33  ;;  %252 = vst [vmem:[%s15469_s29 + $0x88] sm:$0xf] %v251_v34  ;;  %v253_v35 = vld [vmem:[%s15462_s28 + $0x230] sm:$0xf] }
  0x2b   : > { %v255_v36 = vld [vmem:[%s15462_s28 + $0x240] sm:$0xf]  ;;  %v257_v37 = vld [vmem:[%s15462_s28 + $0x250] sm:$0xf]  ;;  %254 = vst [vmem:[%s15469_s29 + $0x8c] sm:$0xf] %v253_v35 }
  0x2c   : > { %256 = vst [vmem:[%s15469_s29 + $0x90] sm:$0xf] %v255_v36  ;;  %258 = vst [vmem:[%s15469_s29 + $0x94] sm:$0xf] %v257_v37  ;;  %v259_v38 = vld [vmem:[%s15462_s28 + $0x260] sm:$0xf] }
  0x2d   : > { %v261_v39 = vld [vmem:[%s15462_s28 + $0x270] sm:$0xf]  ;;  %v263_v40 = vld [vmem:[%s15462_s28 + $0x280] sm:$0xf]  ;;  %260 = vst [vmem:[%s15469_s29 + $0x98] sm:$0xf] %v259_v38 }
  0x2e   : > { %262 = vst [vmem:[%s15469_s29 + $0x9c] sm:$0xf] %v261_v39  ;;  %264 = vst [vmem:[%s15469_s29 + $0xa0] sm:$0xf] %v263_v40  ;;  %v265_v41 = vld [vmem:[%s15462_s28 + $0x290] sm:$0xf] }
  0x2f   : > { %v267_v42 = vld [vmem:[%s15462_s28 + $0x2a0] sm:$0xf]  ;;  %v269_v43 = vld [vmem:[%s15462_s28 + $0x2b0] sm:$0xf]  ;;  %266 = vst [vmem:[%s15469_s29 + $0xa4] sm:$0xf] %v265_v41 }
  0x30   : > { %268 = vst [vmem:[%s15469_s29 + $0xa8] sm:$0xf] %v267_v42  ;;  %270 = vst [vmem:[%s15469_s29 + $0xac] sm:$0xf] %v269_v43  ;;  %v271_v44 = vld [vmem:[%s15462_s28 + $0x2c0] sm:$0xf] }
  0x31   : > { %v273_v45 = vld [vmem:[%s15462_s28 + $0x2d0] sm:$0xf]  ;;  %v275_v46 = vld [vmem:[%s15462_s28 + $0x2e0] sm:$0xf]  ;;  %272 = vst [vmem:[%s15469_s29 + $0xb0] sm:$0xf] %v271_v44 }
  0x32   : > { %274 = vst [vmem:[%s15469_s29 + $0xb4] sm:$0xf] %v273_v45  ;;  %276 = vst [vmem:[%s15469_s29 + $0xb8] sm:$0xf] %v275_v46  ;;  %v277_v47 = vld [vmem:[%s15462_s28 + $0x2f0] sm:$0xf] }
  0x33   : > { %v279_v48 = vld [vmem:[%s15462_s28 + $0x300] sm:$0xf]  ;;  %v281_v49 = vld [vmem:[%s15462_s28 + $0x310] sm:$0xf]  ;;  %278 = vst [vmem:[%s15469_s29 + $0xbc] sm:$0xf] %v277_v47 }
  0x34   : > { %280 = vst [vmem:[%s15469_s29 + $0xc0] sm:$0xf] %v279_v48  ;;  %282 = vst [vmem:[%s15469_s29 + $0xc4] sm:$0xf] %v281_v49  ;;  %v283_v50 = vld [vmem:[%s15462_s28 + $0x320] sm:$0xf] }
  0x35   : > { %v285_v51 = vld [vmem:[%s15462_s28 + $0x330] sm:$0xf]  ;;  %v287_v52 = vld [vmem:[%s15462_s28 + $0x340] sm:$0xf]  ;;  %284 = vst [vmem:[%s15469_s29 + $0xc8] sm:$0xf] %v283_v50 }
  0x36   : > { %286 = vst [vmem:[%s15469_s29 + $0xcc] sm:$0xf] %v285_v51  ;;  %288 = vst [vmem:[%s15469_s29 + $0xd0] sm:$0xf] %v287_v52  ;;  %v289_v53 = vld [vmem:[%s15462_s28 + $0x350] sm:$0xf] }
  0x37   : > { %v291_v54 = vld [vmem:[%s15462_s28 + $0x360] sm:$0xf]  ;;  %v293_v55 = vld [vmem:[%s15462_s28 + $0x370] sm:$0xf]  ;;  %290 = vst [vmem:[%s15469_s29 + $0xd4] sm:$0xf] %v289_v53 }
  0x38   : > { %292 = vst [vmem:[%s15469_s29 + $0xd8] sm:$0xf] %v291_v54  ;;  %294 = vst [vmem:[%s15469_s29 + $0xdc] sm:$0xf] %v293_v55  ;;  %v295_v56 = vld [vmem:[%s15462_s28 + $0x380] sm:$0xf] }
  0x39   : > { %v297_v57 = vld [vmem:[%s15462_s28 + $0x390] sm:$0xf]  ;;  %v299_v58 = vld [vmem:[%s15462_s28 + $0x3a0] sm:$0xf]  ;;  %296 = vst [vmem:[%s15469_s29 + $0xe0] sm:$0xf] %v295_v56 }
  0x3a   : > { %298 = vst [vmem:[%s15469_s29 + $0xe4] sm:$0xf] %v297_v57  ;;  %300 = vst [vmem:[%s15469_s29 + $0xe8] sm:$0xf] %v299_v58  ;;  %v301_v59 = vld [vmem:[%s15462_s28 + $0x3b0] sm:$0xf] }
  0x3b   : > { %v303_v60 = vld [vmem:[%s15462_s28 + $0x3c0] sm:$0xf]  ;;  %v305_v61 = vld [vmem:[%s15462_s28 + $0x3d0] sm:$0xf]  ;;  %302 = vst [vmem:[%s15469_s29 + $0xec] sm:$0xf] %v301_v59 }
  0x3c   : > { %304 = vst [vmem:[%s15469_s29 + $0xf0] sm:$0xf] %v303_v60  ;;  %306 = vst [vmem:[%s15469_s29 + $0xf4] sm:$0xf] %v305_v61  ;;  %v307_v62 = vld [vmem:[%s15462_s28 + $0x3e0] sm:$0xf] }
  0x3d   : > { %v309_v63 = vld [vmem:[%s15462_s28 + $0x3f0] sm:$0xf]  ;;  %v311_v0 = vld [vmem:[%s15462_s28 + $0x400] sm:$0xf]  ;;  %308 = vst [vmem:[%s15469_s29 + $0xf8] sm:$0xf] %v307_v62 }
  0x3e   : > { %310 = vst [vmem:[%s15469_s29 + $0xfc] sm:$0xf] %v309_v63  ;;  %312 = vst [vmem:[%s15469_s29 + $0x100] sm:$0xf] %v311_v0  ;;  %v313_v1 = vld [vmem:[%s15462_s28 + $0x410] sm:$0xf] }
  0x3f   : > { %v315_v2 = vld [vmem:[%s15462_s28 + $0x420] sm:$0xf]  ;;  %v317_v3 = vld [vmem:[%s15462_s28 + $0x430] sm:$0xf]  ;;  %314 = vst [vmem:[%s15469_s29 + $0x104] sm:$0xf] %v313_v1 }
  0x40   : > { %316 = vst [vmem:[%s15469_s29 + $0x108] sm:$0xf] %v315_v2  ;;  %318 = vst [vmem:[%s15469_s29 + $0x10c] sm:$0xf] %v317_v3  ;;  %v319_v4 = vld [vmem:[%s15462_s28 + $0x440] sm:$0xf] }
  0x41   : > { %v321_v5 = vld [vmem:[%s15462_s28 + $0x450] sm:$0xf]  ;;  %v323_v6 = vld [vmem:[%s15462_s28 + $0x460] sm:$0xf]  ;;  %320 = vst [vmem:[%s15469_s29 + $0x110] sm:$0xf] %v319_v4 }
  0x42   : > { %322 = vst [vmem:[%s15469_s29 + $0x114] sm:$0xf] %v321_v5  ;;  %324 = vst [vmem:[%s15469_s29 + $0x118] sm:$0xf] %v323_v6  ;;  %v325_v7 = vld [vmem:[%s15462_s28 + $0x470] sm:$0xf] }
  0x43   : > { %v327_v8 = vld [vmem:[%s15462_s28 + $0x480] sm:$0xf]  ;;  %v329_v9 = vld [vmem:[%s15462_s28 + $0x490] sm:$0xf]  ;;  %326 = vst [vmem:[%s15469_s29 + $0x11c] sm:$0xf] %v325_v7 }
  0x44   : > { %328 = vst [vmem:[%s15469_s29 + $0x120] sm:$0xf] %v327_v8  ;;  %330 = vst [vmem:[%s15469_s29 + $0x124] sm:$0xf] %v329_v9  ;;  %v331_v10 = vld [vmem:[%s15462_s28 + $0x4a0] sm:$0xf] }
  0x45   : > { %v333_v11 = vld [vmem:[%s15462_s28 + $0x4b0] sm:$0xf]  ;;  %v335_v12 = vld [vmem:[%s15462_s28 + $0x4c0] sm:$0xf]  ;;  %332 = vst [vmem:[%s15469_s29 + $0x128] sm:$0xf] %v331_v10 }
  0x46   : > { %334 = vst [vmem:[%s15469_s29 + $0x12c] sm:$0xf] %v333_v11  ;;  %336 = vst [vmem:[%s15469_s29 + $0x130] sm:$0xf] %v335_v12  ;;  %v337_v13 = vld [vmem:[%s15462_s28 + $0x4d0] sm:$0xf] }
  0x47   : > { %v339_v14 = vld [vmem:[%s15462_s28 + $0x4e0] sm:$0xf]  ;;  %v341_v15 = vld [vmem:[%s15462_s28 + $0x4f0] sm:$0xf]  ;;  %338 = vst [vmem:[%s15469_s29 + $0x134] sm:$0xf] %v337_v13 }
  0x48   : > { %340 = vst [vmem:[%s15469_s29 + $0x138] sm:$0xf] %v339_v14  ;;  %342 = vst [vmem:[%s15469_s29 + $0x13c] sm:$0xf] %v341_v15  ;;  %v343_v16 = vld [vmem:[%s15462_s28 + $0x500] sm:$0xf] }
  0x49   : > { %v345_v17 = vld [vmem:[%s15462_s28 + $0x510] sm:$0xf]  ;;  %v347_v18 = vld [vmem:[%s15462_s28 + $0x520] sm:$0xf]  ;;  %344 = vst [vmem:[%s15469_s29 + $0x140] sm:$0xf] %v343_v16 }
  0x4a   : > { %346 = vst [vmem:[%s15469_s29 + $0x144] sm:$0xf] %v345_v17  ;;  %348 = vst [vmem:[%s15469_s29 + $0x148] sm:$0xf] %v347_v18  ;;  %v349_v19 = vld [vmem:[%s15462_s28 + $0x530] sm:$0xf] }
  0x4b   : > { %v351_v20 = vld [vmem:[%s15462_s28 + $0x540] sm:$0xf]  ;;  %v353_v21 = vld [vmem:[%s15462_s28 + $0x550] sm:$0xf]  ;;  %350 = vst [vmem:[%s15469_s29 + $0x14c] sm:$0xf] %v349_v19 }
  0x4c   : > { %352 = vst [vmem:[%s15469_s29 + $0x150] sm:$0xf] %v351_v20  ;;  %354 = vst [vmem:[%s15469_s29 + $0x154] sm:$0xf] %v353_v21  ;;  %v355_v22 = vld [vmem:[%s15462_s28 + $0x560] sm:$0xf] }
  0x4d   : > { %v357_v23 = vld [vmem:[%s15462_s28 + $0x570] sm:$0xf]  ;;  %v359_v24 = vld [vmem:[%s15462_s28 + $0x580] sm:$0xf]  ;;  %356 = vst [vmem:[%s15469_s29 + $0x158] sm:$0xf] %v355_v22 }
  0x4e   : > { %358 = vst [vmem:[%s15469_s29 + $0x15c] sm:$0xf] %v357_v23  ;;  %360 = vst [vmem:[%s15469_s29 + $0x160] sm:$0xf] %v359_v24  ;;  %v361_v25 = vld [vmem:[%s15462_s28 + $0x590] sm:$0xf] }
  0x4f   : > { %v363_v26 = vld [vmem:[%s15462_s28 + $0x5a0] sm:$0xf]  ;;  %v365_v27 = vld [vmem:[%s15462_s28 + $0x5b0] sm:$0xf]  ;;  %362 = vst [vmem:[%s15469_s29 + $0x164] sm:$0xf] %v361_v25 }
  0x50   : > { %364 = vst [vmem:[%s15469_s29 + $0x168] sm:$0xf] %v363_v26  ;;  %366 = vst [vmem:[%s15469_s29 + $0x16c] sm:$0xf] %v365_v27  ;;  %v367_v28 = vld [vmem:[%s15462_s28 + $0x5c0] sm:$0xf] }
  0x51   : > { %v369_v29 = vld [vmem:[%s15462_s28 + $0x5d0] sm:$0xf]  ;;  %v371_v30 = vld [vmem:[%s15462_s28 + $0x5e0] sm:$0xf]  ;;  %368 = vst [vmem:[%s15469_s29 + $0x170] sm:$0xf] %v367_v28 }
  0x52   : > { %370 = vst [vmem:[%s15469_s29 + $0x174] sm:$0xf] %v369_v29  ;;  %372 = vst [vmem:[%s15469_s29 + $0x178] sm:$0xf] %v371_v30  ;;  %v373_v31 = vld [vmem:[%s15462_s28 + $0x5f0] sm:$0xf] }
  0x53   : > { %v375_v32 = vld [vmem:[%s15462_s28 + $0x600] sm:$0xf]  ;;  %v377_v33 = vld [vmem:[%s15462_s28 + $0x610] sm:$0xf]  ;;  %374 = vst [vmem:[%s15469_s29 + $0x17c] sm:$0xf] %v373_v31 }
  0x54   : > { %376 = vst [vmem:[%s15469_s29 + $0x180] sm:$0xf] %v375_v32  ;;  %378 = vst [vmem:[%s15469_s29 + $0x184] sm:$0xf] %v377_v33  ;;  %v379_v34 = vld [vmem:[%s15462_s28 + $0x620] sm:$0xf] }
  0x55   : > { %v381_v35 = vld [vmem:[%s15462_s28 + $0x630] sm:$0xf]  ;;  %v383_v36 = vld [vmem:[%s15462_s28 + $0x640] sm:$0xf]  ;;  %380 = vst [vmem:[%s15469_s29 + $0x188] sm:$0xf] %v379_v34 }
  0x56   : > { %382 = vst [vmem:[%s15469_s29 + $0x18c] sm:$0xf] %v381_v35  ;;  %384 = vst [vmem:[%s15469_s29 + $0x190] sm:$0xf] %v383_v36  ;;  %v385_v37 = vld [vmem:[%s15462_s28 + $0x650] sm:$0xf] }
  0x57   : > { %v387_v38 = vld [vmem:[%s15462_s28 + $0x660] sm:$0xf]  ;;  %v389_v39 = vld [vmem:[%s15462_s28 + $0x670] sm:$0xf]  ;;  %386 = vst [vmem:[%s15469_s29 + $0x194] sm:$0xf] %v385_v37 }
  0x58   : > { %388 = vst [vmem:[%s15469_s29 + $0x198] sm:$0xf] %v387_v38  ;;  %390 = vst [vmem:[%s15469_s29 + $0x19c] sm:$0xf] %v389_v39  ;;  %v391_v40 = vld [vmem:[%s15462_s28 + $0x680] sm:$0xf] }
  0x59   : > { %v393_v41 = vld [vmem:[%s15462_s28 + $0x690] sm:$0xf]  ;;  %v395_v42 = vld [vmem:[%s15462_s28 + $0x6a0] sm:$0xf]  ;;  %392 = vst [vmem:[%s15469_s29 + $0x1a0] sm:$0xf] %v391_v40 }
  0x5a   : > { %394 = vst [vmem:[%s15469_s29 + $0x1a4] sm:$0xf] %v393_v41  ;;  %396 = vst [vmem:[%s15469_s29 + $0x1a8] sm:$0xf] %v395_v42  ;;  %v397_v43 = vld [vmem:[%s15462_s28 + $0x6b0] sm:$0xf] }
  0x5b   : > { %v399_v44 = vld [vmem:[%s15462_s28 + $0x6c0] sm:$0xf]  ;;  %v401_v45 = vld [vmem:[%s15462_s28 + $0x6d0] sm:$0xf]  ;;  %398 = vst [vmem:[%s15469_s29 + $0x1ac] sm:$0xf] %v397_v43 }
  0x5c   : > { %400 = vst [vmem:[%s15469_s29 + $0x1b0] sm:$0xf] %v399_v44  ;;  %402 = vst [vmem:[%s15469_s29 + $0x1b4] sm:$0xf] %v401_v45  ;;  %v403_v46 = vld [vmem:[%s15462_s28 + $0x6e0] sm:$0xf] }
  0x5d   : > { %v405_v47 = vld [vmem:[%s15462_s28 + $0x6f0] sm:$0xf]  ;;  %v407_v48 = vld [vmem:[%s15462_s28 + $0x700] sm:$0xf]  ;;  %404 = vst [vmem:[%s15469_s29 + $0x1b8] sm:$0xf] %v403_v46 }
  0x5e   : > { %406 = vst [vmem:[%s15469_s29 + $0x1bc] sm:$0xf] %v405_v47  ;;  %408 = vst [vmem:[%s15469_s29 + $0x1c0] sm:$0xf] %v407_v48  ;;  %v409_v49 = vld [vmem:[%s15462_s28 + $0x710] sm:$0xf] }
  0x5f   : > { %v411_v50 = vld [vmem:[%s15462_s28 + $0x720] sm:$0xf]  ;;  %v413_v51 = vld [vmem:[%s15462_s28 + $0x730] sm:$0xf]  ;;  %410 = vst [vmem:[%s15469_s29 + $0x1c4] sm:$0xf] %v409_v49 }
  0x60   : > { %412 = vst [vmem:[%s15469_s29 + $0x1c8] sm:$0xf] %v411_v50  ;;  %414 = vst [vmem:[%s15469_s29 + $0x1cc] sm:$0xf] %v413_v51  ;;  %v415_v52 = vld [vmem:[%s15462_s28 + $0x740] sm:$0xf] }
  0x61   : > { %v417_v53 = vld [vmem:[%s15462_s28 + $0x750] sm:$0xf]  ;;  %v419_v54 = vld [vmem:[%s15462_s28 + $0x760] sm:$0xf]  ;;  %416 = vst [vmem:[%s15469_s29 + $0x1d0] sm:$0xf] %v415_v52 }
  0x62   : > { %418 = vst [vmem:[%s15469_s29 + $0x1d4] sm:$0xf] %v417_v53  ;;  %420 = vst [vmem:[%s15469_s29 + $0x1d8] sm:$0xf] %v419_v54  ;;  %v421_v55 = vld [vmem:[%s15462_s28 + $0x770] sm:$0xf] }
  0x63   : > { %v423_v56 = vld [vmem:[%s15462_s28 + $0x780] sm:$0xf]  ;;  %v425_v57 = vld [vmem:[%s15462_s28 + $0x790] sm:$0xf]  ;;  %422 = vst [vmem:[%s15469_s29 + $0x1dc] sm:$0xf] %v421_v55 }
  0x64   : > { %424 = vst [vmem:[%s15469_s29 + $0x1e0] sm:$0xf] %v423_v56  ;;  %426 = vst [vmem:[%s15469_s29 + $0x1e4] sm:$0xf] %v425_v57  ;;  %v427_v58 = vld [vmem:[%s15462_s28 + $0x7a0] sm:$0xf] }
  0x65   : > { %v429_v59 = vld [vmem:[%s15462_s28 + $0x7b0] sm:$0xf]  ;;  %v431_v60 = vld [vmem:[%s15462_s28 + $0x7c0] sm:$0xf]  ;;  %428 = vst [vmem:[%s15469_s29 + $0x1e8] sm:$0xf] %v427_v58 }
  0x66   : > { %430 = vst [vmem:[%s15469_s29 + $0x1ec] sm:$0xf] %v429_v59  ;;  %432 = vst [vmem:[%s15469_s29 + $0x1f0] sm:$0xf] %v431_v60  ;;  %v433_v61 = vld [vmem:[%s15462_s28 + $0x7d0] sm:$0xf] }
  0x67   : > { %v435_v62 = vld [vmem:[%s15462_s28 + $0x7e0] sm:$0xf]  ;;  %v437_v63 = vld [vmem:[%s15462_s28 + $0x7f0] sm:$0xf]  ;;  %434 = vst [vmem:[%s15469_s29 + $0x1f4] sm:$0xf] %v433_v61 }
  0x68   : > { %436 = vst [vmem:[%s15469_s29 + $0x1f8] sm:$0xf] %v435_v62  ;;  %438 = vst [vmem:[%s15469_s29 + $0x1fc] sm:$0xf] %v437_v63  ;;  %v439_v0 = vld [vmem:[%s15462_s28 + $0x800] sm:$0xf] }
  0x69   : > { %v441_v1 = vld [vmem:[%s15462_s28 + $0x810] sm:$0xf]  ;;  %v443_v2 = vld [vmem:[%s15462_s28 + $0x820] sm:$0xf]  ;;  %440 = vst [vmem:[%s15469_s29 + $0x200] sm:$0xf] %v439_v0 }
  0x6a   : > { %442 = vst [vmem:[%s15469_s29 + $0x204] sm:$0xf] %v441_v1  ;;  %444 = vst [vmem:[%s15469_s29 + $0x208] sm:$0xf] %v443_v2  ;;  %v445_v3 = vld [vmem:[%s15462_s28 + $0x830] sm:$0xf] }
  0x6b   : > { %v447_v4 = vld [vmem:[%s15462_s28 + $0x840] sm:$0xf]  ;;  %v449_v5 = vld [vmem:[%s15462_s28 + $0x850] sm:$0xf]  ;;  %446 = vst [vmem:[%s15469_s29 + $0x20c] sm:$0xf] %v445_v3 }
  0x6c   : > { %448 = vst [vmem:[%s15469_s29 + $0x210] sm:$0xf] %v447_v4  ;;  %450 = vst [vmem:[%s15469_s29 + $0x214] sm:$0xf] %v449_v5  ;;  %v451_v6 = vld [vmem:[%s15462_s28 + $0x860] sm:$0xf] }
  0x6d   : > { %v453_v7 = vld [vmem:[%s15462_s28 + $0x870] sm:$0xf]  ;;  %v455_v8 = vld [vmem:[%s15462_s28 + $0x880] sm:$0xf]  ;;  %452 = vst [vmem:[%s15469_s29 + $0x218] sm:$0xf] %v451_v6 }
  0x6e   : > { %454 = vst [vmem:[%s15469_s29 + $0x21c] sm:$0xf] %v453_v7  ;;  %456 = vst [vmem:[%s15469_s29 + $0x220] sm:$0xf] %v455_v8  ;;  %v457_v9 = vld [vmem:[%s15462_s28 + $0x890] sm:$0xf] }
  0x6f   : > { %v459_v10 = vld [vmem:[%s15462_s28 + $0x8a0] sm:$0xf]  ;;  %v461_v11 = vld [vmem:[%s15462_s28 + $0x8b0] sm:$0xf]  ;;  %458 = vst [vmem:[%s15469_s29 + $0x224] sm:$0xf] %v457_v9 }
  0x70   : > { %460 = vst [vmem:[%s15469_s29 + $0x228] sm:$0xf] %v459_v10  ;;  %462 = vst [vmem:[%s15469_s29 + $0x22c] sm:$0xf] %v461_v11  ;;  %v463_v12 = vld [vmem:[%s15462_s28 + $0x8c0] sm:$0xf] }
  0x71   : > { %v465_v13 = vld [vmem:[%s15462_s28 + $0x8d0] sm:$0xf]  ;;  %v467_v14 = vld [vmem:[%s15462_s28 + $0x8e0] sm:$0xf]  ;;  %464 = vst [vmem:[%s15469_s29 + $0x230] sm:$0xf] %v463_v12 }
  0x72   : > { %466 = vst [vmem:[%s15469_s29 + $0x234] sm:$0xf] %v465_v13  ;;  %468 = vst [vmem:[%s15469_s29 + $0x238] sm:$0xf] %v467_v14  ;;  %v469_v15 = vld [vmem:[%s15462_s28 + $0x8f0] sm:$0xf] }
  0x73   : > { %v471_v16 = vld [vmem:[%s15462_s28 + $0x900] sm:$0xf]  ;;  %v473_v17 = vld [vmem:[%s15462_s28 + $0x910] sm:$0xf]  ;;  %470 = vst [vmem:[%s15469_s29 + $0x23c] sm:$0xf] %v469_v15 }
  0x74   : > { %472 = vst [vmem:[%s15469_s29 + $0x240] sm:$0xf] %v471_v16  ;;  %474 = vst [vmem:[%s15469_s29 + $0x244] sm:$0xf] %v473_v17  ;;  %v475_v18 = vld [vmem:[%s15462_s28 + $0x920] sm:$0xf] }
  0x75   : > { %v477_v19 = vld [vmem:[%s15462_s28 + $0x930] sm:$0xf]  ;;  %v479_v20 = vld [vmem:[%s15462_s28 + $0x940] sm:$0xf]  ;;  %476 = vst [vmem:[%s15469_s29 + $0x248] sm:$0xf] %v475_v18 }
  0x76   : > { %478 = vst [vmem:[%s15469_s29 + $0x24c] sm:$0xf] %v477_v19  ;;  %480 = vst [vmem:[%s15469_s29 + $0x250] sm:$0xf] %v479_v20  ;;  %v481_v21 = vld [vmem:[%s15462_s28 + $0x950] sm:$0xf] }
  0x77   : > { %v483_v22 = vld [vmem:[%s15462_s28 + $0x960] sm:$0xf]  ;;  %v485_v23 = vld [vmem:[%s15462_s28 + $0x970] sm:$0xf]  ;;  %482 = vst [vmem:[%s15469_s29 + $0x254] sm:$0xf] %v481_v21 }
  0x78   : > { %484 = vst [vmem:[%s15469_s29 + $0x258] sm:$0xf] %v483_v22  ;;  %486 = vst [vmem:[%s15469_s29 + $0x25c] sm:$0xf] %v485_v23  ;;  %v487_v24 = vld [vmem:[%s15462_s28 + $0x980] sm:$0xf] }
  0x79   : > { %v489_v25 = vld [vmem:[%s15462_s28 + $0x990] sm:$0xf]  ;;  %v491_v26 = vld [vmem:[%s15462_s28 + $0x9a0] sm:$0xf]  ;;  %488 = vst [vmem:[%s15469_s29 + $0x260] sm:$0xf] %v487_v24 }
  0x7a   : > { %490 = vst [vmem:[%s15469_s29 + $0x264] sm:$0xf] %v489_v25  ;;  %492 = vst [vmem:[%s15469_s29 + $0x268] sm:$0xf] %v491_v26  ;;  %v493_v27 = vld [vmem:[%s15462_s28 + $0x9b0] sm:$0xf] }
  0x7b   : > { %v495_v28 = vld [vmem:[%s15462_s28 + $0x9c0] sm:$0xf]  ;;  %v497_v29 = vld [vmem:[%s15462_s28 + $0x9d0] sm:$0xf]  ;;  %494 = vst [vmem:[%s15469_s29 + $0x26c] sm:$0xf] %v493_v27 }
  0x7c   : > { %496 = vst [vmem:[%s15469_s29 + $0x270] sm:$0xf] %v495_v28  ;;  %498 = vst [vmem:[%s15469_s29 + $0x274] sm:$0xf] %v497_v29  ;;  %v499_v30 = vld [vmem:[%s15462_s28 + $0x9e0] sm:$0xf] }
  0x7d   : > { %v501_v31 = vld [vmem:[%s15462_s28 + $0x9f0] sm:$0xf]  ;;  %v503_v32 = vld [vmem:[%s15462_s28 + $0xa00] sm:$0xf]  ;;  %500 = vst [vmem:[%s15469_s29 + $0x278] sm:$0xf] %v499_v30 }
  0x7e   : > { %502 = vst [vmem:[%s15469_s29 + $0x27c] sm:$0xf] %v501_v31  ;;  %504 = vst [vmem:[%s15469_s29 + $0x280] sm:$0xf] %v503_v32  ;;  %v505_v33 = vld [vmem:[%s15462_s28 + $0xa10] sm:$0xf] }
  0x7f   : > { %v507_v34 = vld [vmem:[%s15462_s28 + $0xa20] sm:$0xf]  ;;  %v509_v35 = vld [vmem:[%s15462_s28 + $0xa30] sm:$0xf]  ;;  %506 = vst [vmem:[%s15469_s29 + $0x284] sm:$0xf] %v505_v33 }
  0x80   : > { %508 = vst [vmem:[%s15469_s29 + $0x288] sm:$0xf] %v507_v34  ;;  %510 = vst [vmem:[%s15469_s29 + $0x28c] sm:$0xf] %v509_v35  ;;  %v511_v36 = vld [vmem:[%s15462_s28 + $0xa40] sm:$0xf] }
  0x81   : > { %v513_v37 = vld [vmem:[%s15462_s28 + $0xa50] sm:$0xf]  ;;  %v515_v38 = vld [vmem:[%s15462_s28 + $0xa60] sm:$0xf]  ;;  %512 = vst [vmem:[%s15469_s29 + $0x290] sm:$0xf] %v511_v36 }
  0x82   : > { %514 = vst [vmem:[%s15469_s29 + $0x294] sm:$0xf] %v513_v37  ;;  %516 = vst [vmem:[%s15469_s29 + $0x298] sm:$0xf] %v515_v38  ;;  %v517_v39 = vld [vmem:[%s15462_s28 + $0xa70] sm:$0xf] }
  0x83   : > { %v519_v40 = vld [vmem:[%s15462_s28 + $0xa80] sm:$0xf]  ;;  %v521_v41 = vld [vmem:[%s15462_s28 + $0xa90] sm:$0xf]  ;;  %518 = vst [vmem:[%s15469_s29 + $0x29c] sm:$0xf] %v517_v39 }
  0x84   : > { %520 = vst [vmem:[%s15469_s29 + $0x2a0] sm:$0xf] %v519_v40  ;;  %522 = vst [vmem:[%s15469_s29 + $0x2a4] sm:$0xf] %v521_v41  ;;  %v523_v42 = vld [vmem:[%s15462_s28 + $0xaa0] sm:$0xf] }
  0x85   : > { %v525_v43 = vld [vmem:[%s15462_s28 + $0xab0] sm:$0xf]  ;;  %v527_v44 = vld [vmem:[%s15462_s28 + $0xac0] sm:$0xf]  ;;  %524 = vst [vmem:[%s15469_s29 + $0x2a8] sm:$0xf] %v523_v42 }
  0x86   : > { %526 = vst [vmem:[%s15469_s29 + $0x2ac] sm:$0xf] %v525_v43  ;;  %528 = vst [vmem:[%s15469_s29 + $0x2b0] sm:$0xf] %v527_v44  ;;  %v529_v45 = vld [vmem:[%s15462_s28 + $0xad0] sm:$0xf] }
  0x87   : > { %v531_v46 = vld [vmem:[%s15462_s28 + $0xae0] sm:$0xf]  ;;  %v533_v47 = vld [vmem:[%s15462_s28 + $0xaf0] sm:$0xf]  ;;  %530 = vst [vmem:[%s15469_s29 + $0x2b4] sm:$0xf] %v529_v45 }
  0x88   : > { %532 = vst [vmem:[%s15469_s29 + $0x2b8] sm:$0xf] %v531_v46  ;;  %534 = vst [vmem:[%s15469_s29 + $0x2bc] sm:$0xf] %v533_v47  ;;  %v535_v48 = vld [vmem:[%s15462_s28 + $0xb00] sm:$0xf] }
  0x89   : > { %v537_v49 = vld [vmem:[%s15462_s28 + $0xb10] sm:$0xf]  ;;  %v539_v50 = vld [vmem:[%s15462_s28 + $0xb20] sm:$0xf]  ;;  %536 = vst [vmem:[%s15469_s29 + $0x2c0] sm:$0xf] %v535_v48 }
  0x8a   : > { %538 = vst [vmem:[%s15469_s29 + $0x2c4] sm:$0xf] %v537_v49  ;;  %540 = vst [vmem:[%s15469_s29 + $0x2c8] sm:$0xf] %v539_v50  ;;  %v541_v51 = vld [vmem:[%s15462_s28 + $0xb30] sm:$0xf] }
  0x8b   : > { %v543_v52 = vld [vmem:[%s15462_s28 + $0xb40] sm:$0xf]  ;;  %v545_v53 = vld [vmem:[%s15462_s28 + $0xb50] sm:$0xf]  ;;  %542 = vst [vmem:[%s15469_s29 + $0x2cc] sm:$0xf] %v541_v51 }
  0x8c   : > { %544 = vst [vmem:[%s15469_s29 + $0x2d0] sm:$0xf] %v543_v52  ;;  %546 = vst [vmem:[%s15469_s29 + $0x2d4] sm:$0xf] %v545_v53  ;;  %v547_v54 = vld [vmem:[%s15462_s28 + $0xb60] sm:$0xf] }
  0x8d   : > { %v549_v55 = vld [vmem:[%s15462_s28 + $0xb70] sm:$0xf]  ;;  %v551_v56 = vld [vmem:[%s15462_s28 + $0xb80] sm:$0xf]  ;;  %548 = vst [vmem:[%s15469_s29 + $0x2d8] sm:$0xf] %v547_v54 }
  0x8e   : > { %550 = vst [vmem:[%s15469_s29 + $0x2dc] sm:$0xf] %v549_v55  ;;  %552 = vst [vmem:[%s15469_s29 + $0x2e0] sm:$0xf] %v551_v56  ;;  %v553_v57 = vld [vmem:[%s15462_s28 + $0xb90] sm:$0xf] }
  0x8f   : > { %v555_v58 = vld [vmem:[%s15462_s28 + $0xba0] sm:$0xf]  ;;  %v557_v59 = vld [vmem:[%s15462_s28 + $0xbb0] sm:$0xf]  ;;  %554 = vst [vmem:[%s15469_s29 + $0x2e4] sm:$0xf] %v553_v57 }
  0x90   : > { %556 = vst [vmem:[%s15469_s29 + $0x2e8] sm:$0xf] %v555_v58  ;;  %558 = vst [vmem:[%s15469_s29 + $0x2ec] sm:$0xf] %v557_v59  ;;  %v559_v60 = vld [vmem:[%s15462_s28 + $0xbc0] sm:$0xf] }
  0x91   : > { %v561_v61 = vld [vmem:[%s15462_s28 + $0xbd0] sm:$0xf]  ;;  %v563_v62 = vld [vmem:[%s15462_s28 + $0xbe0] sm:$0xf]  ;;  %560 = vst [vmem:[%s15469_s29 + $0x2f0] sm:$0xf] %v559_v60 }
  0x92   : > { %562 = vst [vmem:[%s15469_s29 + $0x2f4] sm:$0xf] %v561_v61  ;;  %564 = vst [vmem:[%s15469_s29 + $0x2f8] sm:$0xf] %v563_v62  ;;  %v565_v63 = vld [vmem:[%s15462_s28 + $0xbf0] sm:$0xf] }
  0x93   : > { %v567_v0 = vld [vmem:[%s15462_s28 + $0xc00] sm:$0xf]  ;;  %v569_v1 = vld [vmem:[%s15462_s28 + $0xc10] sm:$0xf]  ;;  %566 = vst [vmem:[%s15469_s29 + $0x2fc] sm:$0xf] %v565_v63 }
  0x94   : > { %568 = vst [vmem:[%s15469_s29 + $0x300] sm:$0xf] %v567_v0  ;;  %570 = vst [vmem:[%s15469_s29 + $0x304] sm:$0xf] %v569_v1  ;;  %v571_v2 = vld [vmem:[%s15462_s28 + $0xc20] sm:$0xf] }
  0x95   : > { %v573_v3 = vld [vmem:[%s15462_s28 + $0xc30] sm:$0xf]  ;;  %v575_v4 = vld [vmem:[%s15462_s28 + $0xc40] sm:$0xf]  ;;  %572 = vst [vmem:[%s15469_s29 + $0x308] sm:$0xf] %v571_v2 }
  0x96   : > { %574 = vst [vmem:[%s15469_s29 + $0x30c] sm:$0xf] %v573_v3  ;;  %576 = vst [vmem:[%s15469_s29 + $0x310] sm:$0xf] %v575_v4  ;;  %v577_v5 = vld [vmem:[%s15462_s28 + $0xc50] sm:$0xf] }
  0x97   : > { %v579_v6 = vld [vmem:[%s15462_s28 + $0xc60] sm:$0xf]  ;;  %v581_v7 = vld [vmem:[%s15462_s28 + $0xc70] sm:$0xf]  ;;  %578 = vst [vmem:[%s15469_s29 + $0x314] sm:$0xf] %v577_v5 }
  0x98   : > { %580 = vst [vmem:[%s15469_s29 + $0x318] sm:$0xf] %v579_v6  ;;  %582 = vst [vmem:[%s15469_s29 + $0x31c] sm:$0xf] %v581_v7  ;;  %v583_v8 = vld [vmem:[%s15462_s28 + $0xc80] sm:$0xf] }
  0x99   : > { %v585_v9 = vld [vmem:[%s15462_s28 + $0xc90] sm:$0xf]  ;;  %v587_v10 = vld [vmem:[%s15462_s28 + $0xca0] sm:$0xf]  ;;  %584 = vst [vmem:[%s15469_s29 + $0x320] sm:$0xf] %v583_v8 }
  0x9a   : > { %586 = vst [vmem:[%s15469_s29 + $0x324] sm:$0xf] %v585_v9  ;;  %588 = vst [vmem:[%s15469_s29 + $0x328] sm:$0xf] %v587_v10  ;;  %v589_v11 = vld [vmem:[%s15462_s28 + $0xcb0] sm:$0xf] }
  0x9b   : > { %v591_v12 = vld [vmem:[%s15462_s28 + $0xcc0] sm:$0xf]  ;;  %v593_v13 = vld [vmem:[%s15462_s28 + $0xcd0] sm:$0xf]  ;;  %590 = vst [vmem:[%s15469_s29 + $0x32c] sm:$0xf] %v589_v11 }
  0x9c   : > { %592 = vst [vmem:[%s15469_s29 + $0x330] sm:$0xf] %v591_v12  ;;  %594 = vst [vmem:[%s15469_s29 + $0x334] sm:$0xf] %v593_v13  ;;  %v595_v14 = vld [vmem:[%s15462_s28 + $0xce0] sm:$0xf] }
  0x9d   : > { %v597_v15 = vld [vmem:[%s15462_s28 + $0xcf0] sm:$0xf]  ;;  %v599_v16 = vld [vmem:[%s15462_s28 + $0xd00] sm:$0xf]  ;;  %596 = vst [vmem:[%s15469_s29 + $0x338] sm:$0xf] %v595_v14 }
  0x9e   : > { %598 = vst [vmem:[%s15469_s29 + $0x33c] sm:$0xf] %v597_v15  ;;  %600 = vst [vmem:[%s15469_s29 + $0x340] sm:$0xf] %v599_v16  ;;  %v601_v17 = vld [vmem:[%s15462_s28 + $0xd10] sm:$0xf] }
  0x9f   : > { %v603_v18 = vld [vmem:[%s15462_s28 + $0xd20] sm:$0xf]  ;;  %v605_v19 = vld [vmem:[%s15462_s28 + $0xd30] sm:$0xf]  ;;  %602 = vst [vmem:[%s15469_s29 + $0x344] sm:$0xf] %v601_v17 }
  0xa0   : > { %604 = vst [vmem:[%s15469_s29 + $0x348] sm:$0xf] %v603_v18  ;;  %606 = vst [vmem:[%s15469_s29 + $0x34c] sm:$0xf] %v605_v19  ;;  %v607_v20 = vld [vmem:[%s15462_s28 + $0xd40] sm:$0xf] }
  0xa1   : > { %v609_v21 = vld [vmem:[%s15462_s28 + $0xd50] sm:$0xf]  ;;  %v611_v22 = vld [vmem:[%s15462_s28 + $0xd60] sm:$0xf]  ;;  %608 = vst [vmem:[%s15469_s29 + $0x350] sm:$0xf] %v607_v20 }
  0xa2   : > { %610 = vst [vmem:[%s15469_s29 + $0x354] sm:$0xf] %v609_v21  ;;  %612 = vst [vmem:[%s15469_s29 + $0x358] sm:$0xf] %v611_v22  ;;  %v613_v23 = vld [vmem:[%s15462_s28 + $0xd70] sm:$0xf] }
  0xa3   : > { %v615_v24 = vld [vmem:[%s15462_s28 + $0xd80] sm:$0xf]  ;;  %v617_v25 = vld [vmem:[%s15462_s28 + $0xd90] sm:$0xf]  ;;  %614 = vst [vmem:[%s15469_s29 + $0x35c] sm:$0xf] %v613_v23 }
  0xa4   : > { %616 = vst [vmem:[%s15469_s29 + $0x360] sm:$0xf] %v615_v24  ;;  %618 = vst [vmem:[%s15469_s29 + $0x364] sm:$0xf] %v617_v25  ;;  %v619_v26 = vld [vmem:[%s15462_s28 + $0xda0] sm:$0xf] }
  0xa5   : > { %v621_v27 = vld [vmem:[%s15462_s28 + $0xdb0] sm:$0xf]  ;;  %v623_v28 = vld [vmem:[%s15462_s28 + $0xdc0] sm:$0xf]  ;;  %620 = vst [vmem:[%s15469_s29 + $0x368] sm:$0xf] %v619_v26 }
  0xa6   : > { %622 = vst [vmem:[%s15469_s29 + $0x36c] sm:$0xf] %v621_v27  ;;  %624 = vst [vmem:[%s15469_s29 + $0x370] sm:$0xf] %v623_v28  ;;  %v625_v29 = vld [vmem:[%s15462_s28 + $0xdd0] sm:$0xf] }
  0xa7   : > { %v627_v30 = vld [vmem:[%s15462_s28 + $0xde0] sm:$0xf]  ;;  %v629_v31 = vld [vmem:[%s15462_s28 + $0xdf0] sm:$0xf]  ;;  %626 = vst [vmem:[%s15469_s29 + $0x374] sm:$0xf] %v625_v29 }
  0xa8   : > { %628 = vst [vmem:[%s15469_s29 + $0x378] sm:$0xf] %v627_v30  ;;  %630 = vst [vmem:[%s15469_s29 + $0x37c] sm:$0xf] %v629_v31  ;;  %v631_v32 = vld [vmem:[%s15462_s28 + $0xe00] sm:$0xf] }
  0xa9   : > { %v633_v33 = vld [vmem:[%s15462_s28 + $0xe10] sm:$0xf]  ;;  %v635_v34 = vld [vmem:[%s15462_s28 + $0xe20] sm:$0xf]  ;;  %632 = vst [vmem:[%s15469_s29 + $0x380] sm:$0xf] %v631_v32 }
  0xaa   : > { %634 = vst [vmem:[%s15469_s29 + $0x384] sm:$0xf] %v633_v33  ;;  %636 = vst [vmem:[%s15469_s29 + $0x388] sm:$0xf] %v635_v34  ;;  %v637_v35 = vld [vmem:[%s15462_s28 + $0xe30] sm:$0xf] }
  0xab   : > { %v639_v36 = vld [vmem:[%s15462_s28 + $0xe40] sm:$0xf]  ;;  %v641_v37 = vld [vmem:[%s15462_s28 + $0xe50] sm:$0xf]  ;;  %638 = vst [vmem:[%s15469_s29 + $0x38c] sm:$0xf] %v637_v35 }
  0xac   : > { %640 = vst [vmem:[%s15469_s29 + $0x390] sm:$0xf] %v639_v36  ;;  %642 = vst [vmem:[%s15469_s29 + $0x394] sm:$0xf] %v641_v37  ;;  %v643_v38 = vld [vmem:[%s15462_s28 + $0xe60] sm:$0xf] }
  0xad   : > { %v645_v39 = vld [vmem:[%s15462_s28 + $0xe70] sm:$0xf]  ;;  %v647_v40 = vld [vmem:[%s15462_s28 + $0xe80] sm:$0xf]  ;;  %644 = vst [vmem:[%s15469_s29 + $0x398] sm:$0xf] %v643_v38 }
  0xae   : > { %646 = vst [vmem:[%s15469_s29 + $0x39c] sm:$0xf] %v645_v39  ;;  %648 = vst [vmem:[%s15469_s29 + $0x3a0] sm:$0xf] %v647_v40  ;;  %v649_v41 = vld [vmem:[%s15462_s28 + $0xe90] sm:$0xf] }
  0xaf   : > { %v651_v42 = vld [vmem:[%s15462_s28 + $0xea0] sm:$0xf]  ;;  %v653_v43 = vld [vmem:[%s15462_s28 + $0xeb0] sm:$0xf]  ;;  %650 = vst [vmem:[%s15469_s29 + $0x3a4] sm:$0xf] %v649_v41 }
  0xb0   : > { %652 = vst [vmem:[%s15469_s29 + $0x3a8] sm:$0xf] %v651_v42  ;;  %654 = vst [vmem:[%s15469_s29 + $0x3ac] sm:$0xf] %v653_v43  ;;  %v655_v44 = vld [vmem:[%s15462_s28 + $0xec0] sm:$0xf] }
  0xb1   : > { %v657_v45 = vld [vmem:[%s15462_s28 + $0xed0] sm:$0xf]  ;;  %v659_v46 = vld [vmem:[%s15462_s28 + $0xee0] sm:$0xf]  ;;  %656 = vst [vmem:[%s15469_s29 + $0x3b0] sm:$0xf] %v655_v44 }
  0xb2   : > { %658 = vst [vmem:[%s15469_s29 + $0x3b4] sm:$0xf] %v657_v45  ;;  %660 = vst [vmem:[%s15469_s29 + $0x3b8] sm:$0xf] %v659_v46  ;;  %v661_v47 = vld [vmem:[%s15462_s28 + $0xef0] sm:$0xf] }
  0xb3   : > { %v663_v48 = vld [vmem:[%s15462_s28 + $0xf00] sm:$0xf]  ;;  %v665_v49 = vld [vmem:[%s15462_s28 + $0xf10] sm:$0xf]  ;;  %662 = vst [vmem:[%s15469_s29 + $0x3bc] sm:$0xf] %v661_v47 }
  0xb4   : > { %664 = vst [vmem:[%s15469_s29 + $0x3c0] sm:$0xf] %v663_v48  ;;  %666 = vst [vmem:[%s15469_s29 + $0x3c4] sm:$0xf] %v665_v49  ;;  %v667_v50 = vld [vmem:[%s15462_s28 + $0xf20] sm:$0xf] }
  0xb5   : > { %v669_v51 = vld [vmem:[%s15462_s28 + $0xf30] sm:$0xf]  ;;  %v671_v52 = vld [vmem:[%s15462_s28 + $0xf40] sm:$0xf]  ;;  %668 = vst [vmem:[%s15469_s29 + $0x3c8] sm:$0xf] %v667_v50 }
  0xb6   : > { %670 = vst [vmem:[%s15469_s29 + $0x3cc] sm:$0xf] %v669_v51  ;;  %672 = vst [vmem:[%s15469_s29 + $0x3d0] sm:$0xf] %v671_v52  ;;  %v673_v53 = vld [vmem:[%s15462_s28 + $0xf50] sm:$0xf] }
  0xb7   : > { %v675_v54 = vld [vmem:[%s15462_s28 + $0xf60] sm:$0xf]  ;;  %v677_v55 = vld [vmem:[%s15462_s28 + $0xf70] sm:$0xf]  ;;  %674 = vst [vmem:[%s15469_s29 + $0x3d4] sm:$0xf] %v673_v53 }
  0xb8   : > { %676 = vst [vmem:[%s15469_s29 + $0x3d8] sm:$0xf] %v675_v54  ;;  %678 = vst [vmem:[%s15469_s29 + $0x3dc] sm:$0xf] %v677_v55  ;;  %v679_v56 = vld [vmem:[%s15462_s28 + $0xf80] sm:$0xf] }
  0xb9   : > { %v681_v57 = vld [vmem:[%s15462_s28 + $0xf90] sm:$0xf]  ;;  %v683_v58 = vld [vmem:[%s15462_s28 + $0xfa0] sm:$0xf]  ;;  %680 = vst [vmem:[%s15469_s29 + $0x3e0] sm:$0xf] %v679_v56 }
  0xba   : > { %682 = vst [vmem:[%s15469_s29 + $0x3e4] sm:$0xf] %v681_v57  ;;  %684 = vst [vmem:[%s15469_s29 + $0x3e8] sm:$0xf] %v683_v58  ;;  %v685_v59 = vld [vmem:[%s15462_s28 + $0xfb0] sm:$0xf] }
  0xbb   : > { %v687_v60 = vld [vmem:[%s15462_s28 + $0xfc0] sm:$0xf]  ;;  %v689_v61 = vld [vmem:[%s15462_s28 + $0xfd0] sm:$0xf]  ;;  %686 = vst [vmem:[%s15469_s29 + $0x3ec] sm:$0xf] %v685_v59 }
  0xbc   : > { %688 = vst [vmem:[%s15469_s29 + $0x3f0] sm:$0xf] %v687_v60  ;;  %690 = vst [vmem:[%s15469_s29 + $0x3f4] sm:$0xf] %v689_v61  ;;  %v691_v62 = vld [vmem:[%s15462_s28 + $0xfe0] sm:$0xf] }
  0xbd   : > { %v693_v63 = vld [vmem:[%s15462_s28 + $0xff0] sm:$0xf]  ;;  %v695_v0 = vld [vmem:[%s15462_s28 + $0x1000] sm:$0xf]  ;;  %692 = vst [vmem:[%s15469_s29 + $0x3f8] sm:$0xf] %v691_v62 }
  0xbe   : > { %694 = vst [vmem:[%s15469_s29 + $0x3fc] sm:$0xf] %v693_v63  ;;  %696 = vst [vmem:[%s15469_s29 + $0x400] sm:$0xf] %v695_v0  ;;  %v697_v1 = vld [vmem:[%s15462_s28 + $0x1010] sm:$0xf] }
  0xbf   : > { %v699_v2 = vld [vmem:[%s15462_s28 + $0x1020] sm:$0xf]  ;;  %v701_v3 = vld [vmem:[%s15462_s28 + $0x1030] sm:$0xf]  ;;  %698 = vst [vmem:[%s15469_s29 + $0x404] sm:$0xf] %v697_v1 }
  0xc0   : > { %700 = vst [vmem:[%s15469_s29 + $0x408] sm:$0xf] %v699_v2  ;;  %702 = vst [vmem:[%s15469_s29 + $0x40c] sm:$0xf] %v701_v3  ;;  %v703_v4 = vld [vmem:[%s15462_s28 + $0x1040] sm:$0xf] }
  0xc1   : > { %v705_v5 = vld [vmem:[%s15462_s28 + $0x1050] sm:$0xf]  ;;  %v707_v6 = vld [vmem:[%s15462_s28 + $0x1060] sm:$0xf]  ;;  %704 = vst [vmem:[%s15469_s29 + $0x410] sm:$0xf] %v703_v4 }
  0xc2   : > { %706 = vst [vmem:[%s15469_s29 + $0x414] sm:$0xf] %v705_v5  ;;  %708 = vst [vmem:[%s15469_s29 + $0x418] sm:$0xf] %v707_v6  ;;  %v709_v7 = vld [vmem:[%s15462_s28 + $0x1070] sm:$0xf] }
  0xc3   : > { %v711_v8 = vld [vmem:[%s15462_s28 + $0x1080] sm:$0xf]  ;;  %v713_v9 = vld [vmem:[%s15462_s28 + $0x1090] sm:$0xf]  ;;  %710 = vst [vmem:[%s15469_s29 + $0x41c] sm:$0xf] %v709_v7 }
  0xc4   : > { %712 = vst [vmem:[%s15469_s29 + $0x420] sm:$0xf] %v711_v8  ;;  %714 = vst [vmem:[%s15469_s29 + $0x424] sm:$0xf] %v713_v9  ;;  %v715_v10 = vld [vmem:[%s15462_s28 + $0x10a0] sm:$0xf] }
  0xc5   : > { %v717_v11 = vld [vmem:[%s15462_s28 + $0x10b0] sm:$0xf]  ;;  %v719_v12 = vld [vmem:[%s15462_s28 + $0x10c0] sm:$0xf]  ;;  %716 = vst [vmem:[%s15469_s29 + $0x428] sm:$0xf] %v715_v10 }
  0xc6   : > { %718 = vst [vmem:[%s15469_s29 + $0x42c] sm:$0xf] %v717_v11  ;;  %720 = vst [vmem:[%s15469_s29 + $0x430] sm:$0xf] %v719_v12  ;;  %v721_v13 = vld [vmem:[%s15462_s28 + $0x10d0] sm:$0xf] }
  0xc7   : > { %v723_v14 = vld [vmem:[%s15462_s28 + $0x10e0] sm:$0xf]  ;;  %v725_v15 = vld [vmem:[%s15462_s28 + $0x10f0] sm:$0xf]  ;;  %722 = vst [vmem:[%s15469_s29 + $0x434] sm:$0xf] %v721_v13 }
  0xc8   : > { %724 = vst [vmem:[%s15469_s29 + $0x438] sm:$0xf] %v723_v14  ;;  %726 = vst [vmem:[%s15469_s29 + $0x43c] sm:$0xf] %v725_v15  ;;  %v727_v16 = vld [vmem:[%s15462_s28 + $0x1100] sm:$0xf] }
  0xc9   : > { %v729_v17 = vld [vmem:[%s15462_s28 + $0x1110] sm:$0xf]  ;;  %v731_v18 = vld [vmem:[%s15462_s28 + $0x1120] sm:$0xf]  ;;  %728 = vst [vmem:[%s15469_s29 + $0x440] sm:$0xf] %v727_v16 }
  0xca   : > { %730 = vst [vmem:[%s15469_s29 + $0x444] sm:$0xf] %v729_v17  ;;  %732 = vst [vmem:[%s15469_s29 + $0x448] sm:$0xf] %v731_v18  ;;  %v733_v19 = vld [vmem:[%s15462_s28 + $0x1130] sm:$0xf] }
  0xcb   : > { %v735_v20 = vld [vmem:[%s15462_s28 + $0x1140] sm:$0xf]  ;;  %v737_v21 = vld [vmem:[%s15462_s28 + $0x1150] sm:$0xf]  ;;  %734 = vst [vmem:[%s15469_s29 + $0x44c] sm:$0xf] %v733_v19 }
  0xcc   : > { %736 = vst [vmem:[%s15469_s29 + $0x450] sm:$0xf] %v735_v20  ;;  %738 = vst [vmem:[%s15469_s29 + $0x454] sm:$0xf] %v737_v21  ;;  %v739_v22 = vld [vmem:[%s15462_s28 + $0x1160] sm:$0xf] }
  0xcd   : > { %v741_v23 = vld [vmem:[%s15462_s28 + $0x1170] sm:$0xf]  ;;  %v743_v24 = vld [vmem:[%s15462_s28 + $0x1180] sm:$0xf]  ;;  %740 = vst [vmem:[%s15469_s29 + $0x458] sm:$0xf] %v739_v22 }
  0xce   : > { %742 = vst [vmem:[%s15469_s29 + $0x45c] sm:$0xf] %v741_v23  ;;  %744 = vst [vmem:[%s15469_s29 + $0x460] sm:$0xf] %v743_v24  ;;  %v745_v25 = vld [vmem:[%s15462_s28 + $0x1190] sm:$0xf] }
  0xcf   : > { %v747_v26 = vld [vmem:[%s15462_s28 + $0x11a0] sm:$0xf]  ;;  %v749_v27 = vld [vmem:[%s15462_s28 + $0x11b0] sm:$0xf]  ;;  %746 = vst [vmem:[%s15469_s29 + $0x464] sm:$0xf] %v745_v25 }
  0xd0   : > { %748 = vst [vmem:[%s15469_s29 + $0x468] sm:$0xf] %v747_v26  ;;  %750 = vst [vmem:[%s15469_s29 + $0x46c] sm:$0xf] %v749_v27  ;;  %v751_v28 = vld [vmem:[%s15462_s28 + $0x11c0] sm:$0xf] }
  0xd1   : > { %v753_v29 = vld [vmem:[%s15462_s28 + $0x11d0] sm:$0xf]  ;;  %v755_v30 = vld [vmem:[%s15462_s28 + $0x11e0] sm:$0xf]  ;;  %752 = vst [vmem:[%s15469_s29 + $0x470] sm:$0xf] %v751_v28 }
  0xd2   : > { %754 = vst [vmem:[%s15469_s29 + $0x474] sm:$0xf] %v753_v29  ;;  %756 = vst [vmem:[%s15469_s29 + $0x478] sm:$0xf] %v755_v30  ;;  %v757_v31 = vld [vmem:[%s15462_s28 + $0x11f0] sm:$0xf] }
  0xd3   : > { %v759_v32 = vld [vmem:[%s15462_s28 + $0x1200] sm:$0xf]  ;;  %v761_v33 = vld [vmem:[%s15462_s28 + $0x1210] sm:$0xf]  ;;  %758 = vst [vmem:[%s15469_s29 + $0x47c] sm:$0xf] %v757_v31 }
  0xd4   : > { %760 = vst [vmem:[%s15469_s29 + $0x480] sm:$0xf] %v759_v32  ;;  %762 = vst [vmem:[%s15469_s29 + $0x484] sm:$0xf] %v761_v33  ;;  %v763_v34 = vld [vmem:[%s15462_s28 + $0x1220] sm:$0xf] }
  0xd5   : > { %v765_v35 = vld [vmem:[%s15462_s28 + $0x1230] sm:$0xf]  ;;  %v767_v36 = vld [vmem:[%s15462_s28 + $0x1240] sm:$0xf]  ;;  %764 = vst [vmem:[%s15469_s29 + $0x488] sm:$0xf] %v763_v34 }
  0xd6   : > { %766 = vst [vmem:[%s15469_s29 + $0x48c] sm:$0xf] %v765_v35  ;;  %768 = vst [vmem:[%s15469_s29 + $0x490] sm:$0xf] %v767_v36  ;;  %v769_v37 = vld [vmem:[%s15462_s28 + $0x1250] sm:$0xf] }
  0xd7   : > { %v771_v38 = vld [vmem:[%s15462_s28 + $0x1260] sm:$0xf]  ;;  %v773_v39 = vld [vmem:[%s15462_s28 + $0x1270] sm:$0xf]  ;;  %770 = vst [vmem:[%s15469_s29 + $0x494] sm:$0xf] %v769_v37 }
  0xd8   : > { %772 = vst [vmem:[%s15469_s29 + $0x498] sm:$0xf] %v771_v38  ;;  %774 = vst [vmem:[%s15469_s29 + $0x49c] sm:$0xf] %v773_v39  ;;  %v775_v40 = vld [vmem:[%s15462_s28 + $0x1280] sm:$0xf] }
  0xd9   : > { %v777_v41 = vld [vmem:[%s15462_s28 + $0x1290] sm:$0xf]  ;;  %v779_v42 = vld [vmem:[%s15462_s28 + $0x12a0] sm:$0xf]  ;;  %776 = vst [vmem:[%s15469_s29 + $0x4a0] sm:$0xf] %v775_v40 }
  0xda   : > { %778 = vst [vmem:[%s15469_s29 + $0x4a4] sm:$0xf] %v777_v41  ;;  %780 = vst [vmem:[%s15469_s29 + $0x4a8] sm:$0xf] %v779_v42  ;;  %v781_v43 = vld [vmem:[%s15462_s28 + $0x12b0] sm:$0xf] }
  0xdb   : > { %v783_v44 = vld [vmem:[%s15462_s28 + $0x12c0] sm:$0xf]  ;;  %v785_v45 = vld [vmem:[%s15462_s28 + $0x12d0] sm:$0xf]  ;;  %782 = vst [vmem:[%s15469_s29 + $0x4ac] sm:$0xf] %v781_v43 }
  0xdc   : > { %784 = vst [vmem:[%s15469_s29 + $0x4b0] sm:$0xf] %v783_v44  ;;  %786 = vst [vmem:[%s15469_s29 + $0x4b4] sm:$0xf] %v785_v45  ;;  %v787_v46 = vld [vmem:[%s15462_s28 + $0x12e0] sm:$0xf] }
  0xdd   : > { %v789_v47 = vld [vmem:[%s15462_s28 + $0x12f0] sm:$0xf]  ;;  %v791_v48 = vld [vmem:[%s15462_s28 + $0x1300] sm:$0xf]  ;;  %788 = vst [vmem:[%s15469_s29 + $0x4b8] sm:$0xf] %v787_v46 }
  0xde   : > { %790 = vst [vmem:[%s15469_s29 + $0x4bc] sm:$0xf] %v789_v47  ;;  %792 = vst [vmem:[%s15469_s29 + $0x4c0] sm:$0xf] %v791_v48  ;;  %v793_v49 = vld [vmem:[%s15462_s28 + $0x1310] sm:$0xf] }
  0xdf   : > { %v795_v50 = vld [vmem:[%s15462_s28 + $0x1320] sm:$0xf]  ;;  %v797_v51 = vld [vmem:[%s15462_s28 + $0x1330] sm:$0xf]  ;;  %794 = vst [vmem:[%s15469_s29 + $0x4c4] sm:$0xf] %v793_v49 }
  0xe0   : > { %796 = vst [vmem:[%s15469_s29 + $0x4c8] sm:$0xf] %v795_v50  ;;  %798 = vst [vmem:[%s15469_s29 + $0x4cc] sm:$0xf] %v797_v51  ;;  %v799_v52 = vld [vmem:[%s15462_s28 + $0x1340] sm:$0xf] }
  0xe1   : > { %v801_v53 = vld [vmem:[%s15462_s28 + $0x1350] sm:$0xf]  ;;  %v803_v54 = vld [vmem:[%s15462_s28 + $0x1360] sm:$0xf]  ;;  %800 = vst [vmem:[%s15469_s29 + $0x4d0] sm:$0xf] %v799_v52 }
  0xe2   : > { %802 = vst [vmem:[%s15469_s29 + $0x4d4] sm:$0xf] %v801_v53  ;;  %804 = vst [vmem:[%s15469_s29 + $0x4d8] sm:$0xf] %v803_v54  ;;  %v805_v55 = vld [vmem:[%s15462_s28 + $0x1370] sm:$0xf] }
  0xe3   : > { %v807_v56 = vld [vmem:[%s15462_s28 + $0x1380] sm:$0xf]  ;;  %v809_v57 = vld [vmem:[%s15462_s28 + $0x1390] sm:$0xf]  ;;  %806 = vst [vmem:[%s15469_s29 + $0x4dc] sm:$0xf] %v805_v55 }
  0xe4   : > { %808 = vst [vmem:[%s15469_s29 + $0x4e0] sm:$0xf] %v807_v56  ;;  %810 = vst [vmem:[%s15469_s29 + $0x4e4] sm:$0xf] %v809_v57  ;;  %v811_v58 = vld [vmem:[%s15462_s28 + $0x13a0] sm:$0xf] }
  0xe5   : > { %v813_v59 = vld [vmem:[%s15462_s28 + $0x13b0] sm:$0xf]  ;;  %v815_v60 = vld [vmem:[%s15462_s28 + $0x13c0] sm:$0xf]  ;;  %812 = vst [vmem:[%s15469_s29 + $0x4e8] sm:$0xf] %v811_v58 }
  0xe6   : > { %814 = vst [vmem:[%s15469_s29 + $0x4ec] sm:$0xf] %v813_v59  ;;  %816 = vst [vmem:[%s15469_s29 + $0x4f0] sm:$0xf] %v815_v60  ;;  %v817_v61 = vld [vmem:[%s15462_s28 + $0x13d0] sm:$0xf] }
  0xe7   : > { %v819_v62 = vld [vmem:[%s15462_s28 + $0x13e0] sm:$0xf]  ;;  %v821_v63 = vld [vmem:[%s15462_s28 + $0x13f0] sm:$0xf]  ;;  %818 = vst [vmem:[%s15469_s29 + $0x4f4] sm:$0xf] %v817_v61 }
  0xe8   : > { %820 = vst [vmem:[%s15469_s29 + $0x4f8] sm:$0xf] %v819_v62  ;;  %822 = vst [vmem:[%s15469_s29 + $0x4fc] sm:$0xf] %v821_v63  ;;  %v823_v0 = vld [vmem:[%s15462_s28 + $0x1400] sm:$0xf] }
  0xe9   : > { %v825_v1 = vld [vmem:[%s15462_s28 + $0x1410] sm:$0xf]  ;;  %v827_v2 = vld [vmem:[%s15462_s28 + $0x1420] sm:$0xf]  ;;  %824 = vst [vmem:[%s15469_s29 + $0x500] sm:$0xf] %v823_v0 }
  0xea   : > { %826 = vst [vmem:[%s15469_s29 + $0x504] sm:$0xf] %v825_v1  ;;  %828 = vst [vmem:[%s15469_s29 + $0x508] sm:$0xf] %v827_v2  ;;  %v829_v3 = vld [vmem:[%s15462_s28 + $0x1430] sm:$0xf] }
  0xeb   : > { %v831_v4 = vld [vmem:[%s15462_s28 + $0x1440] sm:$0xf]  ;;  %v833_v5 = vld [vmem:[%s15462_s28 + $0x1450] sm:$0xf]  ;;  %830 = vst [vmem:[%s15469_s29 + $0x50c] sm:$0xf] %v829_v3 }
  0xec   : > { %832 = vst [vmem:[%s15469_s29 + $0x510] sm:$0xf] %v831_v4  ;;  %834 = vst [vmem:[%s15469_s29 + $0x514] sm:$0xf] %v833_v5  ;;  %v835_v6 = vld [vmem:[%s15462_s28 + $0x1460] sm:$0xf] }
  0xed   : > { %v837_v7 = vld [vmem:[%s15462_s28 + $0x1470] sm:$0xf]  ;;  %v839_v8 = vld [vmem:[%s15462_s28 + $0x1480] sm:$0xf]  ;;  %836 = vst [vmem:[%s15469_s29 + $0x518] sm:$0xf] %v835_v6 }
  0xee   : > { %838 = vst [vmem:[%s15469_s29 + $0x51c] sm:$0xf] %v837_v7  ;;  %840 = vst [vmem:[%s15469_s29 + $0x520] sm:$0xf] %v839_v8  ;;  %v841_v9 = vld [vmem:[%s15462_s28 + $0x1490] sm:$0xf] }
  0xef   : > { %v843_v10 = vld [vmem:[%s15462_s28 + $0x14a0] sm:$0xf]  ;;  %v845_v11 = vld [vmem:[%s15462_s28 + $0x14b0] sm:$0xf]  ;;  %842 = vst [vmem:[%s15469_s29 + $0x524] sm:$0xf] %v841_v9 }
  0xf0   : > { %844 = vst [vmem:[%s15469_s29 + $0x528] sm:$0xf] %v843_v10  ;;  %846 = vst [vmem:[%s15469_s29 + $0x52c] sm:$0xf] %v845_v11  ;;  %v847_v12 = vld [vmem:[%s15462_s28 + $0x14c0] sm:$0xf] }
  0xf1   : > { %v849_v13 = vld [vmem:[%s15462_s28 + $0x14d0] sm:$0xf]  ;;  %v851_v14 = vld [vmem:[%s15462_s28 + $0x14e0] sm:$0xf]  ;;  %848 = vst [vmem:[%s15469_s29 + $0x530] sm:$0xf] %v847_v12 }
  0xf2   : > { %850 = vst [vmem:[%s15469_s29 + $0x534] sm:$0xf] %v849_v13  ;;  %852 = vst [vmem:[%s15469_s29 + $0x538] sm:$0xf] %v851_v14  ;;  %v853_v15 = vld [vmem:[%s15462_s28 + $0x14f0] sm:$0xf] }
  0xf3   : > { %v855_v16 = vld [vmem:[%s15462_s28 + $0x1500] sm:$0xf]  ;;  %v857_v17 = vld [vmem:[%s15462_s28 + $0x1510] sm:$0xf]  ;;  %854 = vst [vmem:[%s15469_s29 + $0x53c] sm:$0xf] %v853_v15 }
  0xf4   : > { %856 = vst [vmem:[%s15469_s29 + $0x540] sm:$0xf] %v855_v16  ;;  %858 = vst [vmem:[%s15469_s29 + $0x544] sm:$0xf] %v857_v17  ;;  %v859_v18 = vld [vmem:[%s15462_s28 + $0x1520] sm:$0xf] }
  0xf5   : > { %v861_v19 = vld [vmem:[%s15462_s28 + $0x1530] sm:$0xf]  ;;  %v863_v20 = vld [vmem:[%s15462_s28 + $0x1540] sm:$0xf]  ;;  %860 = vst [vmem:[%s15469_s29 + $0x548] sm:$0xf] %v859_v18 }
  0xf6   : > { %862 = vst [vmem:[%s15469_s29 + $0x54c] sm:$0xf] %v861_v19  ;;  %864 = vst [vmem:[%s15469_s29 + $0x550] sm:$0xf] %v863_v20  ;;  %v865_v21 = vld [vmem:[%s15462_s28 + $0x1550] sm:$0xf] }
  0xf7   : > { %v867_v22 = vld [vmem:[%s15462_s28 + $0x1560] sm:$0xf]  ;;  %v869_v23 = vld [vmem:[%s15462_s28 + $0x1570] sm:$0xf]  ;;  %866 = vst [vmem:[%s15469_s29 + $0x554] sm:$0xf] %v865_v21 }
  0xf8   : > { %868 = vst [vmem:[%s15469_s29 + $0x558] sm:$0xf] %v867_v22  ;;  %870 = vst [vmem:[%s15469_s29 + $0x55c] sm:$0xf] %v869_v23  ;;  %v871_v24 = vld [vmem:[%s15462_s28 + $0x1580] sm:$0xf] }
  0xf9   : > { %v873_v25 = vld [vmem:[%s15462_s28 + $0x1590] sm:$0xf]  ;;  %v875_v26 = vld [vmem:[%s15462_s28 + $0x15a0] sm:$0xf]  ;;  %872 = vst [vmem:[%s15469_s29 + $0x560] sm:$0xf] %v871_v24 }
  0xfa   : > { %874 = vst [vmem:[%s15469_s29 + $0x564] sm:$0xf] %v873_v25  ;;  %876 = vst [vmem:[%s15469_s29 + $0x568] sm:$0xf] %v875_v26  ;;  %v877_v27 = vld [vmem:[%s15462_s28 + $0x15b0] sm:$0xf] }
  0xfb   : > { %v879_v28 = vld [vmem:[%s15462_s28 + $0x15c0] sm:$0xf]  ;;  %v881_v29 = vld [vmem:[%s15462_s28 + $0x15d0] sm:$0xf]  ;;  %878 = vst [vmem:[%s15469_s29 + $0x56c] sm:$0xf] %v877_v27 }
  0xfc   : > { %880 = vst [vmem:[%s15469_s29 + $0x570] sm:$0xf] %v879_v28  ;;  %882 = vst [vmem:[%s15469_s29 + $0x574] sm:$0xf] %v881_v29  ;;  %v883_v30 = vld [vmem:[%s15462_s28 + $0x15e0] sm:$0xf] }
  0xfd   : > { %v885_v31 = vld [vmem:[%s15462_s28 + $0x15f0] sm:$0xf]  ;;  %v887_v32 = vld [vmem:[%s15462_s28 + $0x1600] sm:$0xf]  ;;  %884 = vst [vmem:[%s15469_s29 + $0x578] sm:$0xf] %v883_v30 }
  0xfe   : > { %886 = vst [vmem:[%s15469_s29 + $0x57c] sm:$0xf] %v885_v31  ;;  %888 = vst [vmem:[%s15469_s29 + $0x580] sm:$0xf] %v887_v32  ;;  %v889_v33 = vld [vmem:[%s15462_s28 + $0x1610] sm:$0xf] }
  0xff   : > { %v891_v34 = vld [vmem:[%s15462_s28 + $0x1620] sm:$0xf]  ;;  %v893_v35 = vld [vmem:[%s15462_s28 + $0x1630] sm:$0xf]  ;;  %890 = vst [vmem:[%s15469_s29 + $0x584] sm:$0xf] %v889_v33 }
 0x100   : > { %892 = vst [vmem:[%s15469_s29 + $0x588] sm:$0xf] %v891_v34  ;;  %894 = vst [vmem:[%s15469_s29 + $0x58c] sm:$0xf] %v893_v35  ;;  %v895_v36 = vld [vmem:[%s15462_s28 + $0x1640] sm:$0xf] }
 0x101   : > { %v897_v37 = vld [vmem:[%s15462_s28 + $0x1650] sm:$0xf]  ;;  %v899_v38 = vld [vmem:[%s15462_s28 + $0x1660] sm:$0xf]  ;;  %896 = vst [vmem:[%s15469_s29 + $0x590] sm:$0xf] %v895_v36 }
 0x102   : > { %898 = vst [vmem:[%s15469_s29 + $0x594] sm:$0xf] %v897_v37  ;;  %900 = vst [vmem:[%s15469_s29 + $0x598] sm:$0xf] %v899_v38  ;;  %v901_v39 = vld [vmem:[%s15462_s28 + $0x1670] sm:$0xf] }
 0x103   : > { %v903_v40 = vld [vmem:[%s15462_s28 + $0x1680] sm:$0xf]  ;;  %v905_v41 = vld [vmem:[%s15462_s28 + $0x1690] sm:$0xf]  ;;  %902 = vst [vmem:[%s15469_s29 + $0x59c] sm:$0xf] %v901_v39 }
 0x104   : > { %904 = vst [vmem:[%s15469_s29 + $0x5a0] sm:$0xf] %v903_v40  ;;  %906 = vst [vmem:[%s15469_s29 + $0x5a4] sm:$0xf] %v905_v41  ;;  %v907_v42 = vld [vmem:[%s15462_s28 + $0x16a0] sm:$0xf] }
 0x105   : > { %v909_v43 = vld [vmem:[%s15462_s28 + $0x16b0] sm:$0xf]  ;;  %v911_v44 = vld [vmem:[%s15462_s28 + $0x16c0] sm:$0xf]  ;;  %908 = vst [vmem:[%s15469_s29 + $0x5a8] sm:$0xf] %v907_v42 }
 0x106   : > { %910 = vst [vmem:[%s15469_s29 + $0x5ac] sm:$0xf] %v909_v43  ;;  %912 = vst [vmem:[%s15469_s29 + $0x5b0] sm:$0xf] %v911_v44  ;;  %v913_v45 = vld [vmem:[%s15462_s28 + $0x16d0] sm:$0xf] }
 0x107   : > { %v915_v46 = vld [vmem:[%s15462_s28 + $0x16e0] sm:$0xf]  ;;  %v917_v47 = vld [vmem:[%s15462_s28 + $0x16f0] sm:$0xf]  ;;  %914 = vst [vmem:[%s15469_s29 + $0x5b4] sm:$0xf] %v913_v45 }
 0x108   : > { %916 = vst [vmem:[%s15469_s29 + $0x5b8] sm:$0xf] %v915_v46  ;;  %918 = vst [vmem:[%s15469_s29 + $0x5bc] sm:$0xf] %v917_v47  ;;  %v919_v48 = vld [vmem:[%s15462_s28 + $0x1700] sm:$0xf] }
 0x109   : > { %v921_v49 = vld [vmem:[%s15462_s28 + $0x1710] sm:$0xf]  ;;  %v923_v50 = vld [vmem:[%s15462_s28 + $0x1720] sm:$0xf]  ;;  %920 = vst [vmem:[%s15469_s29 + $0x5c0] sm:$0xf] %v919_v48 }
 0x10a   : > { %922 = vst [vmem:[%s15469_s29 + $0x5c4] sm:$0xf] %v921_v49  ;;  %924 = vst [vmem:[%s15469_s29 + $0x5c8] sm:$0xf] %v923_v50  ;;  %v925_v51 = vld [vmem:[%s15462_s28 + $0x1730] sm:$0xf] }
 0x10b   : > { %v927_v52 = vld [vmem:[%s15462_s28 + $0x1740] sm:$0xf]  ;;  %v929_v53 = vld [vmem:[%s15462_s28 + $0x1750] sm:$0xf]  ;;  %926 = vst [vmem:[%s15469_s29 + $0x5cc] sm:$0xf] %v925_v51 }
 0x10c   : > { %928 = vst [vmem:[%s15469_s29 + $0x5d0] sm:$0xf] %v927_v52  ;;  %930 = vst [vmem:[%s15469_s29 + $0x5d4] sm:$0xf] %v929_v53  ;;  %v931_v54 = vld [vmem:[%s15462_s28 + $0x1760] sm:$0xf] }
 0x10d   : > { %v933_v55 = vld [vmem:[%s15462_s28 + $0x1770] sm:$0xf]  ;;  %v935_v56 = vld [vmem:[%s15462_s28 + $0x1780] sm:$0xf]  ;;  %932 = vst [vmem:[%s15469_s29 + $0x5d8] sm:$0xf] %v931_v54 }
 0x10e   : > { %934 = vst [vmem:[%s15469_s29 + $0x5dc] sm:$0xf] %v933_v55  ;;  %936 = vst [vmem:[%s15469_s29 + $0x5e0] sm:$0xf] %v935_v56  ;;  %v937_v57 = vld [vmem:[%s15462_s28 + $0x1790] sm:$0xf] }
 0x10f   : > { %v939_v58 = vld [vmem:[%s15462_s28 + $0x17a0] sm:$0xf]  ;;  %v941_v59 = vld [vmem:[%s15462_s28 + $0x17b0] sm:$0xf]  ;;  %938 = vst [vmem:[%s15469_s29 + $0x5e4] sm:$0xf] %v937_v57 }
 0x110   : > { %940 = vst [vmem:[%s15469_s29 + $0x5e8] sm:$0xf] %v939_v58  ;;  %942 = vst [vmem:[%s15469_s29 + $0x5ec] sm:$0xf] %v941_v59  ;;  %v943_v60 = vld [vmem:[%s15462_s28 + $0x17c0] sm:$0xf] }
 0x111   : > { %v945_v61 = vld [vmem:[%s15462_s28 + $0x17d0] sm:$0xf]  ;;  %v947_v62 = vld [vmem:[%s15462_s28 + $0x17e0] sm:$0xf]  ;;  %944 = vst [vmem:[%s15469_s29 + $0x5f0] sm:$0xf] %v943_v60 }
 0x112   : > { %946 = vst [vmem:[%s15469_s29 + $0x5f4] sm:$0xf] %v945_v61  ;;  %948 = vst [vmem:[%s15469_s29 + $0x5f8] sm:$0xf] %v947_v62  ;;  %v949_v63 = vld [vmem:[%s15462_s28 + $0x17f0] sm:$0xf] }
 0x113   : > { %v951_v0 = vld [vmem:[%s15462_s28 + $0x1800] sm:$0xf]  ;;  %v953_v1 = vld [vmem:[%s15462_s28 + $0x1810] sm:$0xf]  ;;  %950 = vst [vmem:[%s15469_s29 + $0x5fc] sm:$0xf] %v949_v63 }
 0x114   : > { %952 = vst [vmem:[%s15469_s29 + $0x600] sm:$0xf] %v951_v0  ;;  %954 = vst [vmem:[%s15469_s29 + $0x604] sm:$0xf] %v953_v1  ;;  %v955_v2 = vld [vmem:[%s15462_s28 + $0x1820] sm:$0xf] }
 0x115   : > { %v957_v3 = vld [vmem:[%s15462_s28 + $0x1830] sm:$0xf]  ;;  %v959_v4 = vld [vmem:[%s15462_s28 + $0x1840] sm:$0xf]  ;;  %956 = vst [vmem:[%s15469_s29 + $0x608] sm:$0xf] %v955_v2 }
 0x116   : > { %958 = vst [vmem:[%s15469_s29 + $0x60c] sm:$0xf] %v957_v3  ;;  %960 = vst [vmem:[%s15469_s29 + $0x610] sm:$0xf] %v959_v4  ;;  %v961_v5 = vld [vmem:[%s15462_s28 + $0x1850] sm:$0xf] }
 0x117   : > { %v963_v6 = vld [vmem:[%s15462_s28 + $0x1860] sm:$0xf]  ;;  %v965_v7 = vld [vmem:[%s15462_s28 + $0x1870] sm:$0xf]  ;;  %962 = vst [vmem:[%s15469_s29 + $0x614] sm:$0xf] %v961_v5 }
 0x118   : > { %964 = vst [vmem:[%s15469_s29 + $0x618] sm:$0xf] %v963_v6  ;;  %966 = vst [vmem:[%s15469_s29 + $0x61c] sm:$0xf] %v965_v7  ;;  %v967_v8 = vld [vmem:[%s15462_s28 + $0x1880] sm:$0xf] }
 0x119   : > { %v969_v9 = vld [vmem:[%s15462_s28 + $0x1890] sm:$0xf]  ;;  %v971_v10 = vld [vmem:[%s15462_s28 + $0x18a0] sm:$0xf]  ;;  %968 = vst [vmem:[%s15469_s29 + $0x620] sm:$0xf] %v967_v8 }
 0x11a   : > { %970 = vst [vmem:[%s15469_s29 + $0x624] sm:$0xf] %v969_v9  ;;  %972 = vst [vmem:[%s15469_s29 + $0x628] sm:$0xf] %v971_v10  ;;  %v973_v11 = vld [vmem:[%s15462_s28 + $0x18b0] sm:$0xf] }
 0x11b   : > { %v975_v12 = vld [vmem:[%s15462_s28 + $0x18c0] sm:$0xf]  ;;  %v977_v13 = vld [vmem:[%s15462_s28 + $0x18d0] sm:$0xf]  ;;  %974 = vst [vmem:[%s15469_s29 + $0x62c] sm:$0xf] %v973_v11 }
 0x11c   : > { %976 = vst [vmem:[%s15469_s29 + $0x630] sm:$0xf] %v975_v12  ;;  %978 = vst [vmem:[%s15469_s29 + $0x634] sm:$0xf] %v977_v13  ;;  %v979_v14 = vld [vmem:[%s15462_s28 + $0x18e0] sm:$0xf] }
 0x11d   : > { %v981_v15 = vld [vmem:[%s15462_s28 + $0x18f0] sm:$0xf]  ;;  %v983_v16 = vld [vmem:[%s15462_s28 + $0x1900] sm:$0xf]  ;;  %980 = vst [vmem:[%s15469_s29 + $0x638] sm:$0xf] %v979_v14 }
 0x11e   : > { %982 = vst [vmem:[%s15469_s29 + $0x63c] sm:$0xf] %v981_v15  ;;  %984 = vst [vmem:[%s15469_s29 + $0x640] sm:$0xf] %v983_v16  ;;  %v985_v17 = vld [vmem:[%s15462_s28 + $0x1910] sm:$0xf] }
 0x11f   : > { %v987_v18 = vld [vmem:[%s15462_s28 + $0x1920] sm:$0xf]  ;;  %v989_v19 = vld [vmem:[%s15462_s28 + $0x1930] sm:$0xf]  ;;  %986 = vst [vmem:[%s15469_s29 + $0x644] sm:$0xf] %v985_v17 }
 0x120   : > { %988 = vst [vmem:[%s15469_s29 + $0x648] sm:$0xf] %v987_v18  ;;  %990 = vst [vmem:[%s15469_s29 + $0x64c] sm:$0xf] %v989_v19  ;;  %v991_v20 = vld [vmem:[%s15462_s28 + $0x1940] sm:$0xf] }
 0x121   : > { %v993_v21 = vld [vmem:[%s15462_s28 + $0x1950] sm:$0xf]  ;;  %v995_v22 = vld [vmem:[%s15462_s28 + $0x1960] sm:$0xf]  ;;  %992 = vst [vmem:[%s15469_s29 + $0x650] sm:$0xf] %v991_v20 }
 0x122   : > { %994 = vst [vmem:[%s15469_s29 + $0x654] sm:$0xf] %v993_v21  ;;  %996 = vst [vmem:[%s15469_s29 + $0x658] sm:$0xf] %v995_v22  ;;  %v997_v23 = vld [vmem:[%s15462_s28 + $0x1970] sm:$0xf] }
 0x123   : > { %v999_v24 = vld [vmem:[%s15462_s28 + $0x1980] sm:$0xf]  ;;  %v1001_v25 = vld [vmem:[%s15462_s28 + $0x1990] sm:$0xf]  ;;  %998 = vst [vmem:[%s15469_s29 + $0x65c] sm:$0xf] %v997_v23 }
 0x124   : > { %1000 = vst [vmem:[%s15469_s29 + $0x660] sm:$0xf] %v999_v24  ;;  %1002 = vst [vmem:[%s15469_s29 + $0x664] sm:$0xf] %v1001_v25  ;;  %v1003_v26 = vld [vmem:[%s15462_s28 + $0x19a0] sm:$0xf] }
 0x125   : > { %v1005_v27 = vld [vmem:[%s15462_s28 + $0x19b0] sm:$0xf]  ;;  %v1007_v28 = vld [vmem:[%s15462_s28 + $0x19c0] sm:$0xf]  ;;  %1004 = vst [vmem:[%s15469_s29 + $0x668] sm:$0xf] %v1003_v26 }
 0x126   : > { %1006 = vst [vmem:[%s15469_s29 + $0x66c] sm:$0xf] %v1005_v27  ;;  %1008 = vst [vmem:[%s15469_s29 + $0x670] sm:$0xf] %v1007_v28  ;;  %v1009_v29 = vld [vmem:[%s15462_s28 + $0x19d0] sm:$0xf] }
 0x127   : > { %v1011_v30 = vld [vmem:[%s15462_s28 + $0x19e0] sm:$0xf]  ;;  %v1013_v31 = vld [vmem:[%s15462_s28 + $0x19f0] sm:$0xf]  ;;  %1010 = vst [vmem:[%s15469_s29 + $0x674] sm:$0xf] %v1009_v29 }
 0x128   : > { %1012 = vst [vmem:[%s15469_s29 + $0x678] sm:$0xf] %v1011_v30  ;;  %1014 = vst [vmem:[%s15469_s29 + $0x67c] sm:$0xf] %v1013_v31  ;;  %v1015_v32 = vld [vmem:[%s15462_s28 + $0x1a00] sm:$0xf] }
 0x129   : > { %v1017_v33 = vld [vmem:[%s15462_s28 + $0x1a10] sm:$0xf]  ;;  %v1019_v34 = vld [vmem:[%s15462_s28 + $0x1a20] sm:$0xf]  ;;  %1016 = vst [vmem:[%s15469_s29 + $0x680] sm:$0xf] %v1015_v32 }
 0x12a   : > { %1018 = vst [vmem:[%s15469_s29 + $0x684] sm:$0xf] %v1017_v33  ;;  %1020 = vst [vmem:[%s15469_s29 + $0x688] sm:$0xf] %v1019_v34  ;;  %v1021_v35 = vld [vmem:[%s15462_s28 + $0x1a30] sm:$0xf] }
 0x12b   : > { %v1023_v36 = vld [vmem:[%s15462_s28 + $0x1a40] sm:$0xf]  ;;  %v1025_v37 = vld [vmem:[%s15462_s28 + $0x1a50] sm:$0xf]  ;;  %1022 = vst [vmem:[%s15469_s29 + $0x68c] sm:$0xf] %v1021_v35 }
 0x12c   : > { %1024 = vst [vmem:[%s15469_s29 + $0x690] sm:$0xf] %v1023_v36  ;;  %1026 = vst [vmem:[%s15469_s29 + $0x694] sm:$0xf] %v1025_v37  ;;  %v1027_v38 = vld [vmem:[%s15462_s28 + $0x1a60] sm:$0xf] }
 0x12d   : > { %v1029_v39 = vld [vmem:[%s15462_s28 + $0x1a70] sm:$0xf]  ;;  %v1031_v40 = vld [vmem:[%s15462_s28 + $0x1a80] sm:$0xf]  ;;  %1028 = vst [vmem:[%s15469_s29 + $0x698] sm:$0xf] %v1027_v38 }
 0x12e   : > { %1030 = vst [vmem:[%s15469_s29 + $0x69c] sm:$0xf] %v1029_v39  ;;  %1032 = vst [vmem:[%s15469_s29 + $0x6a0] sm:$0xf] %v1031_v40  ;;  %v1033_v41 = vld [vmem:[%s15462_s28 + $0x1a90] sm:$0xf] }
 0x12f   : > { %v1035_v42 = vld [vmem:[%s15462_s28 + $0x1aa0] sm:$0xf]  ;;  %v1037_v43 = vld [vmem:[%s15462_s28 + $0x1ab0] sm:$0xf]  ;;  %1034 = vst [vmem:[%s15469_s29 + $0x6a4] sm:$0xf] %v1033_v41 }
 0x130   : > { %1036 = vst [vmem:[%s15469_s29 + $0x6a8] sm:$0xf] %v1035_v42  ;;  %1038 = vst [vmem:[%s15469_s29 + $0x6ac] sm:$0xf] %v1037_v43  ;;  %v1039_v44 = vld [vmem:[%s15462_s28 + $0x1ac0] sm:$0xf] }
 0x131   : > { %v1041_v45 = vld [vmem:[%s15462_s28 + $0x1ad0] sm:$0xf]  ;;  %v1043_v46 = vld [vmem:[%s15462_s28 + $0x1ae0] sm:$0xf]  ;;  %1040 = vst [vmem:[%s15469_s29 + $0x6b0] sm:$0xf] %v1039_v44 }
 0x132   : > { %1042 = vst [vmem:[%s15469_s29 + $0x6b4] sm:$0xf] %v1041_v45  ;;  %1044 = vst [vmem:[%s15469_s29 + $0x6b8] sm:$0xf] %v1043_v46  ;;  %v1045_v47 = vld [vmem:[%s15462_s28 + $0x1af0] sm:$0xf] }
 0x133   : > { %v1047_v48 = vld [vmem:[%s15462_s28 + $0x1b00] sm:$0xf]  ;;  %v1049_v49 = vld [vmem:[%s15462_s28 + $0x1b10] sm:$0xf]  ;;  %1046 = vst [vmem:[%s15469_s29 + $0x6bc] sm:$0xf] %v1045_v47 }
 0x134   : > { %1048 = vst [vmem:[%s15469_s29 + $0x6c0] sm:$0xf] %v1047_v48  ;;  %1050 = vst [vmem:[%s15469_s29 + $0x6c4] sm:$0xf] %v1049_v49  ;;  %v1051_v50 = vld [vmem:[%s15462_s28 + $0x1b20] sm:$0xf] }
 0x135   : > { %v1053_v51 = vld [vmem:[%s15462_s28 + $0x1b30] sm:$0xf]  ;;  %v1055_v52 = vld [vmem:[%s15462_s28 + $0x1b40] sm:$0xf]  ;;  %1052 = vst [vmem:[%s15469_s29 + $0x6c8] sm:$0xf] %v1051_v50 }
 0x136   : > { %1054 = vst [vmem:[%s15469_s29 + $0x6cc] sm:$0xf] %v1053_v51  ;;  %1056 = vst [vmem:[%s15469_s29 + $0x6d0] sm:$0xf] %v1055_v52  ;;  %v1057_v53 = vld [vmem:[%s15462_s28 + $0x1b50] sm:$0xf] }
 0x137   : > { %v1059_v54 = vld [vmem:[%s15462_s28 + $0x1b60] sm:$0xf]  ;;  %v1061_v55 = vld [vmem:[%s15462_s28 + $0x1b70] sm:$0xf]  ;;  %1058 = vst [vmem:[%s15469_s29 + $0x6d4] sm:$0xf] %v1057_v53 }
 0x138   : > { %1060 = vst [vmem:[%s15469_s29 + $0x6d8] sm:$0xf] %v1059_v54  ;;  %1062 = vst [vmem:[%s15469_s29 + $0x6dc] sm:$0xf] %v1061_v55  ;;  %v1063_v56 = vld [vmem:[%s15462_s28 + $0x1b80] sm:$0xf] }
 0x139   : > { %v1065_v57 = vld [vmem:[%s15462_s28 + $0x1b90] sm:$0xf]  ;;  %v1067_v58 = vld [vmem:[%s15462_s28 + $0x1ba0] sm:$0xf]  ;;  %1064 = vst [vmem:[%s15469_s29 + $0x6e0] sm:$0xf] %v1063_v56 }
 0x13a   : > { %1066 = vst [vmem:[%s15469_s29 + $0x6e4] sm:$0xf] %v1065_v57  ;;  %1068 = vst [vmem:[%s15469_s29 + $0x6e8] sm:$0xf] %v1067_v58  ;;  %v1069_v59 = vld [vmem:[%s15462_s28 + $0x1bb0] sm:$0xf] }
 0x13b   : > { %v1071_v60 = vld [vmem:[%s15462_s28 + $0x1bc0] sm:$0xf]  ;;  %v1073_v61 = vld [vmem:[%s15462_s28 + $0x1bd0] sm:$0xf]  ;;  %1070 = vst [vmem:[%s15469_s29 + $0x6ec] sm:$0xf] %v1069_v59 }
 0x13c   : > { %1072 = vst [vmem:[%s15469_s29 + $0x6f0] sm:$0xf] %v1071_v60  ;;  %1074 = vst [vmem:[%s15469_s29 + $0x6f4] sm:$0xf] %v1073_v61  ;;  %v1075_v62 = vld [vmem:[%s15462_s28 + $0x1be0] sm:$0xf] }
 0x13d   : > { %v1077_v63 = vld [vmem:[%s15462_s28 + $0x1bf0] sm:$0xf]  ;;  %v1079_v0 = vld [vmem:[%s15462_s28 + $0x1c00] sm:$0xf]  ;;  %1076 = vst [vmem:[%s15469_s29 + $0x6f8] sm:$0xf] %v1075_v62 }
 0x13e   : > { %1078 = vst [vmem:[%s15469_s29 + $0x6fc] sm:$0xf] %v1077_v63  ;;  %1080 = vst [vmem:[%s15469_s29 + $0x700] sm:$0xf] %v1079_v0  ;;  %v1081_v1 = vld [vmem:[%s15462_s28 + $0x1c10] sm:$0xf] }
 0x13f   : > { %v1083_v2 = vld [vmem:[%s15462_s28 + $0x1c20] sm:$0xf]  ;;  %v1085_v3 = vld [vmem:[%s15462_s28 + $0x1c30] sm:$0xf]  ;;  %1082 = vst [vmem:[%s15469_s29 + $0x704] sm:$0xf] %v1081_v1 }
 0x140   : > { %1084 = vst [vmem:[%s15469_s29 + $0x708] sm:$0xf] %v1083_v2  ;;  %1086 = vst [vmem:[%s15469_s29 + $0x70c] sm:$0xf] %v1085_v3  ;;  %v1087_v4 = vld [vmem:[%s15462_s28 + $0x1c40] sm:$0xf] }
 0x141   : > { %v1089_v5 = vld [vmem:[%s15462_s28 + $0x1c50] sm:$0xf]  ;;  %v1091_v6 = vld [vmem:[%s15462_s28 + $0x1c60] sm:$0xf]  ;;  %1088 = vst [vmem:[%s15469_s29 + $0x710] sm:$0xf] %v1087_v4 }
 0x142   : > { %1090 = vst [vmem:[%s15469_s29 + $0x714] sm:$0xf] %v1089_v5  ;;  %1092 = vst [vmem:[%s15469_s29 + $0x718] sm:$0xf] %v1091_v6  ;;  %v1093_v7 = vld [vmem:[%s15462_s28 + $0x1c70] sm:$0xf] }
 0x143   : > { %v1095_v8 = vld [vmem:[%s15462_s28 + $0x1c80] sm:$0xf]  ;;  %v1097_v9 = vld [vmem:[%s15462_s28 + $0x1c90] sm:$0xf]  ;;  %1094 = vst [vmem:[%s15469_s29 + $0x71c] sm:$0xf] %v1093_v7 }
 0x144   : > { %1096 = vst [vmem:[%s15469_s29 + $0x720] sm:$0xf] %v1095_v8  ;;  %1098 = vst [vmem:[%s15469_s29 + $0x724] sm:$0xf] %v1097_v9  ;;  %v1099_v10 = vld [vmem:[%s15462_s28 + $0x1ca0] sm:$0xf] }
 0x145   : > { %v1101_v11 = vld [vmem:[%s15462_s28 + $0x1cb0] sm:$0xf]  ;;  %v1103_v12 = vld [vmem:[%s15462_s28 + $0x1cc0] sm:$0xf]  ;;  %1100 = vst [vmem:[%s15469_s29 + $0x728] sm:$0xf] %v1099_v10 }
 0x146   : > { %1102 = vst [vmem:[%s15469_s29 + $0x72c] sm:$0xf] %v1101_v11  ;;  %1104 = vst [vmem:[%s15469_s29 + $0x730] sm:$0xf] %v1103_v12  ;;  %v1105_v13 = vld [vmem:[%s15462_s28 + $0x1cd0] sm:$0xf] }
 0x147   : > { %v1107_v14 = vld [vmem:[%s15462_s28 + $0x1ce0] sm:$0xf]  ;;  %v1109_v15 = vld [vmem:[%s15462_s28 + $0x1cf0] sm:$0xf]  ;;  %1106 = vst [vmem:[%s15469_s29 + $0x734] sm:$0xf] %v1105_v13 }
 0x148   : > { %1108 = vst [vmem:[%s15469_s29 + $0x738] sm:$0xf] %v1107_v14  ;;  %1110 = vst [vmem:[%s15469_s29 + $0x73c] sm:$0xf] %v1109_v15  ;;  %v1111_v16 = vld [vmem:[%s15462_s28 + $0x1d00] sm:$0xf] }
 0x149   : > { %v1113_v17 = vld [vmem:[%s15462_s28 + $0x1d10] sm:$0xf]  ;;  %v1115_v18 = vld [vmem:[%s15462_s28 + $0x1d20] sm:$0xf]  ;;  %1112 = vst [vmem:[%s15469_s29 + $0x740] sm:$0xf] %v1111_v16 }
 0x14a   : > { %1114 = vst [vmem:[%s15469_s29 + $0x744] sm:$0xf] %v1113_v17  ;;  %1116 = vst [vmem:[%s15469_s29 + $0x748] sm:$0xf] %v1115_v18  ;;  %v1117_v19 = vld [vmem:[%s15462_s28 + $0x1d30] sm:$0xf] }
 0x14b   : > { %v1119_v20 = vld [vmem:[%s15462_s28 + $0x1d40] sm:$0xf]  ;;  %v1121_v21 = vld [vmem:[%s15462_s28 + $0x1d50] sm:$0xf]  ;;  %1118 = vst [vmem:[%s15469_s29 + $0x74c] sm:$0xf] %v1117_v19 }
 0x14c   : > { %1120 = vst [vmem:[%s15469_s29 + $0x750] sm:$0xf] %v1119_v20  ;;  %1122 = vst [vmem:[%s15469_s29 + $0x754] sm:$0xf] %v1121_v21  ;;  %v1123_v22 = vld [vmem:[%s15462_s28 + $0x1d60] sm:$0xf] }
 0x14d   : > { %v1125_v23 = vld [vmem:[%s15462_s28 + $0x1d70] sm:$0xf]  ;;  %v1127_v24 = vld [vmem:[%s15462_s28 + $0x1d80] sm:$0xf]  ;;  %1124 = vst [vmem:[%s15469_s29 + $0x758] sm:$0xf] %v1123_v22 }
 0x14e   : > { %1126 = vst [vmem:[%s15469_s29 + $0x75c] sm:$0xf] %v1125_v23  ;;  %1128 = vst [vmem:[%s15469_s29 + $0x760] sm:$0xf] %v1127_v24  ;;  %v1129_v25 = vld [vmem:[%s15462_s28 + $0x1d90] sm:$0xf] }
 0x14f   : > { %v1131_v26 = vld [vmem:[%s15462_s28 + $0x1da0] sm:$0xf]  ;;  %v1133_v27 = vld [vmem:[%s15462_s28 + $0x1db0] sm:$0xf]  ;;  %1130 = vst [vmem:[%s15469_s29 + $0x764] sm:$0xf] %v1129_v25 }
 0x150   : > { %1132 = vst [vmem:[%s15469_s29 + $0x768] sm:$0xf] %v1131_v26  ;;  %1134 = vst [vmem:[%s15469_s29 + $0x76c] sm:$0xf] %v1133_v27  ;;  %v1135_v28 = vld [vmem:[%s15462_s28 + $0x1dc0] sm:$0xf] }
 0x151   : > { %v1137_v29 = vld [vmem:[%s15462_s28 + $0x1dd0] sm:$0xf]  ;;  %v1139_v30 = vld [vmem:[%s15462_s28 + $0x1de0] sm:$0xf]  ;;  %1136 = vst [vmem:[%s15469_s29 + $0x770] sm:$0xf] %v1135_v28 }
 0x152   : > { %1138 = vst [vmem:[%s15469_s29 + $0x774] sm:$0xf] %v1137_v29  ;;  %1140 = vst [vmem:[%s15469_s29 + $0x778] sm:$0xf] %v1139_v30  ;;  %v1141_v31 = vld [vmem:[%s15462_s28 + $0x1df0] sm:$0xf] }
 0x153   : > { %v1143_v32 = vld [vmem:[%s15462_s28 + $0x1e00] sm:$0xf]  ;;  %v1145_v33 = vld [vmem:[%s15462_s28 + $0x1e10] sm:$0xf]  ;;  %1142 = vst [vmem:[%s15469_s29 + $0x77c] sm:$0xf] %v1141_v31 }
 0x154   : > { %1144 = vst [vmem:[%s15469_s29 + $0x780] sm:$0xf] %v1143_v32  ;;  %1146 = vst [vmem:[%s15469_s29 + $0x784] sm:$0xf] %v1145_v33  ;;  %v1147_v34 = vld [vmem:[%s15462_s28 + $0x1e20] sm:$0xf] }
 0x155   : > { %v1149_v35 = vld [vmem:[%s15462_s28 + $0x1e30] sm:$0xf]  ;;  %v1151_v36 = vld [vmem:[%s15462_s28 + $0x1e40] sm:$0xf]  ;;  %1148 = vst [vmem:[%s15469_s29 + $0x788] sm:$0xf] %v1147_v34 }
 0x156   : > { %1150 = vst [vmem:[%s15469_s29 + $0x78c] sm:$0xf] %v1149_v35  ;;  %1152 = vst [vmem:[%s15469_s29 + $0x790] sm:$0xf] %v1151_v36  ;;  %v1153_v37 = vld [vmem:[%s15462_s28 + $0x1e50] sm:$0xf] }
 0x157   : > { %v1155_v38 = vld [vmem:[%s15462_s28 + $0x1e60] sm:$0xf]  ;;  %v1157_v39 = vld [vmem:[%s15462_s28 + $0x1e70] sm:$0xf]  ;;  %1154 = vst [vmem:[%s15469_s29 + $0x794] sm:$0xf] %v1153_v37 }
 0x158   : > { %1156 = vst [vmem:[%s15469_s29 + $0x798] sm:$0xf] %v1155_v38  ;;  %1158 = vst [vmem:[%s15469_s29 + $0x79c] sm:$0xf] %v1157_v39  ;;  %v1159_v40 = vld [vmem:[%s15462_s28 + $0x1e80] sm:$0xf] }
 0x159   : > { %v1161_v41 = vld [vmem:[%s15462_s28 + $0x1e90] sm:$0xf]  ;;  %v1163_v42 = vld [vmem:[%s15462_s28 + $0x1ea0] sm:$0xf]  ;;  %1160 = vst [vmem:[%s15469_s29 + $0x7a0] sm:$0xf] %v1159_v40 }
 0x15a   : > { %1162 = vst [vmem:[%s15469_s29 + $0x7a4] sm:$0xf] %v1161_v41  ;;  %1164 = vst [vmem:[%s15469_s29 + $0x7a8] sm:$0xf] %v1163_v42  ;;  %v1165_v43 = vld [vmem:[%s15462_s28 + $0x1eb0] sm:$0xf] }
 0x15b   : > { %v1167_v44 = vld [vmem:[%s15462_s28 + $0x1ec0] sm:$0xf]  ;;  %v1169_v45 = vld [vmem:[%s15462_s28 + $0x1ed0] sm:$0xf]  ;;  %1166 = vst [vmem:[%s15469_s29 + $0x7ac] sm:$0xf] %v1165_v43 }
 0x15c   : > { %1168 = vst [vmem:[%s15469_s29 + $0x7b0] sm:$0xf] %v1167_v44  ;;  %1170 = vst [vmem:[%s15469_s29 + $0x7b4] sm:$0xf] %v1169_v45  ;;  %v1171_v46 = vld [vmem:[%s15462_s28 + $0x1ee0] sm:$0xf] }
 0x15d   : > { %v1173_v47 = vld [vmem:[%s15462_s28 + $0x1ef0] sm:$0xf]  ;;  %v1175_v48 = vld [vmem:[%s15462_s28 + $0x1f00] sm:$0xf]  ;;  %1172 = vst [vmem:[%s15469_s29 + $0x7b8] sm:$0xf] %v1171_v46 }
 0x15e   : > { %1174 = vst [vmem:[%s15469_s29 + $0x7bc] sm:$0xf] %v1173_v47  ;;  %1176 = vst [vmem:[%s15469_s29 + $0x7c0] sm:$0xf] %v1175_v48  ;;  %v1177_v49 = vld [vmem:[%s15462_s28 + $0x1f10] sm:$0xf] }
 0x15f   : > { %v1179_v50 = vld [vmem:[%s15462_s28 + $0x1f20] sm:$0xf]  ;;  %v1181_v51 = vld [vmem:[%s15462_s28 + $0x1f30] sm:$0xf]  ;;  %1178 = vst [vmem:[%s15469_s29 + $0x7c4] sm:$0xf] %v1177_v49 }
 0x160   : > { %1180 = vst [vmem:[%s15469_s29 + $0x7c8] sm:$0xf] %v1179_v50  ;;  %1182 = vst [vmem:[%s15469_s29 + $0x7cc] sm:$0xf] %v1181_v51  ;;  %v1183_v52 = vld [vmem:[%s15462_s28 + $0x1f40] sm:$0xf] }
 0x161   : > { %v1185_v53 = vld [vmem:[%s15462_s28 + $0x1f50] sm:$0xf]  ;;  %v1187_v54 = vld [vmem:[%s15462_s28 + $0x1f60] sm:$0xf]  ;;  %1184 = vst [vmem:[%s15469_s29 + $0x7d0] sm:$0xf] %v1183_v52 }
 0x162   : > { %1186 = vst [vmem:[%s15469_s29 + $0x7d4] sm:$0xf] %v1185_v53  ;;  %1188 = vst [vmem:[%s15469_s29 + $0x7d8] sm:$0xf] %v1187_v54  ;;  %v1189_v55 = vld [vmem:[%s15462_s28 + $0x1f70] sm:$0xf] }
 0x163   : > { %v1191_v56 = vld [vmem:[%s15462_s28 + $0x1f80] sm:$0xf]  ;;  %v1193_v57 = vld [vmem:[%s15462_s28 + $0x1f90] sm:$0xf]  ;;  %1190 = vst [vmem:[%s15469_s29 + $0x7dc] sm:$0xf] %v1189_v55 }
 0x164   : > { %1192 = vst [vmem:[%s15469_s29 + $0x7e0] sm:$0xf] %v1191_v56  ;;  %1194 = vst [vmem:[%s15469_s29 + $0x7e4] sm:$0xf] %v1193_v57  ;;  %v1195_v58 = vld [vmem:[%s15462_s28 + $0x1fa0] sm:$0xf] }
 0x165   : > { %v1197_v59 = vld [vmem:[%s15462_s28 + $0x1fb0] sm:$0xf]  ;;  %v1199_v60 = vld [vmem:[%s15462_s28 + $0x1fc0] sm:$0xf]  ;;  %1196 = vst [vmem:[%s15469_s29 + $0x7e8] sm:$0xf] %v1195_v58 }
 0x166   : > { %1198 = vst [vmem:[%s15469_s29 + $0x7ec] sm:$0xf] %v1197_v59  ;;  %1200 = vst [vmem:[%s15469_s29 + $0x7f0] sm:$0xf] %v1199_v60  ;;  %v1201_v61 = vld [vmem:[%s15462_s28 + $0x1fd0] sm:$0xf] }
 0x167   : > { %v1203_v62 = vld [vmem:[%s15462_s28 + $0x1fe0] sm:$0xf]  ;;  %v1205_v63 = vld [vmem:[%s15462_s28 + $0x1ff0] sm:$0xf]  ;;  %1202 = vst [vmem:[%s15469_s29 + $0x7f4] sm:$0xf] %v1201_v61 }
 0x168   : > { %1204 = vst [vmem:[%s15469_s29 + $0x7f8] sm:$0xf] %v1203_v62  ;;  %1206 = vst [vmem:[%s15469_s29 + $0x7fc] sm:$0xf] %v1205_v63  ;;  %v1207_v0 = vld [vmem:[%s15462_s28 + $0x2000] sm:$0xf] }
 0x169   : > { %v1209_v1 = vld [vmem:[%s15462_s28 + $0x2010] sm:$0xf]  ;;  %v1211_v2 = vld [vmem:[%s15462_s28 + $0x2020] sm:$0xf]  ;;  %1208 = vst [vmem:[%s15469_s29 + $0x800] sm:$0xf] %v1207_v0 }
 0x16a   : > { %1210 = vst [vmem:[%s15469_s29 + $0x804] sm:$0xf] %v1209_v1  ;;  %1212 = vst [vmem:[%s15469_s29 + $0x808] sm:$0xf] %v1211_v2  ;;  %v1213_v3 = vld [vmem:[%s15462_s28 + $0x2030] sm:$0xf] }
 0x16b   : > { %v1215_v4 = vld [vmem:[%s15462_s28 + $0x2040] sm:$0xf]  ;;  %v1217_v5 = vld [vmem:[%s15462_s28 + $0x2050] sm:$0xf]  ;;  %1214 = vst [vmem:[%s15469_s29 + $0x80c] sm:$0xf] %v1213_v3 }
 0x16c   : > { %1216 = vst [vmem:[%s15469_s29 + $0x810] sm:$0xf] %v1215_v4  ;;  %1218 = vst [vmem:[%s15469_s29 + $0x814] sm:$0xf] %v1217_v5  ;;  %v1219_v6 = vld [vmem:[%s15462_s28 + $0x2060] sm:$0xf] }
 0x16d   : > { %v1221_v7 = vld [vmem:[%s15462_s28 + $0x2070] sm:$0xf]  ;;  %v1223_v8 = vld [vmem:[%s15462_s28 + $0x2080] sm:$0xf]  ;;  %1220 = vst [vmem:[%s15469_s29 + $0x818] sm:$0xf] %v1219_v6 }
 0x16e   : > { %1222 = vst [vmem:[%s15469_s29 + $0x81c] sm:$0xf] %v1221_v7  ;;  %1224 = vst [vmem:[%s15469_s29 + $0x820] sm:$0xf] %v1223_v8  ;;  %v1225_v9 = vld [vmem:[%s15462_s28 + $0x2090] sm:$0xf] }
 0x16f   : > { %v1227_v10 = vld [vmem:[%s15462_s28 + $0x20a0] sm:$0xf]  ;;  %v1229_v11 = vld [vmem:[%s15462_s28 + $0x20b0] sm:$0xf]  ;;  %1226 = vst [vmem:[%s15469_s29 + $0x824] sm:$0xf] %v1225_v9 }
 0x170   : > { %1228 = vst [vmem:[%s15469_s29 + $0x828] sm:$0xf] %v1227_v10  ;;  %1230 = vst [vmem:[%s15469_s29 + $0x82c] sm:$0xf] %v1229_v11  ;;  %v1231_v12 = vld [vmem:[%s15462_s28 + $0x20c0] sm:$0xf] }
 0x171   : > { %v1233_v13 = vld [vmem:[%s15462_s28 + $0x20d0] sm:$0xf]  ;;  %v1235_v14 = vld [vmem:[%s15462_s28 + $0x20e0] sm:$0xf]  ;;  %1232 = vst [vmem:[%s15469_s29 + $0x830] sm:$0xf] %v1231_v12 }
 0x172   : > { %1234 = vst [vmem:[%s15469_s29 + $0x834] sm:$0xf] %v1233_v13  ;;  %1236 = vst [vmem:[%s15469_s29 + $0x838] sm:$0xf] %v1235_v14  ;;  %v1237_v15 = vld [vmem:[%s15462_s28 + $0x20f0] sm:$0xf] }
 0x173   : > { %v1239_v16 = vld [vmem:[%s15462_s28 + $0x2100] sm:$0xf]  ;;  %v1241_v17 = vld [vmem:[%s15462_s28 + $0x2110] sm:$0xf]  ;;  %1238 = vst [vmem:[%s15469_s29 + $0x83c] sm:$0xf] %v1237_v15 }
 0x174   : > { %1240 = vst [vmem:[%s15469_s29 + $0x840] sm:$0xf] %v1239_v16  ;;  %1242 = vst [vmem:[%s15469_s29 + $0x844] sm:$0xf] %v1241_v17  ;;  %v1243_v18 = vld [vmem:[%s15462_s28 + $0x2120] sm:$0xf] }
 0x175   : > { %v1245_v19 = vld [vmem:[%s15462_s28 + $0x2130] sm:$0xf]  ;;  %v1247_v20 = vld [vmem:[%s15462_s28 + $0x2140] sm:$0xf]  ;;  %1244 = vst [vmem:[%s15469_s29 + $0x848] sm:$0xf] %v1243_v18 }
 0x176   : > { %1246 = vst [vmem:[%s15469_s29 + $0x84c] sm:$0xf] %v1245_v19  ;;  %1248 = vst [vmem:[%s15469_s29 + $0x850] sm:$0xf] %v1247_v20  ;;  %v1249_v21 = vld [vmem:[%s15462_s28 + $0x2150] sm:$0xf] }
 0x177   : > { %v1251_v22 = vld [vmem:[%s15462_s28 + $0x2160] sm:$0xf]  ;;  %v1253_v23 = vld [vmem:[%s15462_s28 + $0x2170] sm:$0xf]  ;;  %1250 = vst [vmem:[%s15469_s29 + $0x854] sm:$0xf] %v1249_v21 }
 0x178   : > { %1252 = vst [vmem:[%s15469_s29 + $0x858] sm:$0xf] %v1251_v22  ;;  %1254 = vst [vmem:[%s15469_s29 + $0x85c] sm:$0xf] %v1253_v23  ;;  %v1255_v24 = vld [vmem:[%s15462_s28 + $0x2180] sm:$0xf] }
 0x179   : > { %v1257_v25 = vld [vmem:[%s15462_s28 + $0x2190] sm:$0xf]  ;;  %v1259_v26 = vld [vmem:[%s15462_s28 + $0x21a0] sm:$0xf]  ;;  %1256 = vst [vmem:[%s15469_s29 + $0x860] sm:$0xf] %v1255_v24 }
 0x17a   : > { %1258 = vst [vmem:[%s15469_s29 + $0x864] sm:$0xf] %v1257_v25  ;;  %1260 = vst [vmem:[%s15469_s29 + $0x868] sm:$0xf] %v1259_v26  ;;  %v1261_v27 = vld [vmem:[%s15462_s28 + $0x21b0] sm:$0xf] }
 0x17b   : > { %v1263_v28 = vld [vmem:[%s15462_s28 + $0x21c0] sm:$0xf]  ;;  %v1265_v29 = vld [vmem:[%s15462_s28 + $0x21d0] sm:$0xf]  ;;  %1262 = vst [vmem:[%s15469_s29 + $0x86c] sm:$0xf] %v1261_v27 }
 0x17c   : > { %1264 = vst [vmem:[%s15469_s29 + $0x870] sm:$0xf] %v1263_v28  ;;  %1266 = vst [vmem:[%s15469_s29 + $0x874] sm:$0xf] %v1265_v29  ;;  %v1267_v30 = vld [vmem:[%s15462_s28 + $0x21e0] sm:$0xf] }
 0x17d   : > { %v1269_v31 = vld [vmem:[%s15462_s28 + $0x21f0] sm:$0xf]  ;;  %v1271_v32 = vld [vmem:[%s15462_s28 + $0x2200] sm:$0xf]  ;;  %1268 = vst [vmem:[%s15469_s29 + $0x878] sm:$0xf] %v1267_v30 }
 0x17e   : > { %1270 = vst [vmem:[%s15469_s29 + $0x87c] sm:$0xf] %v1269_v31  ;;  %1272 = vst [vmem:[%s15469_s29 + $0x880] sm:$0xf] %v1271_v32  ;;  %v1273_v33 = vld [vmem:[%s15462_s28 + $0x2210] sm:$0xf] }
 0x17f   : > { %v1275_v34 = vld [vmem:[%s15462_s28 + $0x2220] sm:$0xf]  ;;  %v1277_v35 = vld [vmem:[%s15462_s28 + $0x2230] sm:$0xf]  ;;  %1274 = vst [vmem:[%s15469_s29 + $0x884] sm:$0xf] %v1273_v33 }
 0x180   : > { %1276 = vst [vmem:[%s15469_s29 + $0x888] sm:$0xf] %v1275_v34  ;;  %1278 = vst [vmem:[%s15469_s29 + $0x88c] sm:$0xf] %v1277_v35  ;;  %v1279_v36 = vld [vmem:[%s15462_s28 + $0x2240] sm:$0xf] }
 0x181   : > { %v1281_v37 = vld [vmem:[%s15462_s28 + $0x2250] sm:$0xf]  ;;  %v1283_v38 = vld [vmem:[%s15462_s28 + $0x2260] sm:$0xf]  ;;  %1280 = vst [vmem:[%s15469_s29 + $0x890] sm:$0xf] %v1279_v36 }
 0x182   : > { %1282 = vst [vmem:[%s15469_s29 + $0x894] sm:$0xf] %v1281_v37  ;;  %1284 = vst [vmem:[%s15469_s29 + $0x898] sm:$0xf] %v1283_v38  ;;  %v1285_v39 = vld [vmem:[%s15462_s28 + $0x2270] sm:$0xf] }
 0x183   : > { %v1287_v40 = vld [vmem:[%s15462_s28 + $0x2280] sm:$0xf]  ;;  %v1289_v41 = vld [vmem:[%s15462_s28 + $0x2290] sm:$0xf]  ;;  %1286 = vst [vmem:[%s15469_s29 + $0x89c] sm:$0xf] %v1285_v39 }
 0x184   : > { %1288 = vst [vmem:[%s15469_s29 + $0x8a0] sm:$0xf] %v1287_v40  ;;  %1290 = vst [vmem:[%s15469_s29 + $0x8a4] sm:$0xf] %v1289_v41  ;;  %v1291_v42 = vld [vmem:[%s15462_s28 + $0x22a0] sm:$0xf] }
 0x185   : > { %v1293_v43 = vld [vmem:[%s15462_s28 + $0x22b0] sm:$0xf]  ;;  %v1295_v44 = vld [vmem:[%s15462_s28 + $0x22c0] sm:$0xf]  ;;  %1292 = vst [vmem:[%s15469_s29 + $0x8a8] sm:$0xf] %v1291_v42 }
 0x186   : > { %1294 = vst [vmem:[%s15469_s29 + $0x8ac] sm:$0xf] %v1293_v43  ;;  %1296 = vst [vmem:[%s15469_s29 + $0x8b0] sm:$0xf] %v1295_v44  ;;  %v1297_v45 = vld [vmem:[%s15462_s28 + $0x22d0] sm:$0xf] }
 0x187   : > { %v1299_v46 = vld [vmem:[%s15462_s28 + $0x22e0] sm:$0xf]  ;;  %v1301_v47 = vld [vmem:[%s15462_s28 + $0x22f0] sm:$0xf]  ;;  %1298 = vst [vmem:[%s15469_s29 + $0x8b4] sm:$0xf] %v1297_v45 }
 0x188   : > { %1300 = vst [vmem:[%s15469_s29 + $0x8b8] sm:$0xf] %v1299_v46  ;;  %1302 = vst [vmem:[%s15469_s29 + $0x8bc] sm:$0xf] %v1301_v47  ;;  %v1303_v48 = vld [vmem:[%s15462_s28 + $0x2300] sm:$0xf] }
 0x189   : > { %v1305_v49 = vld [vmem:[%s15462_s28 + $0x2310] sm:$0xf]  ;;  %v1307_v50 = vld [vmem:[%s15462_s28 + $0x2320] sm:$0xf]  ;;  %1304 = vst [vmem:[%s15469_s29 + $0x8c0] sm:$0xf] %v1303_v48 }
 0x18a   : > { %1306 = vst [vmem:[%s15469_s29 + $0x8c4] sm:$0xf] %v1305_v49  ;;  %1308 = vst [vmem:[%s15469_s29 + $0x8c8] sm:$0xf] %v1307_v50  ;;  %v1309_v51 = vld [vmem:[%s15462_s28 + $0x2330] sm:$0xf] }
 0x18b   : > { %v1311_v52 = vld [vmem:[%s15462_s28 + $0x2340] sm:$0xf]  ;;  %v1313_v53 = vld [vmem:[%s15462_s28 + $0x2350] sm:$0xf]  ;;  %1310 = vst [vmem:[%s15469_s29 + $0x8cc] sm:$0xf] %v1309_v51 }
 0x18c   : > { %1312 = vst [vmem:[%s15469_s29 + $0x8d0] sm:$0xf] %v1311_v52  ;;  %1314 = vst [vmem:[%s15469_s29 + $0x8d4] sm:$0xf] %v1313_v53  ;;  %v1315_v54 = vld [vmem:[%s15462_s28 + $0x2360] sm:$0xf] }
 0x18d   : > { %v1317_v55 = vld [vmem:[%s15462_s28 + $0x2370] sm:$0xf]  ;;  %v1319_v56 = vld [vmem:[%s15462_s28 + $0x2380] sm:$0xf]  ;;  %1316 = vst [vmem:[%s15469_s29 + $0x8d8] sm:$0xf] %v1315_v54 }
 0x18e   : > { %1318 = vst [vmem:[%s15469_s29 + $0x8dc] sm:$0xf] %v1317_v55  ;;  %1320 = vst [vmem:[%s15469_s29 + $0x8e0] sm:$0xf] %v1319_v56  ;;  %v1321_v57 = vld [vmem:[%s15462_s28 + $0x2390] sm:$0xf] }
 0x18f   : > { %v1323_v58 = vld [vmem:[%s15462_s28 + $0x23a0] sm:$0xf]  ;;  %v1325_v59 = vld [vmem:[%s15462_s28 + $0x23b0] sm:$0xf]  ;;  %1322 = vst [vmem:[%s15469_s29 + $0x8e4] sm:$0xf] %v1321_v57 }
 0x190   : > { %1324 = vst [vmem:[%s15469_s29 + $0x8e8] sm:$0xf] %v1323_v58  ;;  %1326 = vst [vmem:[%s15469_s29 + $0x8ec] sm:$0xf] %v1325_v59  ;;  %v1327_v60 = vld [vmem:[%s15462_s28 + $0x23c0] sm:$0xf] }
 0x191   : > { %v1329_v61 = vld [vmem:[%s15462_s28 + $0x23d0] sm:$0xf]  ;;  %v1331_v62 = vld [vmem:[%s15462_s28 + $0x23e0] sm:$0xf]  ;;  %1328 = vst [vmem:[%s15469_s29 + $0x8f0] sm:$0xf] %v1327_v60 }
 0x192   : > { %1330 = vst [vmem:[%s15469_s29 + $0x8f4] sm:$0xf] %v1329_v61  ;;  %1332 = vst [vmem:[%s15469_s29 + $0x8f8] sm:$0xf] %v1331_v62  ;;  %v1333_v63 = vld [vmem:[%s15462_s28 + $0x23f0] sm:$0xf] }
 0x193   : > { %v1335_v0 = vld [vmem:[%s15462_s28 + $0x2400] sm:$0xf]  ;;  %v1337_v1 = vld [vmem:[%s15462_s28 + $0x2410] sm:$0xf]  ;;  %1334 = vst [vmem:[%s15469_s29 + $0x8fc] sm:$0xf] %v1333_v63 }
 0x194   : > { %1336 = vst [vmem:[%s15469_s29 + $0x900] sm:$0xf] %v1335_v0  ;;  %1338 = vst [vmem:[%s15469_s29 + $0x904] sm:$0xf] %v1337_v1  ;;  %v1339_v2 = vld [vmem:[%s15462_s28 + $0x2420] sm:$0xf] }
 0x195   : > { %v1341_v3 = vld [vmem:[%s15462_s28 + $0x2430] sm:$0xf]  ;;  %v1343_v4 = vld [vmem:[%s15462_s28 + $0x2440] sm:$0xf]  ;;  %1340 = vst [vmem:[%s15469_s29 + $0x908] sm:$0xf] %v1339_v2 }
 0x196   : > { %1342 = vst [vmem:[%s15469_s29 + $0x90c] sm:$0xf] %v1341_v3  ;;  %1344 = vst [vmem:[%s15469_s29 + $0x910] sm:$0xf] %v1343_v4  ;;  %v1345_v5 = vld [vmem:[%s15462_s28 + $0x2450] sm:$0xf] }
 0x197   : > { %v1347_v6 = vld [vmem:[%s15462_s28 + $0x2460] sm:$0xf]  ;;  %v1349_v7 = vld [vmem:[%s15462_s28 + $0x2470] sm:$0xf]  ;;  %1346 = vst [vmem:[%s15469_s29 + $0x914] sm:$0xf] %v1345_v5 }
 0x198   : > { %1348 = vst [vmem:[%s15469_s29 + $0x918] sm:$0xf] %v1347_v6  ;;  %1350 = vst [vmem:[%s15469_s29 + $0x91c] sm:$0xf] %v1349_v7  ;;  %v1351_v8 = vld [vmem:[%s15462_s28 + $0x2480] sm:$0xf] }
 0x199   : > { %v1353_v9 = vld [vmem:[%s15462_s28 + $0x2490] sm:$0xf]  ;;  %v1355_v10 = vld [vmem:[%s15462_s28 + $0x24a0] sm:$0xf]  ;;  %1352 = vst [vmem:[%s15469_s29 + $0x920] sm:$0xf] %v1351_v8 }
 0x19a   : > { %1354 = vst [vmem:[%s15469_s29 + $0x924] sm:$0xf] %v1353_v9  ;;  %1356 = vst [vmem:[%s15469_s29 + $0x928] sm:$0xf] %v1355_v10  ;;  %v1357_v11 = vld [vmem:[%s15462_s28 + $0x24b0] sm:$0xf] }
 0x19b   : > { %v1359_v12 = vld [vmem:[%s15462_s28 + $0x24c0] sm:$0xf]  ;;  %v1361_v13 = vld [vmem:[%s15462_s28 + $0x24d0] sm:$0xf]  ;;  %1358 = vst [vmem:[%s15469_s29 + $0x92c] sm:$0xf] %v1357_v11 }
 0x19c   : > { %1360 = vst [vmem:[%s15469_s29 + $0x930] sm:$0xf] %v1359_v12  ;;  %1362 = vst [vmem:[%s15469_s29 + $0x934] sm:$0xf] %v1361_v13  ;;  %v1363_v14 = vld [vmem:[%s15462_s28 + $0x24e0] sm:$0xf] }
 0x19d   : > { %v1365_v15 = vld [vmem:[%s15462_s28 + $0x24f0] sm:$0xf]  ;;  %v1367_v16 = vld [vmem:[%s15462_s28 + $0x2500] sm:$0xf]  ;;  %1364 = vst [vmem:[%s15469_s29 + $0x938] sm:$0xf] %v1363_v14 }
 0x19e   : > { %1366 = vst [vmem:[%s15469_s29 + $0x93c] sm:$0xf] %v1365_v15  ;;  %1368 = vst [vmem:[%s15469_s29 + $0x940] sm:$0xf] %v1367_v16  ;;  %v1369_v17 = vld [vmem:[%s15462_s28 + $0x2510] sm:$0xf] }
 0x19f   : > { %v1371_v18 = vld [vmem:[%s15462_s28 + $0x2520] sm:$0xf]  ;;  %v1373_v19 = vld [vmem:[%s15462_s28 + $0x2530] sm:$0xf]  ;;  %1370 = vst [vmem:[%s15469_s29 + $0x944] sm:$0xf] %v1369_v17 }
 0x1a0   : > { %1372 = vst [vmem:[%s15469_s29 + $0x948] sm:$0xf] %v1371_v18  ;;  %1374 = vst [vmem:[%s15469_s29 + $0x94c] sm:$0xf] %v1373_v19  ;;  %v1375_v20 = vld [vmem:[%s15462_s28 + $0x2540] sm:$0xf] }
 0x1a1   : > { %v1377_v21 = vld [vmem:[%s15462_s28 + $0x2550] sm:$0xf]  ;;  %v1379_v22 = vld [vmem:[%s15462_s28 + $0x2560] sm:$0xf]  ;;  %1376 = vst [vmem:[%s15469_s29 + $0x950] sm:$0xf] %v1375_v20 }
 0x1a2   : > { %1378 = vst [vmem:[%s15469_s29 + $0x954] sm:$0xf] %v1377_v21  ;;  %1380 = vst [vmem:[%s15469_s29 + $0x958] sm:$0xf] %v1379_v22  ;;  %v1381_v23 = vld [vmem:[%s15462_s28 + $0x2570] sm:$0xf] }
 0x1a3   : > { %v1383_v24 = vld [vmem:[%s15462_s28 + $0x2580] sm:$0xf]  ;;  %v1385_v25 = vld [vmem:[%s15462_s28 + $0x2590] sm:$0xf]  ;;  %1382 = vst [vmem:[%s15469_s29 + $0x95c] sm:$0xf] %v1381_v23 }
 0x1a4   : > { %1384 = vst [vmem:[%s15469_s29 + $0x960] sm:$0xf] %v1383_v24  ;;  %1386 = vst [vmem:[%s15469_s29 + $0x964] sm:$0xf] %v1385_v25  ;;  %v1387_v26 = vld [vmem:[%s15462_s28 + $0x25a0] sm:$0xf] }
 0x1a5   : > { %v1389_v27 = vld [vmem:[%s15462_s28 + $0x25b0] sm:$0xf]  ;;  %v1391_v28 = vld [vmem:[%s15462_s28 + $0x25c0] sm:$0xf]  ;;  %1388 = vst [vmem:[%s15469_s29 + $0x968] sm:$0xf] %v1387_v26 }
 0x1a6   : > { %1390 = vst [vmem:[%s15469_s29 + $0x96c] sm:$0xf] %v1389_v27  ;;  %1392 = vst [vmem:[%s15469_s29 + $0x970] sm:$0xf] %v1391_v28  ;;  %v1393_v29 = vld [vmem:[%s15462_s28 + $0x25d0] sm:$0xf] }
 0x1a7   : > { %v1395_v30 = vld [vmem:[%s15462_s28 + $0x25e0] sm:$0xf]  ;;  %v1397_v31 = vld [vmem:[%s15462_s28 + $0x25f0] sm:$0xf]  ;;  %1394 = vst [vmem:[%s15469_s29 + $0x974] sm:$0xf] %v1393_v29 }
 0x1a8   : > { %1396 = vst [vmem:[%s15469_s29 + $0x978] sm:$0xf] %v1395_v30  ;;  %1398 = vst [vmem:[%s15469_s29 + $0x97c] sm:$0xf] %v1397_v31  ;;  %v1399_v32 = vld [vmem:[%s15462_s28 + $0x2600] sm:$0xf] }
 0x1a9   : > { %v1401_v33 = vld [vmem:[%s15462_s28 + $0x2610] sm:$0xf]  ;;  %v1403_v34 = vld [vmem:[%s15462_s28 + $0x2620] sm:$0xf]  ;;  %1400 = vst [vmem:[%s15469_s29 + $0x980] sm:$0xf] %v1399_v32 }
 0x1aa   : > { %1402 = vst [vmem:[%s15469_s29 + $0x984] sm:$0xf] %v1401_v33  ;;  %1404 = vst [vmem:[%s15469_s29 + $0x988] sm:$0xf] %v1403_v34  ;;  %v1405_v35 = vld [vmem:[%s15462_s28 + $0x2630] sm:$0xf] }
 0x1ab   : > { %v1407_v36 = vld [vmem:[%s15462_s28 + $0x2640] sm:$0xf]  ;;  %v1409_v37 = vld [vmem:[%s15462_s28 + $0x2650] sm:$0xf]  ;;  %1406 = vst [vmem:[%s15469_s29 + $0x98c] sm:$0xf] %v1405_v35 }
 0x1ac   : > { %1408 = vst [vmem:[%s15469_s29 + $0x990] sm:$0xf] %v1407_v36  ;;  %1410 = vst [vmem:[%s15469_s29 + $0x994] sm:$0xf] %v1409_v37  ;;  %v1411_v38 = vld [vmem:[%s15462_s28 + $0x2660] sm:$0xf] }
 0x1ad   : > { %v1413_v39 = vld [vmem:[%s15462_s28 + $0x2670] sm:$0xf]  ;;  %v1415_v40 = vld [vmem:[%s15462_s28 + $0x2680] sm:$0xf]  ;;  %1412 = vst [vmem:[%s15469_s29 + $0x998] sm:$0xf] %v1411_v38 }
 0x1ae   : > { %1414 = vst [vmem:[%s15469_s29 + $0x99c] sm:$0xf] %v1413_v39  ;;  %1416 = vst [vmem:[%s15469_s29 + $0x9a0] sm:$0xf] %v1415_v40  ;;  %v1417_v41 = vld [vmem:[%s15462_s28 + $0x2690] sm:$0xf] }
 0x1af   : > { %v1419_v42 = vld [vmem:[%s15462_s28 + $0x26a0] sm:$0xf]  ;;  %v1421_v43 = vld [vmem:[%s15462_s28 + $0x26b0] sm:$0xf]  ;;  %1418 = vst [vmem:[%s15469_s29 + $0x9a4] sm:$0xf] %v1417_v41 }
 0x1b0   : > { %1420 = vst [vmem:[%s15469_s29 + $0x9a8] sm:$0xf] %v1419_v42  ;;  %1422 = vst [vmem:[%s15469_s29 + $0x9ac] sm:$0xf] %v1421_v43  ;;  %v1423_v44 = vld [vmem:[%s15462_s28 + $0x26c0] sm:$0xf] }
 0x1b1   : > { %v1425_v45 = vld [vmem:[%s15462_s28 + $0x26d0] sm:$0xf]  ;;  %v1427_v46 = vld [vmem:[%s15462_s28 + $0x26e0] sm:$0xf]  ;;  %1424 = vst [vmem:[%s15469_s29 + $0x9b0] sm:$0xf] %v1423_v44 }
 0x1b2   : > { %1426 = vst [vmem:[%s15469_s29 + $0x9b4] sm:$0xf] %v1425_v45  ;;  %1428 = vst [vmem:[%s15469_s29 + $0x9b8] sm:$0xf] %v1427_v46  ;;  %v1429_v47 = vld [vmem:[%s15462_s28 + $0x26f0] sm:$0xf] }
 0x1b3   : > { %v1431_v48 = vld [vmem:[%s15462_s28 + $0x2700] sm:$0xf]  ;;  %v1433_v49 = vld [vmem:[%s15462_s28 + $0x2710] sm:$0xf]  ;;  %1430 = vst [vmem:[%s15469_s29 + $0x9bc] sm:$0xf] %v1429_v47 }
 0x1b4   : > { %1432 = vst [vmem:[%s15469_s29 + $0x9c0] sm:$0xf] %v1431_v48  ;;  %1434 = vst [vmem:[%s15469_s29 + $0x9c4] sm:$0xf] %v1433_v49  ;;  %v1435_v50 = vld [vmem:[%s15462_s28 + $0x2720] sm:$0xf] }
 0x1b5   : > { %v1437_v51 = vld [vmem:[%s15462_s28 + $0x2730] sm:$0xf]  ;;  %v1439_v52 = vld [vmem:[%s15462_s28 + $0x2740] sm:$0xf]  ;;  %1436 = vst [vmem:[%s15469_s29 + $0x9c8] sm:$0xf] %v1435_v50 }
 0x1b6   : > { %1438 = vst [vmem:[%s15469_s29 + $0x9cc] sm:$0xf] %v1437_v51  ;;  %1440 = vst [vmem:[%s15469_s29 + $0x9d0] sm:$0xf] %v1439_v52  ;;  %v1441_v53 = vld [vmem:[%s15462_s28 + $0x2750] sm:$0xf] }
 0x1b7   : > { %v1443_v54 = vld [vmem:[%s15462_s28 + $0x2760] sm:$0xf]  ;;  %v1445_v55 = vld [vmem:[%s15462_s28 + $0x2770] sm:$0xf]  ;;  %1442 = vst [vmem:[%s15469_s29 + $0x9d4] sm:$0xf] %v1441_v53 }
 0x1b8   : > { %1444 = vst [vmem:[%s15469_s29 + $0x9d8] sm:$0xf] %v1443_v54  ;;  %1446 = vst [vmem:[%s15469_s29 + $0x9dc] sm:$0xf] %v1445_v55  ;;  %v1447_v56 = vld [vmem:[%s15462_s28 + $0x2780] sm:$0xf] }
 0x1b9   : > { %v1449_v57 = vld [vmem:[%s15462_s28 + $0x2790] sm:$0xf]  ;;  %v1451_v58 = vld [vmem:[%s15462_s28 + $0x27a0] sm:$0xf]  ;;  %1448 = vst [vmem:[%s15469_s29 + $0x9e0] sm:$0xf] %v1447_v56 }
 0x1ba   : > { %1450 = vst [vmem:[%s15469_s29 + $0x9e4] sm:$0xf] %v1449_v57  ;;  %1452 = vst [vmem:[%s15469_s29 + $0x9e8] sm:$0xf] %v1451_v58  ;;  %v1453_v59 = vld [vmem:[%s15462_s28 + $0x27b0] sm:$0xf] }
 0x1bb   : > { %v1455_v60 = vld [vmem:[%s15462_s28 + $0x27c0] sm:$0xf]  ;;  %v1457_v61 = vld [vmem:[%s15462_s28 + $0x27d0] sm:$0xf]  ;;  %1454 = vst [vmem:[%s15469_s29 + $0x9ec] sm:$0xf] %v1453_v59 }
 0x1bc   : > { %1456 = vst [vmem:[%s15469_s29 + $0x9f0] sm:$0xf] %v1455_v60  ;;  %1458 = vst [vmem:[%s15469_s29 + $0x9f4] sm:$0xf] %v1457_v61  ;;  %v1459_v62 = vld [vmem:[%s15462_s28 + $0x27e0] sm:$0xf] }
 0x1bd   : > { %v1461_v63 = vld [vmem:[%s15462_s28 + $0x27f0] sm:$0xf]  ;;  %v1463_v0 = vld [vmem:[%s15462_s28 + $0x2800] sm:$0xf]  ;;  %1460 = vst [vmem:[%s15469_s29 + $0x9f8] sm:$0xf] %v1459_v62 }
 0x1be   : > { %1462 = vst [vmem:[%s15469_s29 + $0x9fc] sm:$0xf] %v1461_v63  ;;  %1464 = vst [vmem:[%s15469_s29 + $0xa00] sm:$0xf] %v1463_v0  ;;  %v1465_v1 = vld [vmem:[%s15462_s28 + $0x2810] sm:$0xf] }
 0x1bf   : > { %v1467_v2 = vld [vmem:[%s15462_s28 + $0x2820] sm:$0xf]  ;;  %v1469_v3 = vld [vmem:[%s15462_s28 + $0x2830] sm:$0xf]  ;;  %1466 = vst [vmem:[%s15469_s29 + $0xa04] sm:$0xf] %v1465_v1 }
 0x1c0   : > { %1468 = vst [vmem:[%s15469_s29 + $0xa08] sm:$0xf] %v1467_v2  ;;  %1470 = vst [vmem:[%s15469_s29 + $0xa0c] sm:$0xf] %v1469_v3  ;;  %v1471_v4 = vld [vmem:[%s15462_s28 + $0x2840] sm:$0xf] }
 0x1c1   : > { %v1473_v5 = vld [vmem:[%s15462_s28 + $0x2850] sm:$0xf]  ;;  %v1475_v6 = vld [vmem:[%s15462_s28 + $0x2860] sm:$0xf]  ;;  %1472 = vst [vmem:[%s15469_s29 + $0xa10] sm:$0xf] %v1471_v4 }
 0x1c2   : > { %1474 = vst [vmem:[%s15469_s29 + $0xa14] sm:$0xf] %v1473_v5  ;;  %1476 = vst [vmem:[%s15469_s29 + $0xa18] sm:$0xf] %v1475_v6  ;;  %v1477_v7 = vld [vmem:[%s15462_s28 + $0x2870] sm:$0xf] }
 0x1c3   : > { %v1479_v8 = vld [vmem:[%s15462_s28 + $0x2880] sm:$0xf]  ;;  %v1481_v9 = vld [vmem:[%s15462_s28 + $0x2890] sm:$0xf]  ;;  %1478 = vst [vmem:[%s15469_s29 + $0xa1c] sm:$0xf] %v1477_v7 }
 0x1c4   : > { %1480 = vst [vmem:[%s15469_s29 + $0xa20] sm:$0xf] %v1479_v8  ;;  %1482 = vst [vmem:[%s15469_s29 + $0xa24] sm:$0xf] %v1481_v9  ;;  %v1483_v10 = vld [vmem:[%s15462_s28 + $0x28a0] sm:$0xf] }
 0x1c5   : > { %v1485_v11 = vld [vmem:[%s15462_s28 + $0x28b0] sm:$0xf]  ;;  %v1487_v12 = vld [vmem:[%s15462_s28 + $0x28c0] sm:$0xf]  ;;  %1484 = vst [vmem:[%s15469_s29 + $0xa28] sm:$0xf] %v1483_v10 }
 0x1c6   : > { %1486 = vst [vmem:[%s15469_s29 + $0xa2c] sm:$0xf] %v1485_v11  ;;  %1488 = vst [vmem:[%s15469_s29 + $0xa30] sm:$0xf] %v1487_v12  ;;  %v1489_v13 = vld [vmem:[%s15462_s28 + $0x28d0] sm:$0xf] }
 0x1c7   : > { %v1491_v14 = vld [vmem:[%s15462_s28 + $0x28e0] sm:$0xf]  ;;  %v1493_v15 = vld [vmem:[%s15462_s28 + $0x28f0] sm:$0xf]  ;;  %1490 = vst [vmem:[%s15469_s29 + $0xa34] sm:$0xf] %v1489_v13 }
 0x1c8   : > { %1492 = vst [vmem:[%s15469_s29 + $0xa38] sm:$0xf] %v1491_v14  ;;  %1494 = vst [vmem:[%s15469_s29 + $0xa3c] sm:$0xf] %v1493_v15  ;;  %v1495_v16 = vld [vmem:[%s15462_s28 + $0x2900] sm:$0xf] }
 0x1c9   : > { %v1497_v17 = vld [vmem:[%s15462_s28 + $0x2910] sm:$0xf]  ;;  %v1499_v18 = vld [vmem:[%s15462_s28 + $0x2920] sm:$0xf]  ;;  %1496 = vst [vmem:[%s15469_s29 + $0xa40] sm:$0xf] %v1495_v16 }
 0x1ca   : > { %1498 = vst [vmem:[%s15469_s29 + $0xa44] sm:$0xf] %v1497_v17  ;;  %1500 = vst [vmem:[%s15469_s29 + $0xa48] sm:$0xf] %v1499_v18  ;;  %v1501_v19 = vld [vmem:[%s15462_s28 + $0x2930] sm:$0xf] }
 0x1cb   : > { %v1503_v20 = vld [vmem:[%s15462_s28 + $0x2940] sm:$0xf]  ;;  %v1505_v21 = vld [vmem:[%s15462_s28 + $0x2950] sm:$0xf]  ;;  %1502 = vst [vmem:[%s15469_s29 + $0xa4c] sm:$0xf] %v1501_v19 }
 0x1cc   : > { %1504 = vst [vmem:[%s15469_s29 + $0xa50] sm:$0xf] %v1503_v20  ;;  %1506 = vst [vmem:[%s15469_s29 + $0xa54] sm:$0xf] %v1505_v21  ;;  %v1507_v22 = vld [vmem:[%s15462_s28 + $0x2960] sm:$0xf] }
 0x1cd   : > { %v1509_v23 = vld [vmem:[%s15462_s28 + $0x2970] sm:$0xf]  ;;  %v1511_v24 = vld [vmem:[%s15462_s28 + $0x2980] sm:$0xf]  ;;  %1508 = vst [vmem:[%s15469_s29 + $0xa58] sm:$0xf] %v1507_v22 }
 0x1ce   : > { %1510 = vst [vmem:[%s15469_s29 + $0xa5c] sm:$0xf] %v1509_v23  ;;  %1512 = vst [vmem:[%s15469_s29 + $0xa60] sm:$0xf] %v1511_v24  ;;  %v1513_v25 = vld [vmem:[%s15462_s28 + $0x2990] sm:$0xf] }
 0x1cf   : > { %v1515_v26 = vld [vmem:[%s15462_s28 + $0x29a0] sm:$0xf]  ;;  %v1517_v27 = vld [vmem:[%s15462_s28 + $0x29b0] sm:$0xf]  ;;  %1514 = vst [vmem:[%s15469_s29 + $0xa64] sm:$0xf] %v1513_v25 }
 0x1d0   : > { %1516 = vst [vmem:[%s15469_s29 + $0xa68] sm:$0xf] %v1515_v26  ;;  %1518 = vst [vmem:[%s15469_s29 + $0xa6c] sm:$0xf] %v1517_v27  ;;  %v1519_v28 = vld [vmem:[%s15462_s28 + $0x29c0] sm:$0xf] }
 0x1d1   : > { %v1521_v29 = vld [vmem:[%s15462_s28 + $0x29d0] sm:$0xf]  ;;  %v1523_v30 = vld [vmem:[%s15462_s28 + $0x29e0] sm:$0xf]  ;;  %1520 = vst [vmem:[%s15469_s29 + $0xa70] sm:$0xf] %v1519_v28 }
 0x1d2   : > { %1522 = vst [vmem:[%s15469_s29 + $0xa74] sm:$0xf] %v1521_v29  ;;  %1524 = vst [vmem:[%s15469_s29 + $0xa78] sm:$0xf] %v1523_v30  ;;  %v1525_v31 = vld [vmem:[%s15462_s28 + $0x29f0] sm:$0xf] }
 0x1d3   : > { %v1527_v32 = vld [vmem:[%s15462_s28 + $0x2a00] sm:$0xf]  ;;  %v1529_v33 = vld [vmem:[%s15462_s28 + $0x2a10] sm:$0xf]  ;;  %1526 = vst [vmem:[%s15469_s29 + $0xa7c] sm:$0xf] %v1525_v31 }
 0x1d4   : > { %1528 = vst [vmem:[%s15469_s29 + $0xa80] sm:$0xf] %v1527_v32  ;;  %1530 = vst [vmem:[%s15469_s29 + $0xa84] sm:$0xf] %v1529_v33  ;;  %v1531_v34 = vld [vmem:[%s15462_s28 + $0x2a20] sm:$0xf] }
 0x1d5   : > { %v1533_v35 = vld [vmem:[%s15462_s28 + $0x2a30] sm:$0xf]  ;;  %v1535_v36 = vld [vmem:[%s15462_s28 + $0x2a40] sm:$0xf]  ;;  %1532 = vst [vmem:[%s15469_s29 + $0xa88] sm:$0xf] %v1531_v34 }
 0x1d6   : > { %1534 = vst [vmem:[%s15469_s29 + $0xa8c] sm:$0xf] %v1533_v35  ;;  %1536 = vst [vmem:[%s15469_s29 + $0xa90] sm:$0xf] %v1535_v36  ;;  %v1537_v37 = vld [vmem:[%s15462_s28 + $0x2a50] sm:$0xf] }
 0x1d7   : > { %v1539_v38 = vld [vmem:[%s15462_s28 + $0x2a60] sm:$0xf]  ;;  %v1541_v39 = vld [vmem:[%s15462_s28 + $0x2a70] sm:$0xf]  ;;  %1538 = vst [vmem:[%s15469_s29 + $0xa94] sm:$0xf] %v1537_v37 }
 0x1d8   : > { %1540 = vst [vmem:[%s15469_s29 + $0xa98] sm:$0xf] %v1539_v38  ;;  %1542 = vst [vmem:[%s15469_s29 + $0xa9c] sm:$0xf] %v1541_v39  ;;  %v1543_v40 = vld [vmem:[%s15462_s28 + $0x2a80] sm:$0xf] }
 0x1d9   : > { %v1545_v41 = vld [vmem:[%s15462_s28 + $0x2a90] sm:$0xf]  ;;  %v1547_v42 = vld [vmem:[%s15462_s28 + $0x2aa0] sm:$0xf]  ;;  %1544 = vst [vmem:[%s15469_s29 + $0xaa0] sm:$0xf] %v1543_v40 }
 0x1da   : > { %1546 = vst [vmem:[%s15469_s29 + $0xaa4] sm:$0xf] %v1545_v41  ;;  %1548 = vst [vmem:[%s15469_s29 + $0xaa8] sm:$0xf] %v1547_v42  ;;  %v1549_v43 = vld [vmem:[%s15462_s28 + $0x2ab0] sm:$0xf] }
 0x1db   : > { %v1551_v44 = vld [vmem:[%s15462_s28 + $0x2ac0] sm:$0xf]  ;;  %v1553_v45 = vld [vmem:[%s15462_s28 + $0x2ad0] sm:$0xf]  ;;  %1550 = vst [vmem:[%s15469_s29 + $0xaac] sm:$0xf] %v1549_v43 }
 0x1dc   : > { %1552 = vst [vmem:[%s15469_s29 + $0xab0] sm:$0xf] %v1551_v44  ;;  %1554 = vst [vmem:[%s15469_s29 + $0xab4] sm:$0xf] %v1553_v45  ;;  %v1555_v46 = vld [vmem:[%s15462_s28 + $0x2ae0] sm:$0xf] }
 0x1dd   : > { %v1557_v47 = vld [vmem:[%s15462_s28 + $0x2af0] sm:$0xf]  ;;  %v1559_v48 = vld [vmem:[%s15462_s28 + $0x2b00] sm:$0xf]  ;;  %1556 = vst [vmem:[%s15469_s29 + $0xab8] sm:$0xf] %v1555_v46 }
 0x1de   : > { %1558 = vst [vmem:[%s15469_s29 + $0xabc] sm:$0xf] %v1557_v47  ;;  %1560 = vst [vmem:[%s15469_s29 + $0xac0] sm:$0xf] %v1559_v48  ;;  %v1561_v49 = vld [vmem:[%s15462_s28 + $0x2b10] sm:$0xf] }
 0x1df   : > { %v1563_v50 = vld [vmem:[%s15462_s28 + $0x2b20] sm:$0xf]  ;;  %v1565_v51 = vld [vmem:[%s15462_s28 + $0x2b30] sm:$0xf]  ;;  %1562 = vst [vmem:[%s15469_s29 + $0xac4] sm:$0xf] %v1561_v49 }
 0x1e0   : > { %1564 = vst [vmem:[%s15469_s29 + $0xac8] sm:$0xf] %v1563_v50  ;;  %1566 = vst [vmem:[%s15469_s29 + $0xacc] sm:$0xf] %v1565_v51  ;;  %v1567_v52 = vld [vmem:[%s15462_s28 + $0x2b40] sm:$0xf] }
 0x1e1   : > { %v1569_v53 = vld [vmem:[%s15462_s28 + $0x2b50] sm:$0xf]  ;;  %v1571_v54 = vld [vmem:[%s15462_s28 + $0x2b60] sm:$0xf]  ;;  %1568 = vst [vmem:[%s15469_s29 + $0xad0] sm:$0xf] %v1567_v52 }
 0x1e2   : > { %1570 = vst [vmem:[%s15469_s29 + $0xad4] sm:$0xf] %v1569_v53  ;;  %1572 = vst [vmem:[%s15469_s29 + $0xad8] sm:$0xf] %v1571_v54  ;;  %v1573_v55 = vld [vmem:[%s15462_s28 + $0x2b70] sm:$0xf] }
 0x1e3   : > { %v1575_v56 = vld [vmem:[%s15462_s28 + $0x2b80] sm:$0xf]  ;;  %v1577_v57 = vld [vmem:[%s15462_s28 + $0x2b90] sm:$0xf]  ;;  %1574 = vst [vmem:[%s15469_s29 + $0xadc] sm:$0xf] %v1573_v55 }
 0x1e4   : > { %1576 = vst [vmem:[%s15469_s29 + $0xae0] sm:$0xf] %v1575_v56  ;;  %1578 = vst [vmem:[%s15469_s29 + $0xae4] sm:$0xf] %v1577_v57  ;;  %v1579_v58 = vld [vmem:[%s15462_s28 + $0x2ba0] sm:$0xf] }
 0x1e5   : > { %v1581_v59 = vld [vmem:[%s15462_s28 + $0x2bb0] sm:$0xf]  ;;  %v1583_v60 = vld [vmem:[%s15462_s28 + $0x2bc0] sm:$0xf]  ;;  %1580 = vst [vmem:[%s15469_s29 + $0xae8] sm:$0xf] %v1579_v58 }
 0x1e6   : > { %1582 = vst [vmem:[%s15469_s29 + $0xaec] sm:$0xf] %v1581_v59  ;;  %1584 = vst [vmem:[%s15469_s29 + $0xaf0] sm:$0xf] %v1583_v60  ;;  %v1585_v61 = vld [vmem:[%s15462_s28 + $0x2bd0] sm:$0xf] }
 0x1e7   : > { %v1587_v62 = vld [vmem:[%s15462_s28 + $0x2be0] sm:$0xf]  ;;  %v1589_v63 = vld [vmem:[%s15462_s28 + $0x2bf0] sm:$0xf]  ;;  %1586 = vst [vmem:[%s15469_s29 + $0xaf4] sm:$0xf] %v1585_v61 }
 0x1e8   : > { %1588 = vst [vmem:[%s15469_s29 + $0xaf8] sm:$0xf] %v1587_v62  ;;  %1590 = vst [vmem:[%s15469_s29 + $0xafc] sm:$0xf] %v1589_v63  ;;  %v1591_v0 = vld [vmem:[%s15462_s28 + $0x2c00] sm:$0xf] }
 0x1e9   : > { %v1593_v1 = vld [vmem:[%s15462_s28 + $0x2c10] sm:$0xf]  ;;  %v1595_v2 = vld [vmem:[%s15462_s28 + $0x2c20] sm:$0xf]  ;;  %1592 = vst [vmem:[%s15469_s29 + $0xb00] sm:$0xf] %v1591_v0 }
 0x1ea   : > { %1594 = vst [vmem:[%s15469_s29 + $0xb04] sm:$0xf] %v1593_v1  ;;  %1596 = vst [vmem:[%s15469_s29 + $0xb08] sm:$0xf] %v1595_v2  ;;  %v1597_v3 = vld [vmem:[%s15462_s28 + $0x2c30] sm:$0xf] }
 0x1eb   : > { %v1599_v4 = vld [vmem:[%s15462_s28 + $0x2c40] sm:$0xf]  ;;  %v1601_v5 = vld [vmem:[%s15462_s28 + $0x2c50] sm:$0xf]  ;;  %1598 = vst [vmem:[%s15469_s29 + $0xb0c] sm:$0xf] %v1597_v3 }
 0x1ec   : > { %1600 = vst [vmem:[%s15469_s29 + $0xb10] sm:$0xf] %v1599_v4  ;;  %1602 = vst [vmem:[%s15469_s29 + $0xb14] sm:$0xf] %v1601_v5  ;;  %v1603_v6 = vld [vmem:[%s15462_s28 + $0x2c60] sm:$0xf] }
 0x1ed   : > { %v1605_v7 = vld [vmem:[%s15462_s28 + $0x2c70] sm:$0xf]  ;;  %v1607_v8 = vld [vmem:[%s15462_s28 + $0x2c80] sm:$0xf]  ;;  %1604 = vst [vmem:[%s15469_s29 + $0xb18] sm:$0xf] %v1603_v6 }
 0x1ee   : > { %1606 = vst [vmem:[%s15469_s29 + $0xb1c] sm:$0xf] %v1605_v7  ;;  %1608 = vst [vmem:[%s15469_s29 + $0xb20] sm:$0xf] %v1607_v8  ;;  %v1609_v9 = vld [vmem:[%s15462_s28 + $0x2c90] sm:$0xf] }
 0x1ef   : > { %v1611_v10 = vld [vmem:[%s15462_s28 + $0x2ca0] sm:$0xf]  ;;  %v1613_v11 = vld [vmem:[%s15462_s28 + $0x2cb0] sm:$0xf]  ;;  %1610 = vst [vmem:[%s15469_s29 + $0xb24] sm:$0xf] %v1609_v9 }
 0x1f0   : > { %1612 = vst [vmem:[%s15469_s29 + $0xb28] sm:$0xf] %v1611_v10  ;;  %1614 = vst [vmem:[%s15469_s29 + $0xb2c] sm:$0xf] %v1613_v11  ;;  %v1615_v12 = vld [vmem:[%s15462_s28 + $0x2cc0] sm:$0xf] }
 0x1f1   : > { %v1617_v13 = vld [vmem:[%s15462_s28 + $0x2cd0] sm:$0xf]  ;;  %v1619_v14 = vld [vmem:[%s15462_s28 + $0x2ce0] sm:$0xf]  ;;  %1616 = vst [vmem:[%s15469_s29 + $0xb30] sm:$0xf] %v1615_v12 }
 0x1f2   : > { %1618 = vst [vmem:[%s15469_s29 + $0xb34] sm:$0xf] %v1617_v13  ;;  %1620 = vst [vmem:[%s15469_s29 + $0xb38] sm:$0xf] %v1619_v14  ;;  %v1621_v15 = vld [vmem:[%s15462_s28 + $0x2cf0] sm:$0xf] }
 0x1f3   : > { %v1623_v16 = vld [vmem:[%s15462_s28 + $0x2d00] sm:$0xf]  ;;  %v1625_v17 = vld [vmem:[%s15462_s28 + $0x2d10] sm:$0xf]  ;;  %1622 = vst [vmem:[%s15469_s29 + $0xb3c] sm:$0xf] %v1621_v15 }
 0x1f4   : > { %1624 = vst [vmem:[%s15469_s29 + $0xb40] sm:$0xf] %v1623_v16  ;;  %1626 = vst [vmem:[%s15469_s29 + $0xb44] sm:$0xf] %v1625_v17  ;;  %v1627_v18 = vld [vmem:[%s15462_s28 + $0x2d20] sm:$0xf] }
 0x1f5   : > { %v1629_v19 = vld [vmem:[%s15462_s28 + $0x2d30] sm:$0xf]  ;;  %v1631_v20 = vld [vmem:[%s15462_s28 + $0x2d40] sm:$0xf]  ;;  %1628 = vst [vmem:[%s15469_s29 + $0xb48] sm:$0xf] %v1627_v18 }
 0x1f6   : > { %1630 = vst [vmem:[%s15469_s29 + $0xb4c] sm:$0xf] %v1629_v19  ;;  %1632 = vst [vmem:[%s15469_s29 + $0xb50] sm:$0xf] %v1631_v20  ;;  %v1633_v21 = vld [vmem:[%s15462_s28 + $0x2d50] sm:$0xf] }
 0x1f7   : > { %v1635_v22 = vld [vmem:[%s15462_s28 + $0x2d60] sm:$0xf]  ;;  %v1637_v23 = vld [vmem:[%s15462_s28 + $0x2d70] sm:$0xf]  ;;  %1634 = vst [vmem:[%s15469_s29 + $0xb54] sm:$0xf] %v1633_v21 }
 0x1f8   : > { %1636 = vst [vmem:[%s15469_s29 + $0xb58] sm:$0xf] %v1635_v22  ;;  %1638 = vst [vmem:[%s15469_s29 + $0xb5c] sm:$0xf] %v1637_v23  ;;  %v1639_v24 = vld [vmem:[%s15462_s28 + $0x2d80] sm:$0xf] }
 0x1f9   : > { %v1641_v25 = vld [vmem:[%s15462_s28 + $0x2d90] sm:$0xf]  ;;  %v1643_v26 = vld [vmem:[%s15462_s28 + $0x2da0] sm:$0xf]  ;;  %1640 = vst [vmem:[%s15469_s29 + $0xb60] sm:$0xf] %v1639_v24 }
 0x1fa   : > { %1642 = vst [vmem:[%s15469_s29 + $0xb64] sm:$0xf] %v1641_v25  ;;  %1644 = vst [vmem:[%s15469_s29 + $0xb68] sm:$0xf] %v1643_v26  ;;  %v1645_v27 = vld [vmem:[%s15462_s28 + $0x2db0] sm:$0xf] }
 0x1fb   : > { %v1647_v28 = vld [vmem:[%s15462_s28 + $0x2dc0] sm:$0xf]  ;;  %v1649_v29 = vld [vmem:[%s15462_s28 + $0x2dd0] sm:$0xf]  ;;  %1646 = vst [vmem:[%s15469_s29 + $0xb6c] sm:$0xf] %v1645_v27 }
 0x1fc   : > { %1648 = vst [vmem:[%s15469_s29 + $0xb70] sm:$0xf] %v1647_v28  ;;  %1650 = vst [vmem:[%s15469_s29 + $0xb74] sm:$0xf] %v1649_v29  ;;  %v1651_v30 = vld [vmem:[%s15462_s28 + $0x2de0] sm:$0xf] }
 0x1fd   : > { %v1653_v31 = vld [vmem:[%s15462_s28 + $0x2df0] sm:$0xf]  ;;  %v1655_v32 = vld [vmem:[%s15462_s28 + $0x2e00] sm:$0xf]  ;;  %1652 = vst [vmem:[%s15469_s29 + $0xb78] sm:$0xf] %v1651_v30 }
 0x1fe   : > { %1654 = vst [vmem:[%s15469_s29 + $0xb7c] sm:$0xf] %v1653_v31  ;;  %1656 = vst [vmem:[%s15469_s29 + $0xb80] sm:$0xf] %v1655_v32  ;;  %v1657_v33 = vld [vmem:[%s15462_s28 + $0x2e10] sm:$0xf] }
 0x1ff   : > { %v1659_v34 = vld [vmem:[%s15462_s28 + $0x2e20] sm:$0xf]  ;;  %v1661_v35 = vld [vmem:[%s15462_s28 + $0x2e30] sm:$0xf]  ;;  %1658 = vst [vmem:[%s15469_s29 + $0xb84] sm:$0xf] %v1657_v33 }
 0x200   : > { %1660 = vst [vmem:[%s15469_s29 + $0xb88] sm:$0xf] %v1659_v34  ;;  %1662 = vst [vmem:[%s15469_s29 + $0xb8c] sm:$0xf] %v1661_v35  ;;  %v1663_v36 = vld [vmem:[%s15462_s28 + $0x2e40] sm:$0xf] }
 0x201   : > { %v1665_v37 = vld [vmem:[%s15462_s28 + $0x2e50] sm:$0xf]  ;;  %v1667_v38 = vld [vmem:[%s15462_s28 + $0x2e60] sm:$0xf]  ;;  %1664 = vst [vmem:[%s15469_s29 + $0xb90] sm:$0xf] %v1663_v36 }
 0x202   : > { %1666 = vst [vmem:[%s15469_s29 + $0xb94] sm:$0xf] %v1665_v37  ;;  %1668 = vst [vmem:[%s15469_s29 + $0xb98] sm:$0xf] %v1667_v38  ;;  %v1669_v39 = vld [vmem:[%s15462_s28 + $0x2e70] sm:$0xf] }
 0x203   : > { %v1671_v40 = vld [vmem:[%s15462_s28 + $0x2e80] sm:$0xf]  ;;  %v1673_v41 = vld [vmem:[%s15462_s28 + $0x2e90] sm:$0xf]  ;;  %1670 = vst [vmem:[%s15469_s29 + $0xb9c] sm:$0xf] %v1669_v39 }
 0x204   : > { %1672 = vst [vmem:[%s15469_s29 + $0xba0] sm:$0xf] %v1671_v40  ;;  %1674 = vst [vmem:[%s15469_s29 + $0xba4] sm:$0xf] %v1673_v41  ;;  %v1675_v42 = vld [vmem:[%s15462_s28 + $0x2ea0] sm:$0xf] }
 0x205   : > { %v1677_v43 = vld [vmem:[%s15462_s28 + $0x2eb0] sm:$0xf]  ;;  %v1679_v44 = vld [vmem:[%s15462_s28 + $0x2ec0] sm:$0xf]  ;;  %1676 = vst [vmem:[%s15469_s29 + $0xba8] sm:$0xf] %v1675_v42 }
 0x206   : > { %1678 = vst [vmem:[%s15469_s29 + $0xbac] sm:$0xf] %v1677_v43  ;;  %1680 = vst [vmem:[%s15469_s29 + $0xbb0] sm:$0xf] %v1679_v44  ;;  %v1681_v45 = vld [vmem:[%s15462_s28 + $0x2ed0] sm:$0xf] }
 0x207   : > { %v1683_v46 = vld [vmem:[%s15462_s28 + $0x2ee0] sm:$0xf]  ;;  %v1685_v47 = vld [vmem:[%s15462_s28 + $0x2ef0] sm:$0xf]  ;;  %1682 = vst [vmem:[%s15469_s29 + $0xbb4] sm:$0xf] %v1681_v45 }
 0x208   : > { %1684 = vst [vmem:[%s15469_s29 + $0xbb8] sm:$0xf] %v1683_v46  ;;  %1686 = vst [vmem:[%s15469_s29 + $0xbbc] sm:$0xf] %v1685_v47  ;;  %v1687_v48 = vld [vmem:[%s15462_s28 + $0x2f00] sm:$0xf] }
 0x209   : > { %v1689_v49 = vld [vmem:[%s15462_s28 + $0x2f10] sm:$0xf]  ;;  %v1691_v50 = vld [vmem:[%s15462_s28 + $0x2f20] sm:$0xf]  ;;  %1688 = vst [vmem:[%s15469_s29 + $0xbc0] sm:$0xf] %v1687_v48 }
 0x20a   : > { %1690 = vst [vmem:[%s15469_s29 + $0xbc4] sm:$0xf] %v1689_v49  ;;  %1692 = vst [vmem:[%s15469_s29 + $0xbc8] sm:$0xf] %v1691_v50  ;;  %v1693_v51 = vld [vmem:[%s15462_s28 + $0x2f30] sm:$0xf] }
 0x20b   : > { %v1695_v52 = vld [vmem:[%s15462_s28 + $0x2f40] sm:$0xf]  ;;  %v1697_v53 = vld [vmem:[%s15462_s28 + $0x2f50] sm:$0xf]  ;;  %1694 = vst [vmem:[%s15469_s29 + $0xbcc] sm:$0xf] %v1693_v51 }
 0x20c   : > { %1696 = vst [vmem:[%s15469_s29 + $0xbd0] sm:$0xf] %v1695_v52  ;;  %1698 = vst [vmem:[%s15469_s29 + $0xbd4] sm:$0xf] %v1697_v53  ;;  %v1699_v54 = vld [vmem:[%s15462_s28 + $0x2f60] sm:$0xf] }
 0x20d   : > { %v1701_v55 = vld [vmem:[%s15462_s28 + $0x2f70] sm:$0xf]  ;;  %v1703_v56 = vld [vmem:[%s15462_s28 + $0x2f80] sm:$0xf]  ;;  %1700 = vst [vmem:[%s15469_s29 + $0xbd8] sm:$0xf] %v1699_v54 }
 0x20e   : > { %1702 = vst [vmem:[%s15469_s29 + $0xbdc] sm:$0xf] %v1701_v55  ;;  %1704 = vst [vmem:[%s15469_s29 + $0xbe0] sm:$0xf] %v1703_v56  ;;  %v1705_v57 = vld [vmem:[%s15462_s28 + $0x2f90] sm:$0xf] }
 0x20f   : > { %v1707_v58 = vld [vmem:[%s15462_s28 + $0x2fa0] sm:$0xf]  ;;  %v1709_v59 = vld [vmem:[%s15462_s28 + $0x2fb0] sm:$0xf]  ;;  %1706 = vst [vmem:[%s15469_s29 + $0xbe4] sm:$0xf] %v1705_v57 }
 0x210   : > { %1708 = vst [vmem:[%s15469_s29 + $0xbe8] sm:$0xf] %v1707_v58  ;;  %1710 = vst [vmem:[%s15469_s29 + $0xbec] sm:$0xf] %v1709_v59  ;;  %v1711_v60 = vld [vmem:[%s15462_s28 + $0x2fc0] sm:$0xf] }
 0x211   : > { %v1713_v61 = vld [vmem:[%s15462_s28 + $0x2fd0] sm:$0xf]  ;;  %v1715_v62 = vld [vmem:[%s15462_s28 + $0x2fe0] sm:$0xf]  ;;  %1712 = vst [vmem:[%s15469_s29 + $0xbf0] sm:$0xf] %v1711_v60 }
 0x212   : > { %1714 = vst [vmem:[%s15469_s29 + $0xbf4] sm:$0xf] %v1713_v61  ;;  %1716 = vst [vmem:[%s15469_s29 + $0xbf8] sm:$0xf] %v1715_v62  ;;  %v1717_v63 = vld [vmem:[%s15462_s28 + $0x2ff0] sm:$0xf] }
 0x213   : > { %v1719_v0 = vld [vmem:[%s15462_s28 + $0x3000] sm:$0xf]  ;;  %v1721_v1 = vld [vmem:[%s15462_s28 + $0x3010] sm:$0xf]  ;;  %1718 = vst [vmem:[%s15469_s29 + $0xbfc] sm:$0xf] %v1717_v63 }
 0x214   : > { %1720 = vst [vmem:[%s15469_s29 + $0xc00] sm:$0xf] %v1719_v0  ;;  %1722 = vst [vmem:[%s15469_s29 + $0xc04] sm:$0xf] %v1721_v1  ;;  %v1723_v2 = vld [vmem:[%s15462_s28 + $0x3020] sm:$0xf] }
 0x215   : > { %v1725_v3 = vld [vmem:[%s15462_s28 + $0x3030] sm:$0xf]  ;;  %v1727_v4 = vld [vmem:[%s15462_s28 + $0x3040] sm:$0xf]  ;;  %1724 = vst [vmem:[%s15469_s29 + $0xc08] sm:$0xf] %v1723_v2 }
 0x216   : > { %1726 = vst [vmem:[%s15469_s29 + $0xc0c] sm:$0xf] %v1725_v3  ;;  %1728 = vst [vmem:[%s15469_s29 + $0xc10] sm:$0xf] %v1727_v4  ;;  %v1729_v5 = vld [vmem:[%s15462_s28 + $0x3050] sm:$0xf] }
 0x217   : > { %v1731_v6 = vld [vmem:[%s15462_s28 + $0x3060] sm:$0xf]  ;;  %v1733_v7 = vld [vmem:[%s15462_s28 + $0x3070] sm:$0xf]  ;;  %1730 = vst [vmem:[%s15469_s29 + $0xc14] sm:$0xf] %v1729_v5 }
 0x218   : > { %1732 = vst [vmem:[%s15469_s29 + $0xc18] sm:$0xf] %v1731_v6  ;;  %1734 = vst [vmem:[%s15469_s29 + $0xc1c] sm:$0xf] %v1733_v7  ;;  %v1735_v8 = vld [vmem:[%s15462_s28 + $0x3080] sm:$0xf] }
 0x219   : > { %v1737_v9 = vld [vmem:[%s15462_s28 + $0x3090] sm:$0xf]  ;;  %v1739_v10 = vld [vmem:[%s15462_s28 + $0x30a0] sm:$0xf]  ;;  %1736 = vst [vmem:[%s15469_s29 + $0xc20] sm:$0xf] %v1735_v8 }
 0x21a   : > { %1738 = vst [vmem:[%s15469_s29 + $0xc24] sm:$0xf] %v1737_v9  ;;  %1740 = vst [vmem:[%s15469_s29 + $0xc28] sm:$0xf] %v1739_v10  ;;  %v1741_v11 = vld [vmem:[%s15462_s28 + $0x30b0] sm:$0xf] }
 0x21b   : > { %v1743_v12 = vld [vmem:[%s15462_s28 + $0x30c0] sm:$0xf]  ;;  %v1745_v13 = vld [vmem:[%s15462_s28 + $0x30d0] sm:$0xf]  ;;  %1742 = vst [vmem:[%s15469_s29 + $0xc2c] sm:$0xf] %v1741_v11 }
 0x21c   : > { %1744 = vst [vmem:[%s15469_s29 + $0xc30] sm:$0xf] %v1743_v12  ;;  %1746 = vst [vmem:[%s15469_s29 + $0xc34] sm:$0xf] %v1745_v13  ;;  %v1747_v14 = vld [vmem:[%s15462_s28 + $0x30e0] sm:$0xf] }
 0x21d   : > { %v1749_v15 = vld [vmem:[%s15462_s28 + $0x30f0] sm:$0xf]  ;;  %v1751_v16 = vld [vmem:[%s15462_s28 + $0x3100] sm:$0xf]  ;;  %1748 = vst [vmem:[%s15469_s29 + $0xc38] sm:$0xf] %v1747_v14 }
 0x21e   : > { %1750 = vst [vmem:[%s15469_s29 + $0xc3c] sm:$0xf] %v1749_v15  ;;  %1752 = vst [vmem:[%s15469_s29 + $0xc40] sm:$0xf] %v1751_v16  ;;  %v1753_v17 = vld [vmem:[%s15462_s28 + $0x3110] sm:$0xf] }
 0x21f   : > { %v1755_v18 = vld [vmem:[%s15462_s28 + $0x3120] sm:$0xf]  ;;  %v1757_v19 = vld [vmem:[%s15462_s28 + $0x3130] sm:$0xf]  ;;  %1754 = vst [vmem:[%s15469_s29 + $0xc44] sm:$0xf] %v1753_v17 }
 0x220   : > { %1756 = vst [vmem:[%s15469_s29 + $0xc48] sm:$0xf] %v1755_v18  ;;  %1758 = vst [vmem:[%s15469_s29 + $0xc4c] sm:$0xf] %v1757_v19  ;;  %v1759_v20 = vld [vmem:[%s15462_s28 + $0x3140] sm:$0xf] }
 0x221   : > { %v1761_v21 = vld [vmem:[%s15462_s28 + $0x3150] sm:$0xf]  ;;  %v1763_v22 = vld [vmem:[%s15462_s28 + $0x3160] sm:$0xf]  ;;  %1760 = vst [vmem:[%s15469_s29 + $0xc50] sm:$0xf] %v1759_v20 }
 0x222   : > { %1762 = vst [vmem:[%s15469_s29 + $0xc54] sm:$0xf] %v1761_v21  ;;  %1764 = vst [vmem:[%s15469_s29 + $0xc58] sm:$0xf] %v1763_v22  ;;  %v1765_v23 = vld [vmem:[%s15462_s28 + $0x3170] sm:$0xf] }
 0x223   : > { %v1767_v24 = vld [vmem:[%s15462_s28 + $0x3180] sm:$0xf]  ;;  %v1769_v25 = vld [vmem:[%s15462_s28 + $0x3190] sm:$0xf]  ;;  %1766 = vst [vmem:[%s15469_s29 + $0xc5c] sm:$0xf] %v1765_v23 }
 0x224   : > { %1768 = vst [vmem:[%s15469_s29 + $0xc60] sm:$0xf] %v1767_v24  ;;  %1770 = vst [vmem:[%s15469_s29 + $0xc64] sm:$0xf] %v1769_v25  ;;  %v1771_v26 = vld [vmem:[%s15462_s28 + $0x31a0] sm:$0xf] }
 0x225   : > { %v1773_v27 = vld [vmem:[%s15462_s28 + $0x31b0] sm:$0xf]  ;;  %v1775_v28 = vld [vmem:[%s15462_s28 + $0x31c0] sm:$0xf]  ;;  %1772 = vst [vmem:[%s15469_s29 + $0xc68] sm:$0xf] %v1771_v26 }
 0x226   : > { %1774 = vst [vmem:[%s15469_s29 + $0xc6c] sm:$0xf] %v1773_v27  ;;  %1776 = vst [vmem:[%s15469_s29 + $0xc70] sm:$0xf] %v1775_v28  ;;  %v1777_v29 = vld [vmem:[%s15462_s28 + $0x31d0] sm:$0xf] }
 0x227   : > { %v1779_v30 = vld [vmem:[%s15462_s28 + $0x31e0] sm:$0xf]  ;;  %v1781_v31 = vld [vmem:[%s15462_s28 + $0x31f0] sm:$0xf]  ;;  %1778 = vst [vmem:[%s15469_s29 + $0xc74] sm:$0xf] %v1777_v29 }
 0x228   : > { %1780 = vst [vmem:[%s15469_s29 + $0xc78] sm:$0xf] %v1779_v30  ;;  %1782 = vst [vmem:[%s15469_s29 + $0xc7c] sm:$0xf] %v1781_v31  ;;  %v1783_v32 = vld [vmem:[%s15462_s28 + $0x3200] sm:$0xf] }
 0x229   : > { %v1785_v33 = vld [vmem:[%s15462_s28 + $0x3210] sm:$0xf]  ;;  %v1787_v34 = vld [vmem:[%s15462_s28 + $0x3220] sm:$0xf]  ;;  %1784 = vst [vmem:[%s15469_s29 + $0xc80] sm:$0xf] %v1783_v32 }
 0x22a   : > { %1786 = vst [vmem:[%s15469_s29 + $0xc84] sm:$0xf] %v1785_v33  ;;  %1788 = vst [vmem:[%s15469_s29 + $0xc88] sm:$0xf] %v1787_v34  ;;  %v1789_v35 = vld [vmem:[%s15462_s28 + $0x3230] sm:$0xf] }
 0x22b   : > { %v1791_v36 = vld [vmem:[%s15462_s28 + $0x3240] sm:$0xf]  ;;  %v1793_v37 = vld [vmem:[%s15462_s28 + $0x3250] sm:$0xf]  ;;  %1790 = vst [vmem:[%s15469_s29 + $0xc8c] sm:$0xf] %v1789_v35 }
 0x22c   : > { %1792 = vst [vmem:[%s15469_s29 + $0xc90] sm:$0xf] %v1791_v36  ;;  %1794 = vst [vmem:[%s15469_s29 + $0xc94] sm:$0xf] %v1793_v37  ;;  %v1795_v38 = vld [vmem:[%s15462_s28 + $0x3260] sm:$0xf] }
 0x22d   : > { %v1797_v39 = vld [vmem:[%s15462_s28 + $0x3270] sm:$0xf]  ;;  %v1799_v40 = vld [vmem:[%s15462_s28 + $0x3280] sm:$0xf]  ;;  %1796 = vst [vmem:[%s15469_s29 + $0xc98] sm:$0xf] %v1795_v38 }
 0x22e   : > { %1798 = vst [vmem:[%s15469_s29 + $0xc9c] sm:$0xf] %v1797_v39  ;;  %1800 = vst [vmem:[%s15469_s29 + $0xca0] sm:$0xf] %v1799_v40  ;;  %v1801_v41 = vld [vmem:[%s15462_s28 + $0x3290] sm:$0xf] }
 0x22f   : > { %v1803_v42 = vld [vmem:[%s15462_s28 + $0x32a0] sm:$0xf]  ;;  %v1805_v43 = vld [vmem:[%s15462_s28 + $0x32b0] sm:$0xf]  ;;  %1802 = vst [vmem:[%s15469_s29 + $0xca4] sm:$0xf] %v1801_v41 }
 0x230   : > { %1804 = vst [vmem:[%s15469_s29 + $0xca8] sm:$0xf] %v1803_v42  ;;  %1806 = vst [vmem:[%s15469_s29 + $0xcac] sm:$0xf] %v1805_v43  ;;  %v1807_v44 = vld [vmem:[%s15462_s28 + $0x32c0] sm:$0xf] }
 0x231   : > { %v1809_v45 = vld [vmem:[%s15462_s28 + $0x32d0] sm:$0xf]  ;;  %v1811_v46 = vld [vmem:[%s15462_s28 + $0x32e0] sm:$0xf]  ;;  %1808 = vst [vmem:[%s15469_s29 + $0xcb0] sm:$0xf] %v1807_v44 }
 0x232   : > { %1810 = vst [vmem:[%s15469_s29 + $0xcb4] sm:$0xf] %v1809_v45  ;;  %1812 = vst [vmem:[%s15469_s29 + $0xcb8] sm:$0xf] %v1811_v46  ;;  %v1813_v47 = vld [vmem:[%s15462_s28 + $0x32f0] sm:$0xf] }
 0x233   : > { %v1815_v48 = vld [vmem:[%s15462_s28 + $0x3300] sm:$0xf]  ;;  %v1817_v49 = vld [vmem:[%s15462_s28 + $0x3310] sm:$0xf]  ;;  %1814 = vst [vmem:[%s15469_s29 + $0xcbc] sm:$0xf] %v1813_v47 }
 0x234   : > { %1816 = vst [vmem:[%s15469_s29 + $0xcc0] sm:$0xf] %v1815_v48  ;;  %1818 = vst [vmem:[%s15469_s29 + $0xcc4] sm:$0xf] %v1817_v49  ;;  %v1819_v50 = vld [vmem:[%s15462_s28 + $0x3320] sm:$0xf] }
 0x235   : > { %v1821_v51 = vld [vmem:[%s15462_s28 + $0x3330] sm:$0xf]  ;;  %v1823_v52 = vld [vmem:[%s15462_s28 + $0x3340] sm:$0xf]  ;;  %1820 = vst [vmem:[%s15469_s29 + $0xcc8] sm:$0xf] %v1819_v50 }
 0x236   : > { %1822 = vst [vmem:[%s15469_s29 + $0xccc] sm:$0xf] %v1821_v51  ;;  %1824 = vst [vmem:[%s15469_s29 + $0xcd0] sm:$0xf] %v1823_v52  ;;  %v1825_v53 = vld [vmem:[%s15462_s28 + $0x3350] sm:$0xf] }
 0x237   : > { %v1827_v54 = vld [vmem:[%s15462_s28 + $0x3360] sm:$0xf]  ;;  %v1829_v55 = vld [vmem:[%s15462_s28 + $0x3370] sm:$0xf]  ;;  %1826 = vst [vmem:[%s15469_s29 + $0xcd4] sm:$0xf] %v1825_v53 }
 0x238   : > { %1828 = vst [vmem:[%s15469_s29 + $0xcd8] sm:$0xf] %v1827_v54  ;;  %1830 = vst [vmem:[%s15469_s29 + $0xcdc] sm:$0xf] %v1829_v55  ;;  %v1831_v56 = vld [vmem:[%s15462_s28 + $0x3380] sm:$0xf] }
 0x239   : > { %v1833_v57 = vld [vmem:[%s15462_s28 + $0x3390] sm:$0xf]  ;;  %v1835_v58 = vld [vmem:[%s15462_s28 + $0x33a0] sm:$0xf]  ;;  %1832 = vst [vmem:[%s15469_s29 + $0xce0] sm:$0xf] %v1831_v56 }
 0x23a   : > { %1834 = vst [vmem:[%s15469_s29 + $0xce4] sm:$0xf] %v1833_v57  ;;  %1836 = vst [vmem:[%s15469_s29 + $0xce8] sm:$0xf] %v1835_v58  ;;  %v1837_v59 = vld [vmem:[%s15462_s28 + $0x33b0] sm:$0xf] }
 0x23b   : > { %v1839_v60 = vld [vmem:[%s15462_s28 + $0x33c0] sm:$0xf]  ;;  %v1841_v61 = vld [vmem:[%s15462_s28 + $0x33d0] sm:$0xf]  ;;  %1838 = vst [vmem:[%s15469_s29 + $0xcec] sm:$0xf] %v1837_v59 }
 0x23c   : > { %1840 = vst [vmem:[%s15469_s29 + $0xcf0] sm:$0xf] %v1839_v60  ;;  %1842 = vst [vmem:[%s15469_s29 + $0xcf4] sm:$0xf] %v1841_v61  ;;  %v1843_v62 = vld [vmem:[%s15462_s28 + $0x33e0] sm:$0xf] }
 0x23d   : > { %v1845_v63 = vld [vmem:[%s15462_s28 + $0x33f0] sm:$0xf]  ;;  %v1847_v0 = vld [vmem:[%s15462_s28 + $0x3400] sm:$0xf]  ;;  %1844 = vst [vmem:[%s15469_s29 + $0xcf8] sm:$0xf] %v1843_v62 }
 0x23e   : > { %1846 = vst [vmem:[%s15469_s29 + $0xcfc] sm:$0xf] %v1845_v63  ;;  %1848 = vst [vmem:[%s15469_s29 + $0xd00] sm:$0xf] %v1847_v0  ;;  %v1849_v1 = vld [vmem:[%s15462_s28 + $0x3410] sm:$0xf] }
 0x23f   : > { %v1851_v2 = vld [vmem:[%s15462_s28 + $0x3420] sm:$0xf]  ;;  %v1853_v3 = vld [vmem:[%s15462_s28 + $0x3430] sm:$0xf]  ;;  %1850 = vst [vmem:[%s15469_s29 + $0xd04] sm:$0xf] %v1849_v1 }
 0x240   : > { %1852 = vst [vmem:[%s15469_s29 + $0xd08] sm:$0xf] %v1851_v2  ;;  %1854 = vst [vmem:[%s15469_s29 + $0xd0c] sm:$0xf] %v1853_v3  ;;  %v1855_v4 = vld [vmem:[%s15462_s28 + $0x3440] sm:$0xf] }
 0x241   : > { %v1857_v5 = vld [vmem:[%s15462_s28 + $0x3450] sm:$0xf]  ;;  %v1859_v6 = vld [vmem:[%s15462_s28 + $0x3460] sm:$0xf]  ;;  %1856 = vst [vmem:[%s15469_s29 + $0xd10] sm:$0xf] %v1855_v4 }
 0x242   : > { %1858 = vst [vmem:[%s15469_s29 + $0xd14] sm:$0xf] %v1857_v5  ;;  %1860 = vst [vmem:[%s15469_s29 + $0xd18] sm:$0xf] %v1859_v6  ;;  %v1861_v7 = vld [vmem:[%s15462_s28 + $0x3470] sm:$0xf] }
 0x243   : > { %v1863_v8 = vld [vmem:[%s15462_s28 + $0x3480] sm:$0xf]  ;;  %v1865_v9 = vld [vmem:[%s15462_s28 + $0x3490] sm:$0xf]  ;;  %1862 = vst [vmem:[%s15469_s29 + $0xd1c] sm:$0xf] %v1861_v7 }
 0x244   : > { %1864 = vst [vmem:[%s15469_s29 + $0xd20] sm:$0xf] %v1863_v8  ;;  %1866 = vst [vmem:[%s15469_s29 + $0xd24] sm:$0xf] %v1865_v9  ;;  %v1867_v10 = vld [vmem:[%s15462_s28 + $0x34a0] sm:$0xf] }
 0x245   : > { %v1869_v11 = vld [vmem:[%s15462_s28 + $0x34b0] sm:$0xf]  ;;  %v1871_v12 = vld [vmem:[%s15462_s28 + $0x34c0] sm:$0xf]  ;;  %1868 = vst [vmem:[%s15469_s29 + $0xd28] sm:$0xf] %v1867_v10 }
 0x246   : > { %1870 = vst [vmem:[%s15469_s29 + $0xd2c] sm:$0xf] %v1869_v11  ;;  %1872 = vst [vmem:[%s15469_s29 + $0xd30] sm:$0xf] %v1871_v12  ;;  %v1873_v13 = vld [vmem:[%s15462_s28 + $0x34d0] sm:$0xf] }
 0x247   : > { %v1875_v14 = vld [vmem:[%s15462_s28 + $0x34e0] sm:$0xf]  ;;  %v1877_v15 = vld [vmem:[%s15462_s28 + $0x34f0] sm:$0xf]  ;;  %1874 = vst [vmem:[%s15469_s29 + $0xd34] sm:$0xf] %v1873_v13 }
 0x248   : > { %1876 = vst [vmem:[%s15469_s29 + $0xd38] sm:$0xf] %v1875_v14  ;;  %1878 = vst [vmem:[%s15469_s29 + $0xd3c] sm:$0xf] %v1877_v15  ;;  %v1879_v16 = vld [vmem:[%s15462_s28 + $0x3500] sm:$0xf] }
 0x249   : > { %v1881_v17 = vld [vmem:[%s15462_s28 + $0x3510] sm:$0xf]  ;;  %v1883_v18 = vld [vmem:[%s15462_s28 + $0x3520] sm:$0xf]  ;;  %1880 = vst [vmem:[%s15469_s29 + $0xd40] sm:$0xf] %v1879_v16 }
 0x24a   : > { %1882 = vst [vmem:[%s15469_s29 + $0xd44] sm:$0xf] %v1881_v17  ;;  %1884 = vst [vmem:[%s15469_s29 + $0xd48] sm:$0xf] %v1883_v18  ;;  %v1885_v19 = vld [vmem:[%s15462_s28 + $0x3530] sm:$0xf] }
 0x24b   : > { %v1887_v20 = vld [vmem:[%s15462_s28 + $0x3540] sm:$0xf]  ;;  %v1889_v21 = vld [vmem:[%s15462_s28 + $0x3550] sm:$0xf]  ;;  %1886 = vst [vmem:[%s15469_s29 + $0xd4c] sm:$0xf] %v1885_v19 }
 0x24c   : > { %1888 = vst [vmem:[%s15469_s29 + $0xd50] sm:$0xf] %v1887_v20  ;;  %1890 = vst [vmem:[%s15469_s29 + $0xd54] sm:$0xf] %v1889_v21  ;;  %v1891_v22 = vld [vmem:[%s15462_s28 + $0x3560] sm:$0xf] }
 0x24d   : > { %v1893_v23 = vld [vmem:[%s15462_s28 + $0x3570] sm:$0xf]  ;;  %v1895_v24 = vld [vmem:[%s15462_s28 + $0x3580] sm:$0xf]  ;;  %1892 = vst [vmem:[%s15469_s29 + $0xd58] sm:$0xf] %v1891_v22 }
 0x24e   : > { %1894 = vst [vmem:[%s15469_s29 + $0xd5c] sm:$0xf] %v1893_v23  ;;  %1896 = vst [vmem:[%s15469_s29 + $0xd60] sm:$0xf] %v1895_v24  ;;  %v1897_v25 = vld [vmem:[%s15462_s28 + $0x3590] sm:$0xf] }
 0x24f   : > { %v1899_v26 = vld [vmem:[%s15462_s28 + $0x35a0] sm:$0xf]  ;;  %v1901_v27 = vld [vmem:[%s15462_s28 + $0x35b0] sm:$0xf]  ;;  %1898 = vst [vmem:[%s15469_s29 + $0xd64] sm:$0xf] %v1897_v25 }
 0x250   : > { %1900 = vst [vmem:[%s15469_s29 + $0xd68] sm:$0xf] %v1899_v26  ;;  %1902 = vst [vmem:[%s15469_s29 + $0xd6c] sm:$0xf] %v1901_v27  ;;  %v1903_v28 = vld [vmem:[%s15462_s28 + $0x35c0] sm:$0xf] }
 0x251   : > { %v1905_v29 = vld [vmem:[%s15462_s28 + $0x35d0] sm:$0xf]  ;;  %v1907_v30 = vld [vmem:[%s15462_s28 + $0x35e0] sm:$0xf]  ;;  %1904 = vst [vmem:[%s15469_s29 + $0xd70] sm:$0xf] %v1903_v28 }
 0x252   : > { %1906 = vst [vmem:[%s15469_s29 + $0xd74] sm:$0xf] %v1905_v29  ;;  %1908 = vst [vmem:[%s15469_s29 + $0xd78] sm:$0xf] %v1907_v30  ;;  %v1909_v31 = vld [vmem:[%s15462_s28 + $0x35f0] sm:$0xf] }
 0x253   : > { %v1911_v32 = vld [vmem:[%s15462_s28 + $0x3600] sm:$0xf]  ;;  %v1913_v33 = vld [vmem:[%s15462_s28 + $0x3610] sm:$0xf]  ;;  %1910 = vst [vmem:[%s15469_s29 + $0xd7c] sm:$0xf] %v1909_v31 }
 0x254   : > { %1912 = vst [vmem:[%s15469_s29 + $0xd80] sm:$0xf] %v1911_v32  ;;  %1914 = vst [vmem:[%s15469_s29 + $0xd84] sm:$0xf] %v1913_v33  ;;  %v1915_v34 = vld [vmem:[%s15462_s28 + $0x3620] sm:$0xf] }
 0x255   : > { %v1917_v35 = vld [vmem:[%s15462_s28 + $0x3630] sm:$0xf]  ;;  %v1919_v36 = vld [vmem:[%s15462_s28 + $0x3640] sm:$0xf]  ;;  %1916 = vst [vmem:[%s15469_s29 + $0xd88] sm:$0xf] %v1915_v34 }
 0x256   : > { %1918 = vst [vmem:[%s15469_s29 + $0xd8c] sm:$0xf] %v1917_v35  ;;  %1920 = vst [vmem:[%s15469_s29 + $0xd90] sm:$0xf] %v1919_v36  ;;  %v1921_v37 = vld [vmem:[%s15462_s28 + $0x3650] sm:$0xf] }
 0x257   : > { %v1923_v38 = vld [vmem:[%s15462_s28 + $0x3660] sm:$0xf]  ;;  %v1925_v39 = vld [vmem:[%s15462_s28 + $0x3670] sm:$0xf]  ;;  %1922 = vst [vmem:[%s15469_s29 + $0xd94] sm:$0xf] %v1921_v37 }
 0x258   : > { %1924 = vst [vmem:[%s15469_s29 + $0xd98] sm:$0xf] %v1923_v38  ;;  %1926 = vst [vmem:[%s15469_s29 + $0xd9c] sm:$0xf] %v1925_v39  ;;  %v1927_v40 = vld [vmem:[%s15462_s28 + $0x3680] sm:$0xf] }
 0x259   : > { %v1929_v41 = vld [vmem:[%s15462_s28 + $0x3690] sm:$0xf]  ;;  %v1931_v42 = vld [vmem:[%s15462_s28 + $0x36a0] sm:$0xf]  ;;  %1928 = vst [vmem:[%s15469_s29 + $0xda0] sm:$0xf] %v1927_v40 }
 0x25a   : > { %1930 = vst [vmem:[%s15469_s29 + $0xda4] sm:$0xf] %v1929_v41  ;;  %1932 = vst [vmem:[%s15469_s29 + $0xda8] sm:$0xf] %v1931_v42  ;;  %v1933_v43 = vld [vmem:[%s15462_s28 + $0x36b0] sm:$0xf] }
 0x25b   : > { %v1935_v44 = vld [vmem:[%s15462_s28 + $0x36c0] sm:$0xf]  ;;  %v1937_v45 = vld [vmem:[%s15462_s28 + $0x36d0] sm:$0xf]  ;;  %1934 = vst [vmem:[%s15469_s29 + $0xdac] sm:$0xf] %v1933_v43 }
 0x25c   : > { %1936 = vst [vmem:[%s15469_s29 + $0xdb0] sm:$0xf] %v1935_v44  ;;  %1938 = vst [vmem:[%s15469_s29 + $0xdb4] sm:$0xf] %v1937_v45  ;;  %v1939_v46 = vld [vmem:[%s15462_s28 + $0x36e0] sm:$0xf] }
 0x25d   : > { %v1941_v47 = vld [vmem:[%s15462_s28 + $0x36f0] sm:$0xf]  ;;  %v1943_v48 = vld [vmem:[%s15462_s28 + $0x3700] sm:$0xf]  ;;  %1940 = vst [vmem:[%s15469_s29 + $0xdb8] sm:$0xf] %v1939_v46 }
 0x25e   : > { %1942 = vst [vmem:[%s15469_s29 + $0xdbc] sm:$0xf] %v1941_v47  ;;  %1944 = vst [vmem:[%s15469_s29 + $0xdc0] sm:$0xf] %v1943_v48  ;;  %v1945_v49 = vld [vmem:[%s15462_s28 + $0x3710] sm:$0xf] }
 0x25f   : > { %v1947_v50 = vld [vmem:[%s15462_s28 + $0x3720] sm:$0xf]  ;;  %v1949_v51 = vld [vmem:[%s15462_s28 + $0x3730] sm:$0xf]  ;;  %1946 = vst [vmem:[%s15469_s29 + $0xdc4] sm:$0xf] %v1945_v49 }
 0x260   : > { %1948 = vst [vmem:[%s15469_s29 + $0xdc8] sm:$0xf] %v1947_v50  ;;  %1950 = vst [vmem:[%s15469_s29 + $0xdcc] sm:$0xf] %v1949_v51  ;;  %v1951_v52 = vld [vmem:[%s15462_s28 + $0x3740] sm:$0xf] }
 0x261   : > { %v1953_v53 = vld [vmem:[%s15462_s28 + $0x3750] sm:$0xf]  ;;  %v1955_v54 = vld [vmem:[%s15462_s28 + $0x3760] sm:$0xf]  ;;  %1952 = vst [vmem:[%s15469_s29 + $0xdd0] sm:$0xf] %v1951_v52 }
 0x262   : > { %1954 = vst [vmem:[%s15469_s29 + $0xdd4] sm:$0xf] %v1953_v53  ;;  %1956 = vst [vmem:[%s15469_s29 + $0xdd8] sm:$0xf] %v1955_v54  ;;  %v1957_v55 = vld [vmem:[%s15462_s28 + $0x3770] sm:$0xf] }
 0x263   : > { %v1959_v56 = vld [vmem:[%s15462_s28 + $0x3780] sm:$0xf]  ;;  %v1961_v57 = vld [vmem:[%s15462_s28 + $0x3790] sm:$0xf]  ;;  %1958 = vst [vmem:[%s15469_s29 + $0xddc] sm:$0xf] %v1957_v55 }
 0x264   : > { %1960 = vst [vmem:[%s15469_s29 + $0xde0] sm:$0xf] %v1959_v56  ;;  %1962 = vst [vmem:[%s15469_s29 + $0xde4] sm:$0xf] %v1961_v57  ;;  %v1963_v58 = vld [vmem:[%s15462_s28 + $0x37a0] sm:$0xf] }
 0x265   : > { %v1965_v59 = vld [vmem:[%s15462_s28 + $0x37b0] sm:$0xf]  ;;  %v1967_v60 = vld [vmem:[%s15462_s28 + $0x37c0] sm:$0xf]  ;;  %1964 = vst [vmem:[%s15469_s29 + $0xde8] sm:$0xf] %v1963_v58 }
 0x266   : > { %1966 = vst [vmem:[%s15469_s29 + $0xdec] sm:$0xf] %v1965_v59  ;;  %1968 = vst [vmem:[%s15469_s29 + $0xdf0] sm:$0xf] %v1967_v60  ;;  %v1969_v61 = vld [vmem:[%s15462_s28 + $0x37d0] sm:$0xf] }
 0x267   : > { %v1971_v62 = vld [vmem:[%s15462_s28 + $0x37e0] sm:$0xf]  ;;  %v1973_v63 = vld [vmem:[%s15462_s28 + $0x37f0] sm:$0xf]  ;;  %1970 = vst [vmem:[%s15469_s29 + $0xdf4] sm:$0xf] %v1969_v61 }
 0x268   : > { %1972 = vst [vmem:[%s15469_s29 + $0xdf8] sm:$0xf] %v1971_v62  ;;  %1974 = vst [vmem:[%s15469_s29 + $0xdfc] sm:$0xf] %v1973_v63  ;;  %v1975_v0 = vld [vmem:[%s15462_s28 + $0x3800] sm:$0xf] }
 0x269   : > { %v1977_v1 = vld [vmem:[%s15462_s28 + $0x3810] sm:$0xf]  ;;  %v1979_v2 = vld [vmem:[%s15462_s28 + $0x3820] sm:$0xf]  ;;  %1976 = vst [vmem:[%s15469_s29 + $0xe00] sm:$0xf] %v1975_v0 }
 0x26a   : > { %1978 = vst [vmem:[%s15469_s29 + $0xe04] sm:$0xf] %v1977_v1  ;;  %1980 = vst [vmem:[%s15469_s29 + $0xe08] sm:$0xf] %v1979_v2  ;;  %v1981_v3 = vld [vmem:[%s15462_s28 + $0x3830] sm:$0xf] }
 0x26b   : > { %v1983_v4 = vld [vmem:[%s15462_s28 + $0x3840] sm:$0xf]  ;;  %v1985_v5 = vld [vmem:[%s15462_s28 + $0x3850] sm:$0xf]  ;;  %1982 = vst [vmem:[%s15469_s29 + $0xe0c] sm:$0xf] %v1981_v3 }
 0x26c   : > { %1984 = vst [vmem:[%s15469_s29 + $0xe10] sm:$0xf] %v1983_v4  ;;  %1986 = vst [vmem:[%s15469_s29 + $0xe14] sm:$0xf] %v1985_v5  ;;  %v1987_v6 = vld [vmem:[%s15462_s28 + $0x3860] sm:$0xf] }
 0x26d   : > { %v1989_v7 = vld [vmem:[%s15462_s28 + $0x3870] sm:$0xf]  ;;  %v1991_v8 = vld [vmem:[%s15462_s28 + $0x3880] sm:$0xf]  ;;  %1988 = vst [vmem:[%s15469_s29 + $0xe18] sm:$0xf] %v1987_v6 }
 0x26e   : > { %1990 = vst [vmem:[%s15469_s29 + $0xe1c] sm:$0xf] %v1989_v7  ;;  %1992 = vst [vmem:[%s15469_s29 + $0xe20] sm:$0xf] %v1991_v8  ;;  %v1993_v9 = vld [vmem:[%s15462_s28 + $0x3890] sm:$0xf] }
 0x26f   : > { %v1995_v10 = vld [vmem:[%s15462_s28 + $0x38a0] sm:$0xf]  ;;  %v1997_v11 = vld [vmem:[%s15462_s28 + $0x38b0] sm:$0xf]  ;;  %1994 = vst [vmem:[%s15469_s29 + $0xe24] sm:$0xf] %v1993_v9 }
 0x270   : > { %1996 = vst [vmem:[%s15469_s29 + $0xe28] sm:$0xf] %v1995_v10  ;;  %1998 = vst [vmem:[%s15469_s29 + $0xe2c] sm:$0xf] %v1997_v11  ;;  %v1999_v12 = vld [vmem:[%s15462_s28 + $0x38c0] sm:$0xf] }
 0x271   : > { %v2001_v13 = vld [vmem:[%s15462_s28 + $0x38d0] sm:$0xf]  ;;  %v2003_v14 = vld [vmem:[%s15462_s28 + $0x38e0] sm:$0xf]  ;;  %2000 = vst [vmem:[%s15469_s29 + $0xe30] sm:$0xf] %v1999_v12 }
 0x272   : > { %2002 = vst [vmem:[%s15469_s29 + $0xe34] sm:$0xf] %v2001_v13  ;;  %2004 = vst [vmem:[%s15469_s29 + $0xe38] sm:$0xf] %v2003_v14  ;;  %v2005_v15 = vld [vmem:[%s15462_s28 + $0x38f0] sm:$0xf] }
 0x273   : > { %v2007_v16 = vld [vmem:[%s15462_s28 + $0x3900] sm:$0xf]  ;;  %v2009_v17 = vld [vmem:[%s15462_s28 + $0x3910] sm:$0xf]  ;;  %2006 = vst [vmem:[%s15469_s29 + $0xe3c] sm:$0xf] %v2005_v15 }
 0x274   : > { %2008 = vst [vmem:[%s15469_s29 + $0xe40] sm:$0xf] %v2007_v16  ;;  %2010 = vst [vmem:[%s15469_s29 + $0xe44] sm:$0xf] %v2009_v17  ;;  %v2011_v18 = vld [vmem:[%s15462_s28 + $0x3920] sm:$0xf] }
 0x275   : > { %v2013_v19 = vld [vmem:[%s15462_s28 + $0x3930] sm:$0xf]  ;;  %v2015_v20 = vld [vmem:[%s15462_s28 + $0x3940] sm:$0xf]  ;;  %2012 = vst [vmem:[%s15469_s29 + $0xe48] sm:$0xf] %v2011_v18 }
 0x276   : > { %2014 = vst [vmem:[%s15469_s29 + $0xe4c] sm:$0xf] %v2013_v19  ;;  %2016 = vst [vmem:[%s15469_s29 + $0xe50] sm:$0xf] %v2015_v20  ;;  %v2017_v21 = vld [vmem:[%s15462_s28 + $0x3950] sm:$0xf] }
 0x277   : > { %v2019_v22 = vld [vmem:[%s15462_s28 + $0x3960] sm:$0xf]  ;;  %v2021_v23 = vld [vmem:[%s15462_s28 + $0x3970] sm:$0xf]  ;;  %2018 = vst [vmem:[%s15469_s29 + $0xe54] sm:$0xf] %v2017_v21 }
 0x278   : > { %2020 = vst [vmem:[%s15469_s29 + $0xe58] sm:$0xf] %v2019_v22  ;;  %2022 = vst [vmem:[%s15469_s29 + $0xe5c] sm:$0xf] %v2021_v23  ;;  %v2023_v24 = vld [vmem:[%s15462_s28 + $0x3980] sm:$0xf] }
 0x279   : > { %v2025_v25 = vld [vmem:[%s15462_s28 + $0x3990] sm:$0xf]  ;;  %v2027_v26 = vld [vmem:[%s15462_s28 + $0x39a0] sm:$0xf]  ;;  %2024 = vst [vmem:[%s15469_s29 + $0xe60] sm:$0xf] %v2023_v24 }
 0x27a   : > { %2026 = vst [vmem:[%s15469_s29 + $0xe64] sm:$0xf] %v2025_v25  ;;  %2028 = vst [vmem:[%s15469_s29 + $0xe68] sm:$0xf] %v2027_v26  ;;  %v2029_v27 = vld [vmem:[%s15462_s28 + $0x39b0] sm:$0xf] }
 0x27b   : > { %v2031_v28 = vld [vmem:[%s15462_s28 + $0x39c0] sm:$0xf]  ;;  %v2033_v29 = vld [vmem:[%s15462_s28 + $0x39d0] sm:$0xf]  ;;  %2030 = vst [vmem:[%s15469_s29 + $0xe6c] sm:$0xf] %v2029_v27 }
 0x27c   : > { %2032 = vst [vmem:[%s15469_s29 + $0xe70] sm:$0xf] %v2031_v28  ;;  %2034 = vst [vmem:[%s15469_s29 + $0xe74] sm:$0xf] %v2033_v29  ;;  %v2035_v30 = vld [vmem:[%s15462_s28 + $0x39e0] sm:$0xf] }
 0x27d   : > { %v2037_v31 = vld [vmem:[%s15462_s28 + $0x39f0] sm:$0xf]  ;;  %v2039_v32 = vld [vmem:[%s15462_s28 + $0x3a00] sm:$0xf]  ;;  %2036 = vst [vmem:[%s15469_s29 + $0xe78] sm:$0xf] %v2035_v30 }
 0x27e   : > { %2038 = vst [vmem:[%s15469_s29 + $0xe7c] sm:$0xf] %v2037_v31  ;;  %2040 = vst [vmem:[%s15469_s29 + $0xe80] sm:$0xf] %v2039_v32  ;;  %v2041_v33 = vld [vmem:[%s15462_s28 + $0x3a10] sm:$0xf] }
 0x27f   : > { %v2043_v34 = vld [vmem:[%s15462_s28 + $0x3a20] sm:$0xf]  ;;  %v2045_v35 = vld [vmem:[%s15462_s28 + $0x3a30] sm:$0xf]  ;;  %2042 = vst [vmem:[%s15469_s29 + $0xe84] sm:$0xf] %v2041_v33 }
 0x280   : > { %2044 = vst [vmem:[%s15469_s29 + $0xe88] sm:$0xf] %v2043_v34  ;;  %2046 = vst [vmem:[%s15469_s29 + $0xe8c] sm:$0xf] %v2045_v35  ;;  %v2047_v36 = vld [vmem:[%s15462_s28 + $0x3a40] sm:$0xf] }
 0x281   : > { %v2049_v37 = vld [vmem:[%s15462_s28 + $0x3a50] sm:$0xf]  ;;  %v2051_v38 = vld [vmem:[%s15462_s28 + $0x3a60] sm:$0xf]  ;;  %2048 = vst [vmem:[%s15469_s29 + $0xe90] sm:$0xf] %v2047_v36 }
 0x282   : > { %2050 = vst [vmem:[%s15469_s29 + $0xe94] sm:$0xf] %v2049_v37  ;;  %2052 = vst [vmem:[%s15469_s29 + $0xe98] sm:$0xf] %v2051_v38  ;;  %v2053_v39 = vld [vmem:[%s15462_s28 + $0x3a70] sm:$0xf] }
 0x283   : > { %v2055_v40 = vld [vmem:[%s15462_s28 + $0x3a80] sm:$0xf]  ;;  %v2057_v41 = vld [vmem:[%s15462_s28 + $0x3a90] sm:$0xf]  ;;  %2054 = vst [vmem:[%s15469_s29 + $0xe9c] sm:$0xf] %v2053_v39 }
 0x284   : > { %2056 = vst [vmem:[%s15469_s29 + $0xea0] sm:$0xf] %v2055_v40  ;;  %2058 = vst [vmem:[%s15469_s29 + $0xea4] sm:$0xf] %v2057_v41  ;;  %v2059_v42 = vld [vmem:[%s15462_s28 + $0x3aa0] sm:$0xf] }
 0x285   : > { %v2061_v43 = vld [vmem:[%s15462_s28 + $0x3ab0] sm:$0xf]  ;;  %v2063_v44 = vld [vmem:[%s15462_s28 + $0x3ac0] sm:$0xf]  ;;  %2060 = vst [vmem:[%s15469_s29 + $0xea8] sm:$0xf] %v2059_v42 }
 0x286   : > { %2062 = vst [vmem:[%s15469_s29 + $0xeac] sm:$0xf] %v2061_v43  ;;  %2064 = vst [vmem:[%s15469_s29 + $0xeb0] sm:$0xf] %v2063_v44  ;;  %v2065_v45 = vld [vmem:[%s15462_s28 + $0x3ad0] sm:$0xf] }
 0x287   : > { %v2067_v46 = vld [vmem:[%s15462_s28 + $0x3ae0] sm:$0xf]  ;;  %v2069_v47 = vld [vmem:[%s15462_s28 + $0x3af0] sm:$0xf]  ;;  %2066 = vst [vmem:[%s15469_s29 + $0xeb4] sm:$0xf] %v2065_v45 }
 0x288   : > { %2068 = vst [vmem:[%s15469_s29 + $0xeb8] sm:$0xf] %v2067_v46  ;;  %2070 = vst [vmem:[%s15469_s29 + $0xebc] sm:$0xf] %v2069_v47  ;;  %v2071_v48 = vld [vmem:[%s15462_s28 + $0x3b00] sm:$0xf] }
 0x289   : > { %v2073_v49 = vld [vmem:[%s15462_s28 + $0x3b10] sm:$0xf]  ;;  %v2075_v50 = vld [vmem:[%s15462_s28 + $0x3b20] sm:$0xf]  ;;  %2072 = vst [vmem:[%s15469_s29 + $0xec0] sm:$0xf] %v2071_v48 }
 0x28a   : > { %2074 = vst [vmem:[%s15469_s29 + $0xec4] sm:$0xf] %v2073_v49  ;;  %2076 = vst [vmem:[%s15469_s29 + $0xec8] sm:$0xf] %v2075_v50  ;;  %v2077_v51 = vld [vmem:[%s15462_s28 + $0x3b30] sm:$0xf] }
 0x28b   : > { %v2079_v52 = vld [vmem:[%s15462_s28 + $0x3b40] sm:$0xf]  ;;  %v2081_v53 = vld [vmem:[%s15462_s28 + $0x3b50] sm:$0xf]  ;;  %2078 = vst [vmem:[%s15469_s29 + $0xecc] sm:$0xf] %v2077_v51 }
 0x28c   : > { %2080 = vst [vmem:[%s15469_s29 + $0xed0] sm:$0xf] %v2079_v52  ;;  %2082 = vst [vmem:[%s15469_s29 + $0xed4] sm:$0xf] %v2081_v53  ;;  %v2083_v54 = vld [vmem:[%s15462_s28 + $0x3b60] sm:$0xf] }
 0x28d   : > { %v2085_v55 = vld [vmem:[%s15462_s28 + $0x3b70] sm:$0xf]  ;;  %v2087_v56 = vld [vmem:[%s15462_s28 + $0x3b80] sm:$0xf]  ;;  %2084 = vst [vmem:[%s15469_s29 + $0xed8] sm:$0xf] %v2083_v54 }
 0x28e   : > { %2086 = vst [vmem:[%s15469_s29 + $0xedc] sm:$0xf] %v2085_v55  ;;  %2088 = vst [vmem:[%s15469_s29 + $0xee0] sm:$0xf] %v2087_v56  ;;  %v2089_v57 = vld [vmem:[%s15462_s28 + $0x3b90] sm:$0xf] }
 0x28f   : > { %v2091_v58 = vld [vmem:[%s15462_s28 + $0x3ba0] sm:$0xf]  ;;  %v2093_v59 = vld [vmem:[%s15462_s28 + $0x3bb0] sm:$0xf]  ;;  %2090 = vst [vmem:[%s15469_s29 + $0xee4] sm:$0xf] %v2089_v57 }
 0x290   : > { %2092 = vst [vmem:[%s15469_s29 + $0xee8] sm:$0xf] %v2091_v58  ;;  %2094 = vst [vmem:[%s15469_s29 + $0xeec] sm:$0xf] %v2093_v59  ;;  %v2095_v60 = vld [vmem:[%s15462_s28 + $0x3bc0] sm:$0xf] }
 0x291   : > { %v2097_v61 = vld [vmem:[%s15462_s28 + $0x3bd0] sm:$0xf]  ;;  %v2099_v62 = vld [vmem:[%s15462_s28 + $0x3be0] sm:$0xf]  ;;  %2096 = vst [vmem:[%s15469_s29 + $0xef0] sm:$0xf] %v2095_v60 }
 0x292   : > { %2098 = vst [vmem:[%s15469_s29 + $0xef4] sm:$0xf] %v2097_v61  ;;  %2100 = vst [vmem:[%s15469_s29 + $0xef8] sm:$0xf] %v2099_v62  ;;  %v2101_v63 = vld [vmem:[%s15462_s28 + $0x3bf0] sm:$0xf] }
 0x293   : > { %v2103_v0 = vld [vmem:[%s15462_s28 + $0x3c00] sm:$0xf]  ;;  %v2105_v1 = vld [vmem:[%s15462_s28 + $0x3c10] sm:$0xf]  ;;  %2102 = vst [vmem:[%s15469_s29 + $0xefc] sm:$0xf] %v2101_v63 }
 0x294   : > { %2104 = vst [vmem:[%s15469_s29 + $0xf00] sm:$0xf] %v2103_v0  ;;  %2106 = vst [vmem:[%s15469_s29 + $0xf04] sm:$0xf] %v2105_v1  ;;  %v2107_v2 = vld [vmem:[%s15462_s28 + $0x3c20] sm:$0xf] }
 0x295   : > { %v2109_v3 = vld [vmem:[%s15462_s28 + $0x3c30] sm:$0xf]  ;;  %v2111_v4 = vld [vmem:[%s15462_s28 + $0x3c40] sm:$0xf]  ;;  %2108 = vst [vmem:[%s15469_s29 + $0xf08] sm:$0xf] %v2107_v2 }
 0x296   : > { %2110 = vst [vmem:[%s15469_s29 + $0xf0c] sm:$0xf] %v2109_v3  ;;  %2112 = vst [vmem:[%s15469_s29 + $0xf10] sm:$0xf] %v2111_v4  ;;  %v2113_v5 = vld [vmem:[%s15462_s28 + $0x3c50] sm:$0xf] }
 0x297   : > { %v2115_v6 = vld [vmem:[%s15462_s28 + $0x3c60] sm:$0xf]  ;;  %v2117_v7 = vld [vmem:[%s15462_s28 + $0x3c70] sm:$0xf]  ;;  %2114 = vst [vmem:[%s15469_s29 + $0xf14] sm:$0xf] %v2113_v5 }
 0x298   : > { %2116 = vst [vmem:[%s15469_s29 + $0xf18] sm:$0xf] %v2115_v6  ;;  %2118 = vst [vmem:[%s15469_s29 + $0xf1c] sm:$0xf] %v2117_v7  ;;  %v2119_v8 = vld [vmem:[%s15462_s28 + $0x3c80] sm:$0xf] }
 0x299   : > { %v2121_v9 = vld [vmem:[%s15462_s28 + $0x3c90] sm:$0xf]  ;;  %v2123_v10 = vld [vmem:[%s15462_s28 + $0x3ca0] sm:$0xf]  ;;  %2120 = vst [vmem:[%s15469_s29 + $0xf20] sm:$0xf] %v2119_v8 }
 0x29a   : > { %2122 = vst [vmem:[%s15469_s29 + $0xf24] sm:$0xf] %v2121_v9  ;;  %2124 = vst [vmem:[%s15469_s29 + $0xf28] sm:$0xf] %v2123_v10  ;;  %v2125_v11 = vld [vmem:[%s15462_s28 + $0x3cb0] sm:$0xf] }
 0x29b   : > { %v2127_v12 = vld [vmem:[%s15462_s28 + $0x3cc0] sm:$0xf]  ;;  %v2129_v13 = vld [vmem:[%s15462_s28 + $0x3cd0] sm:$0xf]  ;;  %2126 = vst [vmem:[%s15469_s29 + $0xf2c] sm:$0xf] %v2125_v11 }
 0x29c   : > { %2128 = vst [vmem:[%s15469_s29 + $0xf30] sm:$0xf] %v2127_v12  ;;  %2130 = vst [vmem:[%s15469_s29 + $0xf34] sm:$0xf] %v2129_v13  ;;  %v2131_v14 = vld [vmem:[%s15462_s28 + $0x3ce0] sm:$0xf] }
 0x29d   : > { %v2133_v15 = vld [vmem:[%s15462_s28 + $0x3cf0] sm:$0xf]  ;;  %2132 = vst [vmem:[%s15469_s29 + $0xf38] sm:$0xf] %v2131_v14 }
 0x29e   : > { %2134 = vst [vmem:[%s15469_s29 + $0xf3c] sm:$0xf] %v2133_v15 }
 0x29f PF: > { %p13636_p8 = scmp.ge.s32.totalorder %s15390_s16, 1  ;;  %p8049_p9 = scmp.lt.s32.totalorder %s15390_s16, 5 }
 0x2a1   : > { %p8050_p10 = pnand %p13636_p8, %p8049_p9 }
 0x2a3   : > { %8053 = sbr.rel (%p8050_p10) target bundleno = 1410 (0x582), region = 80 }
 0x2a8   : > { %s8056_s30 = sand.u32 1, %s15374_s12   ;;  %v8106_v16 = vld [vmem:[%s18577_s0 + $0x8] sm:$0xff]  ;;  %v8167_v17 = vld [vmem:[%s18577_s0 + $0x1f0] sm:$0xff]  ;;  %v8108_v18 = vld [vmem:[%s18577_s0 + $0x18] sm:$0xff]  ;;  %vm15393_vm0 = vmmov 0   ;;  %p8093_p11 = scmp.lt.s32.totalorder %s15382_s14, 3 }
 0x2a9   : > { %s14821_s10 = smul.u32 3904, %s8056_s30  ;;  %v8228_v19 = vpack.c.bf16 %v8167_v17, %v8106_v16  ;;  %v8169_v20 = vld [vmem:[%s18577_s0 + $0x200] sm:$0xff]  ;;  %v8166_v50 = vld [vmem:[%s18577_s0 + $0x1e8] sm:$0xff]  ;;  %v8107_v52 = vld [vmem:[%s18577_s0 + $0x10] sm:$0xff]  ;;  %s13637_s23 = sshll.u32 %s8056_s30, 4 }
 0x2aa   : > { %v8230_v21 = vpack.c.bf16 %v8169_v20, %v8108_v18  ;;  %v8105_v49 = vld [vmem:[%s18577_s0] sm:$0xff]  ;;  %v8168_v53 = vld [vmem:[%s18577_s0 + $0x1f8] sm:$0xff]  ;;  %v8110_v55 = vld [vmem:[%s18577_s0 + $0x28] sm:$0xff]  ;;  %s8085_s24 = scalar_lea.vmem [#allocation4], %s13637_s23  ;;  %s14128_s25 = sshll.u32 (%p15449_p6), %s15382_s14, 3 }
 0x2ab   : > { %12224 = vmatprep.mubr.bf16.mxu0 %v8228_v19  ;;  %s17435_s19 = scalar_lea.vmem [#allocation3], %s14821_s10  ;;  %v8171_v56 = vld [vmem:[%s18577_s0 + $0x210] sm:$0xff]  ;;  %v8227_v60 = vpack.c.bf16 %v8166_v50, %v8105_v49  ;;  %v8229_v61 = vpack.c.bf16 %v8168_v53, %v8107_v52  ;;  %s13493_s26 = scalar_lea.vmem (%p15449_p6), %s18580_s3, %s14128_s25 }
 0x2ac   : > { %v14864_v22 = vld [vmem:[%s17435_s19 + $0x78] sm:$0xff]   ;;  %12265 = vmatprep.mubr.bf16.mxu1 %v8230_v21  ;;  %v14868_v26 = vld [vmem:[%s17435_s19 + $0x70] sm:$0xff]   ;;  %v14872_v30 = vld [vmem:[%s17435_s19 + $0x68] sm:$0xff]   ;;  %v8232_v0 = vpack.c.bf16 %v8171_v56, %v8110_v55 }
 0x2ad   : > { %v14865_v23 = vld [vmem:[%s17435_s19 + $0xf8] sm:$0xff]   ;;  %14131 = vmatprep.subr.bf16.mxu0 %v14864_v22  ;;  %v14869_v27 = vld [vmem:[%s17435_s19 + $0xf0] sm:$0xff]   ;;  %v14873_v31 = vld [vmem:[%s17435_s19 + $0xe8] sm:$0xff]  }
 0x2ae   : > { %v14866_v24 = vld [vmem:[%s17435_s19 + $0x38] sm:$0xff]   ;;  %14153 = vmatprep.subr.bf16.mxu1 %v14865_v23  ;;  %v14870_v28 = vld [vmem:[%s17435_s19 + $0x30] sm:$0xff]   ;;  %v14874_v32 = vld [vmem:[%s17435_s19 + $0x28] sm:$0xff]  }
 0x2af   : > { %v14867_v25 = vld [vmem:[%s17435_s19 + $0xb8] sm:$0xff]   ;;  %14132 = vmatpush3.bf16.msra.mxu0 %v14866_v24  ;;  %v14871_v29 = vld [vmem:[%s17435_s19 + $0xb0] sm:$0xff]   ;;  %v14875_v33 = vld [vmem:[%s17435_s19 + $0xa8] sm:$0xff]  }
 0x2b0   : > { %14154 = vmatpush3.bf16.msra.mxu1 %v14867_v25  ;;  %14133 = vmatprep.subr.bf16.mxu0 %v14868_v26  ;;  %v14876_v34 = vld [vmem:[%s17435_s19 + $0x60] sm:$0xff]   ;;  %v14880_v38 = vld [vmem:[%s17435_s19 + $0x58] sm:$0xff]   ;;  %v14884_v42 = vld [vmem:[%s17435_s19 + $0x50] sm:$0xff]  }
 0x2b1   : > { %14155 = vmatprep.subr.bf16.mxu1 %v14869_v27  ;;  %v14877_v35 = vld [vmem:[%s17435_s19 + $0xe0] sm:$0xff]   ;;  %v14881_v39 = vld [vmem:[%s17435_s19 + $0xd8] sm:$0xff]   ;;  %v14885_v43 = vld [vmem:[%s17435_s19 + $0xd0] sm:$0xff]  }
 0x2b2   : > { %v14878_v36 = vld [vmem:[%s17435_s19 + $0x20] sm:$0xff]   ;;  %v14882_v40 = vld [vmem:[%s17435_s19 + $0x18] sm:$0xff]   ;;  %v14886_v44 = vld [vmem:[%s17435_s19 + $0x10] sm:$0xff]  }
 0x2b3   : > { %14134 = vmatpush3.bf16.msra.mxu0 %v14870_v28  ;;  %v14879_v37 = vld [vmem:[%s17435_s19 + $0xa0] sm:$0xff]   ;;  %v14883_v41 = vld [vmem:[%s17435_s19 + $0x98] sm:$0xff]   ;;  %v14887_v45 = vld [vmem:[%s17435_s19 + $0x90] sm:$0xff]  }
 0x2b4   : > { %14156 = vmatpush3.bf16.msra.mxu1 %v14871_v29  ;;  %14135 = vmatprep.subr.bf16.mxu0 %v14872_v30  ;;  %v14888_v46 = vld [vmem:[%s17435_s19 + $0x48] sm:$0xff]   ;;  %v14892_v54 = vld [vmem:[%s17435_s19 + $0x40] sm:$0xff]   ;;  %v14896_v62 = vld [vmem:[%s17435_s19 + $0x178] sm:$0xff]  }
 0x2b5   : > { %14157 = vmatprep.subr.bf16.mxu1 %v14873_v31  ;;  %v14889_v47 = vld [vmem:[%s17435_s19 + $0xc8] sm:$0xff]   ;;  %v14893_v57 = vld [vmem:[%s17435_s19 + $0xc0] sm:$0xff]   ;;  %v14897_v63 = vld [vmem:[%s17435_s19 + $0x138] sm:$0xff]  }
 0x2b6   : > { %v14890_v48 = vld [vmem:[%s17435_s19 + $0x8] sm:$0xff]   ;;  %v14894_v58 = vld [vmem:[%s17435_s19] sm:$0xff]   ;;  %v14898_v1 = vld [vmem:[%s17435_s19 + $0x1f8] sm:$0xff]  }
 0x2b7   : > { %14136 = vmatpush3.bf16.msra.mxu0 %v14874_v32  ;;  %v14891_v51 = vld [vmem:[%s17435_s19 + $0x88] sm:$0xff]   ;;  %v14895_v59 = vld [vmem:[%s17435_s19 + $0x80] sm:$0xff]   ;;  %v14899_v2 = vld [vmem:[%s17435_s19 + $0x1b8] sm:$0xff]  }
 0x2b8   : > { %14158 = vmatpush3.bf16.msra.mxu1 %v14875_v33  ;;  %14137 = vmatprep.subr.bf16.mxu0 %v14876_v34  ;;  %v14900_v3 = vld [vmem:[%s17435_s19 + $0x170] sm:$0xff]   ;;  %v14904_v7 = vld [vmem:[%s17435_s19 + $0x168] sm:$0xff]   ;;  %v14908_v11 = vld [vmem:[%s17435_s19 + $0x160] sm:$0xff]  }
 0x2b9   : > { %14159 = vmatprep.subr.bf16.mxu1 %v14877_v35  ;;  %v14901_v4 = vld [vmem:[%s17435_s19 + $0x130] sm:$0xff]   ;;  %v14905_v8 = vld [vmem:[%s17435_s19 + $0x128] sm:$0xff]   ;;  %v14909_v12 = vld [vmem:[%s17435_s19 + $0x120] sm:$0xff]  }
 0x2ba   : > { %v14902_v5 = vld [vmem:[%s17435_s19 + $0x1f0] sm:$0xff]   ;;  %v14906_v9 = vld [vmem:[%s17435_s19 + $0x1e8] sm:$0xff]   ;;  %v14910_v13 = vld [vmem:[%s17435_s19 + $0x1e0] sm:$0xff]  }
 0x2bb   : > { %14138 = vmatpush3.bf16.msra.mxu0 %v14878_v36  ;;  %v14903_v6 = vld [vmem:[%s17435_s19 + $0x1b0] sm:$0xff]   ;;  %v14907_v10 = vld [vmem:[%s17435_s19 + $0x1a8] sm:$0xff]   ;;  %v14911_v14 = vld [vmem:[%s17435_s19 + $0x1a0] sm:$0xff]  }
 0x2bc   : > { %14160 = vmatpush3.bf16.msra.mxu1 %v14879_v37  ;;  %14139 = vmatprep.subr.bf16.mxu0 %v14880_v38  ;;  %v14912_v15 = vld [vmem:[%s17435_s19 + $0x158] sm:$0xff]   ;;  %v14916_v19 = vld [vmem:[%s17435_s19 + $0x150] sm:$0xff]   ;;  %v14920_v23 = vld [vmem:[%s17435_s19 + $0x148] sm:$0xff]  }
 0x2bd   : > { %14161 = vmatprep.subr.bf16.mxu1 %v14881_v39  ;;  %v14913_v16 = vld [vmem:[%s17435_s19 + $0x118] sm:$0xff]   ;;  %v14917_v20 = vld [vmem:[%s17435_s19 + $0x110] sm:$0xff]   ;;  %v14921_v24 = vld [vmem:[%s17435_s19 + $0x108] sm:$0xff]  }
 0x2be   : > { %v14914_v17 = vld [vmem:[%s17435_s19 + $0x1d8] sm:$0xff]   ;;  %v14918_v21 = vld [vmem:[%s17435_s19 + $0x1d0] sm:$0xff]   ;;  %v14922_v25 = vld [vmem:[%s17435_s19 + $0x1c8] sm:$0xff]  }
 0x2bf   : > { %14140 = vmatpush3.bf16.msra.mxu0 %v14882_v40  ;;  %v14915_v18 = vld [vmem:[%s17435_s19 + $0x198] sm:$0xff]   ;;  %v14919_v22 = vld [vmem:[%s17435_s19 + $0x190] sm:$0xff]   ;;  %v8109_v26 = vld [vmem:[%s18577_s0 + $0x20] sm:$0xff] }
 0x2c0   : > { %14162 = vmatpush3.bf16.msra.mxu1 %v14883_v41  ;;  %14141 = vmatprep.subr.bf16.mxu0 %v14884_v42  ;;  %v8170_v27 = vld [vmem:[%s18577_s0 + $0x208] sm:$0xff]  ;;  %v14924_v29 = vld [vmem:[%s17435_s19 + $0x140] sm:$0xff]   ;;  %v14928_v34 = vld [vmem:[%s17435_s19 + $0x278] sm:$0xff]  }
 0x2c1   : > { %14163 = vmatprep.subr.bf16.mxu1 %v14885_v43  ;;  %v14923_v28 = vld [vmem:[%s17435_s19 + $0x188] sm:$0xff]   ;;  %v14925_v30 = vld [vmem:[%s17435_s19 + $0x100] sm:$0xff]   ;;  %v8231_v33 = vpack.c.bf16 %v8170_v27, %v8109_v26  ;;  %v8112_v35 = vld [vmem:[%s18577_s0 + $0x38] sm:$0xff] }
 0x2c2   : > { %v14926_v31 = vld [vmem:[%s17435_s19 + $0x1c0] sm:$0xff]   ;;  %v14929_v38 = vld [vmem:[%s17435_s19 + $0x238] sm:$0xff]   ;;  %v8111_v39 = vld [vmem:[%s18577_s0 + $0x30] sm:$0xff] }
 0x2c3   : > { %14142 = vmatpush3.bf16.msra.mxu0 %v14886_v44  ;;  %v14927_v32 = vld [vmem:[%s17435_s19 + $0x180] sm:$0xff]   ;;  %v8172_v40 = vld [vmem:[%s18577_s0 + $0x218] sm:$0xff]  ;;  %v14932_v44 = vld [vmem:[%s17435_s19 + $0x270] sm:$0xff]  }
 0x2c4   : > { %14164 = vmatpush3.bf16.msra.mxu1 %v14887_v45  ;;  %14143 = vmatprep.subr.bf16.mxu0 %v14888_v46  ;;  %v8173_v36 = vld [vmem:[%s18577_s0 + $0x220] sm:$0xff]  ;;  %v8233_v41 = vpack.c.bf16 %v8172_v40, %v8111_v39  ;;  %v14930_v42 = vld [vmem:[%s17435_s19 + $0x2f8] sm:$0xff]   ;;  %v14933_v45 = vld [vmem:[%s17435_s19 + $0x230] sm:$0xff]  }
 0x2c5   : > { %14165 = vmatprep.subr.bf16.mxu1 %v14889_v47  ;;  %v8234_v37 = vpack.c.bf16 %v8173_v36, %v8112_v35  ;;  %v14931_v43 = vld [vmem:[%s17435_s19 + $0x2b8] sm:$0xff]   ;;  %v14934_v46 = vld [vmem:[%s17435_s19 + $0x2f0] sm:$0xff]   ;;  %v14937_v49 = vld [vmem:[%s17435_s19 + $0x228] sm:$0xff]  }
 0x2c6   : > { %v14935_v47 = vld [vmem:[%s17435_s19 + $0x2b0] sm:$0xff]   ;;  %v14938_v50 = vld [vmem:[%s17435_s19 + $0x2e8] sm:$0xff]   ;;  %v14940_v52 = vld [vmem:[%s17435_s19 + $0x260] sm:$0xff]  }
 0x2c7   : > { %14144 = vmatpush3.bf16.msra.mxu0 %v14890_v48  ;;  %v14936_v48 = vld [vmem:[%s17435_s19 + $0x268] sm:$0xff]   ;;  %v14941_v53 = vld [vmem:[%s17435_s19 + $0x220] sm:$0xff]   ;;  %v14944_v56 = vld [vmem:[%s17435_s19 + $0x258] sm:$0xff]  }
 0x2c8   : > { %14166 = vmatpush3.bf16.msra.mxu1 %v14891_v51  ;;  %14145 = vmatprep.subr.bf16.mxu0 %v14892_v54  ;;  %v14939_v51 = vld [vmem:[%s17435_s19 + $0x2a8] sm:$0xff]   ;;  %v14942_v54 = vld [vmem:[%s17435_s19 + $0x2e0] sm:$0xff]   ;;  %v14966_v26 = vld [vmem:[%s17435_s19 + $0x3f0] sm:$0xff]  }
 0x2c9   : > { %14167 = vmatprep.subr.bf16.mxu1 %v14893_v57  ;;  %v14943_v55 = vld [vmem:[%s17435_s19 + $0x2a0] sm:$0xff]   ;;  %v14945_v57 = vld [vmem:[%s17435_s19 + $0x218] sm:$0xff]   ;;  %v14967_v27 = vld [vmem:[%s17435_s19 + $0x3b0] sm:$0xff]  }
 0x2ca   : > { %v14975_v35 = vld [vmem:[%s17435_s19 + $0x3a0] sm:$0xff]   ;;  %v14976_v36 = vld [vmem:[%s17435_s19 + $0x358] sm:$0xff]   ;;  %v14980_v40 = vld [vmem:[%s17435_s19 + $0x350] sm:$0xff]  }
 0x2cb   : > { %14146 = vmatpush3.bf16.msra.mxu0 %v14894_v58  ;;  %v14946_v58 = vld [vmem:[%s17435_s19 + $0x2d8] sm:$0xff]  }
 0x2cc   : > { %14168 = vmatpush3.bf16.msra.mxu1 %v14895_v59  ;;  %14175 = vmatprep.subr.bf16.mxu0 %v14896_v62  ;;  %v14947_v59 = vld [vmem:[%s17435_s19 + $0x298] sm:$0xff]   ;;  %v14950_v62 = vld [vmem:[%s17435_s19 + $0x2d0] sm:$0xff]  }
 0x2cd   : > { %14197 = vmatprep.subr.bf16.mxu1 %v14898_v1  ;;  %v14953_v1 = vld [vmem:[%s17435_s19 + $0x208] sm:$0xff]   ;;  %v14979_v39 = vld [vmem:[%s17435_s19 + $0x398] sm:$0xff]  }
 0x2ce   : > { %12225 = vmatmul.mubr.bf16.vlgmr.msra.gmra.mxu0 %v8227_v60  ;;  %v14948_v60 = vld [vmem:[%s17435_s19 + $0x250] sm:$0xff]  }
 0x2cf   : > { %12266 = vmatmul.mubr.bf16.vlgmr.msra.gmra.mxu1 %v8229_v61  ;;  %14176 = vmatpush3.bf16.msra.mxu0 %v14897_v63  ;;  %v14949_v61 = vld [vmem:[%s17435_s19 + $0x210] sm:$0xff]  }
 0x2d0   : > { %12306 = vmatprep.mubr.bf16.mxu0 %v8232_v0  ;;  %14198 = vmatpush3.bf16.msra.mxu1 %v14899_v2  ;;  %v14951_v63 = vld [vmem:[%s17435_s19 + $0x290] sm:$0xff]   ;;  %v14952_v0 = vld [vmem:[%s17435_s19 + $0x248] sm:$0xff]  }
 0x2d1   : > { %14177 = vmatprep.subr.bf16.mxu0 %v14900_v3  ;;  %14199 = vmatprep.subr.bf16.mxu1 %v14902_v5  ;;  %v14954_v2 = vld [vmem:[%s17435_s19 + $0x2c8] sm:$0xff]   ;;  %v14957_v5 = vld [vmem:[%s17435_s19 + $0x200] sm:$0xff]  }
 0x2d2   : > { %12347 = vmatprep.mubr.bf16.mxu1 %v8234_v37  ;;  %v14955_v3 = vld [vmem:[%s17435_s19 + $0x288] sm:$0xff]   ;;  %v14977_v37 = vld [vmem:[%s17435_s19 + $0x318] sm:$0xff]  }
 0x2d3   : > { %14178 = vmatpush3.bf16.msra.mxu0 %v14901_v4  ;;  %v14956_v4 = vld [vmem:[%s17435_s19 + $0x240] sm:$0xff]  }
 0x2d4   : > { %14200 = vmatpush3.bf16.msra.mxu1 %v14903_v6  ;;  %14179 = vmatprep.subr.bf16.mxu0 %v14904_v7  ;;  %v14958_v6 = vld [vmem:[%s17435_s19 + $0x2c0] sm:$0xff]   ;;  %v8114_v7 = vld [vmem:[%s18577_s0 + $0x48] sm:$0xff] }
 0x2d5   : > { %14201 = vmatprep.subr.bf16.mxu1 %v14906_v9 }
 0x2d7   : > { %14180 = vmatpush3.bf16.msra.mxu0 %v14905_v8  ;;  %v8175_v8 = vld [vmem:[%s18577_s0 + $0x230] sm:$0xff] }
 0x2d8   : > { %14202 = vmatpush3.bf16.msra.mxu1 %v14907_v10  ;;  %14181 = vmatprep.subr.bf16.mxu0 %v14908_v11  ;;  %v8236_v9 = vpack.c.bf16 %v8175_v8, %v8114_v7  ;;  %v14959_v10 = vld [vmem:[%s17435_s19 + $0x280] sm:$0xff]   ;;  %v14999_v7 = vld [vmem:[%s17435_s19 + $0x4b0] sm:$0xff]   ;;  %v15000_v8 = vld [vmem:[%s17435_s19 + $0x468] sm:$0xff]  }
 0x2d9   : > { %14203 = vmatprep.subr.bf16.mxu1 %v14910_v13  ;;  %v8113_v11 = vld [vmem:[%s18577_s0 + $0x40] sm:$0xff] }
 0x2db   : > { %14182 = vmatpush3.bf16.msra.mxu0 %v14909_v12  ;;  %v8174_v12 = vld [vmem:[%s18577_s0 + $0x228] sm:$0xff] }
 0x2dc   : > { %14204 = vmatpush3.bf16.msra.mxu1 %v14911_v14  ;;  %14183 = vmatprep.subr.bf16.mxu0 %v14912_v15  ;;  %v8235_v13 = vpack.c.bf16 %v8174_v12, %v8113_v11  ;;  %v14960_v14 = vld [vmem:[%s17435_s19 + $0x378] sm:$0xff]   ;;  %v15003_v11 = vld [vmem:[%s17435_s19 + $0x4a8] sm:$0xff]   ;;  %v15004_v12 = vld [vmem:[%s17435_s19 + $0x460] sm:$0xff]  }
 0x2dd   : > { %14205 = vmatprep.subr.bf16.mxu1 %v14914_v17  ;;  %v8116_v15 = vld [vmem:[%s18577_s0 + $0x58] sm:$0xff] }
 0x2df   : > { %14184 = vmatpush3.bf16.msra.mxu0 %v14913_v16  ;;  %v8177_v16 = vld [vmem:[%s18577_s0 + $0x240] sm:$0xff] }
 0x2e0   : > { %14206 = vmatpush3.bf16.msra.mxu1 %v14915_v18  ;;  %14185 = vmatprep.subr.bf16.mxu0 %v14916_v19  ;;  %v8238_v17 = vpack.c.bf16 %v8177_v16, %v8116_v15  ;;  %v14961_v18 = vld [vmem:[%s17435_s19 + $0x338] sm:$0xff]   ;;  %v8115_v19 = vld [vmem:[%s18577_s0 + $0x50] sm:$0xff]  ;;  %v15007_v15 = vld [vmem:[%s17435_s19 + $0x4a0] sm:$0xff]  }
 0x2e1   : > { %14207 = vmatprep.subr.bf16.mxu1 %v14918_v21  ;;  %v15008_v16 = vld [vmem:[%s17435_s19 + $0x458] sm:$0xff]  }
 0x2e3   : > { %14186 = vmatpush3.bf16.msra.mxu0 %v14917_v20  ;;  %v8176_v20 = vld [vmem:[%s18577_s0 + $0x238] sm:$0xff] }
 0x2e4   : > { %14208 = vmatpush3.bf16.msra.mxu1 %v14919_v22  ;;  %14187 = vmatprep.subr.bf16.mxu0 %v14920_v23  ;;  %v8237_v21 = vpack.c.bf16 %v8176_v20, %v8115_v19  ;;  %v14962_v22 = vld [vmem:[%s17435_s19 + $0x3f8] sm:$0xff]   ;;  %v15012_v20 = vld [vmem:[%s17435_s19 + $0x450] sm:$0xff]  }
 0x2e5   : > { %14209 = vmatprep.subr.bf16.mxu1 %v14922_v25  ;;  %v14963_v23 = vld [vmem:[%s17435_s19 + $0x3b8] sm:$0xff]   ;;  %v14965_v25 = vld [vmem:[%s17435_s19 + $0x330] sm:$0xff]  }
 0x2e6   : > { %v15011_v19 = vld [vmem:[%s17435_s19 + $0x498] sm:$0xff]  }
 0x2e7   : > { %14188 = vmatpush3.bf16.msra.mxu0 %v14921_v24  ;;  %v14964_v24 = vld [vmem:[%s17435_s19 + $0x370] sm:$0xff]  }
 0x2e8   : > { %14210 = vmatpush3.bf16.msra.mxu1 %v14923_v28  ;;  %14189 = vmatprep.subr.bf16.mxu0 %v14924_v29  ;;  %v14968_v28 = vld [vmem:[%s17435_s19 + $0x368] sm:$0xff]  }
 0x2e9   : > { %14211 = vmatprep.subr.bf16.mxu1 %v14926_v31  ;;  %v14969_v29 = vld [vmem:[%s17435_s19 + $0x328] sm:$0xff]  }
 0x2ea   : > { %v14971_v31 = vld [vmem:[%s17435_s19 + $0x3a8] sm:$0xff]  }
 0x2eb   : > { %14190 = vmatpush3.bf16.msra.mxu0 %v14925_v30  ;;  %v14970_v30 = vld [vmem:[%s17435_s19 + $0x3e8] sm:$0xff]  }
 0x2ec   : > { %14212 = vmatpush3.bf16.msra.mxu1 %v14927_v32  ;;  %14219 = vmatprep.subr.bf16.mxu0 %v14928_v34  ;;  %v14972_v32 = vld [vmem:[%s17435_s19 + $0x360] sm:$0xff]  }
 0x2ed   : > { %14241 = vmatprep.subr.bf16.mxu1 %v14930_v42  ;;  %v14974_v34 = vld [vmem:[%s17435_s19 + $0x3e0] sm:$0xff]   ;;  %v14982_v42 = vld [vmem:[%s17435_s19 + $0x3d0] sm:$0xff]  }
 0x2ee   : > { %12307 = vmatmul.mubr.bf16.vlgmr.msra.gmra.mxu0 %v8231_v33  ;;  %v14973_v33 = vld [vmem:[%s17435_s19 + $0x320] sm:$0xff]  }
 0x2ef   : > { %14220 = vmatpush3.bf16.msra.mxu0 %v14929_v38  ;;  %12348 = vmatmul.mubr.bf16.vlgmr.msra.gmra.mxu1 %v8233_v41  ;;  %v14978_v38 = vld [vmem:[%s17435_s19 + $0x3d8] sm:$0xff]   ;;  %v14981_v41 = vld [vmem:[%s17435_s19 + $0x310] sm:$0xff]  }
 0x2f0   : > { %14242 = vmatpush3.bf16.msra.mxu1 %v14931_v43  ;;  %14221 = vmatprep.subr.bf16.mxu0 %v14932_v44  ;;  %v14983_v43 = vld [vmem:[%s17435_s19 + $0x390] sm:$0xff]   ;;  %v14984_v44 = vld [vmem:[%s17435_s19 + $0x348] sm:$0xff]  }
 0x2f1   : > { %14243 = vmatprep.subr.bf16.mxu1 %v14934_v46  ;;  %12388 = vmatprep.mubr.bf16.mxu0 %v8236_v9  ;;  %v14986_v46 = vld [vmem:[%s17435_s19 + $0x3c8] sm:$0xff]  }
 0x2f2   : > { %12429 = vmatprep.mubr.bf16.mxu1 %v8238_v17  ;;  %v15001_v9 = vld [vmem:[%s17435_s19 + $0x428] sm:$0xff]   ;;  %v15009_v17 = vld [vmem:[%s17435_s19 + $0x418] sm:$0xff]  }
 0x2f3   : > { %14222 = vmatpush3.bf16.msra.mxu0 %v14933_v45  ;;  %v14985_v45 = vld [vmem:[%s17435_s19 + $0x308] sm:$0xff]  }
 0x2f4   : > { %14244 = vmatpush3.bf16.msra.mxu1 %v14935_v47  ;;  %14223 = vmatprep.subr.bf16.mxu0 %v14936_v48  ;;  %v14987_v47 = vld [vmem:[%s17435_s19 + $0x388] sm:$0xff]   ;;  %v14988_v48 = vld [vmem:[%s17435_s19 + $0x340] sm:$0xff]  }
 0x2f5   : > { %14245 = vmatprep.subr.bf16.mxu1 %v14938_v50  ;;  %v14990_v50 = vld [vmem:[%s17435_s19 + $0x3c0] sm:$0xff]  }
 0x2f7   : > { %14224 = vmatpush3.bf16.msra.mxu0 %v14937_v49  ;;  %v14989_v49 = vld [vmem:[%s17435_s19 + $0x300] sm:$0xff]  }
 0x2f8   : > { %14246 = vmatpush3.bf16.msra.mxu1 %v14939_v51  ;;  %14225 = vmatprep.subr.bf16.mxu0 %v14940_v52  ;;  %v8118_v51 = vld [vmem:[%s18577_s0 + $0x68] sm:$0xff]  ;;  %v8179_v52 = vld [vmem:[%s18577_s0 + $0x250] sm:$0xff] }
 0x2f9   : > { %14247 = vmatprep.subr.bf16.mxu1 %v14942_v54  ;;  %v14991_v54 = vld [vmem:[%s17435_s19 + $0x380] sm:$0xff]  }
 0x2fb   : > { %14226 = vmatpush3.bf16.msra.mxu0 %v14941_v53  ;;  %v8240_v53 = vpack.c.bf16 %v8179_v52, %v8118_v51  ;;  %v15031_v51 = vld [vmem:[%s17435_s19 + $0x5b0] sm:$0xff]   ;;  %v15032_v52 = vld [vmem:[%s17435_s19 + $0x568] sm:$0xff]  }
 0x2fc   : > { %14248 = vmatpush3.bf16.msra.mxu1 %v14943_v55  ;;  %14227 = vmatprep.subr.bf16.mxu0 %v14944_v56  ;;  %v8117_v55 = vld [vmem:[%s18577_s0 + $0x60] sm:$0xff]  ;;  %v8178_v56 = vld [vmem:[%s18577_s0 + $0x248] sm:$0xff] }
 0x2fd   : > { %14249 = vmatprep.subr.bf16.mxu1 %v14946_v58  ;;  %v14992_v58 = vld [vmem:[%s17435_s19 + $0x478] sm:$0xff]  }
 0x2ff   : > { %14228 = vmatpush3.bf16.msra.mxu0 %v14945_v57  ;;  %v8239_v57 = vpack.c.bf16 %v8178_v56, %v8117_v55  ;;  %v15035_v55 = vld [vmem:[%s17435_s19 + $0x5a8] sm:$0xff]   ;;  %v15036_v56 = vld [vmem:[%s17435_s19 + $0x560] sm:$0xff]  }
 0x300   : > { %14250 = vmatpush3.bf16.msra.mxu1 %v14947_v59  ;;  %14229 = vmatprep.subr.bf16.mxu0 %v14948_v60  ;;  %v8120_v59 = vld [vmem:[%s18577_s0 + $0x78] sm:$0xff]  ;;  %v8181_v60 = vld [vmem:[%s18577_s0 + $0x260] sm:$0xff] }
 0x301   : > { %14251 = vmatprep.subr.bf16.mxu1 %v14950_v62  ;;  %v14993_v62 = vld [vmem:[%s17435_s19 + $0x438] sm:$0xff]  }
 0x303   : > { %14230 = vmatpush3.bf16.msra.mxu0 %v14949_v61  ;;  %v8242_v61 = vpack.c.bf16 %v8181_v60, %v8120_v59  ;;  %v15039_v59 = vld [vmem:[%s17435_s19 + $0x5a0] sm:$0xff]   ;;  %v15040_v60 = vld [vmem:[%s17435_s19 + $0x558] sm:$0xff]  }
 0x304   : > { %14252 = vmatpush3.bf16.msra.mxu1 %v14951_v63  ;;  %14231 = vmatprep.subr.bf16.mxu0 %v14952_v0  ;;  %v8119_v63 = vld [vmem:[%s18577_s0 + $0x70] sm:$0xff]  ;;  %v8180_v0 = vld [vmem:[%s18577_s0 + $0x258] sm:$0xff] }
 0x305   : > { %14253 = vmatprep.subr.bf16.mxu1 %v14954_v2  ;;  %v14994_v2 = vld [vmem:[%s17435_s19 + $0x4f8] sm:$0xff]  }
 0x307   : > { %14232 = vmatpush3.bf16.msra.mxu0 %v14953_v1  ;;  %v8241_v1 = vpack.c.bf16 %v8180_v0, %v8119_v63  ;;  %v15043_v63 = vld [vmem:[%s17435_s19 + $0x598] sm:$0xff]   ;;  %v15044_v0 = vld [vmem:[%s17435_s19 + $0x550] sm:$0xff]  }
 0x308   : > { %14254 = vmatpush3.bf16.msra.mxu1 %v14955_v3  ;;  %14233 = vmatprep.subr.bf16.mxu0 %v14956_v4  ;;  %v14995_v3 = vld [vmem:[%s17435_s19 + $0x4b8] sm:$0xff]   ;;  %v14996_v4 = vld [vmem:[%s17435_s19 + $0x470] sm:$0xff]  }
 0x309   : > { %14255 = vmatprep.subr.bf16.mxu1 %v14958_v6  ;;  %v14998_v6 = vld [vmem:[%s17435_s19 + $0x4f0] sm:$0xff]  }
 0x30b   : > { %14234 = vmatpush3.bf16.msra.mxu0 %v14957_v5  ;;  %v14997_v5 = vld [vmem:[%s17435_s19 + $0x430] sm:$0xff]  }
 0x30c   : > { %14256 = vmatpush3.bf16.msra.mxu1 %v14959_v10  ;;  %14263 = vmatprep.subr.bf16.mxu0 %v14960_v14  ;;  %v15002_v10 = vld [vmem:[%s17435_s19 + $0x4e8] sm:$0xff]   ;;  %v15006_v14 = vld [vmem:[%s17435_s19 + $0x4e0] sm:$0xff]  }
 0x30d   : > { %14285 = vmatprep.subr.bf16.mxu1 %v14962_v22  ;;  %v15014_v22 = vld [vmem:[%s17435_s19 + $0x4d0] sm:$0xff]  }
 0x30e   : > { %12389 = vmatmul.mubr.bf16.vlgmr.msra.gmra.mxu0 %v8235_v13  ;;  %v15005_v13 = vld [vmem:[%s17435_s19 + $0x420] sm:$0xff]  }
 0x30f   : > { %14264 = vmatpush3.bf16.msra.mxu0 %v14961_v18  ;;  %12430 = vmatmul.mubr.bf16.vlgmr.msra.gmra.mxu1 %v8237_v21  ;;  %v15010_v18 = vld [vmem:[%s17435_s19 + $0x4d8] sm:$0xff]   ;;  %v15013_v21 = vld [vmem:[%s17435_s19 + $0x410] sm:$0xff]  }
 0x310   : > { %14286 = vmatpush3.bf16.msra.mxu1 %v14963_v23  ;;  %14265 = vmatprep.subr.bf16.mxu0 %v14964_v24  ;;  %v15015_v23 = vld [vmem:[%s17435_s19 + $0x490] sm:$0xff]   ;;  %v15016_v24 = vld [vmem:[%s17435_s19 + $0x448] sm:$0xff]  }
 0x311   : > { %14287 = vmatprep.subr.bf16.mxu1 %v14966_v26  ;;  %12470 = vmatprep.mubr.bf16.mxu0 %v8240_v53  ;;  %v15018_v26 = vld [vmem:[%s17435_s19 + $0x4c8] sm:$0xff]  }
 0x312   : > { %12511 = vmatprep.mubr.bf16.mxu1 %v8242_v61  ;;  %v15033_v53 = vld [vmem:[%s17435_s19 + $0x528] sm:$0xff]   ;;  %v15041_v61 = vld [vmem:[%s17435_s19 + $0x518] sm:$0xff]  }
 0x313   : > { %14266 = vmatpush3.bf16.msra.mxu0 %v14965_v25  ;;  %v15017_v25 = vld [vmem:[%s17435_s19 + $0x408] sm:$0xff]  }
 0x314   : > { %14288 = vmatpush3.bf16.msra.mxu1 %v14967_v27  ;;  %14267 = vmatprep.subr.bf16.mxu0 %v14968_v28  ;;  %v15019_v27 = vld [vmem:[%s17435_s19 + $0x488] sm:$0xff]   ;;  %v15020_v28 = vld [vmem:[%s17435_s19 + $0x440] sm:$0xff]  }
 0x315   : > { %14289 = vmatprep.subr.bf16.mxu1 %v14970_v30  ;;  %v15022_v30 = vld [vmem:[%s17435_s19 + $0x4c0] sm:$0xff]  }
 0x317   : > { %14268 = vmatpush3.bf16.msra.mxu0 %v14969_v29  ;;  %v15021_v29 = vld [vmem:[%s17435_s19 + $0x400] sm:$0xff]  }
 0x318   : > { %14290 = vmatpush3.bf16.msra.mxu1 %v14971_v31  ;;  %14269 = vmatprep.subr.bf16.mxu0 %v14972_v32  ;;  %v8122_v31 = vld [vmem:[%s18577_s0 + $0x88] sm:$0xff]  ;;  %v8183_v32 = vld [vmem:[%s18577_s0 + $0x270] sm:$0xff] }
 0x319   : > { %14291 = vmatprep.subr.bf16.mxu1 %v14974_v34  ;;  %v15023_v34 = vld [vmem:[%s17435_s19 + $0x480] sm:$0xff]  }
 0x31b   : > { %14270 = vmatpush3.bf16.msra.mxu0 %v14973_v33  ;;  %v8244_v33 = vpack.c.bf16 %v8183_v32, %v8122_v31  ;;  %v15063_v31 = vld [vmem:[%s17435_s19 + $0x6b0] sm:$0xff]   ;;  %v15064_v32 = vld [vmem:[%s17435_s19 + $0x668] sm:$0xff]  }
 0x31c   : > { %14292 = vmatpush3.bf16.msra.mxu1 %v14975_v35  ;;  %14271 = vmatprep.subr.bf16.mxu0 %v14976_v36  ;;  %v8121_v35 = vld [vmem:[%s18577_s0 + $0x80] sm:$0xff]  ;;  %v8182_v36 = vld [vmem:[%s18577_s0 + $0x268] sm:$0xff] }
 0x31d   : > { %14293 = vmatprep.subr.bf16.mxu1 %v14978_v38  ;;  %v15024_v38 = vld [vmem:[%s17435_s19 + $0x578] sm:$0xff]  }
 0x31f   : > { %14272 = vmatpush3.bf16.msra.mxu0 %v14977_v37  ;;  %v8243_v37 = vpack.c.bf16 %v8182_v36, %v8121_v35  ;;  %v15067_v35 = vld [vmem:[%s17435_s19 + $0x6a8] sm:$0xff]   ;;  %v15068_v36 = vld [vmem:[%s17435_s19 + $0x660] sm:$0xff]  }
 0x320   : > { %14294 = vmatpush3.bf16.msra.mxu1 %v14979_v39  ;;  %14273 = vmatprep.subr.bf16.mxu0 %v14980_v40  ;;  %v8124_v39 = vld [vmem:[%s18577_s0 + $0x98] sm:$0xff]  ;;  %v8185_v40 = vld [vmem:[%s18577_s0 + $0x280] sm:$0xff] }
 0x321   : > { %14295 = vmatprep.subr.bf16.mxu1 %v14982_v42  ;;  %v15025_v42 = vld [vmem:[%s17435_s19 + $0x538] sm:$0xff]  }
 0x323   : > { %14274 = vmatpush3.bf16.msra.mxu0 %v14981_v41  ;;  %v8246_v41 = vpack.c.bf16 %v8185_v40, %v8124_v39  ;;  %v15071_v39 = vld [vmem:[%s17435_s19 + $0x6a0] sm:$0xff]   ;;  %v15072_v40 = vld [vmem:[%s17435_s19 + $0x658] sm:$0xff]  }
 0x324   : > { %14296 = vmatpush3.bf16.msra.mxu1 %v14983_v43  ;;  %14275 = vmatprep.subr.bf16.mxu0 %v14984_v44  ;;  %v8123_v43 = vld [vmem:[%s18577_s0 + $0x90] sm:$0xff]  ;;  %v8184_v44 = vld [vmem:[%s18577_s0 + $0x278] sm:$0xff] }
 0x325   : > { %14297 = vmatprep.subr.bf16.mxu1 %v14986_v46  ;;  %v15026_v46 = vld [vmem:[%s17435_s19 + $0x5f8] sm:$0xff]  }
 0x327   : > { %14276 = vmatpush3.bf16.msra.mxu0 %v14985_v45  ;;  %v8245_v45 = vpack.c.bf16 %v8184_v44, %v8123_v43  ;;  %v15075_v43 = vld [vmem:[%s17435_s19 + $0x698] sm:$0xff]   ;;  %v15076_v44 = vld [vmem:[%s17435_s19 + $0x650] sm:$0xff]  }
 0x328   : > { %14298 = vmatpush3.bf16.msra.mxu1 %v14987_v47  ;;  %14277 = vmatprep.subr.bf16.mxu0 %v14988_v48  ;;  %v15027_v47 = vld [vmem:[%s17435_s19 + $0x5b8] sm:$0xff]   ;;  %v15028_v48 = vld [vmem:[%s17435_s19 + $0x570] sm:$0xff]  }
 0x329   : > { %14299 = vmatprep.subr.bf16.mxu1 %v14990_v50  ;;  %v15030_v50 = vld [vmem:[%s17435_s19 + $0x5f0] sm:$0xff]  }
 0x32b   : > { %14278 = vmatpush3.bf16.msra.mxu0 %v14989_v49  ;;  %v15029_v49 = vld [vmem:[%s17435_s19 + $0x530] sm:$0xff]  }
 0x32c   : > { %14300 = vmatpush3.bf16.msra.mxu1 %v14991_v54  ;;  %14307 = vmatprep.subr.bf16.mxu0 %v14992_v58  ;;  %v15034_v54 = vld [vmem:[%s17435_s19 + $0x5e8] sm:$0xff]   ;;  %v15038_v58 = vld [vmem:[%s17435_s19 + $0x5e0] sm:$0xff]  }
 0x32d   : > { %14329 = vmatprep.subr.bf16.mxu1 %v14994_v2  ;;  %v15046_v2 = vld [vmem:[%s17435_s19 + $0x5d0] sm:$0xff]  }
 0x32e   : > { %12471 = vmatmul.mubr.bf16.vlgmr.msra.gmra.mxu0 %v8239_v57  ;;  %v15037_v57 = vld [vmem:[%s17435_s19 + $0x520] sm:$0xff]  }
 0x32f   : > { %14308 = vmatpush3.bf16.msra.mxu0 %v14993_v62  ;;  %12512 = vmatmul.mubr.bf16.vlgmr.msra.gmra.mxu1 %v8241_v1  ;;  %v15042_v62 = vld [vmem:[%s17435_s19 + $0x5d8] sm:$0xff]   ;;  %v15045_v1 = vld [vmem:[%s17435_s19 + $0x510] sm:$0xff]  }
 0x330   : > { %14330 = vmatpush3.bf16.msra.mxu1 %v14995_v3  ;;  %14309 = vmatprep.subr.bf16.mxu0 %v14996_v4  ;;  %v15047_v3 = vld [vmem:[%s17435_s19 + $0x590] sm:$0xff]   ;;  %v15048_v4 = vld [vmem:[%s17435_s19 + $0x548] sm:$0xff]  }
 0x331   : > { %14331 = vmatprep.subr.bf16.mxu1 %v14998_v6  ;;  %12552 = vmatprep.mubr.bf16.mxu0 %v8244_v33  ;;  %v15050_v6 = vld [vmem:[%s17435_s19 + $0x5c8] sm:$0xff]  }
 0x332   : > { %12593 = vmatprep.mubr.bf16.mxu1 %v8246_v41  ;;  %v15065_v33 = vld [vmem:[%s17435_s19 + $0x628] sm:$0xff]   ;;  %v15073_v41 = vld [vmem:[%s17435_s19 + $0x618] sm:$0xff]  }
 0x333   : > { %14310 = vmatpush3.bf16.msra.mxu0 %v14997_v5  ;;  %v15049_v5 = vld [vmem:[%s17435_s19 + $0x508] sm:$0xff]  }
 0x334   : > { %14332 = vmatpush3.bf16.msra.mxu1 %v14999_v7  ;;  %14311 = vmatprep.subr.bf16.mxu0 %v15000_v8  ;;  %v15051_v7 = vld [vmem:[%s17435_s19 + $0x588] sm:$0xff]   ;;  %v15052_v8 = vld [vmem:[%s17435_s19 + $0x540] sm:$0xff]  }
 0x335   : > { %14333 = vmatprep.subr.bf16.mxu1 %v15002_v10  ;;  %v15054_v10 = vld [vmem:[%s17435_s19 + $0x5c0] sm:$0xff]  }
 0x337   : > { %14312 = vmatpush3.bf16.msra.mxu0 %v15001_v9  ;;  %v15053_v9 = vld [vmem:[%s17435_s19 + $0x500] sm:$0xff]  }
 0x338   : > { %14334 = vmatpush3.bf16.msra.mxu1 %v15003_v11  ;;  %14313 = vmatprep.subr.bf16.mxu0 %v15004_v12  ;;  %v8126_v11 = vld [vmem:[%s18577_s0 + $0xa8] sm:$0xff]  ;;  %v8187_v12 = vld [vmem:[%s18577_s0 + $0x290] sm:$0xff] }
 0x339   : > { %14335 = vmatprep.subr.bf16.mxu1 %v15006_v14  ;;  %v15055_v14 = vld [vmem:[%s17435_s19 + $0x580] sm:$0xff]  }
 0x33b   : > { %14314 = vmatpush3.bf16.msra.mxu0 %v15005_v13  ;;  %v8248_v13 = vpack.c.bf16 %v8187_v12, %v8126_v11  ;;  %v15095_v11 = vld [vmem:[%s17435_s19 + $0x7b0] sm:$0xff]   ;;  %v15096_v12 = vld [vmem:[%s17435_s19 + $0x768] sm:$0xff]  }
 0x33c   : > { %14336 = vmatpush3.bf16.msra.mxu1 %v15007_v15  ;;  %14315 = vmatprep.subr.bf16.mxu0 %v15008_v16  ;;  %v8125_v15 = vld [vmem:[%s18577_s0 + $0xa0] sm:$0xff]  ;;  %v8186_v16 = vld [vmem:[%s18577_s0 + $0x288] sm:$0xff] }
 0x33d   : > { %14337 = vmatprep.subr.bf16.mxu1 %v15010_v18  ;;  %v15056_v18 = vld [vmem:[%s17435_s19 + $0x678] sm:$0xff]  }
 0x33f   : > { %14316 = vmatpush3.bf16.msra.mxu0 %v15009_v17  ;;  %v8247_v17 = vpack.c.bf16 %v8186_v16, %v8125_v15  ;;  %v15099_v15 = vld [vmem:[%s17435_s19 + $0x7a8] sm:$0xff]   ;;  %v15100_v16 = vld [vmem:[%s17435_s19 + $0x760] sm:$0xff]  }
 0x340   : > { %14338 = vmatpush3.bf16.msra.mxu1 %v15011_v19  ;;  %14317 = vmatprep.subr.bf16.mxu0 %v15012_v20  ;;  %v8128_v19 = vld [vmem:[%s18577_s0 + $0xb8] sm:$0xff]  ;;  %v8189_v20 = vld [vmem:[%s18577_s0 + $0x2a0] sm:$0xff] }
 0x341   : > { %14339 = vmatprep.subr.bf16.mxu1 %v15014_v22  ;;  %v15057_v22 = vld [vmem:[%s17435_s19 + $0x638] sm:$0xff]  }
 0x343   : > { %14318 = vmatpush3.bf16.msra.mxu0 %v15013_v21  ;;  %v8250_v21 = vpack.c.bf16 %v8189_v20, %v8128_v19  ;;  %v15103_v19 = vld [vmem:[%s17435_s19 + $0x7a0] sm:$0xff]   ;;  %v15104_v20 = vld [vmem:[%s17435_s19 + $0x758] sm:$0xff]  }
 0x344   : > { %14340 = vmatpush3.bf16.msra.mxu1 %v15015_v23  ;;  %14319 = vmatprep.subr.bf16.mxu0 %v15016_v24  ;;  %v8127_v23 = vld [vmem:[%s18577_s0 + $0xb0] sm:$0xff]  ;;  %v8188_v24 = vld [vmem:[%s18577_s0 + $0x298] sm:$0xff] }
 0x345   : > { %14341 = vmatprep.subr.bf16.mxu1 %v15018_v26  ;;  %v15058_v26 = vld [vmem:[%s17435_s19 + $0x6f8] sm:$0xff]  }
 0x347   : > { %14320 = vmatpush3.bf16.msra.mxu0 %v15017_v25  ;;  %v8249_v25 = vpack.c.bf16 %v8188_v24, %v8127_v23  ;;  %v15107_v23 = vld [vmem:[%s17435_s19 + $0x798] sm:$0xff]   ;;  %v15108_v24 = vld [vmem:[%s17435_s19 + $0x750] sm:$0xff]  }
 0x348   : > { %14342 = vmatpush3.bf16.msra.mxu1 %v15019_v27  ;;  %14321 = vmatprep.subr.bf16.mxu0 %v15020_v28  ;;  %v15059_v27 = vld [vmem:[%s17435_s19 + $0x6b8] sm:$0xff]   ;;  %v15060_v28 = vld [vmem:[%s17435_s19 + $0x670] sm:$0xff]  }
 0x349   : > { %14343 = vmatprep.subr.bf16.mxu1 %v15022_v30  ;;  %v15062_v30 = vld [vmem:[%s17435_s19 + $0x6f0] sm:$0xff]  }
 0x34b   : > { %14322 = vmatpush3.bf16.msra.mxu0 %v15021_v29  ;;  %v15061_v29 = vld [vmem:[%s17435_s19 + $0x630] sm:$0xff]  }
 0x34c   : > { %14344 = vmatpush3.bf16.msra.mxu1 %v15023_v34  ;;  %14351 = vmatprep.subr.bf16.mxu0 %v15024_v38  ;;  %v15066_v34 = vld [vmem:[%s17435_s19 + $0x6e8] sm:$0xff]   ;;  %v15070_v38 = vld [vmem:[%s17435_s19 + $0x6e0] sm:$0xff]  }
 0x34d   : > { %14373 = vmatprep.subr.bf16.mxu1 %v15026_v46  ;;  %v15078_v46 = vld [vmem:[%s17435_s19 + $0x6d0] sm:$0xff]  }
 0x34e   : > { %12553 = vmatmul.mubr.bf16.vlgmr.msra.gmra.mxu0 %v8243_v37  ;;  %v15069_v37 = vld [vmem:[%s17435_s19 + $0x620] sm:$0xff]  }
 0x34f   : > { %14352 = vmatpush3.bf16.msra.mxu0 %v15025_v42  ;;  %12594 = vmatmul.mubr.bf16.vlgmr.msra.gmra.mxu1 %v8245_v45  ;;  %v15074_v42 = vld [vmem:[%s17435_s19 + $0x6d8] sm:$0xff]   ;;  %v15077_v45 = vld [vmem:[%s17435_s19 + $0x610] sm:$0xff]  }
 0x350   : > { %14374 = vmatpush3.bf16.msra.mxu1 %v15027_v47  ;;  %14353 = vmatprep.subr.bf16.mxu0 %v15028_v48  ;;  %v15079_v47 = vld [vmem:[%s17435_s19 + $0x690] sm:$0xff]   ;;  %v15080_v48 = vld [vmem:[%s17435_s19 + $0x648] sm:$0xff]  }
 0x351   : > { %14375 = vmatprep.subr.bf16.mxu1 %v15030_v50  ;;  %12634 = vmatprep.mubr.bf16.mxu0 %v8248_v13  ;;  %v15082_v50 = vld [vmem:[%s17435_s19 + $0x6c8] sm:$0xff]  }
 0x352   : > { %12675 = vmatprep.mubr.bf16.mxu1 %v8250_v21  ;;  %v15097_v13 = vld [vmem:[%s17435_s19 + $0x728] sm:$0xff]   ;;  %v15105_v21 = vld [vmem:[%s17435_s19 + $0x718] sm:$0xff]  }
 0x353   : > { %14354 = vmatpush3.bf16.msra.mxu0 %v15029_v49  ;;  %v15081_v49 = vld [vmem:[%s17435_s19 + $0x608] sm:$0xff]  }
 0x354   : > { %14376 = vmatpush3.bf16.msra.mxu1 %v15031_v51  ;;  %14355 = vmatprep.subr.bf16.mxu0 %v15032_v52  ;;  %v15083_v51 = vld [vmem:[%s17435_s19 + $0x688] sm:$0xff]   ;;  %v15084_v52 = vld [vmem:[%s17435_s19 + $0x640] sm:$0xff]  }
 0x355   : > { %14377 = vmatprep.subr.bf16.mxu1 %v15034_v54  ;;  %v15086_v54 = vld [vmem:[%s17435_s19 + $0x6c0] sm:$0xff]  }
 0x357   : > { %14356 = vmatpush3.bf16.msra.mxu0 %v15033_v53  ;;  %v15085_v53 = vld [vmem:[%s17435_s19 + $0x600] sm:$0xff]  }
 0x358   : > { %14378 = vmatpush3.bf16.msra.mxu1 %v15035_v55  ;;  %14357 = vmatprep.subr.bf16.mxu0 %v15036_v56  ;;  %v8130_v55 = vld [vmem:[%s18577_s0 + $0xc8] sm:$0xff]  ;;  %v8191_v56 = vld [vmem:[%s18577_s0 + $0x2b0] sm:$0xff] }
 0x359   : > { %14379 = vmatprep.subr.bf16.mxu1 %v15038_v58  ;;  %v15087_v58 = vld [vmem:[%s17435_s19 + $0x680] sm:$0xff]  }
 0x35b   : > { %14358 = vmatpush3.bf16.msra.mxu0 %v15037_v57  ;;  %v8252_v57 = vpack.c.bf16 %v8191_v56, %v8130_v55  ;;  %v15127_v55 = vld [vmem:[%s17435_s19 + $0x8b0] sm:$0xff]   ;;  %v15128_v56 = vld [vmem:[%s17435_s19 + $0x868] sm:$0xff]  }
 0x35c   : > { %14380 = vmatpush3.bf16.msra.mxu1 %v15039_v59  ;;  %14359 = vmatprep.subr.bf16.mxu0 %v15040_v60  ;;  %v8129_v59 = vld [vmem:[%s18577_s0 + $0xc0] sm:$0xff]  ;;  %v8190_v60 = vld [vmem:[%s18577_s0 + $0x2a8] sm:$0xff] }
 0x35d   : > { %14381 = vmatprep.subr.bf16.mxu1 %v15042_v62  ;;  %v15088_v62 = vld [vmem:[%s17435_s19 + $0x778] sm:$0xff]  }
 0x35f   : > { %14360 = vmatpush3.bf16.msra.mxu0 %v15041_v61  ;;  %v8251_v61 = vpack.c.bf16 %v8190_v60, %v8129_v59  ;;  %v15131_v59 = vld [vmem:[%s17435_s19 + $0x8a8] sm:$0xff]   ;;  %v15132_v60 = vld [vmem:[%s17435_s19 + $0x860] sm:$0xff]  }
 0x360   : > { %14382 = vmatpush3.bf16.msra.mxu1 %v15043_v63  ;;  %14361 = vmatprep.subr.bf16.mxu0 %v15044_v0  ;;  %v8132_v63 = vld [vmem:[%s18577_s0 + $0xd8] sm:$0xff]  ;;  %v8193_v0 = vld [vmem:[%s18577_s0 + $0x2c0] sm:$0xff] }
 0x361   : > { %14383 = vmatprep.subr.bf16.mxu1 %v15046_v2  ;;  %v15089_v2 = vld [vmem:[%s17435_s19 + $0x738] sm:$0xff]  }
 0x363   : > { %14362 = vmatpush3.bf16.msra.mxu0 %v15045_v1  ;;  %v8254_v1 = vpack.c.bf16 %v8193_v0, %v8132_v63  ;;  %v15135_v63 = vld [vmem:[%s17435_s19 + $0x8a0] sm:$0xff]   ;;  %v15136_v0 = vld [vmem:[%s17435_s19 + $0x858] sm:$0xff]  }
 0x364   : > { %14384 = vmatpush3.bf16.msra.mxu1 %v15047_v3  ;;  %14363 = vmatprep.subr.bf16.mxu0 %v15048_v4  ;;  %v8131_v3 = vld [vmem:[%s18577_s0 + $0xd0] sm:$0xff]  ;;  %v8192_v4 = vld [vmem:[%s18577_s0 + $0x2b8] sm:$0xff] }
 0x365   : > { %14385 = vmatprep.subr.bf16.mxu1 %v15050_v6  ;;  %v15090_v6 = vld [vmem:[%s17435_s19 + $0x7f8] sm:$0xff]  }
 0x367   : > { %14364 = vmatpush3.bf16.msra.mxu0 %v15049_v5  ;;  %v8253_v5 = vpack.c.bf16 %v8192_v4, %v8131_v3  ;;  %v15139_v3 = vld [vmem:[%s17435_s19 + $0x898] sm:$0xff]   ;;  %v15140_v4 = vld [vmem:[%s17435_s19 + $0x850] sm:$0xff]  }
 0x368   : > { %14386 = vmatpush3.bf16.msra.mxu1 %v15051_v7  ;;  %14365 = vmatprep.subr.bf16.mxu0 %v15052_v8  ;;  %v15091_v7 = vld [vmem:[%s17435_s19 + $0x7b8] sm:$0xff]   ;;  %v15092_v8 = vld [vmem:[%s17435_s19 + $0x770] sm:$0xff]  }
 0x369   : > { %14387 = vmatprep.subr.bf16.mxu1 %v15054_v10  ;;  %v15094_v10 = vld [vmem:[%s17435_s19 + $0x7f0] sm:$0xff]  }
 0x36b   : > { %14366 = vmatpush3.bf16.msra.mxu0 %v15053_v9  ;;  %v15093_v9 = vld [vmem:[%s17435_s19 + $0x730] sm:$0xff]  }
 0x36c   : > { %14388 = vmatpush3.bf16.msra.mxu1 %v15055_v14  ;;  %14395 = vmatprep.subr.bf16.mxu0 %v15056_v18  ;;  %v15098_v14 = vld [vmem:[%s17435_s19 + $0x7e8] sm:$0xff]   ;;  %v15102_v18 = vld [vmem:[%s17435_s19 + $0x7e0] sm:$0xff]  }
 0x36d   : > { %14417 = vmatprep.subr.bf16.mxu1 %v15058_v26  ;;  %v15110_v26 = vld [vmem:[%s17435_s19 + $0x7d0] sm:$0xff]  }
 0x36e   : > { %12635 = vmatmul.mubr.bf16.vlgmr.msra.gmra.mxu0 %v8247_v17  ;;  %v15101_v17 = vld [vmem:[%s17435_s19 + $0x720] sm:$0xff]  }
 0x36f   : > { %14396 = vmatpush3.bf16.msra.mxu0 %v15057_v22  ;;  %12676 = vmatmul.mubr.bf16.vlgmr.msra.gmra.mxu1 %v8249_v25  ;;  %v15106_v22 = vld [vmem:[%s17435_s19 + $0x7d8] sm:$0xff]   ;;  %v15109_v25 = vld [vmem:[%s17435_s19 + $0x710] sm:$0xff]  }
 0x370   : > { %14418 = vmatpush3.bf16.msra.mxu1 %v15059_v27  ;;  %14397 = vmatprep.subr.bf16.mxu0 %v15060_v28  ;;  %v15111_v27 = vld [vmem:[%s17435_s19 + $0x790] sm:$0xff]   ;;  %v15112_v28 = vld [vmem:[%s17435_s19 + $0x748] sm:$0xff]  }
 0x371   : > { %14419 = vmatprep.subr.bf16.mxu1 %v15062_v30  ;;  %12716 = vmatprep.mubr.bf16.mxu0 %v8252_v57  ;;  %v15114_v30 = vld [vmem:[%s17435_s19 + $0x7c8] sm:$0xff]  }
 0x372   : > { %12757 = vmatprep.mubr.bf16.mxu1 %v8254_v1  ;;  %v15129_v57 = vld [vmem:[%s17435_s19 + $0x828] sm:$0xff]   ;;  %v15137_v1 = vld [vmem:[%s17435_s19 + $0x818] sm:$0xff]  }
 0x373   : > { %14398 = vmatpush3.bf16.msra.mxu0 %v15061_v29  ;;  %v15113_v29 = vld [vmem:[%s17435_s19 + $0x708] sm:$0xff]  }
 0x374   : > { %14420 = vmatpush3.bf16.msra.mxu1 %v15063_v31  ;;  %14399 = vmatprep.subr.bf16.mxu0 %v15064_v32  ;;  %v15115_v31 = vld [vmem:[%s17435_s19 + $0x788] sm:$0xff]   ;;  %v15116_v32 = vld [vmem:[%s17435_s19 + $0x740] sm:$0xff]  }
 0x375   : > { %14421 = vmatprep.subr.bf16.mxu1 %v15066_v34  ;;  %v15118_v34 = vld [vmem:[%s17435_s19 + $0x7c0] sm:$0xff]  }
 0x377   : > { %14400 = vmatpush3.bf16.msra.mxu0 %v15065_v33  ;;  %v15117_v33 = vld [vmem:[%s17435_s19 + $0x700] sm:$0xff]  }
 0x378   : > { %14422 = vmatpush3.bf16.msra.mxu1 %v15067_v35  ;;  %14401 = vmatprep.subr.bf16.mxu0 %v15068_v36  ;;  %v8134_v35 = vld [vmem:[%s18577_s0 + $0xe8] sm:$0xff]  ;;  %v8195_v36 = vld [vmem:[%s18577_s0 + $0x2d0] sm:$0xff] }
 0x379   : > { %14423 = vmatprep.subr.bf16.mxu1 %v15070_v38  ;;  %v15119_v38 = vld [vmem:[%s17435_s19 + $0x780] sm:$0xff]  }
 0x37b   : > { %14402 = vmatpush3.bf16.msra.mxu0 %v15069_v37  ;;  %v8256_v37 = vpack.c.bf16 %v8195_v36, %v8134_v35  ;;  %v15159_v35 = vld [vmem:[%s17435_s19 + $0x9b0] sm:$0xff]   ;;  %v15160_v36 = vld [vmem:[%s17435_s19 + $0x968] sm:$0xff]  }
 0x37c   : > { %14424 = vmatpush3.bf16.msra.mxu1 %v15071_v39  ;;  %14403 = vmatprep.subr.bf16.mxu0 %v15072_v40  ;;  %v8133_v39 = vld [vmem:[%s18577_s0 + $0xe0] sm:$0xff]  ;;  %v8194_v40 = vld [vmem:[%s18577_s0 + $0x2c8] sm:$0xff] }
 0x37d   : > { %14425 = vmatprep.subr.bf16.mxu1 %v15074_v42  ;;  %v15120_v42 = vld [vmem:[%s17435_s19 + $0x878] sm:$0xff]  }
 0x37f   : > { %14404 = vmatpush3.bf16.msra.mxu0 %v15073_v41  ;;  %v8255_v41 = vpack.c.bf16 %v8194_v40, %v8133_v39  ;;  %v15163_v39 = vld [vmem:[%s17435_s19 + $0x9a8] sm:$0xff]   ;;  %v15164_v40 = vld [vmem:[%s17435_s19 + $0x960] sm:$0xff]  }
 0x380   : > { %14426 = vmatpush3.bf16.msra.mxu1 %v15075_v43  ;;  %14405 = vmatprep.subr.bf16.mxu0 %v15076_v44  ;;  %v8136_v43 = vld [vmem:[%s18577_s0 + $0xf8] sm:$0xff]  ;;  %v8197_v44 = vld [vmem:[%s18577_s0 + $0x2e0] sm:$0xff] }
 0x381   : > { %14427 = vmatprep.subr.bf16.mxu1 %v15078_v46  ;;  %v15121_v46 = vld [vmem:[%s17435_s19 + $0x838] sm:$0xff]  }
 0x383   : > { %14406 = vmatpush3.bf16.msra.mxu0 %v15077_v45  ;;  %v8258_v45 = vpack.c.bf16 %v8197_v44, %v8136_v43  ;;  %v15167_v43 = vld [vmem:[%s17435_s19 + $0x9a0] sm:$0xff]   ;;  %v15168_v44 = vld [vmem:[%s17435_s19 + $0x958] sm:$0xff]  }
 0x384   : > { %14428 = vmatpush3.bf16.msra.mxu1 %v15079_v47  ;;  %14407 = vmatprep.subr.bf16.mxu0 %v15080_v48  ;;  %v8135_v47 = vld [vmem:[%s18577_s0 + $0xf0] sm:$0xff]  ;;  %v8196_v48 = vld [vmem:[%s18577_s0 + $0x2d8] sm:$0xff] }
 0x385   : > { %14429 = vmatprep.subr.bf16.mxu1 %v15082_v50  ;;  %v15122_v50 = vld [vmem:[%s17435_s19 + $0x8f8] sm:$0xff]  }
 0x387   : > { %14408 = vmatpush3.bf16.msra.mxu0 %v15081_v49  ;;  %v8257_v49 = vpack.c.bf16 %v8196_v48, %v8135_v47  ;;  %v15171_v47 = vld [vmem:[%s17435_s19 + $0x998] sm:$0xff]   ;;  %v15172_v48 = vld [vmem:[%s17435_s19 + $0x950] sm:$0xff]  }
 0x388   : > { %14430 = vmatpush3.bf16.msra.mxu1 %v15083_v51  ;;  %14409 = vmatprep.subr.bf16.mxu0 %v15084_v52  ;;  %v15123_v51 = vld [vmem:[%s17435_s19 + $0x8b8] sm:$0xff]   ;;  %v15124_v52 = vld [vmem:[%s17435_s19 + $0x870] sm:$0xff]  }
 0x389   : > { %14431 = vmatprep.subr.bf16.mxu1 %v15086_v54  ;;  %v15126_v54 = vld [vmem:[%s17435_s19 + $0x8f0] sm:$0xff]  }
 0x38b   : > { %14410 = vmatpush3.bf16.msra.mxu0 %v15085_v53  ;;  %v15125_v53 = vld [vmem:[%s17435_s19 + $0x830] sm:$0xff]  }
 0x38c   : > { %14432 = vmatpush3.bf16.msra.mxu1 %v15087_v58  ;;  %14439 = vmatprep.subr.bf16.mxu0 %v15088_v62  ;;  %v15130_v58 = vld [vmem:[%s17435_s19 + $0x8e8] sm:$0xff]   ;;  %v15134_v62 = vld [vmem:[%s17435_s19 + $0x8e0] sm:$0xff]  }
 0x38d   : > { %14461 = vmatprep.subr.bf16.mxu1 %v15090_v6  ;;  %v15142_v6 = vld [vmem:[%s17435_s19 + $0x8d0] sm:$0xff]  }
 0x38e   : > { %12717 = vmatmul.mubr.bf16.vlgmr.msra.gmra.mxu0 %v8251_v61  ;;  %v15133_v61 = vld [vmem:[%s17435_s19 + $0x820] sm:$0xff]  }
 0x38f   : > { %14440 = vmatpush3.bf16.msra.mxu0 %v15089_v2  ;;  %12758 = vmatmul.mubr.bf16.vlgmr.msra.gmra.mxu1 %v8253_v5  ;;  %v15138_v2 = vld [vmem:[%s17435_s19 + $0x8d8] sm:$0xff]   ;;  %v15141_v5 = vld [vmem:[%s17435_s19 + $0x810] sm:$0xff]  }
 0x390   : > { %14462 = vmatpush3.bf16.msra.mxu1 %v15091_v7  ;;  %14441 = vmatprep.subr.bf16.mxu0 %v15092_v8  ;;  %v15143_v7 = vld [vmem:[%s17435_s19 + $0x890] sm:$0xff]   ;;  %v15144_v8 = vld [vmem:[%s17435_s19 + $0x848] sm:$0xff]  }
 0x391   : > { %14463 = vmatprep.subr.bf16.mxu1 %v15094_v10  ;;  %12798 = vmatprep.mubr.bf16.mxu0 %v8256_v37  ;;  %v15146_v10 = vld [vmem:[%s17435_s19 + $0x8c8] sm:$0xff]  }
 0x392   : > { %12839 = vmatprep.mubr.bf16.mxu1 %v8258_v45  ;;  %v15161_v37 = vld [vmem:[%s17435_s19 + $0x928] sm:$0xff]   ;;  %v15169_v45 = vld [vmem:[%s17435_s19 + $0x918] sm:$0xff]  }
 0x393   : > { %14442 = vmatpush3.bf16.msra.mxu0 %v15093_v9  ;;  %v15145_v9 = vld [vmem:[%s17435_s19 + $0x808] sm:$0xff]  }
 0x394   : > { %14464 = vmatpush3.bf16.msra.mxu1 %v15095_v11  ;;  %14443 = vmatprep.subr.bf16.mxu0 %v15096_v12  ;;  %v15147_v11 = vld [vmem:[%s17435_s19 + $0x888] sm:$0xff]   ;;  %v15148_v12 = vld [vmem:[%s17435_s19 + $0x840] sm:$0xff]  }
 0x395   : > { %14465 = vmatprep.subr.bf16.mxu1 %v15098_v14  ;;  %v15150_v14 = vld [vmem:[%s17435_s19 + $0x8c0] sm:$0xff]  }
 0x397   : > { %14444 = vmatpush3.bf16.msra.mxu0 %v15097_v13  ;;  %v15149_v13 = vld [vmem:[%s17435_s19 + $0x800] sm:$0xff]  }
 0x398   : > { %14466 = vmatpush3.bf16.msra.mxu1 %v15099_v15  ;;  %14445 = vmatprep.subr.bf16.mxu0 %v15100_v16  ;;  %v8138_v15 = vld [vmem:[%s18577_s0 + $0x108] sm:$0xff]  ;;  %v8199_v16 = vld [vmem:[%s18577_s0 + $0x2f0] sm:$0xff] }
 0x399   : > { %14467 = vmatprep.subr.bf16.mxu1 %v15102_v18  ;;  %v15151_v18 = vld [vmem:[%s17435_s19 + $0x880] sm:$0xff]  }
 0x39b   : > { %14446 = vmatpush3.bf16.msra.mxu0 %v15101_v17  ;;  %v8260_v17 = vpack.c.bf16 %v8199_v16, %v8138_v15  ;;  %v15191_v15 = vld [vmem:[%s17435_s19 + $0xab0] sm:$0xff]   ;;  %v15192_v16 = vld [vmem:[%s17435_s19 + $0xa68] sm:$0xff]  }
 0x39c   : > { %14468 = vmatpush3.bf16.msra.mxu1 %v15103_v19  ;;  %14447 = vmatprep.subr.bf16.mxu0 %v15104_v20  ;;  %v8137_v19 = vld [vmem:[%s18577_s0 + $0x100] sm:$0xff]  ;;  %v8198_v20 = vld [vmem:[%s18577_s0 + $0x2e8] sm:$0xff] }
 0x39d   : > { %14469 = vmatprep.subr.bf16.mxu1 %v15106_v22  ;;  %v15152_v22 = vld [vmem:[%s17435_s19 + $0x978] sm:$0xff]  }
 0x39f   : > { %14448 = vmatpush3.bf16.msra.mxu0 %v15105_v21  ;;  %v8259_v21 = vpack.c.bf16 %v8198_v20, %v8137_v19  ;;  %v15195_v19 = vld [vmem:[%s17435_s19 + $0xaa8] sm:$0xff]   ;;  %v15196_v20 = vld [vmem:[%s17435_s19 + $0xa60] sm:$0xff]  }
 0x3a0   : > { %14470 = vmatpush3.bf16.msra.mxu1 %v15107_v23  ;;  %14449 = vmatprep.subr.bf16.mxu0 %v15108_v24  ;;  %v8140_v23 = vld [vmem:[%s18577_s0 + $0x118] sm:$0xff]  ;;  %v8201_v24 = vld [vmem:[%s18577_s0 + $0x300] sm:$0xff] }
 0x3a1   : > { %14471 = vmatprep.subr.bf16.mxu1 %v15110_v26  ;;  %v15153_v26 = vld [vmem:[%s17435_s19 + $0x938] sm:$0xff]  }
 0x3a3   : > { %14450 = vmatpush3.bf16.msra.mxu0 %v15109_v25  ;;  %v8262_v25 = vpack.c.bf16 %v8201_v24, %v8140_v23  ;;  %v15199_v23 = vld [vmem:[%s17435_s19 + $0xaa0] sm:$0xff]   ;;  %v15200_v24 = vld [vmem:[%s17435_s19 + $0xa58] sm:$0xff]  }
 0x3a4   : > { %14472 = vmatpush3.bf16.msra.mxu1 %v15111_v27  ;;  %14451 = vmatprep.subr.bf16.mxu0 %v15112_v28  ;;  %v8139_v27 = vld [vmem:[%s18577_s0 + $0x110] sm:$0xff]  ;;  %v8200_v28 = vld [vmem:[%s18577_s0 + $0x2f8] sm:$0xff] }
 0x3a5   : > { %14473 = vmatprep.subr.bf16.mxu1 %v15114_v30  ;;  %v15154_v30 = vld [vmem:[%s17435_s19 + $0x9f8] sm:$0xff]  }
 0x3a7   : > { %14452 = vmatpush3.bf16.msra.mxu0 %v15113_v29  ;;  %v8261_v29 = vpack.c.bf16 %v8200_v28, %v8139_v27  ;;  %v15203_v27 = vld [vmem:[%s17435_s19 + $0xa98] sm:$0xff]   ;;  %v15204_v28 = vld [vmem:[%s17435_s19 + $0xa50] sm:$0xff]  }
 0x3a8   : > { %14474 = vmatpush3.bf16.msra.mxu1 %v15115_v31  ;;  %14453 = vmatprep.subr.bf16.mxu0 %v15116_v32  ;;  %v15155_v31 = vld [vmem:[%s17435_s19 + $0x9b8] sm:$0xff]   ;;  %v15156_v32 = vld [vmem:[%s17435_s19 + $0x970] sm:$0xff]  }
 0x3a9   : > { %14475 = vmatprep.subr.bf16.mxu1 %v15118_v34  ;;  %v15158_v34 = vld [vmem:[%s17435_s19 + $0x9f0] sm:$0xff]  }
 0x3ab   : > { %14454 = vmatpush3.bf16.msra.mxu0 %v15117_v33  ;;  %v15157_v33 = vld [vmem:[%s17435_s19 + $0x930] sm:$0xff]  }
 0x3ac   : > { %14476 = vmatpush3.bf16.msra.mxu1 %v15119_v38  ;;  %14483 = vmatprep.subr.bf16.mxu0 %v15120_v42  ;;  %v15162_v38 = vld [vmem:[%s17435_s19 + $0x9e8] sm:$0xff]   ;;  %v15166_v42 = vld [vmem:[%s17435_s19 + $0x9e0] sm:$0xff]  }
 0x3ad   : > { %14505 = vmatprep.subr.bf16.mxu1 %v15122_v50  ;;  %v15174_v50 = vld [vmem:[%s17435_s19 + $0x9d0] sm:$0xff]  }
 0x3ae   : > { %12799 = vmatmul.mubr.bf16.vlgmr.msra.gmra.mxu0 %v8255_v41  ;;  %v15165_v41 = vld [vmem:[%s17435_s19 + $0x920] sm:$0xff]  }
 0x3af   : > { %14484 = vmatpush3.bf16.msra.mxu0 %v15121_v46  ;;  %12840 = vmatmul.mubr.bf16.vlgmr.msra.gmra.mxu1 %v8257_v49  ;;  %v15170_v46 = vld [vmem:[%s17435_s19 + $0x9d8] sm:$0xff]   ;;  %v15173_v49 = vld [vmem:[%s17435_s19 + $0x910] sm:$0xff]  }
 0x3b0   : > { %14506 = vmatpush3.bf16.msra.mxu1 %v15123_v51  ;;  %14485 = vmatprep.subr.bf16.mxu0 %v15124_v52  ;;  %v15175_v51 = vld [vmem:[%s17435_s19 + $0x990] sm:$0xff]   ;;  %v15176_v52 = vld [vmem:[%s17435_s19 + $0x948] sm:$0xff]  }
 0x3b1   : > { %14507 = vmatprep.subr.bf16.mxu1 %v15126_v54  ;;  %12880 = vmatprep.mubr.bf16.mxu0 %v8260_v17  ;;  %v15178_v54 = vld [vmem:[%s17435_s19 + $0x9c8] sm:$0xff]  }
 0x3b2   : > { %12921 = vmatprep.mubr.bf16.mxu1 %v8262_v25  ;;  %v15193_v17 = vld [vmem:[%s17435_s19 + $0xa28] sm:$0xff]   ;;  %v15201_v25 = vld [vmem:[%s17435_s19 + $0xa18] sm:$0xff]  }
 0x3b3   : > { %14486 = vmatpush3.bf16.msra.mxu0 %v15125_v53  ;;  %v15177_v53 = vld [vmem:[%s17435_s19 + $0x908] sm:$0xff]  }
 0x3b4   : > { %14508 = vmatpush3.bf16.msra.mxu1 %v15127_v55  ;;  %14487 = vmatprep.subr.bf16.mxu0 %v15128_v56  ;;  %v15179_v55 = vld [vmem:[%s17435_s19 + $0x988] sm:$0xff]   ;;  %v15180_v56 = vld [vmem:[%s17435_s19 + $0x940] sm:$0xff]  }
 0x3b5   : > { %14509 = vmatprep.subr.bf16.mxu1 %v15130_v58  ;;  %v15182_v58 = vld [vmem:[%s17435_s19 + $0x9c0] sm:$0xff]  }
 0x3b7   : > { %14488 = vmatpush3.bf16.msra.mxu0 %v15129_v57  ;;  %v15181_v57 = vld [vmem:[%s17435_s19 + $0x900] sm:$0xff]  }
 0x3b8   : > { %14510 = vmatpush3.bf16.msra.mxu1 %v15131_v59  ;;  %14489 = vmatprep.subr.bf16.mxu0 %v15132_v60  ;;  %v8142_v59 = vld [vmem:[%s18577_s0 + $0x128] sm:$0xff]  ;;  %v8203_v60 = vld [vmem:[%s18577_s0 + $0x310] sm:$0xff] }
 0x3b9   : > { %14511 = vmatprep.subr.bf16.mxu1 %v15134_v62  ;;  %v15183_v62 = vld [vmem:[%s17435_s19 + $0x980] sm:$0xff]  }
 0x3bb   : > { %14490 = vmatpush3.bf16.msra.mxu0 %v15133_v61  ;;  %v8264_v61 = vpack.c.bf16 %v8203_v60, %v8142_v59  ;;  %v15223_v59 = vld [vmem:[%s17435_s19 + $0xbb0] sm:$0xff]   ;;  %v15224_v60 = vld [vmem:[%s17435_s19 + $0xb68] sm:$0xff]  }
 0x3bc   : > { %14512 = vmatpush3.bf16.msra.mxu1 %v15135_v63  ;;  %14491 = vmatprep.subr.bf16.mxu0 %v15136_v0  ;;  %v8141_v63 = vld [vmem:[%s18577_s0 + $0x120] sm:$0xff]  ;;  %v8202_v0 = vld [vmem:[%s18577_s0 + $0x308] sm:$0xff] }
 0x3bd   : > { %14513 = vmatprep.subr.bf16.mxu1 %v15138_v2  ;;  %v15184_v2 = vld [vmem:[%s17435_s19 + $0xa78] sm:$0xff]  }
 0x3bf   : > { %14492 = vmatpush3.bf16.msra.mxu0 %v15137_v1  ;;  %v8263_v1 = vpack.c.bf16 %v8202_v0, %v8141_v63  ;;  %v15227_v63 = vld [vmem:[%s17435_s19 + $0xba8] sm:$0xff]   ;;  %v15228_v0 = vld [vmem:[%s17435_s19 + $0xb60] sm:$0xff]  }
 0x3c0   : > { %14514 = vmatpush3.bf16.msra.mxu1 %v15139_v3  ;;  %14493 = vmatprep.subr.bf16.mxu0 %v15140_v4  ;;  %v8144_v3 = vld [vmem:[%s18577_s0 + $0x138] sm:$0xff]  ;;  %v8205_v4 = vld [vmem:[%s18577_s0 + $0x320] sm:$0xff] }
 0x3c1   : > { %14515 = vmatprep.subr.bf16.mxu1 %v15142_v6  ;;  %v15185_v6 = vld [vmem:[%s17435_s19 + $0xa38] sm:$0xff]  }
 0x3c3   : > { %14494 = vmatpush3.bf16.msra.mxu0 %v15141_v5  ;;  %v8266_v5 = vpack.c.bf16 %v8205_v4, %v8144_v3  ;;  %v15231_v3 = vld [vmem:[%s17435_s19 + $0xba0] sm:$0xff]   ;;  %v15232_v4 = vld [vmem:[%s17435_s19 + $0xb58] sm:$0xff]  }
 0x3c4   : > { %14516 = vmatpush3.bf16.msra.mxu1 %v15143_v7  ;;  %14495 = vmatprep.subr.bf16.mxu0 %v15144_v8  ;;  %v8143_v7 = vld [vmem:[%s18577_s0 + $0x130] sm:$0xff]  ;;  %v8204_v8 = vld [vmem:[%s18577_s0 + $0x318] sm:$0xff] }
 0x3c5   : > { %14517 = vmatprep.subr.bf16.mxu1 %v15146_v10  ;;  %v15186_v10 = vld [vmem:[%s17435_s19 + $0xaf8] sm:$0xff]  }
 0x3c7   : > { %14496 = vmatpush3.bf16.msra.mxu0 %v15145_v9  ;;  %v8265_v9 = vpack.c.bf16 %v8204_v8, %v8143_v7  ;;  %v15235_v7 = vld [vmem:[%s17435_s19 + $0xb98] sm:$0xff]   ;;  %v15236_v8 = vld [vmem:[%s17435_s19 + $0xb50] sm:$0xff]  }
 0x3c8   : > { %14518 = vmatpush3.bf16.msra.mxu1 %v15147_v11  ;;  %14497 = vmatprep.subr.bf16.mxu0 %v15148_v12  ;;  %v15187_v11 = vld [vmem:[%s17435_s19 + $0xab8] sm:$0xff]   ;;  %v15188_v12 = vld [vmem:[%s17435_s19 + $0xa70] sm:$0xff]  }
 0x3c9   : > { %14519 = vmatprep.subr.bf16.mxu1 %v15150_v14  ;;  %v15190_v14 = vld [vmem:[%s17435_s19 + $0xaf0] sm:$0xff]  }
 0x3cb   : > { %14498 = vmatpush3.bf16.msra.mxu0 %v15149_v13  ;;  %v15189_v13 = vld [vmem:[%s17435_s19 + $0xa30] sm:$0xff]  }
 0x3cc   : > { %14520 = vmatpush3.bf16.msra.mxu1 %v15151_v18  ;;  %14527 = vmatprep.subr.bf16.mxu0 %v15152_v22  ;;  %v15194_v18 = vld [vmem:[%s17435_s19 + $0xae8] sm:$0xff]   ;;  %v15198_v22 = vld [vmem:[%s17435_s19 + $0xae0] sm:$0xff]  }
 0x3cd   : > { %14549 = vmatprep.subr.bf16.mxu1 %v15154_v30  ;;  %v15206_v30 = vld [vmem:[%s17435_s19 + $0xad0] sm:$0xff]  }
 0x3ce   : > { %12881 = vmatmul.mubr.bf16.vlgmr.msra.gmra.mxu0 %v8259_v21  ;;  %v15197_v21 = vld [vmem:[%s17435_s19 + $0xa20] sm:$0xff]  }
 0x3cf   : > { %14528 = vmatpush3.bf16.msra.mxu0 %v15153_v26  ;;  %12922 = vmatmul.mubr.bf16.vlgmr.msra.gmra.mxu1 %v8261_v29  ;;  %v15202_v26 = vld [vmem:[%s17435_s19 + $0xad8] sm:$0xff]   ;;  %v15205_v29 = vld [vmem:[%s17435_s19 + $0xa10] sm:$0xff]  }
 0x3d0   : > { %14550 = vmatpush3.bf16.msra.mxu1 %v15155_v31  ;;  %14529 = vmatprep.subr.bf16.mxu0 %v15156_v32  ;;  %v15207_v31 = vld [vmem:[%s17435_s19 + $0xa90] sm:$0xff]   ;;  %v15208_v32 = vld [vmem:[%s17435_s19 + $0xa48] sm:$0xff]  }
 0x3d1   : > { %14551 = vmatprep.subr.bf16.mxu1 %v15158_v34  ;;  %12962 = vmatprep.mubr.bf16.mxu0 %v8264_v61  ;;  %v15210_v34 = vld [vmem:[%s17435_s19 + $0xac8] sm:$0xff]  }
 0x3d2   : > { %13003 = vmatprep.mubr.bf16.mxu1 %v8266_v5  ;;  %v15225_v61 = vld [vmem:[%s17435_s19 + $0xb28] sm:$0xff]   ;;  %v15233_v5 = vld [vmem:[%s17435_s19 + $0xb18] sm:$0xff]  }
 0x3d3   : > { %14530 = vmatpush3.bf16.msra.mxu0 %v15157_v33  ;;  %v15209_v33 = vld [vmem:[%s17435_s19 + $0xa08] sm:$0xff]  }
 0x3d4   : > { %14552 = vmatpush3.bf16.msra.mxu1 %v15159_v35  ;;  %14531 = vmatprep.subr.bf16.mxu0 %v15160_v36  ;;  %v15211_v35 = vld [vmem:[%s17435_s19 + $0xa88] sm:$0xff]   ;;  %v15212_v36 = vld [vmem:[%s17435_s19 + $0xa40] sm:$0xff]  }
 0x3d5   : > { %14553 = vmatprep.subr.bf16.mxu1 %v15162_v38  ;;  %v15214_v38 = vld [vmem:[%s17435_s19 + $0xac0] sm:$0xff]  }
 0x3d7   : > { %14532 = vmatpush3.bf16.msra.mxu0 %v15161_v37  ;;  %v15213_v37 = vld [vmem:[%s17435_s19 + $0xa00] sm:$0xff]  }
 0x3d8   : > { %14554 = vmatpush3.bf16.msra.mxu1 %v15163_v39  ;;  %14533 = vmatprep.subr.bf16.mxu0 %v15164_v40  ;;  %v8146_v39 = vld [vmem:[%s18577_s0 + $0x148] sm:$0xff]  ;;  %v8207_v40 = vld [vmem:[%s18577_s0 + $0x330] sm:$0xff] }
 0x3d9   : > { %14555 = vmatprep.subr.bf16.mxu1 %v15166_v42  ;;  %v15215_v42 = vld [vmem:[%s17435_s19 + $0xa80] sm:$0xff]  }
 0x3db   : > { %14534 = vmatpush3.bf16.msra.mxu0 %v15165_v41  ;;  %v8268_v41 = vpack.c.bf16 %v8207_v40, %v8146_v39  ;;  %v15255_v39 = vld [vmem:[%s17435_s19 + $0xcb0] sm:$0xff]   ;;  %v15256_v40 = vld [vmem:[%s17435_s19 + $0xc68] sm:$0xff]  }
 0x3dc   : > { %14556 = vmatpush3.bf16.msra.mxu1 %v15167_v43  ;;  %14535 = vmatprep.subr.bf16.mxu0 %v15168_v44  ;;  %v8145_v43 = vld [vmem:[%s18577_s0 + $0x140] sm:$0xff]  ;;  %v8206_v44 = vld [vmem:[%s18577_s0 + $0x328] sm:$0xff] }
 0x3dd   : > { %14557 = vmatprep.subr.bf16.mxu1 %v15170_v46  ;;  %v15216_v46 = vld [vmem:[%s17435_s19 + $0xb78] sm:$0xff]  }
 0x3df   : > { %14536 = vmatpush3.bf16.msra.mxu0 %v15169_v45  ;;  %v8267_v45 = vpack.c.bf16 %v8206_v44, %v8145_v43  ;;  %v15259_v43 = vld [vmem:[%s17435_s19 + $0xca8] sm:$0xff]   ;;  %v15260_v44 = vld [vmem:[%s17435_s19 + $0xc60] sm:$0xff]  }
 0x3e0   : > { %14558 = vmatpush3.bf16.msra.mxu1 %v15171_v47  ;;  %14537 = vmatprep.subr.bf16.mxu0 %v15172_v48  ;;  %v8148_v47 = vld [vmem:[%s18577_s0 + $0x158] sm:$0xff]  ;;  %v8209_v48 = vld [vmem:[%s18577_s0 + $0x340] sm:$0xff] }
 0x3e1   : > { %14559 = vmatprep.subr.bf16.mxu1 %v15174_v50  ;;  %v15217_v50 = vld [vmem:[%s17435_s19 + $0xb38] sm:$0xff]  }
 0x3e3   : > { %14538 = vmatpush3.bf16.msra.mxu0 %v15173_v49  ;;  %v8270_v49 = vpack.c.bf16 %v8209_v48, %v8148_v47  ;;  %v15263_v47 = vld [vmem:[%s17435_s19 + $0xca0] sm:$0xff]   ;;  %v15264_v48 = vld [vmem:[%s17435_s19 + $0xc58] sm:$0xff]  }
 0x3e4   : > { %14560 = vmatpush3.bf16.msra.mxu1 %v15175_v51  ;;  %14539 = vmatprep.subr.bf16.mxu0 %v15176_v52  ;;  %v8147_v51 = vld [vmem:[%s18577_s0 + $0x150] sm:$0xff]  ;;  %v8208_v52 = vld [vmem:[%s18577_s0 + $0x338] sm:$0xff] }
 0x3e5   : > { %14561 = vmatprep.subr.bf16.mxu1 %v15178_v54  ;;  %v15218_v54 = vld [vmem:[%s17435_s19 + $0xbf8] sm:$0xff]  }
 0x3e7   : > { %14540 = vmatpush3.bf16.msra.mxu0 %v15177_v53  ;;  %v8269_v53 = vpack.c.bf16 %v8208_v52, %v8147_v51  ;;  %v15267_v51 = vld [vmem:[%s17435_s19 + $0xc98] sm:$0xff]   ;;  %v15268_v52 = vld [vmem:[%s17435_s19 + $0xc50] sm:$0xff]  }
 0x3e8   : > { %14562 = vmatpush3.bf16.msra.mxu1 %v15179_v55  ;;  %14541 = vmatprep.subr.bf16.mxu0 %v15180_v56  ;;  %v15219_v55 = vld [vmem:[%s17435_s19 + $0xbb8] sm:$0xff]   ;;  %v15220_v56 = vld [vmem:[%s17435_s19 + $0xb70] sm:$0xff]  }
 0x3e9   : > { %14563 = vmatprep.subr.bf16.mxu1 %v15182_v58  ;;  %v15222_v58 = vld [vmem:[%s17435_s19 + $0xbf0] sm:$0xff]  }
 0x3eb   : > { %14542 = vmatpush3.bf16.msra.mxu0 %v15181_v57  ;;  %v15221_v57 = vld [vmem:[%s17435_s19 + $0xb30] sm:$0xff]  }
 0x3ec   : > { %14564 = vmatpush3.bf16.msra.mxu1 %v15183_v62  ;;  %14571 = vmatprep.subr.bf16.mxu0 %v15184_v2  ;;  %v15226_v62 = vld [vmem:[%s17435_s19 + $0xbe8] sm:$0xff]   ;;  %v15230_v2 = vld [vmem:[%s17435_s19 + $0xbe0] sm:$0xff]  }
 0x3ed   : > { %14593 = vmatprep.subr.bf16.mxu1 %v15186_v10  ;;  %v15238_v10 = vld [vmem:[%s17435_s19 + $0xbd0] sm:$0xff]  }
 0x3ee   : > { %12963 = vmatmul.mubr.bf16.vlgmr.msra.gmra.mxu0 %v8263_v1  ;;  %v15229_v1 = vld [vmem:[%s17435_s19 + $0xb20] sm:$0xff]  }
 0x3ef   : > { %14572 = vmatpush3.bf16.msra.mxu0 %v15185_v6  ;;  %13004 = vmatmul.mubr.bf16.vlgmr.msra.gmra.mxu1 %v8265_v9  ;;  %v15234_v6 = vld [vmem:[%s17435_s19 + $0xbd8] sm:$0xff]   ;;  %v15237_v9 = vld [vmem:[%s17435_s19 + $0xb10] sm:$0xff]  }
 0x3f0   : > { %14594 = vmatpush3.bf16.msra.mxu1 %v15187_v11  ;;  %14573 = vmatprep.subr.bf16.mxu0 %v15188_v12  ;;  %v15239_v11 = vld [vmem:[%s17435_s19 + $0xb90] sm:$0xff]   ;;  %v15240_v12 = vld [vmem:[%s17435_s19 + $0xb48] sm:$0xff]  }
 0x3f1   : > { %14595 = vmatprep.subr.bf16.mxu1 %v15190_v14  ;;  %13044 = vmatprep.mubr.bf16.mxu0 %v8268_v41  ;;  %v15242_v14 = vld [vmem:[%s17435_s19 + $0xbc8] sm:$0xff]  }
 0x3f2   : > { %13085 = vmatprep.mubr.bf16.mxu1 %v8270_v49  ;;  %v15257_v41 = vld [vmem:[%s17435_s19 + $0xc28] sm:$0xff]   ;;  %v15265_v49 = vld [vmem:[%s17435_s19 + $0xc18] sm:$0xff]  }
 0x3f3   : > { %14574 = vmatpush3.bf16.msra.mxu0 %v15189_v13  ;;  %v15241_v13 = vld [vmem:[%s17435_s19 + $0xb08] sm:$0xff]  }
 0x3f4   : > { %14596 = vmatpush3.bf16.msra.mxu1 %v15191_v15  ;;  %14575 = vmatprep.subr.bf16.mxu0 %v15192_v16  ;;  %v15243_v15 = vld [vmem:[%s17435_s19 + $0xb88] sm:$0xff]   ;;  %v15244_v16 = vld [vmem:[%s17435_s19 + $0xb40] sm:$0xff]  }
 0x3f5   : > { %14597 = vmatprep.subr.bf16.mxu1 %v15194_v18  ;;  %v15246_v18 = vld [vmem:[%s17435_s19 + $0xbc0] sm:$0xff]  }
 0x3f7   : > { %14576 = vmatpush3.bf16.msra.mxu0 %v15193_v17  ;;  %v15245_v17 = vld [vmem:[%s17435_s19 + $0xb00] sm:$0xff]  }
 0x3f8   : > { %14598 = vmatpush3.bf16.msra.mxu1 %v15195_v19  ;;  %14577 = vmatprep.subr.bf16.mxu0 %v15196_v20  ;;  %v8150_v19 = vld [vmem:[%s18577_s0 + $0x168] sm:$0xff]  ;;  %v8211_v20 = vld [vmem:[%s18577_s0 + $0x350] sm:$0xff] }
 0x3f9   : > { %14599 = vmatprep.subr.bf16.mxu1 %v15198_v22  ;;  %v15247_v22 = vld [vmem:[%s17435_s19 + $0xb80] sm:$0xff]  }
 0x3fb   : > { %14578 = vmatpush3.bf16.msra.mxu0 %v15197_v21  ;;  %v8272_v21 = vpack.c.bf16 %v8211_v20, %v8150_v19  ;;  %v15287_v19 = vld [vmem:[%s17435_s19 + $0xdb0] sm:$0xff]   ;;  %v15288_v20 = vld [vmem:[%s17435_s19 + $0xd68] sm:$0xff]  }
 0x3fc   : > { %14600 = vmatpush3.bf16.msra.mxu1 %v15199_v23  ;;  %14579 = vmatprep.subr.bf16.mxu0 %v15200_v24  ;;  %v8149_v23 = vld [vmem:[%s18577_s0 + $0x160] sm:$0xff]  ;;  %v8210_v24 = vld [vmem:[%s18577_s0 + $0x348] sm:$0xff] }
 0x3fd   : > { %14601 = vmatprep.subr.bf16.mxu1 %v15202_v26  ;;  %v15248_v26 = vld [vmem:[%s17435_s19 + $0xc78] sm:$0xff]  }
 0x3ff   : > { %14580 = vmatpush3.bf16.msra.mxu0 %v15201_v25  ;;  %v8271_v25 = vpack.c.bf16 %v8210_v24, %v8149_v23  ;;  %v15291_v23 = vld [vmem:[%s17435_s19 + $0xda8] sm:$0xff]   ;;  %v15292_v24 = vld [vmem:[%s17435_s19 + $0xd60] sm:$0xff]  }
 0x400   : > { %14602 = vmatpush3.bf16.msra.mxu1 %v15203_v27  ;;  %14581 = vmatprep.subr.bf16.mxu0 %v15204_v28  ;;  %v8152_v27 = vld [vmem:[%s18577_s0 + $0x178] sm:$0xff]  ;;  %v8213_v28 = vld [vmem:[%s18577_s0 + $0x360] sm:$0xff] }
 0x401   : > { %14603 = vmatprep.subr.bf16.mxu1 %v15206_v30  ;;  %v15249_v30 = vld [vmem:[%s17435_s19 + $0xc38] sm:$0xff]  }
 0x403   : > { %14582 = vmatpush3.bf16.msra.mxu0 %v15205_v29  ;;  %v8274_v29 = vpack.c.bf16 %v8213_v28, %v8152_v27  ;;  %v15295_v27 = vld [vmem:[%s17435_s19 + $0xda0] sm:$0xff]   ;;  %v15296_v28 = vld [vmem:[%s17435_s19 + $0xd58] sm:$0xff]  }
 0x404   : > { %14604 = vmatpush3.bf16.msra.mxu1 %v15207_v31  ;;  %14583 = vmatprep.subr.bf16.mxu0 %v15208_v32  ;;  %v8151_v31 = vld [vmem:[%s18577_s0 + $0x170] sm:$0xff]  ;;  %v8212_v32 = vld [vmem:[%s18577_s0 + $0x358] sm:$0xff] }
 0x405   : > { %14605 = vmatprep.subr.bf16.mxu1 %v15210_v34  ;;  %v15250_v34 = vld [vmem:[%s17435_s19 + $0xcf8] sm:$0xff]  }
 0x407   : > { %14584 = vmatpush3.bf16.msra.mxu0 %v15209_v33  ;;  %v8273_v33 = vpack.c.bf16 %v8212_v32, %v8151_v31  ;;  %v15299_v31 = vld [vmem:[%s17435_s19 + $0xd98] sm:$0xff]   ;;  %v15300_v32 = vld [vmem:[%s17435_s19 + $0xd50] sm:$0xff]  }
 0x408   : > { %14606 = vmatpush3.bf16.msra.mxu1 %v15211_v35  ;;  %14585 = vmatprep.subr.bf16.mxu0 %v15212_v36  ;;  %v15251_v35 = vld [vmem:[%s17435_s19 + $0xcb8] sm:$0xff]   ;;  %v15252_v36 = vld [vmem:[%s17435_s19 + $0xc70] sm:$0xff]  }
 0x409   : > { %14607 = vmatprep.subr.bf16.mxu1 %v15214_v38  ;;  %v15254_v38 = vld [vmem:[%s17435_s19 + $0xcf0] sm:$0xff]  }
 0x40b   : > { %14586 = vmatpush3.bf16.msra.mxu0 %v15213_v37  ;;  %v15253_v37 = vld [vmem:[%s17435_s19 + $0xc30] sm:$0xff]  }
 0x40c   : > { %14608 = vmatpush3.bf16.msra.mxu1 %v15215_v42  ;;  %14615 = vmatprep.subr.bf16.mxu0 %v15216_v46  ;;  %v15258_v42 = vld [vmem:[%s17435_s19 + $0xce8] sm:$0xff]   ;;  %v15262_v46 = vld [vmem:[%s17435_s19 + $0xce0] sm:$0xff]  }
 0x40d   : > { %14637 = vmatprep.subr.bf16.mxu1 %v15218_v54  ;;  %v15270_v54 = vld [vmem:[%s17435_s19 + $0xcd0] sm:$0xff]  }
 0x40e   : > { %13045 = vmatmul.mubr.bf16.vlgmr.msra.gmra.mxu0 %v8267_v45  ;;  %v15261_v45 = vld [vmem:[%s17435_s19 + $0xc20] sm:$0xff]  }
 0x40f   : > { %14616 = vmatpush3.bf16.msra.mxu0 %v15217_v50  ;;  %13086 = vmatmul.mubr.bf16.vlgmr.msra.gmra.mxu1 %v8269_v53  ;;  %v15266_v50 = vld [vmem:[%s17435_s19 + $0xcd8] sm:$0xff]   ;;  %v15269_v53 = vld [vmem:[%s17435_s19 + $0xc10] sm:$0xff]  }
 0x410   : > { %14638 = vmatpush3.bf16.msra.mxu1 %v15219_v55  ;;  %14617 = vmatprep.subr.bf16.mxu0 %v15220_v56  ;;  %v15271_v55 = vld [vmem:[%s17435_s19 + $0xc90] sm:$0xff]   ;;  %v15272_v56 = vld [vmem:[%s17435_s19 + $0xc48] sm:$0xff]  }
 0x411   : > { %14639 = vmatprep.subr.bf16.mxu1 %v15222_v58  ;;  %13126 = vmatprep.mubr.bf16.mxu0 %v8272_v21  ;;  %v15274_v58 = vld [vmem:[%s17435_s19 + $0xcc8] sm:$0xff]  }
 0x412   : > { %13167 = vmatprep.mubr.bf16.mxu1 %v8274_v29  ;;  %v15289_v21 = vld [vmem:[%s17435_s19 + $0xd28] sm:$0xff]   ;;  %v15297_v29 = vld [vmem:[%s17435_s19 + $0xd18] sm:$0xff]  }
 0x413   : > { %14618 = vmatpush3.bf16.msra.mxu0 %v15221_v57  ;;  %v15273_v57 = vld [vmem:[%s17435_s19 + $0xc08] sm:$0xff]  }
 0x414   : > { %14640 = vmatpush3.bf16.msra.mxu1 %v15223_v59  ;;  %14619 = vmatprep.subr.bf16.mxu0 %v15224_v60  ;;  %v15275_v59 = vld [vmem:[%s17435_s19 + $0xc88] sm:$0xff]   ;;  %v15276_v60 = vld [vmem:[%s17435_s19 + $0xc40] sm:$0xff]  }
 0x415   : > { %14641 = vmatprep.subr.bf16.mxu1 %v15226_v62  ;;  %v15278_v62 = vld [vmem:[%s17435_s19 + $0xcc0] sm:$0xff]  }
 0x417   : > { %14620 = vmatpush3.bf16.msra.mxu0 %v15225_v61  ;;  %v15277_v61 = vld [vmem:[%s17435_s19 + $0xc00] sm:$0xff]  }
 0x418   : > { %14642 = vmatpush3.bf16.msra.mxu1 %v15227_v63  ;;  %14621 = vmatprep.subr.bf16.mxu0 %v15228_v0  ;;  %v8154_v63 = vld [vmem:[%s18577_s0 + $0x188] sm:$0xff]  ;;  %v8215_v0 = vld [vmem:[%s18577_s0 + $0x370] sm:$0xff] }
 0x419   : > { %14643 = vmatprep.subr.bf16.mxu1 %v15230_v2  ;;  %v15279_v2 = vld [vmem:[%s17435_s19 + $0xc80] sm:$0xff]  }
 0x41b   : > { %14622 = vmatpush3.bf16.msra.mxu0 %v15229_v1  ;;  %v8276_v1 = vpack.c.bf16 %v8215_v0, %v8154_v63  ;;  %v15319_v63 = vld [vmem:[%s17435_s19 + $0xeb0] sm:$0xff]   ;;  %v15320_v0 = vld [vmem:[%s17435_s19 + $0xe68] sm:$0xff]  }
 0x41c   : > { %14644 = vmatpush3.bf16.msra.mxu1 %v15231_v3  ;;  %14623 = vmatprep.subr.bf16.mxu0 %v15232_v4  ;;  %v8153_v3 = vld [vmem:[%s18577_s0 + $0x180] sm:$0xff]  ;;  %v8214_v4 = vld [vmem:[%s18577_s0 + $0x368] sm:$0xff] }
 0x41d   : > { %14645 = vmatprep.subr.bf16.mxu1 %v15234_v6  ;;  %v15280_v6 = vld [vmem:[%s17435_s19 + $0xd78] sm:$0xff]  }
 0x41f   : > { %14624 = vmatpush3.bf16.msra.mxu0 %v15233_v5  ;;  %v8275_v5 = vpack.c.bf16 %v8214_v4, %v8153_v3  ;;  %v15323_v3 = vld [vmem:[%s17435_s19 + $0xea8] sm:$0xff]   ;;  %v15324_v4 = vld [vmem:[%s17435_s19 + $0xe60] sm:$0xff]  }
 0x420   : > { %14646 = vmatpush3.bf16.msra.mxu1 %v15235_v7  ;;  %14625 = vmatprep.subr.bf16.mxu0 %v15236_v8  ;;  %v8156_v7 = vld [vmem:[%s18577_s0 + $0x198] sm:$0xff]  ;;  %v8217_v8 = vld [vmem:[%s18577_s0 + $0x380] sm:$0xff] }
 0x421   : > { %14647 = vmatprep.subr.bf16.mxu1 %v15238_v10  ;;  %v15281_v10 = vld [vmem:[%s17435_s19 + $0xd38] sm:$0xff]  }
 0x423   : > { %14626 = vmatpush3.bf16.msra.mxu0 %v15237_v9  ;;  %v8278_v9 = vpack.c.bf16 %v8217_v8, %v8156_v7  ;;  %v15327_v7 = vld [vmem:[%s17435_s19 + $0xea0] sm:$0xff]   ;;  %v15328_v8 = vld [vmem:[%s17435_s19 + $0xe58] sm:$0xff]  }
 0x424   : > { %14648 = vmatpush3.bf16.msra.mxu1 %v15239_v11  ;;  %14627 = vmatprep.subr.bf16.mxu0 %v15240_v12  ;;  %v8155_v11 = vld [vmem:[%s18577_s0 + $0x190] sm:$0xff]  ;;  %v8216_v12 = vld [vmem:[%s18577_s0 + $0x378] sm:$0xff] }
 0x425   : > { %14649 = vmatprep.subr.bf16.mxu1 %v15242_v14  ;;  %v15282_v14 = vld [vmem:[%s17435_s19 + $0xdf8] sm:$0xff]  }
 0x427   : > { %14628 = vmatpush3.bf16.msra.mxu0 %v15241_v13  ;;  %v8277_v13 = vpack.c.bf16 %v8216_v12, %v8155_v11  ;;  %v15331_v11 = vld [vmem:[%s17435_s19 + $0xe98] sm:$0xff]   ;;  %v15332_v12 = vld [vmem:[%s17435_s19 + $0xe50] sm:$0xff]  }
 0x428   : > { %14650 = vmatpush3.bf16.msra.mxu1 %v15243_v15  ;;  %14629 = vmatprep.subr.bf16.mxu0 %v15244_v16  ;;  %v15283_v15 = vld [vmem:[%s17435_s19 + $0xdb8] sm:$0xff]   ;;  %v15284_v16 = vld [vmem:[%s17435_s19 + $0xd70] sm:$0xff]  }
 0x429   : > { %14651 = vmatprep.subr.bf16.mxu1 %v15246_v18  ;;  %v15286_v18 = vld [vmem:[%s17435_s19 + $0xdf0] sm:$0xff]  }
 0x42b   : > { %14630 = vmatpush3.bf16.msra.mxu0 %v15245_v17  ;;  %v15285_v17 = vld [vmem:[%s17435_s19 + $0xd30] sm:$0xff]  }
 0x42c   : > { %14652 = vmatpush3.bf16.msra.mxu1 %v15247_v22  ;;  %14659 = vmatprep.subr.bf16.mxu0 %v15248_v26  ;;  %v15290_v22 = vld [vmem:[%s17435_s19 + $0xde8] sm:$0xff]   ;;  %v15294_v26 = vld [vmem:[%s17435_s19 + $0xde0] sm:$0xff]  }
 0x42d   : > { %14681 = vmatprep.subr.bf16.mxu1 %v15250_v34  ;;  %v15302_v34 = vld [vmem:[%s17435_s19 + $0xdd0] sm:$0xff]  }
 0x42e   : > { %13127 = vmatmul.mubr.bf16.vlgmr.msra.gmra.mxu0 %v8271_v25  ;;  %v15293_v25 = vld [vmem:[%s17435_s19 + $0xd20] sm:$0xff]  }
 0x42f   : > { %14660 = vmatpush3.bf16.msra.mxu0 %v15249_v30  ;;  %13168 = vmatmul.mubr.bf16.vlgmr.msra.gmra.mxu1 %v8273_v33  ;;  %v15298_v30 = vld [vmem:[%s17435_s19 + $0xdd8] sm:$0xff]   ;;  %v15301_v33 = vld [vmem:[%s17435_s19 + $0xd10] sm:$0xff]  }
 0x430   : > { %14682 = vmatpush3.bf16.msra.mxu1 %v15251_v35  ;;  %14661 = vmatprep.subr.bf16.mxu0 %v15252_v36  ;;  %v15303_v35 = vld [vmem:[%s17435_s19 + $0xd90] sm:$0xff]   ;;  %v15304_v36 = vld [vmem:[%s17435_s19 + $0xd48] sm:$0xff]  }
 0x431   : > { %14683 = vmatprep.subr.bf16.mxu1 %v15254_v38  ;;  %13208 = vmatprep.mubr.bf16.mxu0 %v8276_v1  ;;  %v15306_v38 = vld [vmem:[%s17435_s19 + $0xdc8] sm:$0xff]  }
 0x432   : > { %13249 = vmatprep.mubr.bf16.mxu1 %v8278_v9  ;;  %v15321_v1 = vld [vmem:[%s17435_s19 + $0xe28] sm:$0xff]   ;;  %v15329_v9 = vld [vmem:[%s17435_s19 + $0xe18] sm:$0xff]  }
 0x433   : > { %14662 = vmatpush3.bf16.msra.mxu0 %v15253_v37  ;;  %v15305_v37 = vld [vmem:[%s17435_s19 + $0xd08] sm:$0xff]  }
 0x434   : > { %14684 = vmatpush3.bf16.msra.mxu1 %v15255_v39  ;;  %14663 = vmatprep.subr.bf16.mxu0 %v15256_v40  ;;  %v15307_v39 = vld [vmem:[%s17435_s19 + $0xd88] sm:$0xff]   ;;  %v15308_v40 = vld [vmem:[%s17435_s19 + $0xd40] sm:$0xff]  }
 0x435   : > { %14685 = vmatprep.subr.bf16.mxu1 %v15258_v42  ;;  %v15310_v42 = vld [vmem:[%s17435_s19 + $0xdc0] sm:$0xff]  }
 0x437   : > { %14664 = vmatpush3.bf16.msra.mxu0 %v15257_v41  ;;  %v15309_v41 = vld [vmem:[%s17435_s19 + $0xd00] sm:$0xff]  }
 0x438   : > { %14686 = vmatpush3.bf16.msra.mxu1 %v15259_v43  ;;  %14665 = vmatprep.subr.bf16.mxu0 %v15260_v44  ;;  %v8158_v43 = vld [vmem:[%s18577_s0 + $0x1a8] sm:$0xff]  ;;  %v8219_v44 = vld [vmem:[%s18577_s0 + $0x390] sm:$0xff] }
 0x439   : > { %14687 = vmatprep.subr.bf16.mxu1 %v15262_v46  ;;  %v15311_v46 = vld [vmem:[%s17435_s19 + $0xd80] sm:$0xff]  }
 0x43b   : > { %14666 = vmatpush3.bf16.msra.mxu0 %v15261_v45  ;;  %v8280_v45 = vpack.c.bf16 %v8219_v44, %v8158_v43  ;;  %v15348_v44 = vld [vmem:[%s17435_s19 + $0xf18] sm:$0xff]  }
 0x43c   : > { %14688 = vmatpush3.bf16.msra.mxu1 %v15263_v47  ;;  %14667 = vmatprep.subr.bf16.mxu0 %v15264_v48  ;;  %v8157_v47 = vld [vmem:[%s18577_s0 + $0x1a0] sm:$0xff]  ;;  %v8218_v48 = vld [vmem:[%s18577_s0 + $0x388] sm:$0xff] }
 0x43d   : > { %14689 = vmatprep.subr.bf16.mxu1 %v15266_v50  ;;  %v15312_v50 = vld [vmem:[%s17435_s19 + $0xe78] sm:$0xff]  }
 0x43f   : > { %14668 = vmatpush3.bf16.msra.mxu0 %v15265_v49  ;;  %v8279_v49 = vpack.c.bf16 %v8218_v48, %v8157_v47  ;;  %v15349_v47 = vld [vmem:[%s17435_s19 + $0xf10] sm:$0xff]  }
 0x440   : > { %14690 = vmatpush3.bf16.msra.mxu1 %v15267_v51  ;;  %14669 = vmatprep.subr.bf16.mxu0 %v15268_v52  ;;  %v8160_v51 = vld [vmem:[%s18577_s0 + $0x1b8] sm:$0xff]  ;;  %v8221_v52 = vld [vmem:[%s18577_s0 + $0x3a0] sm:$0xff] }
 0x441   : > { %14691 = vmatprep.subr.bf16.mxu1 %v15270_v54  ;;  %v15313_v54 = vld [vmem:[%s17435_s19 + $0xe38] sm:$0xff]  }
 0x443   : > { %14670 = vmatpush3.bf16.msra.mxu0 %v15269_v53  ;;  %v8282_v53 = vpack.c.bf16 %v8221_v52, %v8160_v51 }
 0x444   : > { %14692 = vmatpush3.bf16.msra.mxu1 %v15271_v55  ;;  %14671 = vmatprep.subr.bf16.mxu0 %v15272_v56  ;;  %v8159_v55 = vld [vmem:[%s18577_s0 + $0x1b0] sm:$0xff]  ;;  %v8220_v56 = vld [vmem:[%s18577_s0 + $0x398] sm:$0xff] }
 0x445   : > { %14693 = vmatprep.subr.bf16.mxu1 %v15274_v58  ;;  %v15314_v58 = vld [vmem:[%s17435_s19 + $0xef8] sm:$0xff]  }
 0x447   : > { %14672 = vmatpush3.bf16.msra.mxu0 %v15273_v57  ;;  %v8281_v57 = vpack.c.bf16 %v8220_v56, %v8159_v55  ;;  %v8226_v55 = vld [vmem:[%s18577_s0 + $0x3c8] sm:$0xff] }
 0x448   : > { %14694 = vmatpush3.bf16.msra.mxu1 %v15275_v59  ;;  %14673 = vmatprep.subr.bf16.mxu0 %v15276_v60  ;;  %v15315_v59 = vld [vmem:[%s17435_s19 + $0xeb8] sm:$0xff]   ;;  %v15316_v60 = vld [vmem:[%s17435_s19 + $0xe70] sm:$0xff]  }
 0x449   : > { %14695 = vmatprep.subr.bf16.mxu1 %v15278_v62  ;;  %v15318_v62 = vld [vmem:[%s17435_s19 + $0xef0] sm:$0xff]  }
 0x44b   : > { %14674 = vmatpush3.bf16.msra.mxu0 %v15277_v61  ;;  %v15317_v61 = vld [vmem:[%s17435_s19 + $0xe30] sm:$0xff]  }
 0x44c   : > { %14696 = vmatpush3.bf16.msra.mxu1 %v15279_v2  ;;  %14703 = vmatprep.subr.bf16.mxu0 %v15280_v6  ;;  %v15322_v2 = vld [vmem:[%s17435_s19 + $0xee8] sm:$0xff]   ;;  %v15326_v6 = vld [vmem:[%s17435_s19 + $0xee0] sm:$0xff]  }
 0x44d   : > { %14725 = vmatprep.subr.bf16.mxu1 %v15282_v14  ;;  %v15334_v14 = vld [vmem:[%s17435_s19 + $0xed0] sm:$0xff]  }
 0x44e   : > { %13209 = vmatmul.mubr.bf16.vlgmr.msra.gmra.mxu0 %v8275_v5  ;;  %v15325_v5 = vld [vmem:[%s17435_s19 + $0xe20] sm:$0xff]  }
 0x44f   : > { %14704 = vmatpush3.bf16.msra.mxu0 %v15281_v10  ;;  %13250 = vmatmul.mubr.bf16.vlgmr.msra.gmra.mxu1 %v8277_v13  ;;  %v15330_v10 = vld [vmem:[%s17435_s19 + $0xed8] sm:$0xff]   ;;  %v15333_v13 = vld [vmem:[%s17435_s19 + $0xe10] sm:$0xff]  }
 0x450   : > { %14726 = vmatpush3.bf16.msra.mxu1 %v15283_v15  ;;  %14705 = vmatprep.subr.bf16.mxu0 %v15284_v16  ;;  %v15335_v15 = vld [vmem:[%s17435_s19 + $0xe90] sm:$0xff]   ;;  %v15336_v16 = vld [vmem:[%s17435_s19 + $0xe48] sm:$0xff]  }
 0x451   : > { %14727 = vmatprep.subr.bf16.mxu1 %v15286_v18  ;;  %13290 = vmatprep.mubr.bf16.mxu0 %v8280_v45  ;;  %v15338_v18 = vld [vmem:[%s17435_s19 + $0xec8] sm:$0xff]  }
 0x452   : > { %13331 = vmatprep.mubr.bf16.mxu1 %v8282_v53  ;;  %v15351_v53 = vld [vmem:[%s17435_s19 + $0xf00] sm:$0xff]  }
 0x453   : > { %14706 = vmatpush3.bf16.msra.mxu0 %v15285_v17  ;;  %v15337_v17 = vld [vmem:[%s17435_s19 + $0xe08] sm:$0xff]  }
 0x454   : > { %14728 = vmatpush3.bf16.msra.mxu1 %v15287_v19  ;;  %14707 = vmatprep.subr.bf16.mxu0 %v15288_v20  ;;  %v15339_v19 = vld [vmem:[%s17435_s19 + $0xe88] sm:$0xff]   ;;  %v15340_v20 = vld [vmem:[%s17435_s19 + $0xe40] sm:$0xff]  }
 0x455   : > { %14729 = vmatprep.subr.bf16.mxu1 %v15290_v22  ;;  %v15342_v22 = vld [vmem:[%s17435_s19 + $0xec0] sm:$0xff]  }
 0x457   : > { %14708 = vmatpush3.bf16.msra.mxu0 %v15289_v21  ;;  %v15341_v21 = vld [vmem:[%s17435_s19 + $0xe00] sm:$0xff]  }
 0x458   : > { %14730 = vmatpush3.bf16.msra.mxu1 %v15291_v23  ;;  %14709 = vmatprep.subr.bf16.mxu0 %v15292_v24  ;;  %v8162_v23 = vld [vmem:[%s18577_s0 + $0x1c8] sm:$0xff]  ;;  %v8223_v24 = vld [vmem:[%s18577_s0 + $0x3b0] sm:$0xff] }
 0x459   : > { %14731 = vmatprep.subr.bf16.mxu1 %v15294_v26  ;;  %v15343_v26 = vld [vmem:[%s17435_s19 + $0xe80] sm:$0xff]  }
 0x45b   : > { %14710 = vmatpush3.bf16.msra.mxu0 %v15293_v25  ;;  %v8284_v25 = vpack.c.bf16 %v8223_v24, %v8162_v23 }
 0x45c   : > { %14732 = vmatpush3.bf16.msra.mxu1 %v15295_v27  ;;  %14711 = vmatprep.subr.bf16.mxu0 %v15296_v28  ;;  %v8161_v27 = vld [vmem:[%s18577_s0 + $0x1c0] sm:$0xff]  ;;  %v8222_v28 = vld [vmem:[%s18577_s0 + $0x3a8] sm:$0xff] }
 0x45d   : > { %14733 = vmatprep.subr.bf16.mxu1 %v15298_v30  ;;  %v8164_v30 = vld [vmem:[%s18577_s0 + $0x1d8] sm:$0xff] }
 0x45f   : > { %14712 = vmatpush3.bf16.msra.mxu0 %v15297_v29  ;;  %v15392_v29 = vmov 0.0  }
 0x460   : > { %14734 = vmatpush3.bf16.msra.mxu1 %v15299_v31  ;;  %14713 = vmatprep.subr.bf16.mxu0 %v15300_v32  ;;  %v8283_v31 = vpack.c.bf16 %v8222_v28, %v8161_v27  ;;  %v8225_v32 = vld [vmem:[%s18577_s0 + $0x3c0] sm:$0xff] }
 0x461   : > { %14735 = vmatprep.subr.bf16.mxu1 %v15302_v34  ;;  %v15344_v34 = vld [vmem:[%s17435_s19 + $0xf38] sm:$0xff]  }
 0x463   : > { %14714 = vmatpush3.bf16.msra.mxu0 %v15301_v33  ;;  %v8286_v33 = vpack.c.bf16 %v8225_v32, %v8164_v30 }
 0x464   : > { %14736 = vmatpush3.bf16.msra.mxu1 %v15303_v35  ;;  %14715 = vmatprep.subr.bf16.mxu0 %v15304_v36  ;;  %v8163_v35 = vld [vmem:[%s18577_s0 + $0x1d0] sm:$0xff]  ;;  %v8224_v36 = vld [vmem:[%s18577_s0 + $0x3b8] sm:$0xff] }
 0x465   : > { %14737 = vmatprep.subr.bf16.mxu1 %v15306_v38  ;;  %v15345_v38 = vld [vmem:[%s17435_s19 + $0xf30] sm:$0xff]  }
 0x467   : > { %14716 = vmatpush3.bf16.msra.mxu0 %v15305_v37  ;;  %v8285_v37 = vpack.c.bf16 %v8224_v36, %v8163_v35 }
 0x468   : > { %14738 = vmatpush3.bf16.msra.mxu1 %v15307_v39  ;;  %14717 = vmatprep.subr.bf16.mxu0 %v15308_v40  ;;  %v15346_v39 = vld [vmem:[%s17435_s19 + $0xf28] sm:$0xff]   ;;  %v18268_v40 = vpop.f32.mrf.mxu0 }
 0x469   : > { %14739 = vmatprep.subr.bf16.mxu1 %v15310_v42  ;;  %v18271_v42 = vpop.f32.mrf.mxu1 }
 0x46a   : > { %v18273_v43 = vpop.f32.mrf.mxu0 }
 0x46b   : > { %14718 = vmatpush3.bf16.msra.mxu0 %v15309_v41  ;;  %v15347_v41 = vld [vmem:[%s17435_s19 + $0xf20] sm:$0xff]   ;;  %v18276_v45 = vpop.f32.mrf.mxu1 }
 0x46c   : > { %14740 = vmatpush3.bf16.msra.mxu1 %v15311_v46  ;;  %14747 = vmatprep.subr.bf16.mxu0 %v15312_v50  ;;  %v18278_v46 = vpop.f32.mrf.mxu0  ;;  %v15350_v50 = vld [vmem:[%s17435_s19 + $0xf08] sm:$0xff]   ;;  %s8094_s19 = scalar_select %p8093_p11, %s15382_s14, 3 }
 0x46d   : > { %14769 = vmatprep.subr.bf16.mxu1 %v15314_v58  ;;  %v18281_v48 = vpop.f32.mrf.mxu1 }
 0x46e   : > { %13291 = vmatmul.mubr.bf16.vlgmr.msra.gmra.mxu0 %v8279_v49  ;;  %v18283_v49 = vpop.f32.mrf.mxu0  ;;  %s8095_s20 = scalar_lea.vmem %s18579_s2, %s8094_s19 }
 0x46f   : > { %14748 = vmatpush3.bf16.msra.mxu0 %v15313_v54  ;;  %13332 = vmatmul.mubr.bf16.vlgmr.msra.gmra.mxu1 %v8281_v57  ;;  %v18288_v52 = vpop.f32.mrf.mxu1  ;;  %v8165_v54 = vld [vmem:[%s18577_s0 + $0x1e0] sm:$0xff] }
 0x470   : > { %14770 = vmatpush3.bf16.msra.mxu1 %v15315_v59  ;;  %14749 = vmatprep.subr.bf16.mxu0 %v15316_v60  ;;  %v18286_v51 = vpop.f32.mrf.mxu0  ;;  %v8287_v58 = vpack.c.bf16 %v8226_v55, %v8165_v54 }
 0x471   : > { %14771 = vmatprep.subr.bf16.mxu1 %v15318_v62  ;;  %13372 = vmatprep.mubr.bf16.mxu0 %v8284_v25  ;;  %v18299_v57 = vpop.f32.mrf.mxu1 }
 0x472   : > { %13413 = vmatprep.mubr.bf16.mxu1 %v8286_v33  ;;  %v18297_v56 = vpop.f32.mrf.mxu0 }
 0x473   : > { %14750 = vmatpush3.bf16.msra.mxu0 %v15317_v61  ;;  %v18303_v60 = vpop.f32.mrf.mxu1 }
 0x474   : > { %14772 = vmatpush3.bf16.msra.mxu1 %v15319_v63  ;;  %14751 = vmatprep.subr.bf16.mxu0 %v15320_v0  ;;  %v18301_v59 = vpop.f32.mrf.mxu0 }
 0x475   : > { %14773 = vmatprep.subr.bf16.mxu1 %v15322_v2  ;;  %v18307_v62 = vpop.f32.mrf.mxu1 }
 0x476   : > { %v18305_v61 = vpop.f32.mrf.mxu0 }
 0x477   : > { %14752 = vmatpush3.bf16.msra.mxu0 %v15321_v1  ;;  %v18311_v0 = vpop.f32.mrf.mxu1 }
 0x478   : > { %14774 = vmatpush3.bf16.msra.mxu1 %v15323_v3  ;;  %14753 = vmatprep.subr.bf16.mxu0 %v15324_v4  ;;  %v18309_v63 = vpop.f32.mrf.mxu0 }
 0x479   : > { %14775 = vmatprep.subr.bf16.mxu1 %v15326_v6  ;;  %v18315_v2 = vpop.f32.mrf.mxu1 }
 0x47a   : > { %v18313_v1 = vpop.f32.mrf.mxu0 }
 0x47b   : > { %14754 = vmatpush3.bf16.msra.mxu0 %v15325_v5  ;;  %v18319_v4 = vpop.f32.mrf.mxu1 }
 0x47c   : > { %14776 = vmatpush3.bf16.msra.mxu1 %v15327_v7  ;;  %14755 = vmatprep.subr.bf16.mxu0 %v15328_v8  ;;  %v18317_v3 = vpop.f32.mrf.mxu0 }
 0x47d   : > { %14777 = vmatprep.subr.bf16.mxu1 %v15330_v10  ;;  %v18323_v6 = vpop.f32.mrf.mxu1 }
 0x47e   : > { %v18321_v5 = vpop.f32.mrf.mxu0 }
 0x47f   : > { %14756 = vmatpush3.bf16.msra.mxu0 %v15329_v9  ;;  %v18327_v8 = vpop.f32.mrf.mxu1 }
 0x480   : > { %14778 = vmatpush3.bf16.msra.mxu1 %v15331_v11  ;;  %14757 = vmatprep.subr.bf16.mxu0 %v15332_v12  ;;  %v18325_v7 = vpop.f32.mrf.mxu0 }
 0x481   : > { %14779 = vmatprep.subr.bf16.mxu1 %v15334_v14  ;;  %v18331_v10 = vpop.f32.mrf.mxu1 }
 0x482   : > { %v18329_v9 = vpop.f32.mrf.mxu0 }
 0x483   : > { %14758 = vmatpush3.bf16.msra.mxu0 %v15333_v13  ;;  %v18335_v12 = vpop.f32.mrf.mxu1 }
 0x484   : > { %14780 = vmatpush3.bf16.msra.mxu1 %v15335_v15  ;;  %14759 = vmatprep.subr.bf16.mxu0 %v15336_v16  ;;  %v18333_v11 = vpop.f32.mrf.mxu0 }
 0x485   : > { %14781 = vmatprep.subr.bf16.mxu1 %v15338_v18  ;;  %v18339_v14 = vpop.f32.mrf.mxu1 }
 0x486   : > { %v18337_v13 = vpop.f32.mrf.mxu0 }
 0x487   : > { %14760 = vmatpush3.bf16.msra.mxu0 %v15337_v17  ;;  %v18343_v16 = vpop.f32.mrf.mxu1 }
 0x488   : > { %14782 = vmatpush3.bf16.msra.mxu1 %v15339_v19  ;;  %14761 = vmatprep.subr.bf16.mxu0 %v15340_v20  ;;  %v18341_v15 = vpop.f32.mrf.mxu0 }
 0x489   : > { %14783 = vmatprep.subr.bf16.mxu1 %v15342_v22  ;;  %v18347_v18 = vpop.f32.mrf.mxu1 }
 0x48a   : > { %v18345_v17 = vpop.f32.mrf.mxu0 }
 0x48b   : > { %14762 = vmatpush3.bf16.msra.mxu0 %v15341_v21  ;;  %v18351_v20 = vpop.f32.mrf.mxu1 }
 0x48c   : > { %14800 = vmatprep.subr.bf16.mxu0 %v15392_v29  ;;  %14784 = vmatpush3.bf16.msra.mxu1 %v15343_v26  ;;  %v18349_v19 = vpop.f32.mrf.mxu0 }
 0x48d   : > { %v18355_v22 = vpop.f32.mrf.mxu1 }
 0x48e   : > { %13373 = vmatmul.mubr.bf16.vlgmr.msra.gmra.mxu0 %v8283_v31  ;;  %v18353_v21 = vpop.f32.mrf.mxu0 }
 0x48f   : > { %14801 = vmatpush3.bf16.msra.mxu0 %v15344_v34  ;;  %13414 = vmatmul.mubr.bf16.vlgmr.msra.gmra.mxu1 %v8285_v37  ;;  %v18359_v24 = vpop.f32.mrf.mxu1 }
 0x490   : > { %14802 = vmatprep.subr.bf16.mxu0 %v15392_v29  ;;  %14816 = vmatprep.mubr.msk.bf16.mxu0 %vm15393_vm0, %v15392_v29  ;;  %v18357_v23 = vpop.f32.mrf.mxu0 }
 0x491   : > { %v18363_v26 = vpop.f32.mrf.mxu1 }
 0x492   : > { %v18361_v25 = vpop.f32.mrf.mxu0 }
 0x493   : > { %14803 = vmatpush3.bf16.msra.mxu0 %v15345_v38  ;;  %v18367_v28 = vpop.f32.mrf.mxu1 }
 0x494   : > { %14804 = vmatprep.subr.bf16.mxu0 %v15392_v29  ;;  %v18365_v27 = vpop.f32.mrf.mxu0 }
 0x495   : > { %v18371_v30 = vpop.f32.mrf.mxu1 }
 0x497   : > { %14805 = vmatpush3.bf16.msra.mxu0 %v15346_v39  ;;  %v18375_v32 = vpop.f32.mrf.mxu1 }
 0x498   : > { %14806 = vmatprep.subr.bf16.mxu0 %v15392_v29 }
 0x499   : > { %v18379_v34 = vpop.f32.mrf.mxu1 }
 0x49b   : > { %14807 = vmatpush3.bf16.msra.mxu0 %v15347_v41  ;;  %v18383_v36 = vpop.f32.mrf.mxu1 }
 0x49c   : > { %14808 = vmatprep.subr.bf16.mxu0 %v15392_v29 }
 0x49d   : > { %v18387_v38 = vpop.f32.mrf.mxu1 }
 0x49e   : > { %18583 = vst [vmem:[#allocation6_spill] sm:$0xff] %v18387_v38 }
 0x49f   : > { %14809 = vmatpush3.bf16.msra.mxu0 %v15348_v44  ;;  %v18391_v41 = vpop.f32.mrf.mxu1 }
 0x4a0   : > { %14810 = vmatprep.subr.bf16.mxu0 %v15392_v29  ;;  %18585 = vst [vmem:[#allocation8_spill] sm:$0xff] %v18391_v41 }
 0x4a3   : > { %14811 = vmatpush3.bf16.msra.mxu0 %v15349_v47  ;;  %v18395_v47 = vpop.f32.mrf.mxu1 }
 0x4a4   : > { %14812 = vmatprep.subr.bf16.mxu0 %v15392_v29  ;;  %18587 = vst [vmem:[#allocation10_spill] sm:$0xff] %v18395_v47 }
 0x4a7   : > { %14813 = vmatpush3.bf16.msra.mxu0 %v15350_v50 }
 0x4a8   : > { %14814 = vmatprep.subr.bf16.mxu0 %v15392_v29  ;;  %v18369_v29 = vpop.f32.mrf.mxu0 }
 0x4aa   : > { %v18373_v31 = vpop.f32.mrf.mxu0 }
 0x4ab   : > { %14815 = vmatpush3.bf16.msra.mxu0 %v15351_v53  ;;  %v18399_v53 = vpop.f32.mrf.mxu1 }
 0x4ac   : > { %v18377_v33 = vpop.f32.mrf.mxu0  ;;  %18589 = vst [vmem:[#allocation12_spill] sm:$0xff] %v18399_v53 }
 0x4ad   : > { %v18403_v55 = vpop.f32.mrf.mxu1 }
 0x4ae   : > { %14817 = vmatmul.mubr.bf16.vlgmr.msra.gmra.mxu0 %v8287_v58  ;;  %v18381_v35 = vpop.f32.mrf.mxu0  ;;  %18590 = vst [vmem:[#allocation13_spill] sm:$0xff] %v18403_v55  ;;  %v14149_v55 = vadd.f32 %v18273_v43, %v18268_v40  ;;  %v14196_v43 = vadd.f32 %v18305_v61, %v18301_v59  ;;  %v14259_v59 = vadd.f32 %v18319_v4, %v18315_v2 }
 0x4af   : > { %v14284_v4 = vadd.f32 %v18337_v13, %v18333_v11  ;;  %v14328_v11 = vadd.f32 %v18353_v21, %v18349_v19  ;;  %v14391_v19 = vadd.f32 %v18367_v28, %v18363_v26  ;;  %v14435_v26 = vadd.f32 %v18383_v36, %v18379_v34 }
 0x4b0   : > { %v18385_v37 = vpop.f32.mrf.mxu0 }
 0x4b1   : > { %18582 = vst [vmem:[#allocation5_spill] sm:$0xff] %v18385_v37  ;;  %v18407_v37 = vpop.f32.mrf.mxu1 }
 0x4b2   : > { %v18389_v39 = vpop.f32.mrf.mxu0  ;;  %18592 = vst [vmem:[#allocation15_spill] sm:$0xff] %v18407_v37  ;;  %v14171_v37 = vadd.f32 %v18276_v45, %v18271_v42  ;;  %v14215_v42 = vadd.f32 %v18303_v60, %v18299_v57  ;;  %v14240_v60 = vadd.f32 %v18321_v5, %v18317_v3  ;;  %v14303_v3 = vadd.f32 %v18335_v12, %v18331_v10 }
 0x4b3   : > { %18584 = vst [vmem:[#allocation7_spill] sm:$0xff] %v18389_v39  ;;  %v18411_v39 = vpop.f32.mrf.mxu1  ;;  %v14347_v10 = vadd.f32 %v18351_v20, %v18347_v18  ;;  %v14372_v20 = vadd.f32 %v18369_v29, %v18365_v27 }
 0x4b4   : > { %v18393_v44 = vpop.f32.mrf.mxu0  ;;  %18593 = vst [vmem:[#allocation16_spill] sm:$0xff] %v18411_v39  ;;  %v14193_v39 = vadd.f32 %v18297_v56, %v18286_v51 }
 0x4b5   : > { %18586 = vst [vmem:[#allocation9_spill] sm:$0xff] %v18393_v44  ;;  %v18415_v44 = vpop.f32.mrf.mxu1 }
 0x4b6   : > { %v18397_v50 = vpop.f32.mrf.mxu0  ;;  %18595 = vst [vmem:[#allocation18_spill] sm:$0xff] %v18415_v44 }
 0x4b7   : > { %18588 = vst [vmem:[#allocation11_spill] sm:$0xff] %v18397_v50  ;;  %v18419_v50 = vpop.f32.mrf.mxu1 }
 0x4b8   : > { %v18401_v54 = vpop.f32.mrf.mxu0  ;;  %18597 = vst [vmem:[#allocation20_spill] sm:$0xff] %v18419_v50  ;;  %v14152_v50 = vadd.f32 %v18283_v49, %v18278_v46  ;;  %v18599_v27 = vld [vmem:[#allocation5_spill] sm:$0xff] }
 0x4b9   : > { %v14416_v28 = vadd.f32 %v18599_v27, %v18381_v35 }
 0x4ba   : > { %v18405_v58 = vpop.f32.mrf.mxu0 }
 0x4bb   : > { %18591 = vst [vmem:[#allocation14_spill] sm:$0xff] %v18405_v58  ;;  %v18427_v58 = vpop.f32.mrf.mxu1 }
 0x4bc   : > { %v18409_v38 = vpop.f32.mrf.mxu0 }
 0x4bd   : > { %v18433_v44 = vpop.f32.mrf.mxu1 }
 0x4be   : > { %v18413_v41 = vpop.f32.mrf.mxu0  ;;  %v18606_v34 = vld [vmem:[#allocation11_spill] sm:$0xff] }
 0x4bf   : > { %18594 = vst [vmem:[#allocation17_spill] sm:$0xff] %v18413_v41  ;;  %v18445_v51 = vpop.f32.mrf.mxu1  ;;  %v14460_v36 = vadd.f32 %v18401_v54, %v18606_v34 }
 0x4c0   : > { %v18417_v47 = vpop.f32.mrf.mxu0 }
 0x4c1   : > { %18596 = vst [vmem:[#allocation19_spill] sm:$0xff] %v18417_v47  ;;  %v12268_v47 = vadd.f32 %v14171_v37, %v14149_v55  ;;  %v14237_v37 = vadd.f32 %v18313_v1, %v18309_v63  ;;  %v14281_v63 = vadd.f32 %v18329_v9, %v18325_v7  ;;  %v14325_v7 = vadd.f32 %v18345_v17, %v18341_v15 }
 0x4c2   : > { %v18421_v53 = vpop.f32.mrf.mxu0  ;;  %v14369_v17 = vadd.f32 %v18361_v25, %v18357_v23  ;;  %v14413_v25 = vadd.f32 %v18377_v33, %v18373_v31 }
 0x4c3   : > { %18598 = vst [vmem:[#allocation21_spill] sm:$0xff] %v18421_v53  ;;  %v14174_v53 = vadd.f32 %v18288_v52, %v18281_v48  ;;  %v12309_v40 = vadd.f32 %v14193_v39, %v12268_v47  ;;  %v14218_v48 = vadd.f32 %v18311_v0, %v18307_v62  ;;  %v18453_v52 = vpop.f32.mrf.mxu1  ;;  %v14262_v47 = vadd.f32 %v18327_v8, %v18323_v6 }
 0x4c4   : > { %v18431_v41 = vpop.f32.mrf.mxu0 }
 0x4c5   : > { %v12271_v56 = vadd.f32 %v14174_v53, %v14152_v50  ;;  %v12350_v55 = vadd.f32 %v14215_v42, %v12309_v40  ;;  %v18463_v1 = vpop.f32.mrf.mxu1  ;;  %v14306_v42 = vadd.f32 %v18343_v16, %v18339_v14  ;;  %v14350_v14 = vadd.f32 %v18359_v24, %v18355_v22 }
 0x4c6   : > { %v18443_v45 = vpop.f32.mrf.mxu0  ;;  %v14394_v22 = vadd.f32 %v18375_v32, %v18371_v30 }
 0x4c7   : > { %v12312_v46 = vadd.f32 %v14196_v43, %v12271_v56  ;;  %v12391_v57 = vadd.f32 %v14237_v37, %v12350_v55 }
 0x4c8   : > { %v18451_v49 = vpop.f32.mrf.mxu0 }
 0x4c9   : > { %v12353_v39 = vadd.f32 %v14218_v48, %v12312_v46  ;;  %v12432_v62 = vadd.f32 %v14259_v59, %v12391_v57 }
 0x4cb   : > { %v12394_v0 = vadd.f32 %v14240_v60, %v12353_v39  ;;  %v12473_v2 = vadd.f32 %v14281_v63, %v12432_v62  ;;  %v18600_v39 = vld [vmem:[#allocation7_spill] sm:$0xff]  ;;  %v18601_v63 = vld [vmem:[#allocation9_spill] sm:$0xff] }
 0x4cc   : > { %v14457_v62 = vadd.f32 %v18601_v63, %v18600_v39 }
 0x4cd   : > { %v12435_v5 = vadd.f32 %v14262_v47, %v12394_v0  ;;  %v12514_v6 = vadd.f32 %v14303_v3, %v12473_v2  ;;  %v18602_v2 = vld [vmem:[#allocation6_spill] sm:$0xff]  ;;  %v18603_v3 = vld [vmem:[#allocation8_spill] sm:$0xff] }
 0x4ce   : > { %v18459_v61 = vpop.f32.mrf.mxu0  ;;  %v14438_v30 = vadd.f32 %v18603_v3, %v18602_v2  ;;  %v14548_v2 = vadd.f32 %v18451_v49, %v18443_v45 }
 0x4cf   : > { %v18469_v53 = vpop.f32.mrf.mxu1  ;;  %v12476_v8 = vadd.f32 %v14284_v4, %v12435_v5  ;;  %v12555_v43 = vadd.f32 %v14325_v7, %v12514_v6  ;;  %v18604_v5 = vld [vmem:[#allocation10_spill] sm:$0xff]  ;;  %v18605_v7 = vld [vmem:[#allocation12_spill] sm:$0xff] }
 0x4d0   : > { %v18467_v50 = vpop.f32.mrf.mxu0  ;;  %v14479_v6 = vadd.f32 %v18605_v7, %v18604_v5 }
 0x4d1   : > { %v18479_v40 = vpop.f32.mrf.mxu1  ;;  %v12517_v15 = vadd.f32 %v14306_v42, %v12476_v8  ;;  %v12596_v37 = vadd.f32 %v14347_v10, %v12555_v43  ;;  %v18607_v42 = vld [vmem:[#allocation14_spill] sm:$0xff] }
 0x4d2   : > { %v18477_v9 = vpop.f32.mrf.mxu0  ;;  %v14501_v43 = vadd.f32 %v18409_v38, %v18607_v42 }
 0x4d3   : > { %v18489_v13 = vpop.f32.mrf.mxu1  ;;  %v12558_v55 = vadd.f32 %v14328_v11, %v12517_v15  ;;  %v12637_v18 = vadd.f32 %v14369_v17, %v12596_v37  ;;  %v18608_v37 = vld [vmem:[#allocation13_spill] sm:$0xff] }
 0x4d4   : > { %v18487_v12 = vpop.f32.mrf.mxu0 }
 0x4d5   : > { %v18497_v16 = vpop.f32.mrf.mxu1  ;;  %v12599_v23 = vadd.f32 %v14350_v14, %v12558_v55  ;;  %v12678_v48 = vadd.f32 %v14391_v19, %v12637_v18  ;;  %v18609_v55 = vld [vmem:[#allocation15_spill] sm:$0xff]  ;;  %v18610_v19 = vld [vmem:[#allocation16_spill] sm:$0xff]  ;;  %v14592_v45 = vadd.f32 %v18487_v12, %v18477_v9 }
 0x4d6   : > { %v14482_v14 = vadd.f32 %v18609_v55, %v18608_v37 }
 0x4d7   : > { %v12640_v57 = vadd.f32 %v14372_v20, %v12599_v23  ;;  %v12719_v60 = vadd.f32 %v14413_v25, %v12678_v48  ;;  %v18611_v20 = vld [vmem:[#allocation18_spill] sm:$0xff]  ;;  %v18612_v25 = vld [vmem:[#allocation17_spill] sm:$0xff]  ;;  %v18613_v48 = vld [vmem:[#allocation19_spill] sm:$0xff] }
 0x4d8   : > { %v14523_v23 = vadd.f32 %v18611_v20, %v18610_v19 }
 0x4d9   : > { %v12681_v29 = vadd.f32 %v14394_v22, %v12640_v57  ;;  %v12760_v33 = vadd.f32 %v14435_v26, %v12719_v60  ;;  %v14504_v57 = vadd.f32 %v18613_v48, %v18612_v25  ;;  %v18614_v26 = vld [vmem:[#allocation21_spill] sm:$0xff] }
 0x4da   : > { %v14545_v38 = vadd.f32 %v18431_v41, %v18614_v26 }
 0x4db   : > { %v12722_v47 = vadd.f32 %v14416_v28, %v12681_v29  ;;  %v12801_v4 = vadd.f32 %v14457_v62, %v12760_v33  ;;  %v18615_v29 = vld [vmem:[#allocation20_spill] sm:$0xff] }
 0x4dc   : > { %v14526_v39 = vadd.f32 %v18427_v58, %v18615_v29  ;;  %v14570_v58 = vadd.f32 %v18463_v1, %v18453_v52 }
 0x4dd   : > { %v12763_v8 = vadd.f32 %v14438_v30, %v12722_v47  ;;  %v12842_v15 = vadd.f32 %v14479_v6, %v12801_v4  ;;  %v14567_v47 = vadd.f32 %v18445_v51, %v18433_v44  ;;  %v14589_v4 = vadd.f32 %v18467_v50, %v18459_v61 }
 0x4de   : > { %v14611_v44 = vadd.f32 %v18479_v40, %v18469_v53 }
 0x4df   : > { %v12804_v17 = vadd.f32 %v14460_v36, %v12763_v8  ;;  %v12883_v18 = vadd.f32 %v14501_v43, %v12842_v15  ;;  %v14614_v43 = vadd.f32 %v18497_v16, %v18489_v13 }
 0x4e1   : > { %v12845_v60 = vadd.f32 %v14482_v14, %v12804_v17  ;;  %v12924_v27 = vadd.f32 %v14523_v23, %v12883_v18 }
 0x4e3   : > { %v12886_v28 = vadd.f32 %v14504_v57, %v12845_v60  ;;  %v12965_v33 = vadd.f32 %v14545_v38, %v12924_v27 }
 0x4e5   : > { %v12927_v30 = vadd.f32 %v14526_v39, %v12886_v28  ;;  %v13006_v5 = vadd.f32 %v14567_v47, %v12965_v33  ;;  %v14126_v47 = vld [vmem:[%s8095_s20] ss:$0 sm:$0xff] }
 0x4e7   : > { %v12968_v7 = vadd.f32 %v14548_v2, %v12927_v30  ;;  %v13047_v36 = vadd.f32 %v14589_v4, %v13006_v5 }
 0x4e9   : > { %v13009_v51 = vadd.f32 %v14570_v58, %v12968_v7  ;;  %v13088_v50 = vadd.f32 %v14611_v44, %v13047_v36 }
 0x4eb   : > { %v13050_v42 = vadd.f32 %v14592_v45, %v13009_v51 }
 0x4ed   : > { %v13091_v53 = vadd.f32 %v14614_v43, %v13050_v42 }
 0x4ee   : > { %v18493_v56 = vpop.f32.mrf.mxu0 }
 0x4ef   : > { %v18503_v46 = vpop.f32.mrf.mxu1 }
 0x4f0   : > { %v14632_v21 = vpop.f32.mrf.mxu0 }
 0x4f1   : > { %v14654_v59 = vpop.f32.mrf.mxu1  ;;  %v14633_v49 = vadd.f32 %v14632_v21, %v18493_v56 }
 0x4f2   : > { %v14634_v24 = vpop.f32.mrf.mxu0  ;;  %v14655_v1 = vadd.f32 %v14654_v59, %v18503_v46 }
 0x4f3   : > { %v14656_v31 = vpop.f32.mrf.mxu1  ;;  %v13129_v52 = vadd.f32 %v14633_v49, %v13088_v50 }
 0x4f4   : > { %v14635_v0 = vpop.f32.mrf.mxu0 }
 0x4f5   : > { %v14657_v35 = vpop.f32.mrf.mxu1  ;;  %v14636_v15 = vadd.f32 %v14635_v0, %v14634_v24  ;;  %v13170_v9 = vadd.f32 %v14655_v1, %v13129_v52 }
 0x4f6   : > { %v14658_v14 = vadd.f32 %v14657_v35, %v14656_v31 }
 0x4f7   : > { %v13132_v12 = vadd.f32 %v14636_v15, %v13091_v53 }
 0x4f9   : > { %v13173_v13 = vadd.f32 %v14658_v14, %v13132_v12 }
 0x50e   : > { %v14675_v32 = vpop.f32.mrf.mxu0 }
 0x50f   : > { %v14697_v11 = vpop.f32.mrf.mxu1 }
 0x510   : > { %v14676_v10 = vpop.f32.mrf.mxu0 }
 0x511   : > { %v14698_v22 = vpop.f32.mrf.mxu1  ;;  %v14677_v40 = vadd.f32 %v14676_v10, %v14675_v32 }
 0x512   : > { %v14678_v54 = vpop.f32.mrf.mxu0  ;;  %v14699_v18 = vadd.f32 %v14698_v22, %v14697_v11 }
 0x513   : > { %v14700_v62 = vpop.f32.mrf.mxu1  ;;  %v13211_v21 = vadd.f32 %v14677_v40, %v13170_v9 }
 0x514   : > { %v14679_v63 = vpop.f32.mrf.mxu0 }
 0x515   : > { %v14701_v41 = vpop.f32.mrf.mxu1  ;;  %v14680_v19 = vadd.f32 %v14679_v63, %v14678_v54  ;;  %v13252_v25 = vadd.f32 %v14699_v18, %v13211_v21 }
 0x516   : > { %v14702_v24 = vadd.f32 %v14701_v41, %v14700_v62 }
 0x517   : > { %v13214_v46 = vadd.f32 %v14680_v19, %v13173_v13 }
 0x519   : > { %v13255_v31 = vadd.f32 %v14702_v24, %v13214_v46 }
 0x52e   : > { %v14719_v3 = vpop.f32.mrf.mxu0 }
 0x52f   : > { %v14741_v34 = vpop.f32.mrf.mxu1 }
 0x530   : > { %v14720_v6 = vpop.f32.mrf.mxu0 }
 0x531   : > { %v14742_v61 = vpop.f32.mrf.mxu1  ;;  %v14721_v16 = vadd.f32 %v14720_v6, %v14719_v3 }
 0x532   : > { %v14722_v8 = vpop.f32.mrf.mxu0  ;;  %v14743_v10 = vadd.f32 %v14742_v61, %v14741_v34 }
 0x533   : > { %v14744_v37 = vpop.f32.mrf.mxu1  ;;  %v13293_v32 = vadd.f32 %v14721_v16, %v13252_v25 }
 0x534   : > { %v14723_v17 = vpop.f32.mrf.mxu0 }
 0x535   : > { %v14745_v56 = vpop.f32.mrf.mxu1  ;;  %v14724_v48 = vadd.f32 %v14723_v17, %v14722_v8  ;;  %v13334_v11 = vadd.f32 %v14743_v10, %v13293_v32 }
 0x536   : > { %v14746_v22 = vadd.f32 %v14745_v56, %v14744_v37 }
 0x537   : > { %v13296_v54 = vadd.f32 %v14724_v48, %v13255_v31 }
 0x539   : > { %v13337_v29 = vadd.f32 %v14746_v22, %v13296_v54 }
 0x54e   : > { %v14763_v55 = vpop.f32.mrf.mxu0 }
 0x54f   : > { %v14785_v23 = vpop.f32.mrf.mxu1 }
 0x550   : > { %v14764_v20 = vpop.f32.mrf.mxu0 }
 0x551   : > { %v14786_v0 = vpop.f32.mrf.mxu1  ;;  %v14765_v35 = vadd.f32 %v14764_v20, %v14763_v55 }
 0x552   : > { %v14766_v59 = vpop.f32.mrf.mxu0  ;;  %v14787_v38 = vadd.f32 %v14786_v0, %v14785_v23 }
 0x553   : > { %v14788_v60 = vpop.f32.mrf.mxu1  ;;  %v13375_v26 = vadd.f32 %v14765_v35, %v13334_v11 }
 0x554   : > { %v14767_v57 = vpop.f32.mrf.mxu0 }
 0x555   : > { %v14768_v27 = vadd.f32 %v14767_v57, %v14766_v59  ;;  %v14789_v28 = vpop.f32.mrf.mxu1  ;;  %v13416_v62 = vadd.f32 %v14787_v38, %v13375_v26 }
 0x556   : > { %v14790_v63 = vadd.f32 %v14789_v28, %v14788_v60 }
 0x557   : > { %v13378_v39 = vadd.f32 %v14768_v27, %v13337_v29 }
 0x559   : > { %v13419_v4 = vadd.f32 %v14790_v63, %v13378_v39 }
 0x56e   : > { %v13456_v33 = vpop.f32.mrf.mxu0 }
 0x56f   : > { %v13457_v2 = vadd.f32 %v13456_v33, %v13416_v62 }
 0x570   : > { %v14818_v3 = vpop.f32.mrf.mxu0 }
 0x571   : > { %v13479_v30 = vadd.f32 %v14126_v47, %v13457_v2 }
 0x572   : > { %v13459_v41 = vpop.f32.mrf.mxu0 }
 0x573   : > { %v13481_v5 = vmax.f32 %v13479_v30, 0.0  ;;  %v13460_v7 = vadd.f32 %v13459_v41, %v13419_v4 }
 0x574   : > { %v14819_v58 = vpop.f32.mrf.mxu0 }
 0x575   : > { %13483 = vst [vmem:[%s8085_s24] sm:$0xff] %v13481_v5  ;;  %v13480_v6 = vadd.f32 %v14126_v47, %v13460_v7  ;;  %13491 = sbr.rel (!%p15449_p6) target bundleno = 1410 (0x582), region = 96 }
 0x577   : > { %v13482_v34 = vmax.f32 %v13480_v6, 0.0 }
 0x579   : > { %13484 = vst [vmem:[%s8085_s24 + $0x8] sm:$0xff] %v13482_v34 }
 0x57c   : > { %v13524_v36 = vld [vmem:[%s8085_s24] sm:$0xff] }
 0x57d   : > { %13525 = vst [vmem:[%s13493_s26] sm:$0xff] %v13524_v36 }
 0x580   : > { %v13526_v44 = vld [vmem:[%s8085_s24 + $0x8] sm:$0xff] }
 0x581   : > { %13527 = vst [vmem:[%s13493_s26 + $0x20] sm:$0xff] %v13526_v44 }
 0x582 PF: > { %s13_s16 = sadd.s32 1, %s15390_s16   ;;  %s18616_s12 = smov %s15378_s13 }
 0x583   : > { %p10_p12 = scmp.ge.s32.totalorder %s13_s16, 6   ;;  %s18617_s13 = smov %s15454_s22 }
 0x584   : > { %s18618_s14 = smov %s15386_s15  ;;  %s18619_s15 = smov %s18621_s17 }
 0x585   :  { %12 = sbr.rel (!%p10_p12) target bundleno = 3 (0x3), region = 175 }

</bundles_post_ra>
